<compile_context>
chip_gen: v6e
topology: v6e:2x2x1
jax: 0.10.0
libtpu: 0.0.40
codegen_flags: <defaults>
</compile_context>

<pallas_src>
import jax
import jax.numpy as jnp
from jax.experimental import pallas as pl
from jax.experimental.pallas import tpu as pltpu

# --- model constants (from the PyTorch module) ---
C1_OUT = 2
K = 5
STRIDE = 5
L_OUT = 1314                  # conv output length: (6570 - 5)//5 + 1
HIDDEN = C1_OUT * L_OUT       # 2628
H1 = 1000
H2 = 500
LATENT = 200
DEC_OUT = 1314
EPS = 1e-5                    # BatchNorm1d default eps
SLOPE = 0.01                  # LeakyReLU default negative slope
IDX_START = 40
INPUT_SHAPE = 6570


def _bn(x, gamma, beta):
    # Training-mode BatchNorm1d: batch statistics, biased variance (f32, VPU path).
    mu = jnp.mean(x, axis=0, keepdims=True)
    var = jnp.mean((x - mu) * (x - mu), axis=0, keepdims=True)
    inv = jax.lax.rsqrt(var + EPS)
    return (x - mu) * inv * gamma + beta


def _leaky(x):
    return jnp.where(x > 0, x, SLOPE * x)


def blast_kernel(xr_ref, cw_ref, cb_ref,
                 vecA_ref, vecB_ref, vecC_ref, vecD_ref,
                 w1a_ref, w1b_ref, w2_ref, w3_ref, wd_ref,
                 lat_ref, out_ref):
    # ---- Conv1d(1, 2, kernel=5, stride=5, padding=0) ----
    # 12 SMEM scalars hoisted out of the FMA chain; taps upcast to f32 (input shipped bf16).
    cw0 = [cw_ref[0, i] for i in range(K)]
    cw1 = [cw_ref[1, i] for i in range(K)]
    taps = [xr_ref[i].astype(jnp.float32) for i in range(K)]   # each (B, 1314), lane-dense

    z0 = cw0[0] * taps[0]
    z1 = cw1[0] * taps[0]
    for i in range(1, K):
        z0 = z0 + cw0[i] * taps[i]
        z1 = z1 + cw1[i] * taps[i]
    z0 = z0 + cb_ref[0, 0]    # channel 0 == flattened features [0:1314]
    z1 = z1 + cb_ref[0, 1]    # channel 1 == flattened features [1314:2628]

    # ---- unpack consolidated parameter slabs (single DMA per width class) ----
    vA = vecA_ref[...]                                          # (5, 1314)
    g0a, b0a = vA[0:1, :], vA[1:2, :]
    g0b, b0b = vA[2:3, :], vA[3:4, :]
    bd = vA[4:5, :]
    vB = vecB_ref[...]                                          # (3, 1000)
    b1, g1, be1 = vB[0:1, :], vB[1:2, :], vB[2:3, :]
    vC = vecC_ref[...]                                          # (3, 500)
    b2, g2, be2 = vC[0:1, :], vC[1:2, :], vC[2:3, :]
    vD = vecD_ref[...]                                          # (3, 200)
    b3, gl, bel = vD[0:1, :], vD[1:2, :], vD[2:3, :]

    # ---- BatchNorm1d(2628), per channel slab (per-feature batch stats -> splittable) ----
    h0 = _bn(z0, g0a, b0a)
    h1 = _bn(z1, g0b, b0b)

    # ---- Linear(2628 -> 1000), bf16 MXU with f32 accumulation ----
    h = (jnp.dot(h0.astype(jnp.bfloat16), w1a_ref[...],
                 preferred_element_type=jnp.float32)
         + jnp.dot(h1.astype(jnp.bfloat16), w1b_ref[...],
                   preferred_element_type=jnp.float32)
         + b1)
    h = _leaky(_bn(h, g1, be1))

    # ---- Linear(1000 -> 500) ----
    h = jnp.dot(h.astype(jnp.bfloat16), w2_ref[...],
                preferred_element_type=jnp.float32) + b2
    h = _leaky(_bn(h, g2, be2))

    # ---- Linear(500 -> 200) -> latent ----
    lat = jnp.dot(h.astype(jnp.bfloat16), w3_ref[...],
                  preferred_element_type=jnp.float32) + b3
    lat_ref[...] = lat

    # ---- Decoder: BatchNorm1d(200) + Linear(200 -> 1314) ----
    z = _bn(lat, gl, bel)
    out_ref[...] = jnp.dot(z.astype(jnp.bfloat16), wd_ref[...],
                           preferred_element_type=jnp.float32) + bd


def init_params(key):
    ks = jax.random.split(key, 24)

    def unif(k, shape, fan_in):
        bound = 1.0 / float(fan_in) ** 0.5
        return jax.random.uniform(k, shape, jnp.float32, -bound, bound)

    def bn_params(kg, kb, n):
        gamma = 1.0 + 0.1 * jax.random.normal(kg, (n,), jnp.float32)
        beta = 0.1 * jax.random.normal(kb, (n,), jnp.float32)
        return gamma, beta

    p = {}
    p["cw"] = unif(ks[0], (C1_OUT, K), K)            # Conv1d weight (out_ch, k), in_ch=1
    p["cb"] = unif(ks[1], (C1_OUT,), K)
    p["g0"], p["be0"] = bn_params(ks[2], ks[3], HIDDEN)
    p["w1"] = unif(ks[4], (HIDDEN, H1), HIDDEN)      # stored as (in, out) == torch W.T
    p["b1"] = unif(ks[5], (H1,), HIDDEN)
    p["g1"], p["be1"] = bn_params(ks[6], ks[7], H1)
    p["w2"] = unif(ks[8], (H1, H2), H1)
    p["b2"] = unif(ks[9], (H2,), H1)
    p["g2"], p["be2"] = bn_params(ks[10], ks[11], H2)
    p["w3"] = unif(ks[12], (H2, LATENT), H2)
    p["b3"] = unif(ks[13], (LATENT,), H2)
    p["gl"], p["bel"] = bn_params(ks[14], ks[15], LATENT)
    p["wd"] = unif(ks[16], (LATENT, DEC_OUT), LATENT)
    p["bd"] = unif(ks[17], (DEC_OUT,), LATENT)
    return p


def blast_forward(batch0, batch1, params):
    # ---- glue: slicing / reshape / dtype plumbing (plain JAX) ----
    x = batch0[:, IDX_START:IDX_START + INPUT_SHAPE]               # (B, 6570)
    B = x.shape[0]

    # xr[k, b, t] = x[b, 5*t + k]: each conv tap is a contiguous lane-dense slab.
    xr = x.reshape(B, L_OUT, K).transpose(2, 0, 1).astype(jnp.bfloat16)  # (5, B, 1314)

    cw = params["cw"].astype(jnp.float32)                          # (2, 5)  -> SMEM scalars
    cb = params["cb"].reshape(1, C1_OUT).astype(jnp.float32)       # (1, 2)  -> SMEM scalars

    f32 = lambda v: v.astype(jnp.float32)
    # Consolidated parameter slabs, grouped by feature width (one DMA each).
    vecA = jnp.stack([f32(params["g0"][:L_OUT]), f32(params["be0"][:L_OUT]),
                      f32(params["g0"][L_OUT:]), f32(params["be0"][L_OUT:]),
                      f32(params["bd"])], axis=0)                  # (5, 1314)
    vecB = jnp.stack([f32(params["b1"]), f32(params["g1"]), f32(params["be1"])], 0)   # (3, 1000)
    vecC = jnp.stack([f32(params["b2"]), f32(params["g2"]), f32(params["be2"])], 0)   # (3, 500)
    vecD = jnp.stack([f32(params["b3"]), f32(params["gl"]), f32(params["bel"])], 0)   # (3, 200)

    w1a = params["w1"][:L_OUT].astype(jnp.bfloat16)                # (1314, 1000)
    w1b = params["w1"][L_OUT:].astype(jnp.bfloat16)                # (1314, 1000)
    w2 = params["w2"].astype(jnp.bfloat16)
    w3 = params["w3"].astype(jnp.bfloat16)
    wd = params["wd"].astype(jnp.bfloat16)

    smem = pl.BlockSpec(memory_space=pltpu.MemorySpace.SMEM)

    def full_block(shape):                                         # full-dim block (exempt
        return pl.BlockSpec(shape, lambda *_: (0,) * len(shape))   # from 8/128 divisibility)

    grid_spec = pltpu.PrefetchScalarGridSpec(
        num_scalar_prefetch=0,
        grid=(1,),                                                 # single step: no reduction
        in_specs=[
            full_block((K, B, L_OUT)),                             # xr (bf16 taps)
            smem, smem,                                            # cw, cb
            full_block((5, L_OUT)),                                # vecA: g0a,b0a,g0b,b0b,bd
            full_block((3, H1)),                                   # vecB: b1,g1,be1
            full_block((3, H2)),                                   # vecC: b2,g2,be2
            full_block((3, LATENT)),                               # vecD: b3,gl,bel
            full_block((L_OUT, H1)),                               # w1a (unpadded)
            full_block((L_OUT, H1)),                               # w1b (unpadded)
            full_block((H1, H2)),                                  # w2
            full_block((H2, LATENT)),                              # w3
            full_block((LATENT, DEC_OUT)),                         # wd
        ],
        out_specs=(full_block((B, LATENT)), full_block((B, DEC_OUT))),
    )

    lat, out = pl.pallas_call(
        blast_kernel,
        out_shape=(jax.ShapeDtypeStruct((B, LATENT), jnp.float32),
                   jax.ShapeDtypeStruct((B, DEC_OUT), jnp.float32)),
        grid_spec=grid_spec,
        compiler_params=pltpu.CompilerParams(
            dimension_semantics=("arbitrary",),
            vmem_limit_bytes=32 * 1024 * 1024),                    # > v5e's 16 MiB default,
    )(xr, cw, cb, vecA, vecB, vecC, vecD, w1a, w1b, w2, w3, wd)    #   <= v7x's 64 MiB physical

    # TODO(synk): MaxTopkSVM criterion is not provided in the source module, so the
    # loss term `criterion(out, argmax(b_labels))` is not implemented here.
    _labels = jnp.argmax(batch1, axis=1)  # kept to mirror the original glue
    return lat, out


def blast_reference(batch0, batch1, params):
    # Pure-JAX f32 reference reproducing the PyTorch (training-mode) forward exactly.
    x = batch0[:, IDX_START:IDX_START + INPUT_SHAPE]
    B = x.shape[0]
    xr = x.reshape(B, L_OUT, K)                                    # xr[b,t,k] = x[b,5t+k]
    conv = jnp.einsum("btk,ck->bct", xr, params["cw"]) + params["cb"][None, :, None]
    h = conv.reshape(B, HIDDEN)                                    # flatten(1): c*1314+t

    def bn(v, g, b):
        mu = v.mean(0, keepdims=True)
        var = ((v - mu) ** 2).mean(0, keepdims=True)
        return (v - mu) / jnp.sqrt(var + EPS) * g + b

    def leaky(v):
        return jnp.where(v > 0, v, SLOPE * v)

    h = bn(h, params["g0"], params["be0"])
    h = h @ params["w1"] + params["b1"]
    h = leaky(bn(h, params["g1"], params["be1"]))
    h = h @ params["w2"] + params["b2"]
    h = leaky(bn(h, params["g2"], params["be2"]))
    lat = h @ params["w3"] + params["b3"]
    z = bn(lat, params["gl"], params["bel"])
    out = z @ params["wd"] + params["bd"]
    return lat, out


if __name__ == "__main__":
    B = 8
    key = jax.random.PRNGKey(0)
    k_in, k_lab, k_par = jax.random.split(key, 3)
    batch0 = jax.random.normal(k_in, (B, 6700), jnp.float32)        # raw inputs (>= 6610 cols)
    batch1 = jax.random.uniform(k_lab, (B, DEC_OUT), jnp.float32)   # one-hot-ish labels
    params = init_params(k_par)

    lat, out = jax.block_until_ready(blast_forward(batch0, batch1, params))
    lat_ref, out_ref = jax.block_until_ready(blast_reference(batch0, batch1, params))

    assert lat.shape == (B, LATENT) and out.shape == (B, DEC_OUT)
    assert bool(jnp.all(jnp.isfinite(lat))) and bool(jnp.all(jnp.isfinite(out)))
    assert bool(jnp.allclose(lat, lat_ref, atol=0.15, rtol=0.15)), \
        float(jnp.max(jnp.abs(lat - lat_ref)))
    assert bool(jnp.allclose(out, out_ref, atol=0.15, rtol=0.15)), \
        float(jnp.max(jnp.abs(out - out_ref)))
    print("KERNEL_OK")
</pallas_src>

<mosaic_0001>
module attributes {stable_mosaic.version = 11 : i64} {
  func.func @blast_kernel(%arg0: i32, %arg1: memref<5x8x1314xbf16, #tpu.memory_space<vmem>>, %arg2: memref<2x5xf32, #tpu.memory_space<smem>>, %arg3: memref<1x2xf32, #tpu.memory_space<smem>>, %arg4: memref<5x1314xf32, #tpu.memory_space<vmem>>, %arg5: memref<3x1000xf32, #tpu.memory_space<vmem>>, %arg6: memref<3x500xf32, #tpu.memory_space<vmem>>, %arg7: memref<3x200xf32, #tpu.memory_space<vmem>>, %arg8: memref<1314x1000xbf16, #tpu.memory_space<vmem>>, %arg9: memref<1314x1000xbf16, #tpu.memory_space<vmem>>, %arg10: memref<1000x500xbf16, #tpu.memory_space<vmem>>, %arg11: memref<500x200xbf16, #tpu.memory_space<vmem>>, %arg12: memref<200x1314xbf16, #tpu.memory_space<vmem>>, %arg13: memref<8x200xf32, #tpu.memory_space<vmem>>, %arg14: memref<8x1314xf32, #tpu.memory_space<vmem>>) attributes {dimension_semantics = [#tpu.dimension_semantics<arbitrary>], iteration_bounds = array<i64: 1>, scalar_prefetch = 0 : i64, scratch_operands = 0 : i64, tpu.core_type = #tpu.core_type<tc>, window_params = [{pipeline_mode = #tpu.pipeline_mode<synchronous>, transform_indices = @transform_0, window_bounds = array<i64: 5, 8, 1314>}, {transform_indices = @transform_1, window_bounds = array<i64: 2, 5>}, {transform_indices = @transform_2, window_bounds = array<i64: 1, 2>}, {pipeline_mode = #tpu.pipeline_mode<synchronous>, transform_indices = @transform_3, window_bounds = array<i64: 5, 1314>}, {pipeline_mode = #tpu.pipeline_mode<synchronous>, transform_indices = @transform_4, window_bounds = array<i64: 3, 1000>}, {pipeline_mode = #tpu.pipeline_mode<synchronous>, transform_indices = @transform_5, window_bounds = array<i64: 3, 500>}, {pipeline_mode = #tpu.pipeline_mode<synchronous>, transform_indices = @transform_6, window_bounds = array<i64: 3, 200>}, {pipeline_mode = #tpu.pipeline_mode<synchronous>, transform_indices = @transform_7, window_bounds = array<i64: 1314, 1000>}, {pipeline_mode = #tpu.pipeline_mode<synchronous>, transform_indices = @transform_8, window_bounds = array<i64: 1314, 1000>}, {pipeline_mode = #tpu.pipeline_mode<synchronous>, transform_indices = @transform_9, window_bounds = array<i64: 1000, 500>}, {pipeline_mode = #tpu.pipeline_mode<synchronous>, transform_indices = @transform_10, window_bounds = array<i64: 500, 200>}, {pipeline_mode = #tpu.pipeline_mode<synchronous>, transform_indices = @transform_11, window_bounds = array<i64: 200, 1314>}, {pipeline_mode = #tpu.pipeline_mode<synchronous>, transform_indices = @transform_12, window_bounds = array<i64: 8, 200>}, {pipeline_mode = #tpu.pipeline_mode<synchronous>, transform_indices = @transform_13, window_bounds = array<i64: 8, 1314>}]} {
    %c0 = arith.constant 0 : index
    %c0_0 = arith.constant 0 : index
    %0 = memref.load %arg2[%c0, %c0_0] : memref<2x5xf32, #tpu.memory_space<smem>>
    %c0_1 = arith.constant 0 : index
    %c1 = arith.constant 1 : index
    %1 = memref.load %arg2[%c0_1, %c1] : memref<2x5xf32, #tpu.memory_space<smem>>
    %c0_2 = arith.constant 0 : index
    %c2 = arith.constant 2 : index
    %2 = memref.load %arg2[%c0_2, %c2] : memref<2x5xf32, #tpu.memory_space<smem>>
    %c0_3 = arith.constant 0 : index
    %c3 = arith.constant 3 : index
    %3 = memref.load %arg2[%c0_3, %c3] : memref<2x5xf32, #tpu.memory_space<smem>>
    %c0_4 = arith.constant 0 : index
    %c4 = arith.constant 4 : index
    %4 = memref.load %arg2[%c0_4, %c4] : memref<2x5xf32, #tpu.memory_space<smem>>
    %c1_5 = arith.constant 1 : index
    %c0_6 = arith.constant 0 : index
    %5 = memref.load %arg2[%c1_5, %c0_6] : memref<2x5xf32, #tpu.memory_space<smem>>
    %c1_7 = arith.constant 1 : index
    %c1_8 = arith.constant 1 : index
    %6 = memref.load %arg2[%c1_7, %c1_8] : memref<2x5xf32, #tpu.memory_space<smem>>
    %c1_9 = arith.constant 1 : index
    %c2_10 = arith.constant 2 : index
    %7 = memref.load %arg2[%c1_9, %c2_10] : memref<2x5xf32, #tpu.memory_space<smem>>
    %c1_11 = arith.constant 1 : index
    %c3_12 = arith.constant 3 : index
    %8 = memref.load %arg2[%c1_11, %c3_12] : memref<2x5xf32, #tpu.memory_space<smem>>
    %c1_13 = arith.constant 1 : index
    %c4_14 = arith.constant 4 : index
    %9 = memref.load %arg2[%c1_13, %c4_14] : memref<2x5xf32, #tpu.memory_space<smem>>
    %c0_15 = arith.constant 0 : index
    %c0_16 = arith.constant 0 : index
    %c0_17 = arith.constant 0 : index
    %10 = vector.load %arg1[%c0_15, %c0_16, %c0_17] : memref<5x8x1314xbf16, #tpu.memory_space<vmem>>, vector<1x8x1314xbf16>
    %11 = vector.shape_cast %10 : vector<1x8x1314xbf16> to vector<8x1314xbf16>
    %12 = arith.extf %11 : vector<8x1314xbf16> to vector<8x1314xf32>
    %c1_18 = arith.constant 1 : index
    %c0_19 = arith.constant 0 : index
    %c0_20 = arith.constant 0 : index
    %13 = vector.load %arg1[%c1_18, %c0_19, %c0_20] : memref<5x8x1314xbf16, #tpu.memory_space<vmem>>, vector<1x8x1314xbf16>
    %14 = vector.shape_cast %13 : vector<1x8x1314xbf16> to vector<8x1314xbf16>
    %15 = arith.extf %14 : vector<8x1314xbf16> to vector<8x1314xf32>
    %c2_21 = arith.constant 2 : index
    %c0_22 = arith.constant 0 : index
    %c0_23 = arith.constant 0 : index
    %16 = vector.load %arg1[%c2_21, %c0_22, %c0_23] : memref<5x8x1314xbf16, #tpu.memory_space<vmem>>, vector<1x8x1314xbf16>
    %17 = vector.shape_cast %16 : vector<1x8x1314xbf16> to vector<8x1314xbf16>
    %18 = arith.extf %17 : vector<8x1314xbf16> to vector<8x1314xf32>
    %c3_24 = arith.constant 3 : index
    %c0_25 = arith.constant 0 : index
    %c0_26 = arith.constant 0 : index
    %19 = vector.load %arg1[%c3_24, %c0_25, %c0_26] : memref<5x8x1314xbf16, #tpu.memory_space<vmem>>, vector<1x8x1314xbf16>
    %20 = vector.shape_cast %19 : vector<1x8x1314xbf16> to vector<8x1314xbf16>
    %21 = arith.extf %20 : vector<8x1314xbf16> to vector<8x1314xf32>
    %c4_27 = arith.constant 4 : index
    %c0_28 = arith.constant 0 : index
    %c0_29 = arith.constant 0 : index
    %22 = vector.load %arg1[%c4_27, %c0_28, %c0_29] : memref<5x8x1314xbf16, #tpu.memory_space<vmem>>, vector<1x8x1314xbf16>
    %23 = vector.shape_cast %22 : vector<1x8x1314xbf16> to vector<8x1314xbf16>
    %24 = arith.extf %23 : vector<8x1314xbf16> to vector<8x1314xf32>
    %25 = vector.broadcast %0 : f32 to vector<8x1314xf32>
    %26 = arith.mulf %25, %12 : vector<8x1314xf32>
    %27 = vector.broadcast %5 : f32 to vector<8x1314xf32>
    %28 = arith.mulf %27, %12 : vector<8x1314xf32>
    %29 = vector.broadcast %1 : f32 to vector<8x1314xf32>
    %30 = arith.mulf %29, %15 : vector<8x1314xf32>
    %31 = arith.addf %26, %30 : vector<8x1314xf32>
    %32 = vector.broadcast %6 : f32 to vector<8x1314xf32>
    %33 = arith.mulf %32, %15 : vector<8x1314xf32>
    %34 = arith.addf %28, %33 : vector<8x1314xf32>
    %35 = vector.broadcast %2 : f32 to vector<8x1314xf32>
    %36 = arith.mulf %35, %18 : vector<8x1314xf32>
    %37 = arith.addf %31, %36 : vector<8x1314xf32>
    %38 = vector.broadcast %7 : f32 to vector<8x1314xf32>
    %39 = arith.mulf %38, %18 : vector<8x1314xf32>
    %40 = arith.addf %34, %39 : vector<8x1314xf32>
    %41 = vector.broadcast %3 : f32 to vector<8x1314xf32>
    %42 = arith.mulf %41, %21 : vector<8x1314xf32>
    %43 = arith.addf %37, %42 : vector<8x1314xf32>
    %44 = vector.broadcast %8 : f32 to vector<8x1314xf32>
    %45 = arith.mulf %44, %21 : vector<8x1314xf32>
    %46 = arith.addf %40, %45 : vector<8x1314xf32>
    %47 = vector.broadcast %4 : f32 to vector<8x1314xf32>
    %48 = arith.mulf %47, %24 : vector<8x1314xf32>
    %49 = arith.addf %43, %48 : vector<8x1314xf32>
    %50 = vector.broadcast %9 : f32 to vector<8x1314xf32>
    %51 = arith.mulf %50, %24 : vector<8x1314xf32>
    %52 = arith.addf %46, %51 : vector<8x1314xf32>
    %c0_30 = arith.constant 0 : index
    %c0_31 = arith.constant 0 : index
    %53 = memref.load %arg3[%c0_30, %c0_31] : memref<1x2xf32, #tpu.memory_space<smem>>
    %54 = vector.broadcast %53 : f32 to vector<8x1314xf32>
    %55 = arith.addf %49, %54 : vector<8x1314xf32>
    %c0_32 = arith.constant 0 : index
    %c1_33 = arith.constant 1 : index
    %56 = memref.load %arg3[%c0_32, %c1_33] : memref<1x2xf32, #tpu.memory_space<smem>>
    %57 = vector.broadcast %56 : f32 to vector<8x1314xf32>
    %58 = arith.addf %52, %57 : vector<8x1314xf32>
    %c0_34 = arith.constant 0 : index
    %c0_35 = arith.constant 0 : index
    %59 = vector.load %arg4[%c0_34, %c0_35] : memref<5x1314xf32, #tpu.memory_space<vmem>>, vector<5x1314xf32>
    %60 = vector.extract_strided_slice %59 {offsets = [0, 0], sizes = [1, 1314], strides = [1, 1]} : vector<5x1314xf32> to vector<1x1314xf32>
    %61 = vector.extract_strided_slice %59 {offsets = [1, 0], sizes = [1, 1314], strides = [1, 1]} : vector<5x1314xf32> to vector<1x1314xf32>
    %62 = vector.extract_strided_slice %59 {offsets = [2, 0], sizes = [1, 1314], strides = [1, 1]} : vector<5x1314xf32> to vector<1x1314xf32>
    %63 = vector.extract_strided_slice %59 {offsets = [3, 0], sizes = [1, 1314], strides = [1, 1]} : vector<5x1314xf32> to vector<1x1314xf32>
    %64 = vector.extract_strided_slice %59 {offsets = [4, 0], sizes = [1, 1314], strides = [1, 1]} : vector<5x1314xf32> to vector<1x1314xf32>
    %c0_36 = arith.constant 0 : index
    %c0_37 = arith.constant 0 : index
    %65 = vector.load %arg5[%c0_36, %c0_37] : memref<3x1000xf32, #tpu.memory_space<vmem>>, vector<3x1000xf32>
    %66 = vector.extract_strided_slice %65 {offsets = [0, 0], sizes = [1, 1000], strides = [1, 1]} : vector<3x1000xf32> to vector<1x1000xf32>
    %67 = vector.extract_strided_slice %65 {offsets = [1, 0], sizes = [1, 1000], strides = [1, 1]} : vector<3x1000xf32> to vector<1x1000xf32>
    %68 = vector.extract_strided_slice %65 {offsets = [2, 0], sizes = [1, 1000], strides = [1, 1]} : vector<3x1000xf32> to vector<1x1000xf32>
    %c0_38 = arith.constant 0 : index
    %c0_39 = arith.constant 0 : index
    %69 = vector.load %arg6[%c0_38, %c0_39] : memref<3x500xf32, #tpu.memory_space<vmem>>, vector<3x500xf32>
    %70 = vector.extract_strided_slice %69 {offsets = [0, 0], sizes = [1, 500], strides = [1, 1]} : vector<3x500xf32> to vector<1x500xf32>
    %71 = vector.extract_strided_slice %69 {offsets = [1, 0], sizes = [1, 500], strides = [1, 1]} : vector<3x500xf32> to vector<1x500xf32>
    %72 = vector.extract_strided_slice %69 {offsets = [2, 0], sizes = [1, 500], strides = [1, 1]} : vector<3x500xf32> to vector<1x500xf32>
    %c0_40 = arith.constant 0 : index
    %c0_41 = arith.constant 0 : index
    %73 = vector.load %arg7[%c0_40, %c0_41] : memref<3x200xf32, #tpu.memory_space<vmem>>, vector<3x200xf32>
    %74 = vector.extract_strided_slice %73 {offsets = [0, 0], sizes = [1, 200], strides = [1, 1]} : vector<3x200xf32> to vector<1x200xf32>
    %75 = vector.extract_strided_slice %73 {offsets = [1, 0], sizes = [1, 200], strides = [1, 1]} : vector<3x200xf32> to vector<1x200xf32>
    %76 = vector.extract_strided_slice %73 {offsets = [2, 0], sizes = [1, 200], strides = [1, 1]} : vector<3x200xf32> to vector<1x200xf32>
    %cst = arith.constant dense<0.000000e+00> : vector<1314xf32>
    %77 = vector.multi_reduction <add>, %55, %cst [0] : vector<8x1314xf32> to vector<1314xf32>
    %78 = vector.shape_cast %77 : vector<1314xf32> to vector<1x1314xf32>
    %cst_42 = arith.constant 8.000000e+00 : f32
    %79 = vector.broadcast %cst_42 : f32 to vector<1x1314xf32>
    %80 = arith.divf %78, %79 : vector<1x1314xf32>
    %81 = vector.broadcast %80 : vector<1x1314xf32> to vector<8x1314xf32>
    %82 = arith.subf %55, %81 : vector<8x1314xf32>
    %83 = vector.broadcast %80 : vector<1x1314xf32> to vector<8x1314xf32>
    %84 = arith.subf %55, %83 : vector<8x1314xf32>
    %85 = arith.mulf %82, %84 : vector<8x1314xf32>
    %cst_43 = arith.constant dense<0.000000e+00> : vector<1314xf32>
    %86 = vector.multi_reduction <add>, %85, %cst_43 [0] : vector<8x1314xf32> to vector<1314xf32>
    %87 = vector.shape_cast %86 : vector<1314xf32> to vector<1x1314xf32>
    %cst_44 = arith.constant 8.000000e+00 : f32
    %88 = vector.broadcast %cst_44 : f32 to vector<1x1314xf32>
    %89 = arith.divf %87, %88 : vector<1x1314xf32>
    %cst_45 = arith.constant 9.99999974E-6 : f32
    %90 = vector.broadcast %cst_45 : f32 to vector<1x1314xf32>
    %91 = arith.addf %89, %90 : vector<1x1314xf32>
    %92 = math.rsqrt %91 : vector<1x1314xf32>
    %93 = vector.broadcast %80 : vector<1x1314xf32> to vector<8x1314xf32>
    %94 = arith.subf %55, %93 : vector<8x1314xf32>
    %95 = vector.broadcast %92 : vector<1x1314xf32> to vector<8x1314xf32>
    %96 = arith.mulf %94, %95 : vector<8x1314xf32>
    %97 = vector.broadcast %60 : vector<1x1314xf32> to vector<8x1314xf32>
    %98 = arith.mulf %96, %97 : vector<8x1314xf32>
    %99 = vector.broadcast %61 : vector<1x1314xf32> to vector<8x1314xf32>
    %100 = arith.addf %98, %99 : vector<8x1314xf32>
    %cst_46 = arith.constant dense<0.000000e+00> : vector<1314xf32>
    %101 = vector.multi_reduction <add>, %58, %cst_46 [0] : vector<8x1314xf32> to vector<1314xf32>
    %102 = vector.shape_cast %101 : vector<1314xf32> to vector<1x1314xf32>
    %cst_47 = arith.constant 8.000000e+00 : f32
    %103 = vector.broadcast %cst_47 : f32 to vector<1x1314xf32>
    %104 = arith.divf %102, %103 : vector<1x1314xf32>
    %105 = vector.broadcast %104 : vector<1x1314xf32> to vector<8x1314xf32>
    %106 = arith.subf %58, %105 : vector<8x1314xf32>
    %107 = vector.broadcast %104 : vector<1x1314xf32> to vector<8x1314xf32>
    %108 = arith.subf %58, %107 : vector<8x1314xf32>
    %109 = arith.mulf %106, %108 : vector<8x1314xf32>
    %cst_48 = arith.constant dense<0.000000e+00> : vector<1314xf32>
    %110 = vector.multi_reduction <add>, %109, %cst_48 [0] : vector<8x1314xf32> to vector<1314xf32>
    %111 = vector.shape_cast %110 : vector<1314xf32> to vector<1x1314xf32>
    %cst_49 = arith.constant 8.000000e+00 : f32
    %112 = vector.broadcast %cst_49 : f32 to vector<1x1314xf32>
    %113 = arith.divf %111, %112 : vector<1x1314xf32>
    %cst_50 = arith.constant 9.99999974E-6 : f32
    %114 = vector.broadcast %cst_50 : f32 to vector<1x1314xf32>
    %115 = arith.addf %113, %114 : vector<1x1314xf32>
    %116 = math.rsqrt %115 : vector<1x1314xf32>
    %117 = vector.broadcast %104 : vector<1x1314xf32> to vector<8x1314xf32>
    %118 = arith.subf %58, %117 : vector<8x1314xf32>
    %119 = vector.broadcast %116 : vector<1x1314xf32> to vector<8x1314xf32>
    %120 = arith.mulf %118, %119 : vector<8x1314xf32>
    %121 = vector.broadcast %62 : vector<1x1314xf32> to vector<8x1314xf32>
    %122 = arith.mulf %120, %121 : vector<8x1314xf32>
    %123 = vector.broadcast %63 : vector<1x1314xf32> to vector<8x1314xf32>
    %124 = arith.addf %122, %123 : vector<8x1314xf32>
    %125 = arith.truncf %100 : vector<8x1314xf32> to vector<8x1314xbf16>
    %c0_51 = arith.constant 0 : index
    %c0_52 = arith.constant 0 : index
    %126 = vector.load %arg8[%c0_51, %c0_52] : memref<1314x1000xbf16, #tpu.memory_space<vmem>>, vector<1314x1000xbf16>
    %cst_53 = arith.constant dense<0.000000e+00> : vector<8x1000xf32>
    %127 = tpu.matmul %125, %126, %cst_53 {dimension_numbers = #tpu.dot_dimension_numbers<[1], [0], [0], [1], [0, 0, 1, 1], [], []>} : vector<8x1314xbf16>, vector<1314x1000xbf16>, vector<8x1000xf32> -> vector<8x1000xf32>
    %128 = arith.truncf %124 : vector<8x1314xf32> to vector<8x1314xbf16>
    %c0_54 = arith.constant 0 : index
    %c0_55 = arith.constant 0 : index
    %129 = vector.load %arg9[%c0_54, %c0_55] : memref<1314x1000xbf16, #tpu.memory_space<vmem>>, vector<1314x1000xbf16>
    %cst_56 = arith.constant dense<0.000000e+00> : vector<8x1000xf32>
    %130 = tpu.matmul %128, %129, %cst_56 {dimension_numbers = #tpu.dot_dimension_numbers<[1], [0], [0], [1], [0, 0, 1, 1], [], []>} : vector<8x1314xbf16>, vector<1314x1000xbf16>, vector<8x1000xf32> -> vector<8x1000xf32>
    %131 = arith.addf %127, %130 : vector<8x1000xf32>
    %132 = vector.broadcast %66 : vector<1x1000xf32> to vector<8x1000xf32>
    %133 = arith.addf %131, %132 : vector<8x1000xf32>
    %cst_57 = arith.constant dense<0.000000e+00> : vector<1000xf32>
    %134 = vector.multi_reduction <add>, %133, %cst_57 [0] : vector<8x1000xf32> to vector<1000xf32>
    %135 = vector.shape_cast %134 : vector<1000xf32> to vector<1x1000xf32>
    %cst_58 = arith.constant 8.000000e+00 : f32
    %136 = vector.broadcast %cst_58 : f32 to vector<1x1000xf32>
    %137 = arith.divf %135, %136 : vector<1x1000xf32>
    %138 = vector.broadcast %137 : vector<1x1000xf32> to vector<8x1000xf32>
    %139 = arith.subf %133, %138 : vector<8x1000xf32>
    %140 = vector.broadcast %137 : vector<1x1000xf32> to vector<8x1000xf32>
    %141 = arith.subf %133, %140 : vector<8x1000xf32>
    %142 = arith.mulf %139, %141 : vector<8x1000xf32>
    %cst_59 = arith.constant dense<0.000000e+00> : vector<1000xf32>
    %143 = vector.multi_reduction <add>, %142, %cst_59 [0] : vector<8x1000xf32> to vector<1000xf32>
    %144 = vector.shape_cast %143 : vector<1000xf32> to vector<1x1000xf32>
    %cst_60 = arith.constant 8.000000e+00 : f32
    %145 = vector.broadcast %cst_60 : f32 to vector<1x1000xf32>
    %146 = arith.divf %144, %145 : vector<1x1000xf32>
    %cst_61 = arith.constant 9.99999974E-6 : f32
    %147 = vector.broadcast %cst_61 : f32 to vector<1x1000xf32>
    %148 = arith.addf %146, %147 : vector<1x1000xf32>
    %149 = math.rsqrt %148 : vector<1x1000xf32>
    %150 = vector.broadcast %137 : vector<1x1000xf32> to vector<8x1000xf32>
    %151 = arith.subf %133, %150 : vector<8x1000xf32>
    %152 = vector.broadcast %149 : vector<1x1000xf32> to vector<8x1000xf32>
    %153 = arith.mulf %151, %152 : vector<8x1000xf32>
    %154 = vector.broadcast %67 : vector<1x1000xf32> to vector<8x1000xf32>
    %155 = arith.mulf %153, %154 : vector<8x1000xf32>
    %156 = vector.broadcast %68 : vector<1x1000xf32> to vector<8x1000xf32>
    %157 = arith.addf %155, %156 : vector<8x1000xf32>
    %cst_62 = arith.constant 0.000000e+00 : f32
    %158 = vector.broadcast %cst_62 : f32 to vector<8x1000xf32>
    %159 = arith.cmpf ogt, %157, %158 : vector<8x1000xf32>
    %cst_63 = arith.constant 0.00999999977 : f32
    %160 = vector.broadcast %cst_63 : f32 to vector<8x1000xf32>
    %161 = arith.mulf %160, %157 : vector<8x1000xf32>
    %162 = arith.select %159, %157, %161 : vector<8x1000xi1>, vector<8x1000xf32>
    %163 = arith.truncf %162 : vector<8x1000xf32> to vector<8x1000xbf16>
    %c0_64 = arith.constant 0 : index
    %c0_65 = arith.constant 0 : index
    %164 = vector.load %arg10[%c0_64, %c0_65] : memref<1000x500xbf16, #tpu.memory_space<vmem>>, vector<1000x500xbf16>
    %cst_66 = arith.constant dense<0.000000e+00> : vector<8x500xf32>
    %165 = tpu.matmul %163, %164, %cst_66 {dimension_numbers = #tpu.dot_dimension_numbers<[1], [0], [0], [1], [0, 0, 1, 1], [], []>} : vector<8x1000xbf16>, vector<1000x500xbf16>, vector<8x500xf32> -> vector<8x500xf32>
    %166 = vector.broadcast %70 : vector<1x500xf32> to vector<8x500xf32>
    %167 = arith.addf %165, %166 : vector<8x500xf32>
    %cst_67 = arith.constant dense<0.000000e+00> : vector<500xf32>
    %168 = vector.multi_reduction <add>, %167, %cst_67 [0] : vector<8x500xf32> to vector<500xf32>
    %169 = vector.shape_cast %168 : vector<500xf32> to vector<1x500xf32>
    %cst_68 = arith.constant 8.000000e+00 : f32
    %170 = vector.broadcast %cst_68 : f32 to vector<1x500xf32>
    %171 = arith.divf %169, %170 : vector<1x500xf32>
    %172 = vector.broadcast %171 : vector<1x500xf32> to vector<8x500xf32>
    %173 = arith.subf %167, %172 : vector<8x500xf32>
    %174 = vector.broadcast %171 : vector<1x500xf32> to vector<8x500xf32>
    %175 = arith.subf %167, %174 : vector<8x500xf32>
    %176 = arith.mulf %173, %175 : vector<8x500xf32>
    %cst_69 = arith.constant dense<0.000000e+00> : vector<500xf32>
    %177 = vector.multi_reduction <add>, %176, %cst_69 [0] : vector<8x500xf32> to vector<500xf32>
    %178 = vector.shape_cast %177 : vector<500xf32> to vector<1x500xf32>
    %cst_70 = arith.constant 8.000000e+00 : f32
    %179 = vector.broadcast %cst_70 : f32 to vector<1x500xf32>
    %180 = arith.divf %178, %179 : vector<1x500xf32>
    %cst_71 = arith.constant 9.99999974E-6 : f32
    %181 = vector.broadcast %cst_71 : f32 to vector<1x500xf32>
    %182 = arith.addf %180, %181 : vector<1x500xf32>
    %183 = math.rsqrt %182 : vector<1x500xf32>
    %184 = vector.broadcast %171 : vector<1x500xf32> to vector<8x500xf32>
    %185 = arith.subf %167, %184 : vector<8x500xf32>
    %186 = vector.broadcast %183 : vector<1x500xf32> to vector<8x500xf32>
    %187 = arith.mulf %185, %186 : vector<8x500xf32>
    %188 = vector.broadcast %71 : vector<1x500xf32> to vector<8x500xf32>
    %189 = arith.mulf %187, %188 : vector<8x500xf32>
    %190 = vector.broadcast %72 : vector<1x500xf32> to vector<8x500xf32>
    %191 = arith.addf %189, %190 : vector<8x500xf32>
    %cst_72 = arith.constant 0.000000e+00 : f32
    %192 = vector.broadcast %cst_72 : f32 to vector<8x500xf32>
    %193 = arith.cmpf ogt, %191, %192 : vector<8x500xf32>
    %cst_73 = arith.constant 0.00999999977 : f32
    %194 = vector.broadcast %cst_73 : f32 to vector<8x500xf32>
    %195 = arith.mulf %194, %191 : vector<8x500xf32>
    %196 = arith.select %193, %191, %195 : vector<8x500xi1>, vector<8x500xf32>
    %197 = arith.truncf %196 : vector<8x500xf32> to vector<8x500xbf16>
    %c0_74 = arith.constant 0 : index
    %c0_75 = arith.constant 0 : index
    %198 = vector.load %arg11[%c0_74, %c0_75] : memref<500x200xbf16, #tpu.memory_space<vmem>>, vector<500x200xbf16>
    %cst_76 = arith.constant dense<0.000000e+00> : vector<8x200xf32>
    %199 = tpu.matmul %197, %198, %cst_76 {dimension_numbers = #tpu.dot_dimension_numbers<[1], [0], [0], [1], [0, 0, 1, 1], [], []>} : vector<8x500xbf16>, vector<500x200xbf16>, vector<8x200xf32> -> vector<8x200xf32>
    %200 = vector.broadcast %74 : vector<1x200xf32> to vector<8x200xf32>
    %201 = arith.addf %199, %200 : vector<8x200xf32>
    %c0_77 = arith.constant 0 : index
    %c0_78 = arith.constant 0 : index
    %202 = vector.load %arg13[%c0_77, %c0_78] : memref<8x200xf32, #tpu.memory_space<vmem>>, vector<8x200xf32>
    tpu.vector_store %arg13[%c0_77, %c0_78], %201 {strides = array<i32>} : memref<8x200xf32, #tpu.memory_space<vmem>>, vector<8x200xf32>,
    %cst_79 = arith.constant dense<0.000000e+00> : vector<200xf32>
    %203 = vector.multi_reduction <add>, %201, %cst_79 [0] : vector<8x200xf32> to vector<200xf32>
    %204 = vector.shape_cast %203 : vector<200xf32> to vector<1x200xf32>
    %cst_80 = arith.constant 8.000000e+00 : f32
    %205 = vector.broadcast %cst_80 : f32 to vector<1x200xf32>
    %206 = arith.divf %204, %205 : vector<1x200xf32>
    %207 = vector.broadcast %206 : vector<1x200xf32> to vector<8x200xf32>
    %208 = arith.subf %201, %207 : vector<8x200xf32>
    %209 = vector.broadcast %206 : vector<1x200xf32> to vector<8x200xf32>
    %210 = arith.subf %201, %209 : vector<8x200xf32>
    %211 = arith.mulf %208, %210 : vector<8x200xf32>
    %cst_81 = arith.constant dense<0.000000e+00> : vector<200xf32>
    %212 = vector.multi_reduction <add>, %211, %cst_81 [0] : vector<8x200xf32> to vector<200xf32>
    %213 = vector.shape_cast %212 : vector<200xf32> to vector<1x200xf32>
    %cst_82 = arith.constant 8.000000e+00 : f32
    %214 = vector.broadcast %cst_82 : f32 to vector<1x200xf32>
    %215 = arith.divf %213, %214 : vector<1x200xf32>
    %cst_83 = arith.constant 9.99999974E-6 : f32
    %216 = vector.broadcast %cst_83 : f32 to vector<1x200xf32>
    %217 = arith.addf %215, %216 : vector<1x200xf32>
    %218 = math.rsqrt %217 : vector<1x200xf32>
    %219 = vector.broadcast %206 : vector<1x200xf32> to vector<8x200xf32>
    %220 = arith.subf %201, %219 : vector<8x200xf32>
    %221 = vector.broadcast %218 : vector<1x200xf32> to vector<8x200xf32>
    %222 = arith.mulf %220, %221 : vector<8x200xf32>
    %223 = vector.broadcast %75 : vector<1x200xf32> to vector<8x200xf32>
    %224 = arith.mulf %222, %223 : vector<8x200xf32>
    %225 = vector.broadcast %76 : vector<1x200xf32> to vector<8x200xf32>
    %226 = arith.addf %224, %225 : vector<8x200xf32>
    %227 = arith.truncf %226 : vector<8x200xf32> to vector<8x200xbf16>
    %c0_84 = arith.constant 0 : index
    %c0_85 = arith.constant 0 : index
    %228 = vector.load %arg12[%c0_84, %c0_85] : memref<200x1314xbf16, #tpu.memory_space<vmem>>, vector<200x1314xbf16>
    %cst_86 = arith.constant dense<0.000000e+00> : vector<8x1314xf32>
    %229 = tpu.matmul %227, %228, %cst_86 {dimension_numbers = #tpu.dot_dimension_numbers<[1], [0], [0], [1], [0, 0, 1, 1], [], []>} : vector<8x200xbf16>, vector<200x1314xbf16>, vector<8x1314xf32> -> vector<8x1314xf32>
    %230 = vector.broadcast %64 : vector<1x1314xf32> to vector<8x1314xf32>
    %231 = arith.addf %229, %230 : vector<8x1314xf32>
    %c0_87 = arith.constant 0 : index
    %c0_88 = arith.constant 0 : index
    %232 = vector.load %arg14[%c0_87, %c0_88] : memref<8x1314xf32, #tpu.memory_space<vmem>>, vector<8x1314xf32>
    tpu.vector_store %arg14[%c0_87, %c0_88], %231 {strides = array<i32>} : memref<8x1314xf32, #tpu.memory_space<vmem>>, vector<8x1314xf32>,
    return
  }
  func.func @transform_0(%arg0: i32) -> (i32, i32, i32) {
    %c0_i32 = arith.constant 0 : i32
    %c0_i32_0 = arith.constant 0 : i32
    %c0_i32_1 = arith.constant 0 : i32
    %c0_i32_2 = arith.constant 0 : i32
    return %c0_i32, %c0_i32_0, %c0_i32_1 : i32, i32, i32
  }
  func.func @transform_1(%arg0: i32) -> (i32, i32) {
    %c0_i32 = arith.constant 0 : i32
    %c0_i32_0 = arith.constant 0 : i32
    %c0_i32_1 = arith.constant 0 : i32
    return %c0_i32, %c0_i32_0 : i32, i32
  }
  func.func @transform_2(%arg0: i32) -> (i32, i32) {
    %c0_i32 = arith.constant 0 : i32
    %c0_i32_0 = arith.constant 0 : i32
    %c0_i32_1 = arith.constant 0 : i32
    return %c0_i32, %c0_i32_0 : i32, i32
  }
  func.func @transform_3(%arg0: i32) -> (i32, i32) {
    %c0_i32 = arith.constant 0 : i32
    %c0_i32_0 = arith.constant 0 : i32
    %c0_i32_1 = arith.constant 0 : i32
    return %c0_i32, %c0_i32_0 : i32, i32
  }
  func.func @transform_4(%arg0: i32) -> (i32, i32) {
    %c0_i32 = arith.constant 0 : i32
    %c0_i32_0 = arith.constant 0 : i32
    %c0_i32_1 = arith.constant 0 : i32
    return %c0_i32, %c0_i32_0 : i32, i32
  }
  func.func @transform_5(%arg0: i32) -> (i32, i32) {
    %c0_i32 = arith.constant 0 : i32
    %c0_i32_0 = arith.constant 0 : i32
    %c0_i32_1 = arith.constant 0 : i32
    return %c0_i32, %c0_i32_0 : i32, i32
  }
  func.func @transform_6(%arg0: i32) -> (i32, i32) {
    %c0_i32 = arith.constant 0 : i32
    %c0_i32_0 = arith.constant 0 : i32
    %c0_i32_1 = arith.constant 0 : i32
    return %c0_i32, %c0_i32_0 : i32, i32
  }
  func.func @transform_7(%arg0: i32) -> (i32, i32) {
    %c0_i32 = arith.constant 0 : i32
    %c0_i32_0 = arith.constant 0 : i32
    %c0_i32_1 = arith.constant 0 : i32
    return %c0_i32, %c0_i32_0 : i32, i32
  }
  func.func @transform_8(%arg0: i32) -> (i32, i32) {
    %c0_i32 = arith.constant 0 : i32
    %c0_i32_0 = arith.constant 0 : i32
    %c0_i32_1 = arith.constant 0 : i32
    return %c0_i32, %c0_i32_0 : i32, i32
  }
  func.func @transform_9(%arg0: i32) -> (i32, i32) {
    %c0_i32 = arith.constant 0 : i32
    %c0_i32_0 = arith.constant 0 : i32
    %c0_i32_1 = arith.constant 0 : i32
    return %c0_i32, %c0_i32_0 : i32, i32
  }
  func.func @transform_10(%arg0: i32) -> (i32, i32) {
    %c0_i32 = arith.constant 0 : i32
    %c0_i32_0 = arith.constant 0 : i32
    %c0_i32_1 = arith.constant 0 : i32
    return %c0_i32, %c0_i32_0 : i32, i32
  }
  func.func @transform_11(%arg0: i32) -> (i32, i32) {
    %c0_i32 = arith.constant 0 : i32
    %c0_i32_0 = arith.constant 0 : i32
    %c0_i32_1 = arith.constant 0 : i32
    return %c0_i32, %c0_i32_0 : i32, i32
  }
  func.func @transform_12(%arg0: i32) -> (i32, i32) {
    %c0_i32 = arith.constant 0 : i32
    %c0_i32_0 = arith.constant 0 : i32
    %c0_i32_1 = arith.constant 0 : i32
    return %c0_i32, %c0_i32_0 : i32, i32
  }
  func.func @transform_13(%arg0: i32) -> (i32, i32) {
    %c0_i32 = arith.constant 0 : i32
    %c0_i32_0 = arith.constant 0 : i32
    %c0_i32_1 = arith.constant 0 : i32
    return %c0_i32, %c0_i32_0 : i32, i32
  }
}

</mosaic_0001>

<bundles_post_ra>
// kernel: tpu_custom_call.1
= control target key start
LH: loop header
LB: loop body
LE: loop exit
PB: predicated region body
PF: predicated region fallthrough
CT: control target
= control target key end

     0   :  { %19 = vsyncpa [#allocation3], 0  ;;  %s20408_s0 = inlined_call_operand.hbm [shape: bf16[5,8,1314], index: 0, kind: input, shape index: {}]   ;;  %s20409_s1 = inlined_call_operand.hbm [shape: f32[2,5], index: 1, kind: input, shape index: {}]   ;;  %s20410_s2 = inlined_call_operand.hbm [shape: f32[1,2], index: 2, kind: input, shape index: {}]   ;;  %s20411_s3 = inlined_call_operand.hbm [shape: f32[5,1314], index: 3, kind: input, shape index: {}]   ;;  %s20412_s4 = inlined_call_operand.hbm [shape: f32[3,1000], index: 4, kind: input, shape index: {}]   ;;  %s20413_s5 = inlined_call_operand.hbm [shape: f32[3,500], index: 5, kind: input, shape index: {}]   ;;  %s20414_s6 = inlined_call_operand.hbm [shape: f32[3,200], index: 6, kind: input, shape index: {}]   ;;  %s20415_s7 = inlined_call_operand.hbm [shape: bf16[1314,1000], index: 7, kind: input, shape index: {}]   ;;  %s20416_s8 = inlined_call_operand.hbm [shape: bf16[1314,1000], index: 8, kind: input, shape index: {}]   ;;  %s20417_s9 = inlined_call_operand.hbm [shape: bf16[1000,500], index: 9, kind: input, shape index: {}]   ;;  %s20418_s10 = inlined_call_operand.vmem [shape: bf16[500,200], index: 10, kind: input, shape index: {}]   ;;  %s20419_s11 = inlined_call_operand.hbm [shape: bf16[200,1314], index: 11, kind: input, shape index: {}]   ;;  %s20420_s12 = inlined_call_operand.hbm [shape: f32[8,200], index: 12, kind: output, shape index: {0}]   ;;  %s20421_s13 = inlined_call_operand.hbm [shape: f32[8,1314], index: 13, kind: output, shape index: {1}]  }
   0x1   :  { %20 = vsyncpa [#allocation5], 0 }
   0x2   :  { %21 = vsyncpa [#allocation8], 0 }
   0x3   :  { %22 = vsyncpa [#allocation10], 0 }
   0x4   :  { %23 = vsyncpa [#allocation13], 0 }
   0x5   :  { %24 = vsyncpa [#allocation16], 0 }
   0x6   :  { %25 = vsyncpa [#allocation19], 0 }
   0x7   :  { %26 = vsyncpa [#allocation4], 0 }
   0x8   :  { %27 = vsyncpa [#allocation23], 0  ;;  %s18313_s25 = smov [#allocation9]   ;;  %s18314_s27 = smov [#allocation12]  }
   0x9   :  { %s62_s26 = sshll.u32 %s18313_s25, 4  ;;  %s82_s28 = sshll.u32 %s18314_s27, 4  ;;  %s63_s26 = int_to_ptr.vmem [resolvable:$true] %s62_s26  ;;  %s83_s28 = int_to_ptr.vmem [resolvable:$true] %s82_s28 }
   0xa   :  { %s18067_s29 = scalar_lea.vmem %s63_s26, 1408  ;;  %p18072_p1 = scmp.lt.s32.totalorder %s63_s26, %s63_s26 }
   0xb   :  { %p18068_p0 = scmp.ne.s32.totalorder %s63_s26, %s18067_s29  ;;  %p18073_p2 = scmp.lt.s32.totalorder %s18067_s29, %s18067_s29 }
   0xd   :  { %p18074_p3 = por %p18073_p2, %p18072_p1 }
   0xf   :  { %p18075_p4 = pnand %p18074_p3, %p18068_p0 }
  0x11   :  { %18078 = shalt.err (!%p18075_p4)
}
  0x12   :  { %65 = dma.hbm_to_vmem [thread:$0]  %s20411_s3, 1408, %s63_s26, [#allocation10]  }
  0x13   :  { %s18087_s15 = scalar_lea.vmem %s83_s28, 256  ;;  %p18092_p6 = scmp.lt.s32.totalorder %s83_s28, %s83_s28 }
  0x14   :  { %p18088_p5 = scmp.ne.s32.totalorder %s83_s28, %s18087_s15  ;;  %p18093_p7 = scmp.lt.s32.totalorder %s18087_s15, %s18087_s15 }
  0x16   :  { %p18094_p8 = por %p18093_p7, %p18092_p6 }
  0x18   :  { %p18095_p9 = pnand %p18094_p8, %p18088_p5 }
  0x1a   :  { %18098 = shalt.err (!%p18095_p9)
}
  0x1b   :  { %85 = dma.hbm_to_vmem [thread:$0]  %s20413_s5, 256, %s83_s28, [#allocation13]  }
  0x1c   :  { %s18315_s18 = smov [#allocation15]  }
  0x1d   :  { %s101_s19 = sshll.u32 %s18315_s18, 4  ;;  %s102_s19 = int_to_ptr.vmem [resolvable:$true] %s101_s19 }
  0x1e   :  { %s18107_s20 = scalar_lea.vmem %s102_s19, 84480  ;;  %p18112_p11 = scmp.lt.s32.totalorder %s102_s19, %s102_s19 }
  0x1f   :  { %p18108_p10 = scmp.ne.s32.totalorder %s102_s19, %s18107_s20  ;;  %p18113_p12 = scmp.lt.s32.totalorder %s18107_s20, %s18107_s20 }
  0x21   :  { %p18114_p13 = por %p18113_p12, %p18112_p11 }
  0x23   :  { %p18115_p0 = pnand %p18114_p13, %p18108_p10 }
  0x25   :  { %18118 = shalt.err (!%p18115_p0)
}
  0x26   :  { %s18316_s3 = smov 512   ;;  %s18317_s21 = smov 32  }
  0x27   :  { %107 = dma.hbm_to_vmem [thread:$0]  %s20415_s7, 84480, %s102_s19, [#allocation16], %s18316_s3, %s18316_s3, %s18317_s21  }
  0x28   :  { %s18318_s5 = smov [#allocation18]  }
  0x29   :  { %s125_s24 = sshll.u32 %s18318_s5, 4  ;;  %s126_s24 = int_to_ptr.vmem [resolvable:$true] %s125_s24 }
  0x2a   :  { %s18127_s25 = scalar_lea.vmem %s126_s24, 32000  ;;  %p18132_p2 = scmp.lt.s32.totalorder %s126_s24, %s126_s24 }
  0x2b   :  { %p18128_p1 = scmp.ne.s32.totalorder %s126_s24, %s18127_s25  ;;  %p18133_p3 = scmp.lt.s32.totalorder %s18127_s25, %s18127_s25 }
  0x2d   :  { %p18134_p4 = por %p18133_p3, %p18132_p2 }
  0x2f   :  { %p18135_p5 = pnand %p18134_p4, %p18128_p1 }
  0x31   :  { %18138 = shalt.err (!%p18135_p5)
}
  0x32   :  { %s18319_s26 = smov 256   ;;  %s18320_s27 = smov 16  }
  0x33   :  { %131 = dma.hbm_to_vmem [thread:$0]  %s20417_s9, 32000, %s126_s24, [#allocation19], %s18319_s26, %s18319_s26, %s18320_s27  }
  0x34   :  { %s18321_s30 = smov [#allocation2]  }
  0x35   :  { %s33_s14 = sshll.u32 %s18321_s30, 4  ;;  %s34_s14 = int_to_ptr.vmem [resolvable:$true] %s33_s14 }
  0x36   :  { %s18147_s7 = scalar_lea.vmem %s34_s14, 3520  ;;  %p18152_p7 = scmp.lt.s32.totalorder %s34_s14, %s34_s14 }
  0x37   :  { %p18148_p6 = scmp.ne.s32.totalorder %s34_s14, %s18147_s7  ;;  %p18153_p8 = scmp.lt.s32.totalorder %s18147_s7, %s18147_s7 }
  0x39   :  { %p18154_p9 = por %p18153_p8, %p18152_p7 }
  0x3b   :  { %p18155_p10 = pnand %p18154_p9, %p18148_p6 }
  0x3d   :  { %18158 = shalt.err (!%p18155_p10)
}
  0x3e   :  { %s18322_s15 = smov 704   ;;  %s18323_s16 = smov 44  }
  0x3f   :  { %39 = dma.hbm_to_vmem [thread:$0]  %s20408_s0, 3520, %s34_s14, [#allocation3], %s18322_s15, %s18322_s15, %s18323_s16  }
  0x40   :  { %s18324_s9 = smov [#allocation6]   ;;  %s18325_s22 = smov [#allocation7]  }
  0x41   :  { %47 = dma.hbm_to_smem %s20409_s1, 32, %s18324_s9, [#allocation5]  }
  0x42   :  { %55 = dma.hbm_to_smem %s20410_s2, 16, %s18325_s22, [#allocation8]  }
  0x43   :  { %s18326_s24 = smov [#allocation11]   ;;  %s18327_s26 = smov [#allocation14]  }
  0x44   :  { %s72_s25 = sshll.u32 %s18326_s24, 4  ;;  %s92_s27 = sshll.u32 %s18327_s26, 4  ;;  %s73_s25 = int_to_ptr.vmem [resolvable:$true] %s72_s25  ;;  %s93_s27 = int_to_ptr.vmem [resolvable:$true] %s92_s27 }
  0x45   :  { %s18183_s28 = scalar_lea.vmem %s73_s25, 512  ;;  %p18188_p12 = scmp.lt.s32.totalorder %s73_s25, %s73_s25 }
  0x46   :  { %p18184_p11 = scmp.ne.s32.totalorder %s73_s25, %s18183_s28  ;;  %p18189_p13 = scmp.lt.s32.totalorder %s18183_s28, %s18183_s28 }
  0x48   :  { %p18190_p0 = por %p18189_p13, %p18188_p12 }
  0x4a   :  { %p18191_p1 = pnand %p18190_p0, %p18184_p11 }
  0x4c   :  { %18194 = shalt.err (!%p18191_p1)
}
  0x4d   :  { %75 = dma.hbm_to_vmem [thread:$0]  %s20412_s4, 512, %s73_s25, [#allocation10]  }
  0x4e   :  { %s18203_s1 = scalar_lea.vmem %s93_s27, 128  ;;  %p18208_p3 = scmp.lt.s32.totalorder %s93_s27, %s93_s27 }
  0x4f   :  { %p18204_p2 = scmp.ne.s32.totalorder %s93_s27, %s18203_s1  ;;  %p18209_p4 = scmp.lt.s32.totalorder %s18203_s1, %s18203_s1 }
  0x51   :  { %p18210_p5 = por %p18209_p4, %p18208_p3 }
  0x53   :  { %p18211_p6 = pnand %p18210_p5, %p18204_p2 }
  0x55   :  { %18214 = shalt.err (!%p18211_p6)
}
  0x56   :  { %95 = dma.hbm_to_vmem [thread:$0]  %s20414_s6, 128, %s93_s27, [#allocation13]  }
  0x57   :  { %s18328_s14 = smov [#allocation17]   ;;  %s18329_s17 = smov [#allocation20]  }
  0x58   :  { %s113_s7 = sshll.u32 %s18328_s14, 4  ;;  %s139_s18 = sshll.u32 %s18329_s17, 4  ;;  %s114_s7 = int_to_ptr.vmem [resolvable:$true] %s113_s7  ;;  %s140_s18 = int_to_ptr.vmem [resolvable:$true] %s139_s18 }
  0x59   :  { %s18223_s9 = scalar_lea.vmem %s114_s7, 84480  ;;  %p18228_p8 = scmp.lt.s32.totalorder %s114_s7, %s114_s7 }
  0x5a   :  { %p18224_p7 = scmp.ne.s32.totalorder %s114_s7, %s18223_s9  ;;  %p18229_p9 = scmp.lt.s32.totalorder %s18223_s9, %s18223_s9 }
  0x5c   :  { %p18230_p10 = por %p18229_p9, %p18228_p8 }
  0x5e   :  { %p18231_p11 = pnand %p18230_p10, %p18224_p7 }
  0x60   :  { %18234 = shalt.err (!%p18231_p11)
}
  0x61   :  { %119 = dma.hbm_to_vmem [thread:$0]  %s20416_s8, 84480, %s114_s7, [#allocation16], %s18316_s3, %s18316_s3, %s18317_s21  }
  0x62   :  { %s18243_s6 = scalar_lea.vmem %s140_s18, 17600  ;;  %p18248_p13 = scmp.lt.s32.totalorder %s140_s18, %s140_s18 }
  0x63   :  { %p18244_p12 = scmp.ne.s32.totalorder %s140_s18, %s18243_s6  ;;  %p18249_p0 = scmp.lt.s32.totalorder %s18243_s6, %s18243_s6 }
  0x65   :  { %p18250_p1 = por %p18249_p0, %p18248_p13 }
  0x67   :  { %p18251_p2 = pnand %p18250_p1, %p18244_p12 }
  0x69   :  { %18254 = shalt.err (!%p18251_p2)
}
  0x6a   :  { %145 = dma.hbm_to_vmem [thread:$0]  %s20419_s11, 17600, %s140_s18, [#allocation19], %s18322_s15, %s18322_s15, %s18323_s16  }
  0x6b   :  { %18295 = dma.done.wait [#allocation3], 3520  }
  0x6c   :  { %18296 = vsyncadd [#allocation3], 4294963776 }
  0x6d   :  { %18297 = dma.done.wait [#allocation5], 32  }
  0x6e   :  { %18298 = vsyncadd [#allocation5], 4294967264 }
  0x6f   :  { %18299 = dma.done.wait [#allocation8], 16  }
  0x70   :  { %18300 = vsyncadd [#allocation8], 4294967280 }
  0x71   :  { %18301 = dma.done.wait [#allocation10], 1920  }
  0x72   :  { %18302 = vsyncadd [#allocation10], 4294965376 }
  0x73   :  { %18303 = dma.done.wait [#allocation13], 384  }
  0x74   :  { %18304 = vsyncadd [#allocation13], 4294966912 }
  0x75   :  { %18305 = dma.done.wait [#allocation16], 168960  }
  0x76   :  { %18306 = vsyncadd [#allocation16], 4294798336 }
  0x77   :  { %18307 = dma.done.wait [#allocation19], 49600  }
  0x78   :  { %18308 = vsyncadd [#allocation19], 4294917696 }
  0x79   :  { %179 = sfence }
  0x7a   :  { %v1914_v0 = vld [vmem:[#allocation17 + $0x1c0] sm:$0xff]  ;;  %s18448_s8 = sld [smem:[#allocation6 + $0x80]]  ;;  %vm592_vm0 = vcmask 277504   ;;  %vm5821_vm1 = vcmask 1040384   ;;  %vm13113_vm6 = vcmask 1043456   ;;  %vm11267_vm9 = vcmask 850944  }
  0x7b   :  { %v1918_v1 = vld [vmem:[#allocation17 + $0x1e0] sm:$0xff]  ;;  %s18450_s11 = sld [smem:[#allocation6 + $0x81]]  ;;  %vm14029_vm12 = vcmask 1041408   ;;  %vm13472_vm15 = vcmask 949248  }
  0x7c   :  { %v2042_v2 = vld [vmem:[#allocation17 + $0x5c0] sm:$0xff]  ;;  %v15491_v3 = vcombine.high %v1914_v0, %v1918_v1  ;;  %v15490_v5 = vcombine.low %v1914_v0, %v1918_v1  ;;  %s18452_s3 = sld [smem:[#allocation6 + $0x82]] }
  0x7d   :  { %v2046_v4 = vld [vmem:[#allocation17 + $0x5e0] sm:$0xff]  ;;  %s18454_s21 = sld [smem:[#allocation6 + $0x83]] }
  0x7e   :  { %v1906_v6 = vld [vmem:[#allocation17 + $0x180] sm:$0xff]  ;;  %v15619_v8 = vcombine.high %v2042_v2, %v2046_v4  ;;  %v15618_v9 = vcombine.low %v2042_v2, %v2046_v4  ;;  %5846 = vmatprep.subr.bf16.mxu0 %v15491_v3  ;;  %s18456_s15 = sld [smem:[#allocation6 + $0x84]]  ;;  %v18499_v2 = vld [vmem:[#allocation2] sm:$0xff] }
  0x7f   :  { %v1910_v7 = vld [vmem:[#allocation17 + $0x1a0] sm:$0xff]  ;;  %5847 = vmatpush1.bf16.msra.mxu0 %v15490_v5  ;;  %s18458_s16 = sld [smem:[#allocation7 + $0x1]] }
  0x80   :  { %v15483_v10 = vcombine.high %v1906_v6, %v1910_v7  ;;  %v2034_v11 = vld [vmem:[#allocation17 + $0x580] sm:$0xff]  ;;  %5887 = vmatprep.subr.bf16.mxu1 %v15619_v8  ;;  %v15482_v18 = vcombine.low %v1906_v6, %v1910_v7  ;;  %v18477_v55 = vstv %s18448_s8  ;;  %v20455_v7 = vunpack.c.h.bf16 %v18499_v2  ;;  %s19257_s23 = sld [smem:[#allocation6]] }
  0x81   :  { %v2038_v12 = vld [vmem:[#allocation17 + $0x5a0] sm:$0xff]  ;;  %5888 = vmatpush1.bf16.msra.mxu1 %v15618_v9  ;;  %v18480_v56 = vstv %s18450_s11  ;;  %v18512_v9 = vld [vmem:[#allocation2 + $0x58] sm:$0xff]  ;;  %s19259_s5 = sld [smem:[#allocation6 + $0x1]] }
  0x82   :  { %v1898_v13 = vld [vmem:[#allocation17 + $0x140] sm:$0xff]  ;;  %v15611_v14 = vcombine.high %v2034_v11, %v2038_v12  ;;  %5848 = vmatprep.subr.bf16.mxu0 %v15483_v10  ;;  %v15610_v19 = vcombine.low %v2034_v11, %v2038_v12  ;;  %v18489_v61 = vstv %s18452_s3  ;;  %v18514_v10 = vld [vmem:[#allocation2 + $0x84] sm:$0xff]  ;;  %s19266_s24 = sld [smem:[#allocation6 + $0x2]] }
  0x83   :  { %v1902_v15 = vld [vmem:[#allocation17 + $0x160] sm:$0xff]  ;;  %5849 = vmatpush1.bf16.msra.mxu0 %v15482_v18  ;;  %v18504_v4 = vstv %s18454_s21  ;;  %v18527_v18 = vld [vmem:[#allocation2 + $0x34] sm:$0xff]  ;;  %s19268_s25 = sld [smem:[#allocation6 + $0x3]] }
  0x84   :  { %v2026_v16 = vld [vmem:[#allocation17 + $0x540] sm:$0xff]  ;;  %v15475_v20 = vcombine.high %v1898_v13, %v1902_v15  ;;  %5889 = vmatprep.subr.bf16.mxu1 %v15611_v14  ;;  %v15474_v26 = vcombine.low %v1898_v13, %v1902_v15  ;;  %v20447_v14 = vunpack.c.h.bf16 %v18512_v9  ;;  %v20444_v15 = vunpack.c.h.bf16 %v18514_v10  ;;  %s19283_s26 = sld [smem:[#allocation6 + $0x4]] }
  0x85   :  { %v2030_v17 = vld [vmem:[#allocation17 + $0x560] sm:$0xff]  ;;  %5890 = vmatpush1.bf16.msra.mxu1 %v15610_v19  ;;  %s19307_s27 = sld [smem:[#allocation7]] }
  0x86   :  { %v15603_v21 = vcombine.high %v2026_v16, %v2030_v17  ;;  %v1890_v22 = vld [vmem:[#allocation17 + $0x100] sm:$0xff]  ;;  %5850 = vmatprep.subr.bf16.mxu0 %v15475_v20  ;;  %v15602_v27 = vcombine.low %v2026_v16, %v2030_v17  ;;  %v294_v20 = vmul.f32 %v18477_v55, %v20455_v7 }
  0x87   :  { %v1894_v23 = vld [vmem:[#allocation17 + $0x120] sm:$0xff]  ;;  %5851 = vmatpush1.bf16.msra.mxu0 %v15474_v26 }
  0x88   :  { %v2018_v24 = vld [vmem:[#allocation17 + $0x500] sm:$0xff]  ;;  %v15467_v28 = vcombine.high %v1890_v22, %v1894_v23  ;;  %5891 = vmatprep.subr.bf16.mxu1 %v15603_v21  ;;  %v15466_v34 = vcombine.low %v1890_v22, %v1894_v23  ;;  %v18538_v22 = vstv %s18456_s15  ;;  %v18541_v23 = vstv %s18458_s16 }
  0x89   :  { %v2022_v25 = vld [vmem:[#allocation17 + $0x520] sm:$0xff]  ;;  %5892 = vmatpush1.bf16.msra.mxu1 %v15602_v27  ;;  %v375_v27 = vmul.f32 %v18489_v61, %v20447_v14 }
  0x8a   :  { %v15595_v29 = vcombine.high %v2018_v24, %v2022_v25  ;;  %v1882_v30 = vld [vmem:[#allocation17 + $0xc0] sm:$0xff]  ;;  %5852 = vmatprep.subr.bf16.mxu0 %v15467_v28  ;;  %v15594_v35 = vcombine.low %v2018_v24, %v2022_v25  ;;  %v18543_v24 = vld [vmem:[#allocation2 + $0x60] sm:$0xff]  ;;  %v421_v28 = vmul.f32 %v18504_v4, %v20444_v15 }
  0x8b   :  { %v1886_v31 = vld [vmem:[#allocation17 + $0xe0] sm:$0xff]  ;;  %5853 = vmatpush1.bf16.msra.mxu0 %v15466_v34  ;;  %v20445_v34 = vunpack.c.h.bf16 %v18527_v18 }
  0x8c   :  { %v2010_v32 = vld [vmem:[#allocation17 + $0x4c0] sm:$0xff]  ;;  %v15459_v36 = vcombine.high %v1882_v30, %v1886_v31  ;;  %5893 = vmatprep.subr.bf16.mxu1 %v15595_v29  ;;  %v15458_v42 = vcombine.low %v1882_v30, %v1886_v31  ;;  %v18556_v30 = vld [vmem:[#allocation2 + $0xb8] sm:$0xff] }
  0x8d   :  { %v2014_v33 = vld [vmem:[#allocation17 + $0x4e0] sm:$0xff]  ;;  %5894 = vmatpush1.bf16.msra.mxu1 %v15594_v35  ;;  %v20438_v35 = vunpack.c.h.bf16 %v18543_v24 }
  0x8e   :  { %v15587_v37 = vcombine.high %v2010_v32, %v2014_v33  ;;  %v1874_v38 = vld [vmem:[#allocation17 + $0x80] sm:$0xff]  ;;  %5854 = vmatprep.subr.bf16.mxu0 %v15459_v36  ;;  %v15586_v43 = vcombine.low %v2010_v32, %v2014_v33 }
  0x8f   :  { %v1878_v39 = vld [vmem:[#allocation17 + $0xa0] sm:$0xff]  ;;  %5855 = vmatpush1.bf16.msra.mxu0 %v15458_v42  ;;  %v20435_v42 = vunpack.c.h.bf16 %v18556_v30 }
  0x90   :  { %v2002_v40 = vld [vmem:[#allocation17 + $0x480] sm:$0xff]  ;;  %v15451_v44 = vcombine.high %v1874_v38, %v1878_v39  ;;  %5895 = vmatprep.subr.bf16.mxu1 %v15587_v37  ;;  %v15450_v52 = vcombine.low %v1874_v38, %v1878_v39 }
  0x91   :  { %v2006_v41 = vld [vmem:[#allocation17 + $0x4a0] sm:$0xff]  ;;  %5896 = vmatpush1.bf16.msra.mxu1 %v15586_v43  ;;  %v331_v43 = vmul.f32 %v18480_v56, %v20445_v34 }
  0x92   :  { %v18460_v45 = vld [vmem:[#allocation17 + $0x40] sm:$0xff]  ;;  %v15579_v48 = vcombine.high %v2002_v40, %v2006_v41  ;;  %v15578_v57 = vcombine.low %v2002_v40, %v2006_v41  ;;  %5856 = vmatprep.subr.bf16.mxu0 %v15451_v44  ;;  %v20434_v40 = vunpack.c.l.bf16 %v18499_v2  ;;  %v377_v44 = vmul.f32 %v18489_v61, %v20438_v35 }
  0x93   :  { %v18462_v46 = vld [vmem:[#allocation17 + $0x60] sm:$0xff]  ;;  %5857 = vmatpush1.bf16.msra.mxu0 %v15450_v52 }
  0x94   :  { %v18464_v47 = vld [vmem:[#allocation17 + $0x440] sm:$0xff]  ;;  %v15443_v58 = vcombine.high %v18460_v45, %v18462_v46  ;;  %v15442_v59 = vcombine.low %v18460_v45, %v18462_v46  ;;  %5897 = vmatprep.subr.bf16.mxu1 %v15579_v48 }
  0x95   :  { %v18466_v49 = vld [vmem:[#allocation17 + $0x460] sm:$0xff]  ;;  %5898 = vmatpush1.bf16.msra.mxu1 %v15578_v57  ;;  %v20429_v57 = vunpack.c.l.bf16 %v18512_v9 }
  0x96   :  { %v18468_v50 = vld [vmem:[#allocation17] sm:$0xff]  ;;  %v15571_v62 = vcombine.high %v18464_v47, %v18466_v49  ;;  %v15570_v63 = vcombine.low %v18464_v47, %v18466_v49  ;;  %5858 = vmatprep.subr.bf16.mxu0 %v15443_v58  ;;  %v20424_v58 = vunpack.c.l.bf16 %v18514_v10 }
  0x97   :  { %v18470_v51 = vld [vmem:[#allocation17 + $0x20] sm:$0xff]  ;;  %5859 = vmatpush1.bf16.msra.mxu0 %v15442_v59 }
  0x98   :  { %v18472_v53 = vld [vmem:[#allocation17 + $0x400] sm:$0xff]  ;;  %v15435_v0 = vcombine.high %v18468_v50, %v18470_v51  ;;  %v15434_v6 = vcombine.low %v18468_v50, %v18470_v51  ;;  %5899 = vmatprep.subr.bf16.mxu1 %v15571_v62 }
  0x99   :  { %v18474_v54 = vld [vmem:[#allocation17 + $0x420] sm:$0xff]  ;;  %5900 = vmatpush1.bf16.msra.mxu1 %v15570_v63 }
  0x9a   :  { %v18486_v60 = vld [vmem:[#allocation17 + $0x3c0] sm:$0xff]  ;;  %v15563_v5 = vcombine.high %v18472_v53, %v18474_v54  ;;  %v15562_v12 = vcombine.low %v18472_v53, %v18474_v54  ;;  %5860 = vmatprep.subr.bf16.mxu0 %v15435_v0  ;;  %v469_v0 = vmul.f32 %v18538_v22, %v20435_v42 }
  0x9b   :  { %v18497_v1 = vld [vmem:[#allocation17 + $0x3e0] sm:$0xff]  ;;  %5861 = vmatpush1.bf16.msra.mxu0 %v15434_v6 }
  0x9c   :  { %v18501_v3 = vld [vmem:[#allocation2 + $0x2c] sm:$0xff]  ;;  %v15555_v26 = vcombine.high %v18486_v60, %v18497_v1  ;;  %v15554_v45 = vcombine.low %v18486_v60, %v18497_v1  ;;  %5901 = vmatprep.subr.bf16.mxu1 %v15563_v5  ;;  %v293_v60 = vmul.f32 %v18477_v55, %v20434_v40 }
  0x9d   :  { %v20453_v8 = vunpack.c.h.bf16 %v18501_v3  ;;  %v18516_v11 = vld [vmem:[#allocation2 + $0xb0] sm:$0xff]  ;;  %v18525_v17 = vld [vmem:[#allocation2 + $0x8] sm:$0xff]  ;;  %v20433_v48 = vunpack.c.l.bf16 %v18501_v3  ;;  %5902 = vmatpush1.bf16.msra.mxu1 %v15562_v12  ;;  %v420_v12 = vmul.f32 %v18504_v4, %v20424_v58 }
  0x9e   :  { %v18520_v13 = vld [vmem:[#allocation17 + $0x7c0] sm:$0xff]  ;;  %v20437_v16 = vunpack.c.h.bf16 %v18516_v11  ;;  %v20446_v29 = vunpack.c.h.bf16 %v18525_v17  ;;  %v20422_v59 = vunpack.c.l.bf16 %v18516_v11  ;;  %5862 = vmatprep.subr.bf16.mxu0 %v15555_v26  ;;  %v20428_v6 = vunpack.c.l.bf16 %v18525_v17 }
  0x9f   :  { %v18529_v19 = vld [vmem:[#allocation17 + $0x7e0] sm:$0xff]  ;;  %v329_v21 = vmul.f32 %v18480_v56, %v20453_v8  ;;  %v328_v1 = vmul.f32 %v18480_v56, %v20433_v48  ;;  %5863 = vmatpush2.bf16.msra.mxu0 %v15554_v45 }
  0xa0   :  { %v18545_v25 = vld [vmem:[#allocation2 + $0x8c] sm:$0xff]  ;;  %v15683_v37 = vcombine.high %v18520_v13, %v18529_v19  ;;  %v467_v38 = vmul.f32 %v18538_v22, %v20437_v16  ;;  %v296_v39 = vmul.f32 %v18477_v55, %v20446_v29  ;;  %v15682_v46 = vcombine.low %v18520_v13, %v18529_v19 }
  0xa1   :  { %v18558_v31 = vld [vmem:[#allocation17 + $0x380] sm:$0xff]  ;;  %v340_v33 = vadd.f32 %v329_v21, %v294_v20  ;;  %v20436_v36 = vunpack.c.h.bf16 %v18545_v25  ;;  %v374_v19 = vmul.f32 %v18489_v61, %v20429_v57  ;;  %v18732_v57 = vld [vmem:[#allocation9 + $0x18] sm:$0x1f] }
  0xa2   :  { %v18560_v32 = vld [vmem:[#allocation17 + $0x3a0] sm:$0xff]  ;;  %v342_v53 = vadd.f32 %v331_v43, %v296_v39  ;;  %5903 = vmatprep.subr.bf16.mxu1 %v15683_v37  ;;  %v20423_v37 = vunpack.c.l.bf16 %v18543_v24  ;;  %v20426_v39 = vunpack.c.l.bf16 %v18545_v25 }
  0xa3   :  { %v386_v41 = vadd.f32 %v375_v27, %v340_v33  ;;  %v15547_v47 = vcombine.high %v18558_v31, %v18560_v32  ;;  %v2098_v49 = vld [vmem:[#allocation17 + $0x780] sm:$0xff]  ;;  %v15546_v51 = vcombine.low %v18558_v31, %v18560_v32  ;;  %v423_v54 = vmul.f32 %v18504_v4, %v20436_v36  ;;  %5904 = vmatpush2.bf16.msra.mxu1 %v15682_v46 }
  0xa4   :  { %v2102_v50 = vld [vmem:[#allocation17 + $0x7a0] sm:$0xff]  ;;  %v388_v63 = vadd.f32 %v377_v44, %v342_v53  ;;  %v339_v31 = vadd.f32 %v328_v1, %v293_v60  ;;  %v466_v33 = vmul.f32 %v18538_v22, %v20422_v59  ;;  %v376_v45 = vmul.f32 %v18489_v61, %v20423_v37 }
  0xa5   :  { %v432_v52 = vadd.f32 %v421_v28, %v386_v41  ;;  %v15675_v5 = vcombine.high %v2098_v49, %v2102_v50  ;;  %v15674_v13 = vcombine.low %v2098_v49, %v2102_v50  ;;  %v1962_v20 = vld [vmem:[#allocation17 + $0x340] sm:$0xff]  ;;  %v295_v49 = vmul.f32 %v18477_v55, %v20428_v6  ;;  %5864 = vmatprep.subr.bf16.mxu0 %v15547_v47 }
  0xa6   :  { %v1966_v21 = vld [vmem:[#allocation17 + $0x360] sm:$0xff]  ;;  %v434_v28 = vadd.f32 %v423_v54, %v388_v63  ;;  %v385_v44 = vadd.f32 %v374_v19, %v339_v31  ;;  %v422_v31 = vmul.f32 %v18504_v4, %v20426_v39  ;;  %5865 = vmatpush2.bf16.msra.mxu0 %v15546_v51 }
  0xa7   :  { %v478_v62 = vadd.f32 %v467_v38, %v432_v52  ;;  %v2090_v26 = vld [vmem:[#allocation17 + $0x740] sm:$0xff]  ;;  %v20427_v38 = vunpack.c.l.bf16 %v18527_v18  ;;  %v15539_v50 = vcombine.high %v1962_v20, %v1966_v21  ;;  %v20425_v52 = vunpack.c.l.bf16 %v18556_v30  ;;  %5905 = vmatprep.subr.bf16.mxu1 %v15675_v5 }
  0xa8   :  { %v2094_v32 = vld [vmem:[#allocation17 + $0x760] sm:$0xff]  ;;  %v480_v43 = vadd.f32 %v469_v0, %v434_v28  ;;  %v431_v47 = vadd.f32 %v420_v12, %v385_v44  ;;  %v15538_v0 = vcombine.low %v1962_v20, %v1966_v21  ;;  %5906 = vmatpush2.bf16.msra.mxu1 %v15674_v13 }
  0xa9   :  { %v18610_v27 = vadd.f32 %v18541_v23, %v478_v62  ;;  %v330_v53 = vmul.f32 %v18480_v56, %v20427_v38  ;;  %v15667_v54 = vcombine.high %v2090_v26, %v2094_v32  ;;  %v1954_v60 = vld [vmem:[#allocation17 + $0x300] sm:$0xff]  ;;  %v15666_v59 = vcombine.low %v2090_v26, %v2094_v32  ;;  %5866 = vmatprep.subr.bf16.mxu0 %v15539_v50 }
  0xaa   :  { %v1958_v62 = vld [vmem:[#allocation17 + $0x320] sm:$0xff]  ;;  %v18634_v46 = vadd.f32 %v18541_v23, %v480_v43  ;;  %v477_v58 = vadd.f32 %v466_v33, %v431_v47  ;;  %v468_v20 = vmul.f32 %v18538_v22, %v20425_v52  ;;  %5867 = vmatpush2.bf16.msra.mxu0 %v15538_v0 }
  0xab   :  { %v861_v41 = vrot.slane %v18610_v27, 4  ;;  %v2082_v1 = vld [vmem:[#allocation17 + $0x700] sm:$0xff]  ;;  %v341_v28 = vadd.f32 %v330_v53, %v295_v49  ;;  %5907 = vmatprep.subr.bf16.mxu1 %v15667_v54  ;;  %v15530_v50 = vcombine.low %v1954_v60, %v1958_v62 }
  0xac   :  { %v2086_v19 = vld [vmem:[#allocation17 + $0x720] sm:$0xff]  ;;  %v873_v37 = vrot.slane %v18634_v46, 4  ;;  %v18645_v26 = vadd.f32 %v18541_v23, %v477_v58  ;;  %5908 = vmatpush2.bf16.msra.mxu1 %v15666_v59 }
  0xad   :  { %v862_v63 = vadd.f32 %v861_v41, %v18610_v27  ;;  %v15531_v41 = vcombine.high %v1954_v60, %v1958_v62  ;;  %v387_v43 = vadd.f32 %v376_v45, %v341_v28  ;;  %v15659_v21 = vcombine.high %v2082_v1, %v2086_v19  ;;  %v1946_v12 = vld [vmem:[#allocation17 + $0x2c0] sm:$0xff] }
  0xae   :  { %v1950_v44 = vld [vmem:[#allocation17 + $0x2e0] sm:$0xff]  ;;  %v874_v51 = vadd.f32 %v873_v37, %v18634_v46  ;;  %v855_v47 = vrot.slane %v18645_v26, 4  ;;  %v15658_v54 = vcombine.low %v2082_v1, %v2086_v19 }
  0xaf   :  { %v863_v5 = vrot.slane %v862_v63, 2  ;;  %v2074_v32 = vld [vmem:[#allocation17 + $0x6c0] sm:$0xff]  ;;  %v433_v13 = vadd.f32 %v422_v31, %v387_v43  ;;  %5868 = vmatprep.subr.bf16.mxu0 %v15531_v41  ;;  %v15523_v28 = vcombine.high %v1946_v12, %v1950_v44  ;;  %5909 = vmatprep.subr.bf16.mxu1 %v15659_v21  ;;  %v15522_v62 = vcombine.low %v1946_v12, %v1950_v44 }
  0xb0   :  { %v2078_v33 = vld [vmem:[#allocation17 + $0x6e0] sm:$0xff]  ;;  %v875_v45 = vrot.slane %v874_v51, 2  ;;  %v856_v38 = vadd.f32 %v855_v47, %v18645_v26  ;;  %5869 = vmatpush2.bf16.msra.mxu0 %v15530_v50  ;;  %5910 = vmatpush2.bf16.msra.mxu1 %v15658_v54 }
  0xb1   :  { %v864_v49 = vadd.f32 %v863_v5, %v862_v63  ;;  %v479_v52 = vadd.f32 %v468_v20, %v433_v13  ;;  %v15651_v63 = vcombine.high %v2074_v32, %v2078_v33  ;;  %v1938_v37 = vld [vmem:[#allocation17 + $0x280] sm:$0xff]  ;;  %5870 = vmatprep.subr.bf16.mxu0 %v15523_v28  ;;  %v15650_v19 = vcombine.low %v2074_v32, %v2078_v33 }
  0xb2   :  { %v1942_v5 = vld [vmem:[#allocation17 + $0x2a0] sm:$0xff]  ;;  %v876_v39 = vadd.f32 %v875_v45, %v874_v51  ;;  %v857_v1 = vrot.slane %v856_v38, 2 }
  0xb3   :  { %v865_v53 = vrot.slane %v864_v49, 1  ;;  %v2066_v31 = vld [vmem:[#allocation17 + $0x680] sm:$0xff]  ;;  %v18650_v60 = vadd.f32 %v18541_v23, %v479_v52  ;;  %v15515_v43 = vcombine.high %v1938_v37, %v1942_v5  ;;  %5911 = vmatprep.subr.bf16.mxu1 %v15651_v63  ;;  %v15514_v45 = vcombine.low %v1938_v37, %v1942_v5 }
  0xb4   :  { %v2070_v0 = vld [vmem:[#allocation17 + $0x6a0] sm:$0xff]  ;;  %v877_v41 = vrot.slane %v876_v39, 1  ;;  %5871 = vmatpush2.bf16.msra.mxu0 %v15522_v62  ;;  %5912 = vmatpush2.bf16.msra.mxu1 %v15650_v19 }
  0xb5   :  { %v866_v58 = vadd.f32 %v865_v53, %v864_v49  ;;  %v867_v20 = vrot.slane %v18650_v60, 4  ;;  %v15643_v21 = vcombine.high %v2066_v31, %v2070_v0  ;;  %v1930_v49 = vld [vmem:[#allocation17 + $0x240] sm:$0xff]  ;;  %v858_v53 = vadd.f32 %v857_v1, %v856_v38  ;;  %5872 = vmatprep.subr.bf16.mxu0 %v15515_v43 }
  0xb6   :  { %v1934_v51 = vld [vmem:[#allocation17 + $0x260] sm:$0xff]  ;;  %v878_v52 = vadd.f32 %v877_v41, %v876_v39  ;;  %v15642_v54 = vcombine.low %v2066_v31, %v2070_v0 }
  0xb7   :  { %v923_v59 = vmul.f32 0.125, %v866_v58  ;;  %v2058_v50 = vld [vmem:[#allocation17 + $0x640] sm:$0xff]  ;;  %v868_v44 = vadd.f32 %v867_v20, %v18650_v60  ;;  %v859_v47 = vrot.slane %v858_v53, 1  ;;  %v15507_v28 = vcombine.high %v1930_v49, %v1934_v51  ;;  %5913 = vmatprep.subr.bf16.mxu1 %v15643_v21 }
  0xb8   :  { %v2062_v12 = vld [vmem:[#allocation17 + $0x660] sm:$0xff]  ;;  %v925_v33 = vmul.f32 0.125, %v878_v52  ;;  %5873 = vmatpush2.bf16.msra.mxu0 %v15514_v45  ;;  %v15506_v1 = vcombine.low %v1930_v49, %v1934_v51  ;;  %5914 = vmatpush2.bf16.msra.mxu1 %v15642_v54 }
  0xb9   :  { %v18654_v13 = vsub.f32 %v18610_v27, %v923_v59  ;;  %v869_v63 = vrot.slane %v868_v44, 2  ;;  %v15635_v27 = vcombine.high %v2058_v50, %v2062_v12  ;;  %v1922_v39 = vld [vmem:[#allocation17 + $0x200] sm:$0xff]  ;;  %v860_v62 = vadd.f32 %v859_v47, %v858_v53  ;;  %5874 = vmatprep.subr.bf16.mxu0 %v15507_v28 }
  0xba   :  { %v1926_v38 = vld [vmem:[#allocation17 + $0x220] sm:$0xff]  ;;  %v18660_v59 = vsub.f32 %v18634_v46, %v925_v33  ;;  %v15634_v19 = vcombine.low %v2058_v50, %v2062_v12 }
  0xbb   :  { %v945_v32 = vmul.f32 %v18654_v13, %v18654_v13  ;;  %v2050_v37 = vld [vmem:[#allocation17 + $0x600] sm:$0xff]  ;;  %v870_v41 = vadd.f32 %v869_v63, %v868_v44  ;;  %v922_v0 = vmul.f32 0.125, %v860_v62  ;;  %v15499_v43 = vcombine.high %v1922_v39, %v1926_v38  ;;  %5915 = vmatprep.subr.bf16.mxu1 %v15635_v27 }
  0xbc   :  { %v2054_v5 = vld [vmem:[#allocation17 + $0x620] sm:$0xff]  ;;  %v947_v31 = vmul.f32 %v18660_v59, %v18660_v59  ;;  %5875 = vmatpush2.bf16.msra.mxu0 %v15506_v1  ;;  %v15498_v50 = vcombine.low %v1922_v39, %v1926_v38  ;;  %5916 = vmatpush2.bf16.msra.mxu1 %v15634_v19  ;;  %v745_v63 = vlaneseq }
  0xbd   :  { %v961_v58 = vrot.slane %v945_v32, 4  ;;  %v871_v21 = vrot.slane %v870_v41, 1  ;;  %v15627_v52 = vcombine.high %v2050_v37, %v2054_v5  ;;  %v18664_v53 = vld [vmem:[#allocation17 + $0x9c0] sm:$0xff]  ;;  %v18669_v49 = vsub.f32 %v18645_v26, %v922_v0  ;;  %5876 = vmatprep.subr.bf16.mxu0 %v15499_v43 }
  0xbe   :  { %v973_v33 = vrot.slane %v947_v31, 4  ;;  %v18666_v47 = vld [vmem:[#allocation17 + $0x9e0] sm:$0xff]  ;;  %v15626_v28 = vcombine.low %v2050_v37, %v2054_v5  ;;  %v18684_v37 = vshrl.u32 %v745_v63, 7  ;;  %v18699_v63 = vld [vmem:[#allocation9 + $0x8] sm:$0x1f] }
  0xbf   :  { %v962_v20 = vadd.f32 %v961_v58, %v945_v32  ;;  %v18671_v51 = vld [vmem:[#allocation17 + $0xdc0] sm:$0xff]  ;;  %v872_v45 = vadd.f32 %v871_v21, %v870_v41  ;;  %v944_v54 = vmul.f32 %v18669_v49, %v18669_v49  ;;  %v15747_v26 = vcombine.high %v18664_v53, %v18666_v47  ;;  %5917 = vmatprep.subr.bf16.mxu1 %v15627_v52  ;;  %v18690_v52 = vld [vmem:[#allocation2 + $0x3c] sm:$0xff] }
  0xc0   :  { %v18673_v44 = vld [vmem:[#allocation17 + $0xde0] sm:$0xff]  ;;  %v974_v32 = vadd.f32 %v973_v33, %v947_v31  ;;  %5877 = vmatpush2.bf16.msra.mxu0 %v15498_v50  ;;  %5918 = vmatpush2.bf16.msra.mxu1 %v15626_v28  ;;  %20508 = vst [vmem:[#allocation33_spill] sm:$0xff] %v18684_v37  ;;  %20509 = vst [vmem:[#allocation34_spill] sm:$0xff] %v18690_v52  ;;  %v18694_v33 = vld [vmem:[#allocation2 + $0x94] sm:$0xff]  ;;  %v20449_v34 = vunpack.c.l.bf16 %v18690_v52 }
  0xc1   :  { %v963_v46 = vrot.slane %v962_v20, 2  ;;  %v924_v27 = vmul.f32 0.125, %v872_v45  ;;  %v15875_v41 = vcombine.high %v18671_v51, %v18673_v44  ;;  %v955_v39 = vrot.slane %v944_v54, 4  ;;  %5928 = vmatprep.subr.bf16.mxu0 %v15747_v26  ;;  %v18688_v21 = vld [vmem:[#allocation2 + $0x10] sm:$0xff]  ;;  %20511 = vst [vmem:[#allocation36_spill] sm:$0xff] %v18694_v33  ;;  %v18696_v45 = vld [vmem:[#allocation2 + $0xc0] sm:$0xff] }
  0xc2   :  { %v975_v62 = vrot.slane %v974_v32, 2  ;;  %20512 = vst [vmem:[#allocation37_spill] sm:$0xff] %v18696_v45  ;;  %v20430_v28 = vunpack.c.h.bf16 %v18688_v21  ;;  %v18702_v26 = vsub.s32 2, %v18684_v37 }
  0xc3   :  { %v964_v12 = vadd.f32 %v963_v46, %v962_v20  ;;  %v18682_v38 = vsub.f32 %v18650_v60, %v924_v27  ;;  %v956_v31 = vadd.f32 %v955_v39, %v944_v54  ;;  %5969 = vmatprep.subr.bf16.mxu1 %v15875_v41  ;;  %v18692_v60 = vld [vmem:[#allocation2 + $0x68] sm:$0xff]  ;;  %v20431_v41 = vunpack.c.h.bf16 %v18690_v52 }
  0xc4   :  { %v976_v20 = vadd.f32 %v975_v62, %v974_v32  ;;  %20510 = vst [vmem:[#allocation35_spill] sm:$0xff] %v18692_v60  ;;  %20513 = vst [vmem:[#allocation38_spill] sm:$0xff] %v18702_v26  ;;  %v20432_v39 = vunpack.c.h.bf16 %v18692_v60  ;;  %v20450_v29 = vunpack.c.l.bf16 %v18692_v60 }
  0xc5   :  { %v965_v58 = vrot.slane %v964_v12, 1  ;;  %v946_v5 = vmul.f32 %v18682_v38, %v18682_v38  ;;  %v957_v43 = vrot.slane %v956_v31, 2 }
  0xc6   :  { %v977_v19 = vrot.slane %v976_v20, 1  ;;  %v379_v6 = vmul.f32 %v18489_v61, %v20432_v39 }
  0xc7   :  { %v966_v1 = vadd.f32 %v965_v58, %v964_v12  ;;  %v967_v46 = vrot.slane %v946_v5, 4  ;;  %v958_v32 = vadd.f32 %v957_v43, %v956_v31  ;;  %v18710_v31 = vld [vmem:[#allocation2 + $0x70] sm:$0xff]  ;;  %v20439_v43 = vunpack.c.h.bf16 %v18696_v45 }
  0xc8   :  { %v978_v12 = vadd.f32 %v977_v19, %v976_v20  ;;  %v18708_v20 = vld [vmem:[#allocation2 + $0x44] sm:$0xff]  ;;  %20516 = vst [vmem:[#allocation41_spill] sm:$0xff] %v18710_v31  ;;  %v20440_v19 = vunpack.c.h.bf16 %v18694_v33  ;;  %v20443_v42 = vunpack.c.h.bf16 %v18710_v31 }
  0xc9   :  { %v1023_v0 = vmul.f32 0.125, %v966_v1  ;;  %v968_v54 = vadd.f32 %v967_v46, %v946_v5  ;;  %v959_v58 = vrot.slane %v958_v32, 1  ;;  %v18706_v1 = vld [vmem:[#allocation2 + $0x18] sm:$0xff]  ;;  %20515 = vst [vmem:[#allocation40_spill] sm:$0xff] %v18708_v20  ;;  %v471_v48 = vmul.f32 %v18538_v22, %v20439_v43 }
  0xca   :  { %v1025_v27 = vmul.f32 0.125, %v978_v12  ;;  %20514 = vst [vmem:[#allocation39_spill] sm:$0xff] %v18706_v1  ;;  %v333_v12 = vmul.f32 %v18480_v56, %v20431_v41  ;;  %v425_v39 = vmul.f32 %v18504_v4, %v20440_v19  ;;  %v381_v43 = vmul.f32 %v18489_v61, %v20443_v42 }
  0xcb   :  { %v1034_v50 = vadd.f32 1e-05, %v1023_v0  ;;  %v969_v62 = vrot.slane %v968_v54, 2  ;;  %v960_v0 = vadd.f32 %v959_v58, %v958_v32  ;;  %v1073_v32 = vrot.slane %v18699_v63, %v18702_v26  ;;  %v18728_v58 = vld [vmem:[#allocation2 + $0x9c] sm:$0xff] }
  0xcc   :  { %v1036_v5 = vadd.f32 1e-05, %v1025_v27  ;;  %v18726_v27 = vsub.s32 3, %v18684_v37  ;;  %20517 = vst [vmem:[#allocation42_spill] sm:$0xff] %v18728_v58  ;;  %v20452_v35 = vunpack.c.h.bf16 %v18728_v58  ;;  %v20448_v42 = vunpack.c.l.bf16 %v18688_v21 }
  0xcd   :  { %17964 = vrsqrt.f32 %v1034_v50  ;;  %v970_v46 = vadd.f32 %v969_v62, %v968_v54  ;;  %v298_v50 = vmul.f32 %v18477_v55, %v20430_v28  ;;  %v1022_v54 = vmul.f32 0.125, %v960_v0  ;;  %v18730_v62 = vld [vmem:[#allocation2 + $0xc8] sm:$0xff] }
  0xce   :  { %17966 = vrsqrt.f32 %v1036_v5  ;;  %20518 = vst [vmem:[#allocation43_spill] sm:$0xff] %v18730_v62  ;;  %v20441_v5 = vunpack.c.h.bf16 %v18706_v1  ;;  %v20442_v0 = vunpack.c.h.bf16 %v18708_v20 }
  0xcf   :  { %v971_v28 = vrot.slane %v970_v46, 1  ;;  %v344_v41 = vadd.f32 %v333_v12, %v298_v50  ;;  %v1033_v40 = vadd.f32 1e-05, %v1022_v54  ;;  %v20451_v50 = vunpack.c.h.bf16 %v18730_v62 }
  0xd0   :  { %v300_v12 = vmul.f32 %v18477_v55, %v20441_v5  ;;  %v335_v54 = vmul.f32 %v18480_v56, %v20442_v0  ;;  %v427_v5 = vmul.f32 %v18504_v4, %v20452_v35 }
  0xd1   :  { %v972_v36 = vadd.f32 %v971_v28, %v970_v46  ;;  %v390_v16 = vadd.f32 %v379_v6, %v344_v41  ;;  %17968 = vrsqrt.f32 %v1033_v40  ;;  %v1128_v6 = vrot.slane %v18699_v63, %v18726_v27  ;;  %v18758_v41 = vld [vmem:[#allocation9] sm:$0x1f] }
  0xd2   :  { %v1081_v28 = vrot.slane %v18732_v57, %v18702_v26  ;;  %v346_v19 = vadd.f32 %v335_v54, %v300_v12  ;;  %v473_v0 = vmul.f32 %v18538_v22, %v20451_v50 }
  0xd3   :  { %v1024_v40 = vmul.f32 0.125, %v972_v36  ;;  %v436_v46 = vadd.f32 %v425_v39, %v390_v16  ;;  %v20454_v16 = vunpack.c.l.bf16 %v18694_v33  ;;  %v20456_v36 = vunpack.c.l.bf16 %v18696_v45 }
  0xd4   :  { %v392_v14 = vadd.f32 %v381_v43, %v346_v19  ;;  %v297_v39 = vmul.f32 %v18477_v55, %v20448_v42  ;;  %v378_v19 = vmul.f32 %v18489_v61, %v20450_v29 }
  0xd5   :  { %v1035_v15 = vadd.f32 1e-05, %v1024_v40  ;;  %v482_v63 = vadd.f32 %v471_v48, %v436_v46  ;;  %v332_v48 = vmul.f32 %v18480_v56, %v20449_v34  ;;  %v1136_v40 = vrot.slane %v18732_v57, %v18726_v27 }
  0xd6   :  { %v1069_v46 = vrot.slane %v18758_v41, %v18702_v26  ;;  %v424_v34 = vmul.f32 %v18504_v4, %v20454_v16  ;;  %v470_v29 = vmul.f32 %v18538_v22, %v20456_v36  ;;  %v20457_v57 = vunpack.c.l.bf16 %v18708_v20 }
  0xd7   :  { %17970 = vrsqrt.f32 %v1035_v15  ;;  %v18775_v54 = vadd.f32 %v18541_v23, %v482_v63  ;;  %v438_v15 = vadd.f32 %v427_v5, %v392_v14  ;;  %v343_v42 = vadd.f32 %v332_v48, %v297_v39 }
  0xd8   :  { %v20458_v39 = vunpack.c.l.bf16 %v18710_v31  ;;  %v20461_v48 = vunpack.c.l.bf16 %v18728_v58 }
  0xd9   :  { %v885_v63 = vrot.slane %v18775_v54, 4  ;;  %v389_v5 = vadd.f32 %v378_v19, %v343_v42  ;;  %v334_v42 = vmul.f32 %v18480_v56, %v20457_v57 }
  0xda   :  { %v17965_v12 = vpop.eup %17964  ;;  %v426_v36 = vmul.f32 %v18504_v4, %v20461_v48  ;;  %v18846_v48 = vld [vmem:[#allocation17 + $0x940] sm:$0xff] }
  0xdb   :  { %v1056_v43 = vmul.f32 %v17965_v12, %v18654_v13  ;;  %v484_v13 = vadd.f32 %v473_v0, %v438_v15  ;;  %v20459_v12 = vunpack.c.l.bf16 %v18706_v1  ;;  %v17967_v35 = vpop.eup %17966  ;;  %v886_v14 = vadd.f32 %v885_v63, %v18775_v54  ;;  %v516_v63 = vld [vmem:[#allocation9 + $0x10] sm:$0x1f] }
  0xdc   :  { %v1058_v16 = vmul.f32 %v17967_v35, %v18660_v59  ;;  %v380_v59 = vmul.f32 %v18489_v61, %v20458_v39 }
  0xdd   :  { %v1111_v50 = vmul.f32 %v1073_v32, %v1056_v43  ;;  %v18802_v7 = vadd.f32 %v18541_v23, %v484_v13  ;;  %v20460_v32 = vunpack.c.l.bf16 %v18730_v62  ;;  %v887_v0 = vrot.slane %v886_v14, 2  ;;  %v18887_v62 = vld [vmem:[#allocation17 + $0x8e0] sm:$0xff] }
  0xde   :  { %v435_v43 = vadd.f32 %v424_v34, %v389_v5  ;;  %v299_v15 = vmul.f32 %v18477_v55, %v20459_v12 }
  0xdf   :  { %v1166_v8 = vadd.f32 %v1128_v6, %v1111_v50  ;;  %v1113_v50 = vmul.f32 %v1081_v28, %v1058_v16  ;;  %v897_v35 = vrot.slane %v18802_v7, 4  ;;  %v17969_v6 = vpop.eup %17968  ;;  %v888_v34 = vadd.f32 %v887_v0, %v886_v14 }
  0xe0   :  { %v481_v13 = vadd.f32 %v470_v29, %v435_v43  ;;  %v345_v5 = vadd.f32 %v334_v42, %v299_v15  ;;  %v1055_v28 = vmul.f32 %v17969_v6, %v18669_v49  ;;  %v1124_v16 = vrot.slane %v18758_v41, %v18726_v27  ;;  %v2166_v41 = vld [vmem:[#allocation17 + $0x9a0] sm:$0xff] }
  0xe1   :  { %v18811_v19 = vpack.c.bf16 %v1166_v8, %v1166_v8  ;;  %v1168_v8 = vadd.f32 %v1136_v40, %v1113_v50  ;;  %v898_v57 = vadd.f32 %v897_v35, %v18802_v7  ;;  %v889_v39 = vrot.slane %v888_v34, 1  ;;  %v18833_v40 = vld [vmem:[#allocation17 + $0x980] sm:$0xff] }
  0xe2   :  { %v18826_v12 = vadd.f32 %v18541_v23, %v481_v13  ;;  %v391_v29 = vadd.f32 %v380_v59, %v345_v5  ;;  %v472_v14 = vmul.f32 %v18538_v22, %v20460_v32  ;;  %v1110_v43 = vmul.f32 %v1069_v46, %v1055_v28  ;;  %v18836_v42 = vld [vmem:[#allocation17 + $0xd80] sm:$0xff] }
  0xe3   :  { %5878 = vmatprep.mubr.bf16.mxu0 %v18811_v19  ;;  %v18831_v0 = vpack.c.bf16 %v1168_v8, %v1168_v8  ;;  %v899_v49 = vrot.slane %v898_v57, 2  ;;  %v1077_v15 = vrot.slane %v516_v63, %v18702_v26  ;;  %v890_v50 = vadd.f32 %v889_v39, %v888_v34  ;;  %v18843_v8 = vld [vmem:[#allocation17 + $0xda0] sm:$0xff] }
  0xe4   :  { %v879_v35 = vrot.slane %v18826_v12, 4  ;;  %v437_v6 = vadd.f32 %v426_v36, %v391_v29  ;;  %v17971_v59 = vpop.eup %17970  ;;  %v15746_v13 = vcombine.low %v18664_v53, %v18666_v47  ;;  %v1165_v5 = vadd.f32 %v1124_v16, %v1110_v43  ;;  %v2158_v47 = vld [vmem:[#allocation17 + $0x960] sm:$0xff] }
  0xe5   :  { %5919 = vmatprep.mubr.bf16.mxu1 %v18831_v0  ;;  %v1132_v46 = vrot.slane %v516_v63, %v18726_v27  ;;  %v900_v28 = vadd.f32 %v899_v49, %v898_v57  ;;  %v1057_v32 = vmul.f32 %v17971_v59, %v18682_v38  ;;  %v927_v39 = vmul.f32 0.125, %v890_v50  ;;  %v18854_v63 = vld [vmem:[#allocation17 + $0xd40] sm:$0xff] }
  0xe6   :  { %v880_v34 = vadd.f32 %v879_v35, %v18826_v12  ;;  %v483_v36 = vadd.f32 %v472_v14, %v437_v6  ;;  %v15874_v29 = vcombine.low %v18671_v51, %v18673_v44  ;;  %v18851_v37 = vpack.c.bf16 %v1165_v5, %v1165_v5  ;;  %v18856_v16 = vld [vmem:[#allocation17 + $0xd60] sm:$0xff] }
  0xe7   :  { %v15739_v53 = vcombine.high %v18833_v40, %v2166_v41  ;;  %v901_v57 = vrot.slane %v900_v28, 1  ;;  %v1112_v38 = vmul.f32 %v1077_v15, %v1057_v32  ;;  %v18858_v43 = vld [vmem:[#allocation17 + $0x900] sm:$0xff]  ;;  %v18863_v14 = vsub.f32 %v18775_v54, %v927_v39 }
  0xe8   :  { %v18860_v49 = vld [vmem:[#allocation17 + $0x920] sm:$0xff]  ;;  %v881_v50 = vrot.slane %v880_v34, 2  ;;  %v18866_v51 = vadd.f32 %v18541_v23, %v483_v36  ;;  %5879 = vmatmul.mubr.bf16.vlgmr.msra.gmra.mxu0 %v18851_v37  ;;  %v15738_v44 = vcombine.low %v18833_v40, %v2166_v41  ;;  %v15866_v35 = vcombine.low %v18836_v42, %v18843_v8 }
  0xe9   :  { %v15867_v32 = vcombine.high %v18836_v42, %v18843_v8  ;;  %v18874_v15 = vld [vmem:[#allocation17 + $0xd00] sm:$0xff]  ;;  %v902_v54 = vadd.f32 %v901_v57, %v900_v28  ;;  %v1167_v59 = vadd.f32 %v1132_v46, %v1112_v38  ;;  %5929 = vmatpush1.bf16.msra.mxu0 %v15746_v13  ;;  %v949_v39 = vmul.f32 %v18863_v14, %v18863_v14  ;;  %v18889_v13 = vld [vmem:[#allocation2 + $0x28] ss:$44 sps:$4 sm:$0xff]  }
  0xea   :  { %v18876_v6 = vld [vmem:[#allocation17 + $0xd20] sm:$0xff]  ;;  %v882_v36 = vadd.f32 %v881_v50, %v880_v34  ;;  %v891_v40 = vrot.slane %v18866_v51, 4  ;;  %5930 = vmatprep.subr.bf16.mxu0 %v15739_v53  ;;  %v15730_v41 = vcombine.low %v18846_v48, %v2158_v47  ;;  %v15731_v42 = vcombine.high %v18846_v48, %v2158_v47  ;;  %20519 = vst [vmem:[#allocation44_spill] sm:$0xff] %v18889_v13  ;;  %v18896_v50 = vld [vmem:[#allocation2 + $0xd8] sm:$0xf] }
  0xeb   :  { %v18878_v5 = vld [vmem:[#allocation17 + $0x8c0] sm:$0xff]  ;;  %v929_v46 = vmul.f32 0.125, %v902_v54  ;;  %v18893_v57 = vpack.c.bf16 %v1167_v59, %v1167_v59  ;;  %v985_v34 = vrot.slane %v949_v39, 4  ;;  %20521 = vst [vmem:[#allocation46_spill] sm:$0xff] %v18896_v50  ;;  %v15859_v48 = vcombine.high %v18854_v63, %v18856_v16 }
  0xec   :  { %v18891_v28 = vld [vmem:[#allocation2 + $0x80] ss:$44 sps:$4 sm:$0xff]   ;;  %v883_v38 = vrot.slane %v882_v36, 1  ;;  %v892_v53 = vadd.f32 %v891_v40, %v18866_v51  ;;  %v15722_v47 = vcombine.low %v18858_v43, %v18860_v49  ;;  %v15723_v54 = vcombine.high %v18858_v43, %v18860_v49 }
  0xed   :  { %20520 = vst [vmem:[#allocation45_spill] sm:$0xff] %v18891_v28  ;;  %v18905_v8 = vsub.f32 %v18802_v7, %v929_v46  ;;  %5920 = vmatmul.mubr.bf16.vlgmr.msra.gmra.mxu1 %v18893_v57  ;;  %5931 = vmatpush1.bf16.msra.mxu0 %v15738_v44  ;;  %v15851_v59 = vcombine.high %v18874_v15, %v18876_v6  ;;  %v20477_v7 = vunpack.c.l.bf16 %v18889_v13  ;;  %v20476_v49 = vunpack.c.h.bf16 %v18889_v13 }
  0xee   :  { %v986_v40 = vadd.f32 %v985_v34, %v949_v39  ;;  %v884_v58 = vadd.f32 %v883_v38, %v882_v36  ;;  %v893_v45 = vrot.slane %v892_v53, 2  ;;  %5970 = vmatpush1.bf16.msra.mxu1 %v15874_v29  ;;  %5932 = vmatprep.subr.bf16.mxu0 %v15731_v42  ;;  %v15715_v31 = vcombine.high %v18878_v5, %v18887_v62  ;;  %v2130_v42 = vld [vmem:[#allocation17 + $0x880] sm:$0xff] }
  0xef   :  { %v951_v43 = vmul.f32 %v18905_v8, %v18905_v8  ;;  %5971 = vmatprep.subr.bf16.mxu1 %v15867_v32  ;;  %v20478_v39 = vunpack.c.l.bf16 %v18891_v28  ;;  %v303_v34 = vmul.f32 %v18477_v55, %v20477_v7  ;;  %v15850_v7 = vcombine.low %v18874_v15, %v18876_v6 }
  0xf0   :  { %v987_v44 = vrot.slane %v986_v40, 2  ;;  %v926_v46 = vmul.f32 0.125, %v884_v58  ;;  %v894_v33 = vadd.f32 %v893_v45, %v892_v53  ;;  %v338_v45 = vmul.f32 %v18480_v56, %v20476_v49  ;;  %v18928_v58 = vld [vmem:[#allocation17 + $0xcc0] sm:$0xff] }
  0xf1   :  { %v997_v36 = vrot.slane %v951_v43, 4  ;;  %5933 = vmatpush1.bf16.msra.mxu0 %v15730_v41  ;;  %v18930_v53 = vld [vmem:[#allocation17 + $0xce0] sm:$0xff]  ;;  %v384_v41 = vmul.f32 %v18489_v61, %v20478_v39  ;;  %v20523_v39 = vunpack.c.l.bf16 %v18896_v50 }
  0xf2   :  { %v988_v38 = vadd.f32 %v987_v44, %v986_v40  ;;  %v18923_v20 = vsub.f32 %v18826_v12, %v926_v46  ;;  %v895_v32 = vrot.slane %v894_v33, 1  ;;  %5972 = vmatpush1.bf16.msra.mxu1 %v15866_v35  ;;  %5934 = vmatprep.subr.bf16.mxu0 %v15723_v54  ;;  %v20522_v12 = vunpack.c.h.bf16 %v18891_v28  ;;  %v2134_v44 = vld [vmem:[#allocation17 + $0x8a0] sm:$0xff] }
  0xf3   :  { %v998_v29 = vadd.f32 %v997_v36, %v951_v43  ;;  %5973 = vmatprep.subr.bf16.mxu1 %v15859_v48  ;;  %v349_v49 = vadd.f32 %v338_v45, %v303_v34  ;;  %v15714_v43 = vcombine.low %v18878_v5, %v18887_v62  ;;  %v476_v28 = vmul.f32 %v18538_v22, %v20523_v39  ;;  %v2258_v62 = vld [vmem:[#allocation17 + $0xc80] sm:$0xff] }
  0xf4   :  { %v430_v40 = vmul.f32 %v18504_v4, %v20522_v12  ;;  %v989_v46 = vrot.slane %v988_v38, 1  ;;  %v948_v35 = vmul.f32 %v18923_v20, %v18923_v20  ;;  %v896_v54 = vadd.f32 %v895_v32, %v894_v33  ;;  %v2262_v5 = vld [vmem:[#allocation17 + $0xca0] sm:$0xff] }
  0xf5   :  { %v999_v36 = vrot.slane %v998_v29, 2  ;;  %5935 = vmatpush1.bf16.msra.mxu0 %v15722_v47  ;;  %v395_v1 = vadd.f32 %v384_v41, %v349_v49  ;;  %v20524_v33 = vcombine.low %v18854_v63, %v18856_v16  ;;  %v15843_v15 = vcombine.high %v18928_v58, %v18930_v53  ;;  %v2122_v34 = vld [vmem:[#allocation17 + $0x840] sm:$0xff] }
  0xf6   :  { %v990_v48 = vadd.f32 %v989_v46, %v988_v38  ;;  %v979_v12 = vrot.slane %v948_v35, 4  ;;  %v928_v13 = vmul.f32 0.125, %v896_v54  ;;  %5936 = vmatprep.subr.bf16.mxu0 %v15715_v31  ;;  %v15707_v6 = vcombine.high %v2130_v42, %v2134_v44  ;;  %v2126_v39 = vld [vmem:[#allocation17 + $0x860] sm:$0xff] }
  0xf7   :  { %5974 = vmatpush1.bf16.msra.mxu1 %v20524_v33  ;;  %v1000_v32 = vadd.f32 %v999_v36, %v998_v29  ;;  %v441_v49 = vadd.f32 %v430_v40, %v395_v1  ;;  %v15842_v63 = vcombine.low %v18928_v58, %v18930_v53  ;;  %v15706_v31 = vcombine.low %v2130_v42, %v2134_v44  ;;  %v2250_v36 = vld [vmem:[#allocation17 + $0xc40] sm:$0xff] }
  0xf8   :  { %5975 = vmatprep.subr.bf16.mxu1 %v15851_v59  ;;  %v1027_v47 = vmul.f32 0.125, %v990_v48  ;;  %v980_v38 = vadd.f32 %v979_v12, %v948_v35  ;;  %v18953_v45 = vsub.f32 %v18866_v51, %v928_v13  ;;  %v15835_v59 = vcombine.high %v2258_v62, %v2262_v5  ;;  %v2254_v51 = vld [vmem:[#allocation17 + $0xc60] sm:$0xff] }
  0xf9   :  { %v1001_v16 = vrot.slane %v1000_v32, 1  ;;  %5937 = vmatpush1.bf16.msra.mxu0 %v15714_v43  ;;  %v487_v29 = vadd.f32 %v476_v28, %v441_v49  ;;  %v15699_v35 = vcombine.high %v2122_v34, %v2126_v39  ;;  %v2114_v13 = vld [vmem:[#allocation17 + $0x800] sm:$0xff]  ;;  %v15698_v28 = vcombine.low %v2122_v34, %v2126_v39 }
  0xfa   :  { %v1038_v41 = vadd.f32 1e-05, %v1027_v47  ;;  %v981_v46 = vrot.slane %v980_v38, 2  ;;  %v950_v54 = vmul.f32 %v18953_v45, %v18953_v45  ;;  %5938 = vmatprep.subr.bf16.mxu0 %v15707_v6  ;;  %v2118_v58 = vld [vmem:[#allocation17 + $0x820] sm:$0xff]  ;;  %v15834_v12 = vcombine.low %v2258_v62, %v2262_v5 }
  0xfb   :  { %5976 = vmatpush1.bf16.msra.mxu1 %v15850_v7  ;;  %v1002_v1 = vadd.f32 %v1001_v16, %v1000_v32  ;;  %v18960_v40 = vadd.f32 %v18541_v23, %v487_v29  ;;  %v15691_v33 = vcombine.high %v2114_v13, %v2118_v58  ;;  %v18966_v6 = vld [vmem:[#allocation17 + $0xc20] sm:$0xff]  ;;  %v15827_v49 = vcombine.high %v2250_v36, %v2254_v51 }
  0xfc   :  { %5977 = vmatprep.subr.bf16.mxu1 %v15843_v15  ;;  %17972 = vrsqrt.f32 %v1038_v41  ;;  %v982_v42 = vadd.f32 %v981_v46, %v980_v38  ;;  %v991_v53 = vrot.slane %v950_v54, 4  ;;  %v18964_v15 = vld [vmem:[#allocation17 + $0xc00] sm:$0xff]  ;;  %v15690_v41 = vcombine.low %v2114_v13, %v2118_v58 }
  0xfd   :  { %v1029_v44 = vmul.f32 0.125, %v1002_v1  ;;  %5939 = vmatpush1.bf16.msra.mxu0 %v15706_v31  ;;  %v915_v48 = vsel %vm592_vm0, %v18960_v40, 0.0  ;;  %v2234_v32 = vld [vmem:[#allocation17 + $0xbc0] sm:$0xff]  ;;  %v15826_v46 = vcombine.low %v2250_v36, %v2254_v51 }
  0xfe   :  { %v983_v7 = vrot.slane %v982_v42, 1  ;;  %v992_v43 = vadd.f32 %v991_v53, %v950_v54  ;;  %5940 = vmatprep.subr.bf16.mxu0 %v15699_v35  ;;  %v916_v38 = vrot.slane %v915_v48, 4  ;;  %v2238_v31 = vld [vmem:[#allocation17 + $0xbe0] sm:$0xff]  ;;  %v519_v53 = vld [vmem:[#allocation9 + $0x28] sm:$0x1f] }
  0xff   :  { %5978 = vmatpush1.bf16.msra.mxu1 %v15842_v63  ;;  %v1040_v47 = vadd.f32 1e-05, %v1029_v44  ;;  %v18968_v63 = vld [vmem:[#allocation17 + $0xfc0] sm:$0xff]  ;;  %v15811_v54 = vcombine.high %v2234_v32, %v2238_v31 }
 0x100   :  { %5979 = vmatprep.subr.bf16.mxu1 %v15835_v59  ;;  %v984_v34 = vadd.f32 %v983_v7, %v982_v42  ;;  %v993_v39 = vrot.slane %v992_v43, 2  ;;  %v917_v16 = vadd.f32 %v916_v38, %v915_v48  ;;  %v18970_v29 = vld [vmem:[#allocation17 + $0xfe0] sm:$0xff]  ;;  %v15819_v42 = vcombine.high %v18964_v15, %v18966_v6 }
 0x101   :  { %17974 = vrsqrt.f32 %v1040_v47  ;;  %5941 = vmatpush1.bf16.msra.mxu0 %v15698_v28  ;;  %v18972_v35 = vld [vmem:[#allocation17 + $0xb80] sm:$0xff]  ;;  %v15938_v47 = vcombine.low %v18968_v63, %v18970_v29 }
 0x102   :  { %v1026_v62 = vmul.f32 0.125, %v984_v34  ;;  %v994_v5 = vadd.f32 %v993_v39, %v992_v43  ;;  %5942 = vmatprep.subr.bf16.mxu0 %v15691_v33  ;;  %v18974_v59 = vld [vmem:[#allocation17 + $0xba0] sm:$0xff]  ;;  %v918_v1 = vrot.slane %v917_v16, 2  ;;  %v15810_v43 = vcombine.low %v2234_v32, %v2238_v31  ;;  %v18996_v39 = vld [vmem:[#allocation2 + $0x20] sm:$0xff] }
 0x103   :  { %5980 = vmatpush1.bf16.msra.mxu1 %v15834_v12  ;;  %v18978_v13 = vld [vmem:[#allocation17 + $0xf80] sm:$0xff]  ;;  %v15818_v33 = vcombine.low %v18964_v15, %v18966_v6  ;;  %v15803_v38 = vcombine.high %v18972_v35, %v18974_v59  ;;  %v15939_v31 = vcombine.high %v18968_v63, %v18970_v29  ;;  %v15802_v15 = vcombine.low %v18972_v35, %v18974_v59 }
 0x104   :  { %5981 = vmatprep.subr.bf16.mxu1 %v15827_v49  ;;  %v18980_v58 = vld [vmem:[#allocation17 + $0xfa0] sm:$0xff]  ;;  %v995_v44 = vrot.slane %v994_v5, 1  ;;  %v1037_v28 = vadd.f32 1e-05, %v1026_v62  ;;  %v919_v7 = vadd.f32 %v918_v1, %v917_v16  ;;  %v19009_v62 = vld [vmem:[#allocation9 + $0x38] sm:$0x1f] }
 0x105   :  { %v18982_v36 = vld [vmem:[#allocation17 + $0xb40] sm:$0xff]  ;;  %5943 = vmatpush1.bf16.msra.mxu0 %v15690_v41  ;;  %v1089_v41 = vrot.slane %v519_v53, %v18702_v26  ;;  %v15930_v1 = vcombine.low %v18978_v13, %v18980_v58  ;;  %v15931_v63 = vcombine.high %v18978_v13, %v18980_v58  ;;  %v20486_v58 = vunpack.c.h.bf16 %v18996_v39 }
 0x106   :  { %v18984_v51 = vld [vmem:[#allocation17 + $0xb60] sm:$0xff]  ;;  %v996_v12 = vadd.f32 %v995_v44, %v994_v5  ;;  %5944 = vmatprep.subr.bf16.mxu0 %v15811_v54  ;;  %v920_v34 = vrot.slane %v919_v7, 1  ;;  %17976 = vrsqrt.f32 %v1037_v28  ;;  %v19026_v28 = vld [vmem:[#allocation2 + $0xa4] sm:$0xff] }
 0x107   :  { %v18986_v48 = vld [vmem:[#allocation17 + $0xf40] sm:$0xff]  ;;  %5982 = vmatpush1.bf16.msra.mxu1 %v15826_v46  ;;  %v19011_v46 = vld [vmem:[#allocation2 + $0x78] sm:$0xff]  ;;  %v15794_v35 = vcombine.low %v18982_v36, %v18984_v51 }
 0x108   :  { %v18994_v49 = vld [vmem:[#allocation17 + $0xf60] sm:$0xff]  ;;  %5983 = vmatprep.subr.bf16.mxu1 %v15819_v42  ;;  %v1028_v5 = vmul.f32 0.125, %v996_v12  ;;  %v921_v29 = vadd.f32 %v920_v34, %v919_v7  ;;  %v1144_v42 = vrot.slane %v519_v53, %v18726_v27  ;;  %v15795_v12 = vcombine.high %v18982_v36, %v18984_v51 }
 0x109   :  { %v18998_v32 = vld [vmem:[#allocation2 + $0x4c] sm:$0xff]  ;;  %v17973_v54 = vpop.eup %17972  ;;  %5945 = vmatpush2.bf16.msra.mxu0 %v15810_v43 }
 0x10a   :  { %v19004_v6 = vld [vmem:[#allocation17 + $0xb00] sm:$0xff]  ;;  %v1060_v59 = vmul.f32 %v17973_v54, %v18863_v14  ;;  %v1039_v44 = vadd.f32 1e-05, %v1028_v5  ;;  %5946 = vmatprep.subr.bf16.mxu0 %v15803_v38  ;;  %v932_v13 = vmul.f32 0.125, %v921_v29  ;;  %v15923_v14 = vcombine.high %v18986_v48, %v18994_v49 }
 0x10b   :  { %v19006_v16 = vld [vmem:[#allocation17 + $0xb20] sm:$0xff]  ;;  %5984 = vmatpush1.bf16.msra.mxu1 %v15818_v33  ;;  %v1097_v54 = vrot.slane %v19009_v62, %v18702_v26  ;;  %v20487_v38 = vunpack.c.h.bf16 %v19026_v28 }
 0x10c   :  { %5985 = vmatprep.subr.bf16.mxu1 %v15939_v31  ;;  %v19030_v7 = vld [vmem:[#allocation17 + $0xf00] sm:$0xff]  ;;  %v1115_v36 = vmul.f32 %v1089_v41, %v1060_v59  ;;  %v15786_v31 = vcombine.low %v19004_v6, %v19006_v16  ;;  %v15787_v5 = vcombine.high %v19004_v6, %v19006_v16  ;;  %v19049_v29 = vsub.f32 %v18960_v40, %v932_v13 }
 0x10d   :  { %v19032_v53 = vld [vmem:[#allocation17 + $0xf20] sm:$0xff]  ;;  %5947 = vmatpush2.bf16.msra.mxu0 %v15802_v15  ;;  %v1152_v59 = vrot.slane %v19009_v62, %v18726_v27  ;;  %17978 = vrsqrt.f32 %v1039_v44  ;;  %v302_v40 = vmul.f32 %v18477_v55, %v20486_v58  ;;  %v20525_v62 = vunpack.c.h.bf16 %v18998_v32 }
 0x10e   :  { %v19034_v43 = vld [vmem:[#allocation17 + $0xac0] sm:$0xff]  ;;  %v17975_v50 = vpop.eup %17974  ;;  %v1170_v41 = vadd.f32 %v1144_v42, %v1115_v36  ;;  %5948 = vmatprep.subr.bf16.mxu0 %v15795_v12  ;;  %v954_v6 = vmul.f32 %v19049_v29, %v19049_v29 }
 0x10f   :  { %v19036_v33 = vld [vmem:[#allocation17 + $0xae0] sm:$0xff]  ;;  %5986 = vmatpush2.bf16.msra.mxu1 %v15938_v47  ;;  %v1062_v51 = vmul.f32 %v17975_v50, %v18905_v8  ;;  %v337_v42 = vmul.f32 %v18480_v56, %v20525_v62  ;;  %v20526_v47 = vunpack.c.h.bf16 %v19011_v46  ;;  %v15915_v50 = vcombine.high %v19030_v7, %v19032_v53 }
 0x110   :  { %v19040_v34 = vld [vmem:[#allocation2 + $0xd0] sm:$0xff]  ;;  %5987 = vmatprep.subr.bf16.mxu1 %v15931_v63  ;;  %v19060_v15 = vpack.c.bf16 %v1170_v41, %v1170_v41  ;;  %v15779_v44 = vcombine.high %v19034_v43, %v19036_v33  ;;  %v1015_v63 = vsel %vm592_vm0, %v954_v6, 0.0  ;;  %v429_v41 = vmul.f32 %v18504_v4, %v20487_v38  ;;  %v19088_v38 = vld [vmem:[#allocation9 + $0x20] sm:$0x1f] }
 0x111   :  { %v20492_v16 = vunpack.c.h.bf16 %v19040_v34  ;;  %v383_v8 = vmul.f32 %v18489_v61, %v20526_v47  ;;  %v1117_v12 = vmul.f32 %v1097_v54, %v1062_v51  ;;  %5949 = vmatpush2.bf16.msra.mxu0 %v15794_v35  ;;  %v1016_v13 = vrot.slane %v1015_v63, 4  ;;  %v19079_v47 = vld [vmem:[#allocation17 + $0xec0] sm:$0xff] }
 0x112   :  { %5960 = vmatprep.mubr.bf16.mxu0 %v19060_v15  ;;  %v348_v36 = vadd.f32 %v337_v42, %v302_v40  ;;  %5950 = vmatprep.subr.bf16.mxu0 %v15787_v5  ;;  %v19081_v58 = vld [vmem:[#allocation17 + $0xee0] sm:$0xff]  ;;  %v20494_v6 = vunpack.c.l.bf16 %v18998_v32  ;;  %v20493_v40 = vunpack.c.l.bf16 %v19011_v46  ;;  %v20496_v42 = vunpack.c.l.bf16 %v19026_v28 }
 0x113   :  { %5988 = vmatpush2.bf16.msra.mxu1 %v15930_v1  ;;  %v19083_v51 = vld [vmem:[#allocation17 + $0xa80] sm:$0xff]  ;;  %v1172_v35 = vadd.f32 %v1152_v59, %v1117_v12  ;;  %v1017_v62 = vadd.f32 %v1016_v13, %v1015_v63  ;;  %v475_v5 = vmul.f32 %v18538_v22, %v20492_v16  ;;  %v20495_v60 = vunpack.c.l.bf16 %v19040_v34  ;;  %v17977_v63 = vpop.eup %17976 }
 0x114   :  { %v2198_v54 = vld [vmem:[#allocation17 + $0xaa0] sm:$0xff]  ;;  %5989 = vmatprep.subr.bf16.mxu1 %v15923_v14  ;;  %v394_v1 = vadd.f32 %v383_v8, %v348_v36  ;;  %v20527_v59 = vunpack.c.l.bf16 %v18996_v39  ;;  %v336_v14 = vmul.f32 %v18480_v56, %v20494_v6  ;;  %v382_v8 = vmul.f32 %v18489_v61, %v20493_v40 }
 0x115   :  { %v19094_v52 = vpack.c.bf16 %v1172_v35, %v1172_v35  ;;  %v15914_v13 = vcombine.low %v19030_v7, %v19032_v53  ;;  %5951 = vmatpush2.bf16.msra.mxu0 %v15786_v31  ;;  %v15778_v36 = vcombine.low %v19034_v43, %v19036_v33  ;;  %v1018_v35 = vrot.slane %v1017_v62, 2  ;;  %v19115_v61 = vld [vmem:[#allocation17 + $0xea0] sm:$0xff] }
 0x116   :  { %v301_v12 = vmul.f32 %v18477_v55, %v20527_v59  ;;  %v440_v16 = vadd.f32 %v429_v41, %v394_v1  ;;  %v20528_v55 = vcombine.low %v18986_v48, %v18994_v49  ;;  %5952 = vmatprep.subr.bf16.mxu0 %v15779_v44  ;;  %v15771_v56 = vcombine.high %v19083_v51, %v2198_v54  ;;  %v19113_v59 = vld [vmem:[#allocation17 + $0xe80] sm:$0xff] }
 0x117   :  { %v2186_v40 = vld [vmem:[#allocation17 + $0xa40] sm:$0xff]  ;;  %v428_v7 = vmul.f32 %v18504_v4, %v20496_v42  ;;  %v15907_v53 = vcombine.high %v19079_v47, %v19081_v58  ;;  %6001 = vmatprep.mubr.bf16.mxu1 %v19094_v52  ;;  %v1019_v48 = vadd.f32 %v1018_v35, %v1017_v62  ;;  %v1059_v33 = vmul.f32 %v17977_v63, %v18923_v20 }
 0x118   :  { %5990 = vmatpush2.bf16.msra.mxu1 %v20528_v55  ;;  %v347_v6 = vadd.f32 %v336_v14, %v301_v12  ;;  %v2190_v43 = vld [vmem:[#allocation17 + $0xa60] sm:$0xff]  ;;  %v486_v49 = vadd.f32 %v475_v5, %v440_v16  ;;  %v1085_v31 = vrot.slane %v19088_v38, %v18702_v26  ;;  %v474_v41 = vmul.f32 %v18538_v22, %v20495_v60  ;;  %v2121_v60 = vld [vmem:[#allocation17 + $0x838] sm:$0xff] }
 0x119   :  { %5991 = vmatprep.subr.bf16.mxu1 %v15915_v50  ;;  %5953 = vmatpush2.bf16.msra.mxu0 %v15778_v36  ;;  %v15770_v4 = vcombine.low %v19083_v51, %v2198_v54  ;;  %v1020_v50 = vrot.slane %v1019_v48, 1  ;;  %v15906_v20 = vcombine.low %v19079_v47, %v19081_v58  ;;  %v15763_v16 = vcombine.high %v2186_v40, %v2190_v43  ;;  %v2314_v62 = vld [vmem:[#allocation17 + $0xe40] sm:$0xff] }
 0x11a   :  { %v393_v44 = vadd.f32 %v382_v8, %v347_v6  ;;  %v19131_v1 = vadd.f32 %v18541_v23, %v486_v49  ;;  %v17979_v12 = vpop.eup %17978  ;;  %5954 = vmatprep.subr.bf16.mxu0 %v15771_v56  ;;  %v2318_v6 = vld [vmem:[#allocation17 + $0xe60] sm:$0xff]  ;;  %v15899_v22 = vcombine.high %v19113_v59, %v19115_v61  ;;  %v15762_v36 = vcombine.low %v2186_v40, %v2190_v43 }
 0x11b   :  { %v2178_v5 = vld [vmem:[#allocation17 + $0xa00] sm:$0xff]  ;;  %v1021_v54 = vadd.f32 %v1020_v50, %v1019_v48  ;;  %v1140_v58 = vrot.slane %v19088_v38, %v18726_v27  ;;  %v1061_v35 = vmul.f32 %v17979_v12, %v18953_v45 }
 0x11c   :  { %5992 = vmatpush2.bf16.msra.mxu1 %v15914_v13  ;;  %v520_v14 = vld [vmem:[#allocation9 + $0x30] sm:$0x1f]  ;;  %v439_v8 = vadd.f32 %v428_v7, %v393_v44  ;;  %v909_v63 = vrot.slane %v19131_v1, 4  ;;  %v1114_v13 = vmul.f32 %v1085_v31, %v1059_v33  ;;  %v15891_v33 = vcombine.high %v2314_v62, %v2318_v6 }
 0x11d   :  { %5993 = vmatprep.subr.bf16.mxu1 %v15907_v53  ;;  %v2182_v51 = vld [vmem:[#allocation17 + $0xa20] sm:$0xff]  ;;  %5955 = vmatpush2.bf16.msra.mxu0 %v15770_v4  ;;  %v1093_v55 = vrot.slane %v520_v14, %v18702_v26  ;;  %v1032_v56 = vmul.f32 0.125, %v1021_v54  ;;  %v15898_v53 = vcombine.low %v19113_v59, %v19115_v61  ;;  %v1148_v59 = vrot.slane %v520_v14, %v18726_v27 }
 0x11e   :  { %v485_v47 = vadd.f32 %v474_v41, %v439_v8  ;;  %v910_v7 = vadd.f32 %v909_v63, %v19131_v1  ;;  %5956 = vmatprep.subr.bf16.mxu0 %v15763_v16  ;;  %v15755_v48 = vcombine.high %v2178_v5, %v2182_v51  ;;  %v2306_v40 = vld [vmem:[#allocation17 + $0xe00] sm:$0xff]  ;;  %v15754_v41 = vcombine.low %v2178_v5, %v2182_v51 }
 0x11f   :  { %v2310_v43 = vld [vmem:[#allocation17 + $0xe20] sm:$0xff]  ;;  %v1043_v31 = vadd.f32 1e-05, %v1032_v56  ;;  %v1169_v4 = vadd.f32 %v1140_v58, %v1114_v13  ;;  %v1116_v12 = vmul.f32 %v1093_v55, %v1061_v35 }
 0x120   :  { %5994 = vmatpush2.bf16.msra.mxu1 %v15906_v20  ;;  %v2426_v49 = vld [vmem:[#allocation17 + $0x11c0] sm:$0xff]  ;;  %v19146_v38 = vadd.f32 %v18541_v23, %v485_v47  ;;  %v911_v44 = vrot.slane %v910_v7, 2  ;;  %v15890_v20 = vcombine.low %v2314_v62, %v2318_v6  ;;  %v15883_v54 = vcombine.high %v2306_v40, %v2310_v43 }
 0x121   :  { %5995 = vmatprep.subr.bf16.mxu1 %v15899_v22  ;;  %v2430_v45 = vld [vmem:[#allocation17 + $0x11e0] sm:$0xff]  ;;  %5957 = vmatpush2.bf16.msra.mxu0 %v15762_v36  ;;  %17980 = vrsqrt.f32 %v1043_v31  ;;  %v19151_v63 = vpack.c.bf16 %v1169_v4, %v1169_v4  ;;  %v1171_v13 = vadd.f32 %v1148_v59, %v1116_v12  ;;  %v15882_v47 = vcombine.low %v2306_v40, %v2310_v43 }
 0x122   :  { %v903_v50 = vrot.slane %v19146_v38, 4  ;;  %v912_v61 = vadd.f32 %v911_v44, %v910_v7  ;;  %5958 = vmatprep.subr.bf16.mxu0 %v15755_v48  ;;  %v16003_v23 = vcombine.high %v2426_v49, %v2430_v45  ;;  %v2514_v16 = vld [vmem:[#allocation17 + $0x1480] sm:$0x11]  ;;  %v16002_v14 = vcombine.low %v2426_v49, %v2430_v45 }
 0x123   :  { %v2418_v8 = vld [vmem:[#allocation17 + $0x1180] sm:$0xff]  ;;  %v16091_v7 = vcombine.high %v2514_v16, %v2514_v16  ;;  %v19154_v44 = vpack.c.bf16 %v1171_v13, %v1171_v13  ;;  %v1915_v13 = vld [vmem:[#allocation17 + $0x1c8] sm:$0xff] }
 0x124   :  { %5996 = vmatpush2.bf16.msra.mxu1 %v15898_v53  ;;  %v904_v22 = vadd.f32 %v903_v50, %v19146_v38  ;;  %v2422_v5 = vld [vmem:[#allocation17 + $0x11a0] sm:$0xff]  ;;  %v913_v51 = vrot.slane %v912_v61, 1  ;;  %v16090_v53 = vcombine.low %v2514_v16, %v2514_v16 }
 0x125   :  { %5997 = vmatprep.subr.bf16.mxu1 %v15891_v33  ;;  %5959 = vmatpush2.bf16.msra.mxu0 %v15754_v41  ;;  %v15995_v62 = vcombine.high %v2418_v8, %v2422_v5  ;;  %v2506_v6 = vld [vmem:[#allocation17 + $0x1440] sm:$0xff]  ;;  %v15994_v49 = vcombine.low %v2418_v8, %v2422_v5 }
 0x126   :  { %v905_v36 = vrot.slane %v904_v22, 2  ;;  %v914_v58 = vadd.f32 %v913_v51, %v912_v61  ;;  %6010 = vmatprep.subr.bf16.mxu0 %v16003_v23  ;;  %v2510_v35 = vld [vmem:[#allocation17 + $0x1460] sm:$0xff]  ;;  %v5823_v59 = vsel %vm5821_vm1, %v16090_v53, 0 }
 0x127   :  { %v2410_v55 = vld [vmem:[#allocation17 + $0x1140] sm:$0xff]  ;;  %v16083_v61 = vcombine.high %v2506_v6, %v2510_v35 }
 0x128   :  { %5998 = vmatpush2.bf16.msra.mxu1 %v15890_v20  ;;  %v906_v56 = vadd.f32 %v905_v36, %v904_v22  ;;  %v2414_v48 = vld [vmem:[#allocation17 + $0x1160] sm:$0xff]  ;;  %v931_v33 = vmul.f32 0.125, %v914_v58  ;;  %5961 = vmatmul.mubr.bf16.vlgmr.msra.gmra.mxu0 %v19151_v63 }
 0x129   :  { %5999 = vmatprep.subr.bf16.mxu1 %v15883_v54  ;;  %6011 = vmatpush1.bf16.msra.mxu0 %v16002_v14  ;;  %v2498_v40 = vld [vmem:[#allocation17 + $0x1400] sm:$0xff]  ;;  %v15987_v45 = vcombine.high %v2410_v55, %v2414_v48  ;;  %v15986_v8 = vcombine.low %v2410_v55, %v2414_v48  ;;  %v1919_v14 = vld [vmem:[#allocation17 + $0x1e8] sm:$0xff] }
 0x12a   :  { %v907_v31 = vrot.slane %v906_v56, 1  ;;  %v19157_v43 = vsub.f32 %v19131_v1, %v931_v33  ;;  %6012 = vmatprep.subr.bf16.mxu0 %v15995_v62  ;;  %v2502_v41 = vld [vmem:[#allocation17 + $0x1420] sm:$0xff]  ;;  %v16082_v1 = vcombine.low %v2506_v6, %v2510_v35  ;;  %v20497_v62 = vmov 0  }
 0x12b   :  { %v2402_v4 = vld [vmem:[#allocation17 + $0x1100] sm:$0xff]  ;;  %v16075_v51 = vcombine.high %v2498_v40, %v2502_v41 }
 0x12c   :  { %6000 = vmatpush2.bf16.msra.mxu1 %v15882_v47  ;;  %v524_v50 = vld [vmem:[#allocation9 + $0x50] sm:$0x1f]  ;;  %v908_v12 = vadd.f32 %v907_v31, %v906_v56  ;;  %v953_v23 = vmul.f32 %v19157_v43, %v19157_v43 }
 0x12d   :  { %16098 = vmatprep.subr.msk.bf16.mxu1 %vm5821_vm1, %v16091_v7  ;;  %v2406_v20 = vld [vmem:[#allocation17 + $0x1120] sm:$0xff]  ;;  %6013 = vmatpush1.bf16.msra.mxu0 %v15994_v49  ;;  %v1109_v22 = vrot.slane %v524_v50, %v18702_v26  ;;  %v1164_v35 = vrot.slane %v524_v50, %v18726_v27  ;;  %v1907_v49 = vld [vmem:[#allocation17 + $0x188] sm:$0xff]  ;;  %v15493_v50 = vcombine.high %v1915_v13, %v1919_v14 }
 0x12e   :  { %v930_v16 = vmul.f32 0.125, %v908_v12  ;;  %v1009_v54 = vrot.slane %v953_v23, 4  ;;  %v17981_v5 = vpop.eup %17980  ;;  %6014 = vmatprep.subr.bf16.mxu0 %v15987_v45  ;;  %v15979_v36 = vcombine.high %v2402_v4, %v2406_v20  ;;  %v2394_v58 = vld [vmem:[#allocation17 + $0x10c0] sm:$0xff]  ;;  %v15978_v53 = vcombine.low %v2402_v4, %v2406_v20  ;;  %v1911_v45 = vld [vmem:[#allocation17 + $0x1a8] sm:$0xff] }
 0x12f   :  { %6002 = vmatmul.mubr.bf16.vlgmr.msra.gmra.mxu1 %v19154_v44  ;;  %v1065_v6 = vmul.f32 %v17981_v5, %v19049_v29  ;;  %v2398_v55 = vld [vmem:[#allocation17 + $0x10e0] sm:$0xff] }
 0x130   :  { %6062 = vmatpush1.bf16.msra.mxu1 %v5823_v59  ;;  %v19166_v47 = vsub.f32 %v19146_v38, %v930_v16  ;;  %6083 = vmatprep.mubr.bf16.mxu1 %v20497_v62  ;;  %v1010_v56 = vadd.f32 %v1009_v54, %v953_v23  ;;  %v16074_v38 = vcombine.low %v2498_v40, %v2502_v41  ;;  %v2386_v12 = vld [vmem:[#allocation17 + $0x1080] sm:$0xff]  ;;  %v1899_v41 = vld [vmem:[#allocation17 + $0x148] sm:$0xff] }
 0x131   :  { %6063 = vmatprep.subr.bf16.mxu1 %v16083_v61  ;;  %6015 = vmatpush1.bf16.msra.mxu0 %v15986_v8  ;;  %v1120_v48 = vmul.f32 %v1109_v22, %v1065_v6  ;;  %v15971_v31 = vcombine.high %v2394_v58, %v2398_v55  ;;  %v2390_v61 = vld [vmem:[#allocation17 + $0x10a0] sm:$0xff]  ;;  %v15970_v4 = vcombine.low %v2394_v58, %v2398_v55  ;;  %v1903_v8 = vld [vmem:[#allocation17 + $0x168] sm:$0xff] }
 0x132   :  { %v952_v7 = vmul.f32 %v19166_v47, %v19166_v47  ;;  %v1011_v33 = vrot.slane %v1010_v56, 2  ;;  %6016 = vmatprep.subr.bf16.mxu0 %v15979_v36  ;;  %v15963_v40 = vcombine.high %v2386_v12, %v2390_v61  ;;  %v2378_v22 = vld [vmem:[#allocation17 + $0x1040] sm:$0xff]  ;;  %v15484_v55 = vcombine.low %v1907_v49, %v1911_v45 }
 0x133   :  { %v1175_v29 = vadd.f32 %v1164_v35, %v1120_v48  ;;  %v2382_v36 = vld [vmem:[#allocation17 + $0x1060] sm:$0xff] }
 0x134   :  { %6064 = vmatpush1.bf16.msra.mxu1 %v16082_v1  ;;  %v1003_v59 = vrot.slane %v952_v7, 4  ;;  %v1012_v23 = vadd.f32 %v1011_v33, %v1010_v56  ;;  %v15492_v1 = vcombine.low %v1915_v13, %v1919_v14  ;;  %v15962_v56 = vcombine.low %v2386_v12, %v2390_v61  ;;  %v1891_v14 = vld [vmem:[#allocation17 + $0x108] sm:$0xff]  ;;  %v2490_v61 = vld [vmem:[#allocation17 + $0x13c0] sm:$0xff] }
 0x135   :  { %6065 = vmatprep.subr.bf16.mxu1 %v16075_v51  ;;  %v19173_v54 = vpack.c.bf16 %v1175_v29, %v1175_v29  ;;  %6017 = vmatpush1.bf16.msra.mxu0 %v15978_v53  ;;  %v15485_v51 = vcombine.high %v1907_v49, %v1911_v45  ;;  %v15955_v13 = vcombine.high %v2378_v22, %v2382_v36  ;;  %v2370_v53 = vld [vmem:[#allocation17 + $0x1000] sm:$0xff]  ;;  %v1883_v45 = vld [vmem:[#allocation17 + $0xc8] sm:$0xff] }
 0x136   :  { %v1004_v16 = vadd.f32 %v1003_v59, %v952_v7  ;;  %v1013_v20 = vrot.slane %v1012_v23, 1  ;;  %6018 = vmatprep.subr.bf16.mxu0 %v15971_v31  ;;  %v1895_v7 = vld [vmem:[#allocation17 + $0x128] sm:$0xff]  ;;  %v15477_v33 = vcombine.high %v1899_v41, %v1903_v8  ;;  %v15954_v29 = vcombine.low %v2378_v22, %v2382_v36 }
 0x137   :  { %v15476_v12 = vcombine.low %v1899_v41, %v1903_v8  ;;  %v1879_v22 = vld [vmem:[#allocation17 + $0xa8] sm:$0xff]  ;;  %v2486_v8 = vld [vmem:[#allocation17 + $0x13a0] sm:$0xff] }
 0x138   :  { %6066 = vmatpush1.bf16.msra.mxu1 %v16074_v38  ;;  %v1005_v5 = vrot.slane %v1004_v16, 2  ;;  %v1014_v6 = vadd.f32 %v1013_v20, %v1012_v23  ;;  %v2374_v38 = vld [vmem:[#allocation17 + $0x1020] sm:$0xff]  ;;  %v15469_v23 = vcombine.high %v1891_v14, %v1895_v7 }
 0x139   :  { %6092 = vmatprep.subr.bf16.mxu1 %v15493_v50  ;;  %6019 = vmatpush1.bf16.msra.mxu0 %v15970_v4  ;;  %v15947_v49 = vcombine.high %v2370_v53, %v2374_v38  ;;  %v1887_v50 = vld [vmem:[#allocation17 + $0xe8] sm:$0xff]  ;;  %v15946_v20 = vcombine.low %v2370_v53, %v2374_v38  ;;  %v523_v53 = vld [vmem:[#allocation9 + $0x48] sm:$0x1f] }
 0x13a   :  { %v1006_v35 = vadd.f32 %v1005_v5, %v1004_v16  ;;  %v1031_v58 = vmul.f32 0.125, %v1014_v6  ;;  %6020 = vmatprep.subr.bf16.mxu0 %v15963_v40  ;;  %v2494_v16 = vld [vmem:[#allocation17 + $0x13e0] sm:$0xff]  ;;  %v1875_v5 = vld [vmem:[#allocation17 + $0x88] sm:$0xff]  ;;  %v15461_v41 = vcombine.high %v1883_v45, %v1887_v50 }
 0x13b   :  { %16099 = vmatmul.mubr.msk.bf16.vlgmr.msra.gmra.mxu1 %vm592_vm0, %v19173_v54  ;;  %v16067_v40 = vcombine.high %v2490_v61, %v2494_v16  ;;  %v16066_v6 = vcombine.low %v2490_v61, %v2494_v16 }
 0x13c   :  { %6093 = vmatpush1.bf16.msra.mxu1 %v15492_v1  ;;  %v1007_v48 = vrot.slane %v1006_v35, 1  ;;  %v1042_v31 = vadd.f32 1e-05, %v1031_v58  ;;  %6124 = vmatprep.mubr.bf16.mxu1 %v18811_v19  ;;  %v15468_v1 = vcombine.low %v1891_v14, %v1895_v7  ;;  %v1867_v58 = vld [vmem:[#allocation17 + $0x48] sm:$0xff]  ;;  %v15453_v14 = vcombine.high %v1875_v5, %v1879_v22  ;;  %v2478_v7 = vld [vmem:[#allocation17 + $0x1360] sm:$0xff] }
 0x13d   :  { %6094 = vmatprep.subr.bf16.mxu1 %v15485_v51  ;;  %6021 = vmatpush1.bf16.msra.mxu0 %v15962_v56  ;;  %v2482_v51 = vld [vmem:[#allocation17 + $0x1380] sm:$0xff] }
 0x13e   :  { %v1008_v59 = vadd.f32 %v1007_v48, %v1006_v35  ;;  %17982 = vrsqrt.f32 %v1042_v31  ;;  %6022 = vmatprep.subr.bf16.mxu0 %v15955_v13  ;;  %v15460_v35 = vcombine.low %v1883_v45, %v1887_v50  ;;  %v16059_v56 = vcombine.high %v2482_v51, %v2486_v8  ;;  %v2474_v13 = vld [vmem:[#allocation17 + $0x1340] sm:$0xff] }
 0x13f   :  { %v16058_v48 = vcombine.low %v2482_v51, %v2486_v8  ;;  %v15452_v31 = vcombine.low %v1875_v5, %v1879_v22  ;;  %v2470_v50 = vld [vmem:[#allocation17 + $0x1320] sm:$0xff]  ;;  %v16050_v16 = vcombine.low %v2474_v13, %v2478_v7  ;;  %v1983_v5 = vld [vmem:[#allocation17 + $0x3e8] sm:$0xff] }
 0x140   :  { %6095 = vmatpush1.bf16.msra.mxu1 %v15484_v55  ;;  %v1030_v4 = vmul.f32 0.125, %v1008_v59  ;;  %v1871_v55 = vld [vmem:[#allocation17 + $0x68] sm:$0xff]  ;;  %v16051_v59 = vcombine.high %v2474_v13, %v2478_v7  ;;  %v2458_v22 = vld [vmem:[#allocation17 + $0x12c0] sm:$0xff] }
 0x141   :  { %6096 = vmatprep.subr.bf16.mxu1 %v15477_v33  ;;  %6023 = vmatpush1.bf16.msra.mxu0 %v15954_v29  ;;  %v1105_v33 = vrot.slane %v523_v53, %v18702_v26  ;;  %v1859_v29 = vld [vmem:[#allocation17 + $0x8] sm:$0xff]  ;;  %v15445_v45 = vcombine.high %v1867_v58, %v1871_v55 }
 0x142   :  { %6024 = vmatprep.subr.bf16.mxu0 %v15947_v49  ;;  %v1041_v36 = vadd.f32 1e-05, %v1030_v4  ;;  %v2466_v49 = vld [vmem:[#allocation17 + $0x1300] sm:$0xff]  ;;  %v1975_v13 = vld [vmem:[#allocation17 + $0x3a8] sm:$0xff] }
 0x144   :  { %6097 = vmatpush1.bf16.msra.mxu1 %v15476_v12  ;;  %17984 = vrsqrt.f32 %v1041_v36  ;;  %v1863_v12 = vld [vmem:[#allocation17 + $0x28] sm:$0xff]  ;;  %v16042_v36 = vcombine.low %v2466_v49, %v2470_v50 }
 0x145   :  { %6098 = vmatprep.subr.bf16.mxu1 %v15469_v23  ;;  %6025 = vmatpush1.bf16.msra.mxu0 %v15946_v20  ;;  %v1160_v23 = vrot.slane %v523_v53, %v18726_v27  ;;  %v15444_v20 = vcombine.low %v1867_v58, %v1871_v55  ;;  %v15437_v51 = vcombine.high %v1859_v29, %v1863_v12  ;;  %v2450_v58 = vld [vmem:[#allocation17 + $0x1280] sm:$0xff] }
 0x146   :  { %6026 = vmatprep.subr.bf16.mxu0 %v16067_v40  ;;  %v1979_v40 = vld [vmem:[#allocation17 + $0x3c8] sm:$0xff]  ;;  %v2454_v55 = vld [vmem:[#allocation17 + $0x12a0] sm:$0xff] }
 0x147   :  { %v15557_v53 = vcombine.high %v1979_v40, %v1983_v5 }
 0x148   :  { %6099 = vmatpush1.bf16.msra.mxu1 %v15468_v1  ;;  %v16043_v1 = vcombine.high %v2466_v49, %v2470_v50  ;;  %v2446_v49 = vld [vmem:[#allocation17 + $0x1260] sm:$0xff] }
 0x149   :  { %6100 = vmatprep.subr.bf16.mxu1 %v15461_v41  ;;  %6027 = vmatpush2.bf16.msra.mxu0 %v16066_v6  ;;  %v2462_v41 = vld [vmem:[#allocation17 + $0x12e0] sm:$0xff] }
 0x14a   :  { %6028 = vmatprep.subr.bf16.mxu0 %v16059_v56  ;;  %v1971_v56 = vld [vmem:[#allocation17 + $0x388] sm:$0xff] }
 0x14b   :  { %v17983_v38 = vpop.eup %17982 }
 0x14c   :  { %6101 = vmatpush1.bf16.msra.mxu1 %v15460_v35  ;;  %v1064_v61 = vmul.f32 %v17983_v38, %v19157_v43  ;;  %v15436_v43 = vcombine.low %v1859_v29, %v1863_v12  ;;  %v16035_v35 = vcombine.high %v2458_v22, %v2462_v41  ;;  %v16027_v38 = vcombine.high %v2450_v58, %v2454_v55  ;;  %v2442_v29 = vld [vmem:[#allocation17 + $0x1240] sm:$0xff] }
 0x14d   :  { %6102 = vmatprep.subr.bf16.mxu1 %v15453_v14  ;;  %6029 = vmatpush2.bf16.msra.mxu0 %v16058_v48  ;;  %v522_v14 = vld [vmem:[#allocation9 + $0x40] sm:$0x1f]  ;;  %v16034_v48 = vcombine.low %v2458_v22, %v2462_v41  ;;  %v15549_v12 = vcombine.high %v1971_v56, %v1975_v13  ;;  %v16018_v41 = vcombine.low %v2442_v29, %v2446_v49 }
 0x14e   :  { %v1119_v4 = vmul.f32 %v1105_v33, %v1064_v61  ;;  %6030 = vmatprep.subr.bf16.mxu0 %v16051_v59  ;;  %v15556_v33 = vcombine.low %v1979_v40, %v1983_v5  ;;  %v1967_v59 = vld [vmem:[#allocation17 + $0x368] sm:$0xff]  ;;  %v1101_v50 = vrot.slane %v522_v14, %v18702_v26  ;;  %v16026_v61 = vcombine.low %v2450_v58, %v2454_v55  ;;  %v2438_v5 = vld [vmem:[#allocation17 + $0x1220] sm:$0xff]  ;;  %v20556_v26 = vld [vmem:[#allocation39_spill] sm:$0xff] }
 0x150   :  { %6103 = vmatpush1.bf16.msra.mxu1 %v15452_v31  ;;  %v1174_v8 = vadd.f32 %v1160_v23, %v1119_v4  ;;  %v1963_v31 = vld [vmem:[#allocation17 + $0x348] sm:$0xff]  ;;  %v15548_v23 = vcombine.low %v1971_v56, %v1975_v13 }
 0x151   :  { %6104 = vmatprep.subr.bf16.mxu1 %v15445_v45  ;;  %6031 = vmatpush2.bf16.msra.mxu0 %v16050_v16  ;;  %v17985_v7 = vpop.eup %17984  ;;  %v16019_v16 = vcombine.high %v2442_v29, %v2446_v49  ;;  %v1955_v4 = vld [vmem:[#allocation17 + $0x308] sm:$0xff]  ;;  %v15541_v40 = vcombine.high %v1963_v31, %v1967_v59 }
 0x152   :  { %v19181_v6 = vpack.c.bf16 %v1174_v8, %v1174_v8  ;;  %6032 = vmatprep.subr.bf16.mxu0 %v16043_v1  ;;  %v1063_v45 = vmul.f32 %v17985_v7, %v19166_v47  ;;  %v2434_v1 = vld [vmem:[#allocation17 + $0x1200] sm:$0xff]  ;;  %v15540_v47 = vcombine.low %v1963_v31, %v1967_v59  ;;  %v2047_v13 = vld [vmem:[#allocation17 + $0x5e8] sm:$0xff] }
 0x153   :  { %v16011_v8 = vcombine.high %v2434_v1, %v2438_v5  ;;  %v16010_v55 = vcombine.low %v2434_v1, %v2438_v5  ;;  %v1939_v7 = vld [vmem:[#allocation17 + $0x288] sm:$0xff] }
 0x154   :  { %6105 = vmatpush1.bf16.msra.mxu1 %v15444_v20  ;;  %6042 = vmatprep.mubr.bf16.mxu0 %v19181_v6  ;;  %v1959_v20 = vld [vmem:[#allocation17 + $0x328] sm:$0xff]  ;;  %v1118_v22 = vmul.f32 %v1101_v50, %v1063_v45 }
 0x155   :  { %6106 = vmatprep.subr.bf16.mxu1 %v15437_v51  ;;  %6033 = vmatpush2.bf16.msra.mxu0 %v16042_v36  ;;  %v1156_v51 = vrot.slane %v522_v14, %v18726_v27  ;;  %v1947_v36 = vld [vmem:[#allocation17 + $0x2c8] sm:$0xff]  ;;  %v15533_v56 = vcombine.high %v1955_v4, %v1959_v20 }
 0x156   :  { %6034 = vmatprep.subr.bf16.mxu0 %v16035_v35  ;;  %v2043_v35 = vld [vmem:[#allocation17 + $0x5c8] sm:$0xff] }
 0x157   :  { %v1173_v58 = vadd.f32 %v1156_v51, %v1118_v22  ;;  %v1943_v27 = vld [vmem:[#allocation17 + $0x2a8] sm:$0xff]  ;;  %v15621_v14 = vcombine.high %v2043_v35, %v2047_v13  ;;  %v15620_v59 = vcombine.low %v2043_v35, %v2047_v13 }
 0x158   :  { %6107 = vmatpush1.bf16.msra.mxu1 %v15436_v43  ;;  %v1951_v43 = vld [vmem:[#allocation17 + $0x2e8] sm:$0xff] }
 0x159   :  { %6108 = vmatprep.subr.bf16.mxu1 %v15557_v53  ;;  %6035 = vmatpush2.bf16.msra.mxu0 %v16034_v48  ;;  %v15532_v53 = vcombine.low %v1955_v4, %v1959_v20  ;;  %v2035_v48 = vld [vmem:[#allocation17 + $0x588] sm:$0xff]  ;;  %v19187_v31 = vpack.c.bf16 %v1173_v58, %v1173_v58  ;;  %v15524_v29 = vcombine.low %v1947_v36, %v1951_v43 }
 0x15a   :  { %6036 = vmatprep.subr.bf16.mxu0 %v16027_v38  ;;  %v2039_v38 = vld [vmem:[#allocation17 + $0x5a8] sm:$0xff]  ;;  %v15516_v4 = vcombine.low %v1939_v7, %v1943_v27 }
 0x15b   :  { %v1935_v49 = vld [vmem:[#allocation17 + $0x268] sm:$0xff]  ;;  %v15613_v45 = vcombine.high %v2035_v48, %v2039_v38 }
 0x15c   :  { %6109 = vmatpush2.bf16.msra.mxu1 %v15556_v33  ;;  %v15525_v33 = vcombine.high %v1947_v36, %v1951_v43  ;;  %v2027_v50 = vld [vmem:[#allocation17 + $0x548] sm:$0xff] }
 0x15d   :  { %6110 = vmatprep.subr.bf16.mxu1 %v15549_v12  ;;  %6037 = vmatpush2.bf16.msra.mxu0 %v16026_v61  ;;  %v1931_v12 = vld [vmem:[#allocation17 + $0x248] sm:$0xff]  ;;  %v15517_v61 = vcombine.high %v1939_v7, %v1943_v27 }
 0x15e   :  { %6038 = vmatprep.subr.bf16.mxu0 %v16019_v16  ;;  %v15612_v16 = vcombine.low %v2035_v48, %v2039_v38  ;;  %v1923_v20 = vld [vmem:[#allocation17 + $0x208] sm:$0xff]  ;;  %v15509_v51 = vcombine.high %v1931_v12, %v1935_v49 }
 0x15f   :  { %v1927_v1 = vld [vmem:[#allocation17 + $0x228] sm:$0xff] }
 0x160   :  { %6111 = vmatpush2.bf16.msra.mxu1 %v15548_v23  ;;  %v2031_v23 = vld [vmem:[#allocation17 + $0x568] sm:$0xff] }
 0x161   :  { %6112 = vmatprep.subr.bf16.mxu1 %v15541_v40  ;;  %6039 = vmatpush2.bf16.msra.mxu0 %v16018_v41  ;;  %v15605_v40 = vcombine.high %v2027_v50, %v2031_v23  ;;  %v2019_v5 = vld [vmem:[#allocation17 + $0x508] sm:$0xff]  ;;  %v15604_v41 = vcombine.low %v2027_v50, %v2031_v23 }
 0x162   :  { %6040 = vmatprep.subr.bf16.mxu0 %v16011_v8  ;;  %v2023_v22 = vld [vmem:[#allocation17 + $0x528] sm:$0xff] }
 0x163   :  { %v15597_v8 = vcombine.high %v2019_v5, %v2023_v22  ;;  %v2171_v36 = vld [vmem:[#allocation17 + $0x9c8] sm:$0xff]  ;;  %v15596_v58 = vcombine.low %v2019_v5, %v2023_v22 }
 0x164   :  { %6113 = vmatpush2.bf16.msra.mxu1 %v15540_v47  ;;  %v15508_v47 = vcombine.low %v1931_v12, %v1935_v49  ;;  %v2175_v43 = vld [vmem:[#allocation17 + $0x9e8] sm:$0xff] }
 0x165   :  { %6114 = vmatprep.subr.bf16.mxu1 %v15533_v56  ;;  %6041 = vmatpush2.bf16.msra.mxu0 %v16010_v55  ;;  %v2011_v35 = vld [vmem:[#allocation17 + $0x4c8] sm:$0xff]  ;;  %v15501_v56 = vcombine.high %v1923_v20, %v1927_v1  ;;  %v15500_v55 = vcombine.low %v1923_v20, %v1927_v1  ;;  %v15749_v48 = vcombine.high %v2171_v36, %v2175_v43 }
 0x166   :  { %6133 = vmatprep.subr.bf16.mxu0 %v15621_v14  ;;  %v2015_v13 = vld [vmem:[#allocation17 + $0x4e8] sm:$0xff] }
 0x167   :  { %v2163_v7 = vld [vmem:[#allocation17 + $0x988] sm:$0xff]  ;;  %v15588_v38 = vcombine.low %v2011_v35, %v2015_v13 }
 0x168   :  { %6115 = vmatpush2.bf16.msra.mxu1 %v15532_v53  ;;  %6043 = vmatmul.mubr.bf16.vlgmr.msra.gmra.mxu0 %v19187_v31  ;;  %v15589_v53 = vcombine.high %v2011_v35, %v2015_v13  ;;  %v2167_v27 = vld [vmem:[#allocation17 + $0x9a8] sm:$0xff] }
 0x169   :  { %6116 = vmatprep.subr.bf16.mxu1 %v15525_v33  ;;  %6134 = vmatpush1.bf16.msra.mxu0 %v15620_v59  ;;  %v2003_v14 = vld [vmem:[#allocation17 + $0x488] sm:$0xff]  ;;  %v15748_v59 = vcombine.low %v2171_v36, %v2175_v43  ;;  %v15741_v50 = vcombine.high %v2163_v7, %v2167_v27 }
 0x16a   :  { %6165 = vmatprep.mubr.bf16.mxu0 %v18831_v0  ;;  %6135 = vmatprep.subr.bf16.mxu0 %v15613_v45  ;;  %v2007_v33 = vld [vmem:[#allocation17 + $0x4a8] sm:$0xff] }
 0x16b   :  { %v2155_v12 = vld [vmem:[#allocation17 + $0x948] sm:$0xff]  ;;  %v15580_v23 = vcombine.low %v2003_v14, %v2007_v33 }
 0x16c   :  { %6117 = vmatpush2.bf16.msra.mxu1 %v15524_v29  ;;  %v15581_v29 = vcombine.high %v2003_v14, %v2007_v33  ;;  %v2159_v49 = vld [vmem:[#allocation17 + $0x968] sm:$0xff] }
 0x16d   :  { %6118 = vmatprep.subr.bf16.mxu1 %v15517_v61  ;;  %6136 = vmatpush1.bf16.msra.mxu0 %v15612_v16  ;;  %v1995_v45 = vld [vmem:[#allocation17 + $0x448] sm:$0xff]  ;;  %v15740_v16 = vcombine.low %v2163_v7, %v2167_v27  ;;  %v15733_v5 = vcombine.high %v2155_v12, %v2159_v49 }
 0x16e   :  { %6137 = vmatprep.subr.bf16.mxu0 %v15605_v40  ;;  %v1999_v61 = vld [vmem:[#allocation17 + $0x468] sm:$0xff] }
 0x16f   :  { %v2147_v20 = vld [vmem:[#allocation17 + $0x908] sm:$0xff] }
 0x170   :  { %6119 = vmatpush2.bf16.msra.mxu1 %v15516_v4  ;;  %v15573_v4 = vcombine.high %v1995_v45, %v1999_v61  ;;  %v2151_v1 = vld [vmem:[#allocation17 + $0x928] sm:$0xff] }
 0x171   :  { %6120 = vmatprep.subr.bf16.mxu1 %v15509_v51  ;;  %6138 = vmatpush1.bf16.msra.mxu0 %v15604_v41  ;;  %v1987_v40 = vld [vmem:[#allocation17 + $0x408] sm:$0xff]  ;;  %v15572_v51 = vcombine.low %v1995_v45, %v1999_v61  ;;  %v15732_v41 = vcombine.low %v2155_v12, %v2159_v49  ;;  %v15725_v35 = vcombine.high %v2147_v20, %v2151_v1 }
 0x172   :  { %6139 = vmatprep.subr.bf16.mxu0 %v15597_v8  ;;  %v1991_v22 = vld [vmem:[#allocation17 + $0x428] sm:$0xff] }
 0x173   :  { %v2139_v8 = vld [vmem:[#allocation17 + $0x8c8] sm:$0xff]  ;;  %v15564_v13 = vcombine.low %v1987_v40, %v1991_v22 }
 0x174   :  { %6121 = vmatpush2.bf16.msra.mxu1 %v15508_v47  ;;  %v15565_v47 = vcombine.high %v1987_v40, %v1991_v22  ;;  %v2143_v36 = vld [vmem:[#allocation17 + $0x8e8] sm:$0xff] }
 0x175   :  { %6122 = vmatprep.subr.bf16.mxu1 %v15501_v56  ;;  %6140 = vmatpush1.bf16.msra.mxu0 %v15596_v58  ;;  %v2107_v43 = vld [vmem:[#allocation17 + $0x7c8] sm:$0xff]  ;;  %v15724_v58 = vcombine.low %v2147_v20, %v2151_v1  ;;  %v15717_v14 = vcombine.high %v2139_v8, %v2143_v36 }
 0x176   :  { %6141 = vmatprep.subr.bf16.mxu0 %v15589_v53  ;;  %v2111_v56 = vld [vmem:[#allocation17 + $0x7e8] sm:$0xff] }
 0x177   :  { %v2131_v53 = vld [vmem:[#allocation17 + $0x888] sm:$0xff]  ;;  %v15684_v33 = vcombine.low %v2107_v43, %v2111_v56 }
 0x178   :  { %6123 = vmatpush2.bf16.msra.mxu1 %v15500_v55  ;;  %v15685_v55 = vcombine.high %v2107_v43, %v2111_v56  ;;  %v2135_v7 = vld [vmem:[#allocation17 + $0x8a8] sm:$0xff] }
 0x179   :  { %6174 = vmatprep.subr.bf16.mxu1 %v15749_v48  ;;  %6142 = vmatpush1.bf16.msra.mxu0 %v15588_v38  ;;  %v2099_v27 = vld [vmem:[#allocation17 + $0x788] sm:$0xff]  ;;  %v15716_v38 = vcombine.low %v2139_v8, %v2143_v36  ;;  %v15709_v45 = vcombine.high %v2131_v53, %v2135_v7 }
 0x17a   :  { %6143 = vmatprep.subr.bf16.mxu0 %v15581_v29  ;;  %v2103_v48 = vld [vmem:[#allocation17 + $0x7a8] sm:$0xff] }
 0x17b   :  { %6125 = vmatmul.mubr.bf16.vlgmr.msra.gmra.mxu1 %v18851_v37  ;;  %v2123_v29 = vld [vmem:[#allocation17 + $0x848] sm:$0xff]  ;;  %v15676_v61 = vcombine.low %v2099_v27, %v2103_v48 }
 0x17c   :  { %6175 = vmatpush1.bf16.msra.mxu1 %v15748_v59  ;;  %6206 = vmatprep.mubr.bf16.mxu1 %v19060_v15  ;;  %v15677_v59 = vcombine.high %v2099_v27, %v2103_v48  ;;  %v2127_v12 = vld [vmem:[#allocation17 + $0x868] sm:$0xff] }
 0x17d   :  { %6176 = vmatprep.subr.bf16.mxu1 %v15741_v50  ;;  %6144 = vmatpush1.bf16.msra.mxu0 %v15580_v23  ;;  %v2091_v49 = vld [vmem:[#allocation17 + $0x748] sm:$0xff]  ;;  %v15708_v23 = vcombine.low %v2131_v53, %v2135_v7  ;;  %v15701_v40 = vcombine.high %v2123_v29, %v2127_v12 }
 0x17e   :  { %6145 = vmatprep.subr.bf16.mxu0 %v15573_v4  ;;  %v2095_v50 = vld [vmem:[#allocation17 + $0x768] sm:$0xff] }
 0x17f   :  { %v2115_v4 = vld [vmem:[#allocation17 + $0x808] sm:$0xff]  ;;  %v15668_v22 = vcombine.low %v2091_v49, %v2095_v50 }
 0x180   :  { %6177 = vmatpush1.bf16.msra.mxu1 %v15740_v16  ;;  %v15669_v16 = vcombine.high %v2091_v49, %v2095_v50  ;;  %v2119_v20 = vld [vmem:[#allocation17 + $0x828] sm:$0xff] }
 0x181   :  { %6178 = vmatprep.subr.bf16.mxu1 %v15733_v5  ;;  %6146 = vmatpush1.bf16.msra.mxu0 %v15572_v51  ;;  %v2083_v1 = vld [vmem:[#allocation17 + $0x708] sm:$0xff]  ;;  %v15700_v51 = vcombine.low %v2123_v29, %v2127_v12  ;;  %v15693_v43 = vcombine.high %v2115_v4, %v2119_v20 }
 0x182   :  { %6147 = vmatprep.subr.bf16.mxu0 %v15565_v47  ;;  %v2087_v5 = vld [vmem:[#allocation17 + $0x728] sm:$0xff] }
 0x183   :  { %v2235_v47 = vld [vmem:[#allocation17 + $0xbc8] sm:$0xff]  ;;  %v15660_v56 = vcombine.low %v2083_v1, %v2087_v5 }
 0x184   :  { %6179 = vmatpush1.bf16.msra.mxu1 %v15732_v41  ;;  %v15661_v41 = vcombine.high %v2083_v1, %v2087_v5  ;;  %v2239_v8 = vld [vmem:[#allocation17 + $0xbe8] sm:$0xff] }
 0x185   :  { %6180 = vmatprep.subr.bf16.mxu1 %v15725_v35  ;;  %6148 = vmatpush1.bf16.msra.mxu0 %v15564_v13  ;;  %v2075_v36 = vld [vmem:[#allocation17 + $0x6c8] sm:$0xff]  ;;  %v15692_v13 = vcombine.low %v2115_v4, %v2119_v20  ;;  %v15813_v27 = vcombine.high %v2235_v47, %v2239_v8 }
 0x186   :  { %6149 = vmatprep.subr.bf16.mxu0 %v15685_v55  ;;  %v2079_v35 = vld [vmem:[#allocation17 + $0x6e8] sm:$0xff] }
 0x187   :  { %v2227_v55 = vld [vmem:[#allocation17 + $0xb88] sm:$0xff]  ;;  %v15652_v48 = vcombine.low %v2075_v36, %v2079_v35 }
 0x188   :  { %6181 = vmatpush1.bf16.msra.mxu1 %v15724_v58  ;;  %v15653_v58 = vcombine.high %v2075_v36, %v2079_v35  ;;  %v2231_v53 = vld [vmem:[#allocation17 + $0xba8] sm:$0xff] }
 0x189   :  { %6182 = vmatprep.subr.bf16.mxu1 %v15717_v14  ;;  %6150 = vmatpush2.bf16.msra.mxu0 %v15684_v33  ;;  %v2067_v7 = vld [vmem:[#allocation17 + $0x688] sm:$0xff]  ;;  %v15812_v33 = vcombine.low %v2235_v47, %v2239_v8  ;;  %v15805_v49 = vcombine.high %v2227_v55, %v2231_v53 }
 0x18a   :  { %6151 = vmatprep.subr.bf16.mxu0 %v15677_v59  ;;  %v2071_v14 = vld [vmem:[#allocation17 + $0x6a8] sm:$0xff] }
 0x18b   :  { %v2219_v59 = vld [vmem:[#allocation17 + $0xb48] sm:$0xff]  ;;  %v15644_v50 = vcombine.low %v2067_v7, %v2071_v14 }
 0x18c   :  { %6183 = vmatpush1.bf16.msra.mxu1 %v15716_v38  ;;  %v15645_v38 = vcombine.high %v2067_v7, %v2071_v14  ;;  %v2223_v29 = vld [vmem:[#allocation17 + $0xb68] sm:$0xff] }
 0x18d   :  { %6184 = vmatprep.subr.bf16.mxu1 %v15709_v45  ;;  %6152 = vmatpush2.bf16.msra.mxu0 %v15676_v61  ;;  %v2059_v12 = vld [vmem:[#allocation17 + $0x648] sm:$0xff]  ;;  %v15804_v61 = vcombine.low %v2227_v55, %v2231_v53  ;;  %v15797_v1 = vcombine.high %v2219_v59, %v2223_v29 }
 0x18e   :  { %6153 = vmatprep.subr.bf16.mxu0 %v15669_v16  ;;  %v2063_v45 = vld [vmem:[#allocation17 + $0x668] sm:$0xff] }
 0x18f   :  { %v2211_v16 = vld [vmem:[#allocation17 + $0xb08] sm:$0xff]  ;;  %v15636_v5 = vcombine.low %v2059_v12, %v2063_v45 }
 0x190   :  { %6185 = vmatpush1.bf16.msra.mxu1 %v15708_v23  ;;  %v15637_v23 = vcombine.high %v2059_v12, %v2063_v45  ;;  %v2215_v4 = vld [vmem:[#allocation17 + $0xb28] sm:$0xff] }
 0x191   :  { %6186 = vmatprep.subr.bf16.mxu1 %v15701_v40  ;;  %6154 = vmatpush2.bf16.msra.mxu0 %v15668_v22  ;;  %v2051_v20 = vld [vmem:[#allocation17 + $0x608] sm:$0xff]  ;;  %v15796_v22 = vcombine.low %v2219_v59, %v2223_v29  ;;  %v15789_v36 = vcombine.high %v2211_v16, %v2215_v4 }
 0x192   :  { %6155 = vmatprep.subr.bf16.mxu0 %v15661_v41  ;;  %v2055_v40 = vld [vmem:[#allocation17 + $0x628] sm:$0xff] }
 0x193   :  { %v2203_v41 = vld [vmem:[#allocation17 + $0xac8] sm:$0xff]  ;;  %v15628_v35 = vcombine.low %v2051_v20, %v2055_v40 }
 0x194   :  { %6187 = vmatpush1.bf16.msra.mxu1 %v15700_v51  ;;  %v15629_v51 = vcombine.high %v2051_v20, %v2055_v40  ;;  %v2207_v47 = vld [vmem:[#allocation17 + $0xae8] sm:$0xff] }
 0x195   :  { %6188 = vmatprep.subr.bf16.mxu1 %v15693_v43  ;;  %6156 = vmatpush2.bf16.msra.mxu0 %v15660_v56  ;;  %v2299_v8 = vld [vmem:[#allocation17 + $0xdc8] sm:$0xff]  ;;  %v15788_v56 = vcombine.low %v2211_v16, %v2215_v4  ;;  %v15781_v7 = vcombine.high %v2203_v41, %v2207_v47 }
 0x196   :  { %6157 = vmatprep.subr.bf16.mxu0 %v15653_v58  ;;  %v2303_v43 = vld [vmem:[#allocation17 + $0xde8] sm:$0xff] }
 0x197   :  { %v2199_v58 = vld [vmem:[#allocation17 + $0xaa8] sm:$0xff]  ;;  %v15877_v55 = vcombine.high %v2299_v8, %v2303_v43  ;;  %v15876_v14 = vcombine.low %v2299_v8, %v2303_v43 }
 0x198   :  { %6189 = vmatpush1.bf16.msra.mxu1 %v15692_v13  ;;  %v2195_v13 = vld [vmem:[#allocation17 + $0xa88] sm:$0xff] }
 0x199   :  { %6190 = vmatprep.subr.bf16.mxu1 %v15813_v27  ;;  %6158 = vmatpush2.bf16.msra.mxu0 %v15652_v48  ;;  %v2291_v53 = vld [vmem:[#allocation17 + $0xd88] sm:$0xff]  ;;  %v15780_v48 = vcombine.low %v2203_v41, %v2207_v47  ;;  %v15773_v59 = vcombine.high %v2195_v13, %v2199_v58 }
 0x19a   :  { %6159 = vmatprep.subr.bf16.mxu0 %v15645_v38  ;;  %v2295_v27 = vld [vmem:[#allocation17 + $0xda8] sm:$0xff] }
 0x19b   :  { %v2283_v38 = vld [vmem:[#allocation17 + $0xd48] sm:$0xff] }
 0x19c   :  { %6191 = vmatpush2.bf16.msra.mxu1 %v15812_v33  ;;  %v15869_v33 = vcombine.high %v2291_v53, %v2295_v27  ;;  %v2287_v29 = vld [vmem:[#allocation17 + $0xd68] sm:$0xff] }
 0x19d   :  { %6192 = vmatprep.subr.bf16.mxu1 %v15805_v49  ;;  %6160 = vmatpush2.bf16.msra.mxu0 %v15644_v50  ;;  %v2187_v49 = vld [vmem:[#allocation17 + $0xa48] sm:$0xff]  ;;  %v15868_v50 = vcombine.low %v2291_v53, %v2295_v27  ;;  %v15861_v16 = vcombine.high %v2283_v38, %v2287_v29  ;;  %v15860_v41 = vcombine.low %v2283_v38, %v2287_v29 }
 0x19e   :  { %6161 = vmatprep.subr.bf16.mxu0 %v15637_v23  ;;  %v2191_v45 = vld [vmem:[#allocation17 + $0xa68] sm:$0xff] }
 0x19f   :  { %v15765_v4 = vcombine.high %v2187_v49, %v2191_v45  ;;  %v2275_v20 = vld [vmem:[#allocation17 + $0xd08] sm:$0xff]  ;;  %v15764_v8 = vcombine.low %v2187_v49, %v2191_v45 }
 0x1a0   :  { %6193 = vmatpush2.bf16.msra.mxu1 %v15804_v61  ;;  %v15772_v61 = vcombine.low %v2195_v13, %v2199_v58  ;;  %v2267_v13 = vld [vmem:[#allocation17 + $0xcc8] sm:$0xff] }
 0x1a1   :  { %6194 = vmatprep.subr.bf16.mxu1 %v15797_v1  ;;  %6162 = vmatpush2.bf16.msra.mxu0 %v15636_v5  ;;  %v2279_v1 = vld [vmem:[#allocation17 + $0xd28] sm:$0xff] }
 0x1a2   :  { %6163 = vmatprep.subr.bf16.mxu0 %v15629_v51  ;;  %v2179_v5 = vld [vmem:[#allocation17 + $0xa08] sm:$0xff]  ;;  %v15853_v43 = vcombine.high %v2275_v20, %v2279_v1 }
 0x1a3   :  { %v2271_v58 = vld [vmem:[#allocation17 + $0xce8] sm:$0xff] }
 0x1a4   :  { %6195 = vmatpush2.bf16.msra.mxu1 %v15796_v22  ;;  %v2183_v22 = vld [vmem:[#allocation17 + $0xa28] sm:$0xff] }
 0x1a5   :  { %6196 = vmatprep.subr.bf16.mxu1 %v15789_v36  ;;  %6164 = vmatpush2.bf16.msra.mxu0 %v15628_v35  ;;  %v2427_v53 = vld [vmem:[#allocation17 + $0x11c8] sm:$0xff] }
 0x1a6   :  { %6215 = vmatprep.subr.bf16.mxu0 %v15877_v55  ;;  %v2259_v29 = vld [vmem:[#allocation17 + $0xc88] sm:$0xff] }
 0x1a7   :  { %v2419_v49 = vld [vmem:[#allocation17 + $0x1188] sm:$0xff] }
 0x1a8   :  { %6197 = vmatpush2.bf16.msra.mxu1 %v15788_v56  ;;  %6166 = vmatmul.mubr.bf16.vlgmr.msra.gmra.mxu0 %v18893_v57  ;;  %v5880_v12 = vpop.f32.mrf.mxu0  ;;  %v15757_v56 = vcombine.high %v2179_v5, %v2183_v22  ;;  %v2423_v45 = vld [vmem:[#allocation17 + $0x11a8] sm:$0xff] }
 0x1a9   :  { %6198 = vmatprep.subr.bf16.mxu1 %v15781_v7  ;;  %6216 = vmatpush1.bf16.msra.mxu0 %v15876_v14  ;;  %v2431_v7 = vld [vmem:[#allocation17 + $0x11e8] sm:$0xff]  ;;  %v15852_v14 = vcombine.low %v2275_v20, %v2279_v1 }
 0x1aa   :  { %6247 = vmatprep.mubr.bf16.mxu0 %v19094_v52  ;;  %v5882_v23 = vpop.f32.mrf.mxu0  ;;  %6217 = vmatprep.subr.bf16.mxu0 %v15869_v33  ;;  %v15845_v33 = vcombine.high %v2267_v13, %v2271_v58  ;;  %v2255_v20 = vld [vmem:[#allocation17 + $0xc68] sm:$0xff] }
 0x1ab   :  { %v2411_v1 = vld [vmem:[#allocation17 + $0x1148] sm:$0xff] }
 0x1ac   :  { %6199 = vmatpush2.bf16.msra.mxu1 %v15780_v48  ;;  %v5884_v40 = vpop.f32.mrf.mxu0  ;;  %v15756_v48 = vcombine.low %v2179_v5, %v2183_v22  ;;  %v15996_v22 = vcombine.low %v2419_v49, %v2423_v45 }
 0x1ad   :  { %6200 = vmatprep.subr.bf16.mxu1 %v15773_v59  ;;  %v5921_v51 = vpop.f32.mrf.mxu1  ;;  %6218 = vmatpush1.bf16.msra.mxu0 %v15868_v50  ;;  %v16005_v59 = vcombine.high %v2427_v53, %v2431_v7  ;;  %v15844_v50 = vcombine.low %v2267_v13, %v2271_v58  ;;  %v2415_v40 = vld [vmem:[#allocation17 + $0x1168] sm:$0xff] }
 0x1ae   :  { %v19195_v47 = vadd.f32 %v5921_v51, %v5880_v12  ;;  %v5885_v36 = vpop.f32.mrf.mxu0  ;;  %6219 = vmatprep.subr.bf16.mxu0 %v15861_v16  ;;  %v2263_v12 = vld [vmem:[#allocation17 + $0xca8] sm:$0xff]  ;;  %v15997_v16 = vcombine.high %v2419_v49, %v2423_v45  ;;  %v15988_v13 = vcombine.low %v2411_v1, %v2415_v40 }
 0x1af   :  { %v5923_v35 = vpop.f32.mrf.mxu1  ;;  %v15836_v5 = vcombine.low %v2259_v29, %v2263_v12  ;;  %v2247_v36 = vld [vmem:[#allocation17 + $0xc28] sm:$0xff] }
 0x1b0   :  { %6201 = vmatpush2.bf16.msra.mxu1 %v15772_v61  ;;  %v19197_v55 = vadd.f32 %v5923_v35, %v5882_v23  ;;  %v16004_v61 = vcombine.low %v2427_v53, %v2431_v7  ;;  %v15837_v23 = vcombine.high %v2259_v29, %v2263_v12  ;;  %v2407_v35 = vld [vmem:[#allocation17 + $0x1128] sm:$0xff] }
 0x1b1   :  { %6202 = vmatprep.subr.bf16.mxu1 %v15765_v4  ;;  %v5925_v27 = vpop.f32.mrf.mxu1  ;;  %6220 = vmatpush1.bf16.msra.mxu0 %v15860_v41  ;;  %v2251_v4 = vld [vmem:[#allocation17 + $0xc48] sm:$0xff]  ;;  %v15989_v41 = vcombine.high %v2411_v1, %v2415_v40 }
 0x1b2   :  { %6221 = vmatprep.subr.bf16.mxu0 %v15853_v43  ;;  %v15829_v51 = vcombine.high %v2251_v4, %v2255_v20  ;;  %v2403_v43 = vld [vmem:[#allocation17 + $0x1108] sm:$0xff] }
 0x1b3   :  { %v5926_v38 = vpop.f32.mrf.mxu1  ;;  %v15981_v53 = vcombine.high %v2403_v43, %v2407_v35  ;;  %v2363_v7 = vld [vmem:[#allocation17 + $0xfc8] sm:$0xff] }
 0x1b4   :  { %6203 = vmatpush2.bf16.msra.mxu1 %v15764_v8  ;;  %v2243_v8 = vld [vmem:[#allocation17 + $0xc08] sm:$0xff]  ;;  %v15980_v38 = vcombine.low %v2403_v43, %v2407_v35 }
 0x1b5   :  { %6204 = vmatprep.subr.bf16.mxu1 %v15757_v56  ;;  %6222 = vmatpush1.bf16.msra.mxu0 %v15852_v14  ;;  %v15828_v56 = vcombine.low %v2251_v4, %v2255_v20  ;;  %v15821_v58 = vcombine.high %v2243_v8, %v2247_v36  ;;  %v2367_v27 = vld [vmem:[#allocation17 + $0xfe8] sm:$0xff] }
 0x1b6   :  { %6223 = vmatprep.subr.bf16.mxu0 %v15845_v33  ;;  %v2395_v14 = vld [vmem:[#allocation17 + $0x10c8] sm:$0xff]  ;;  %v15820_v33 = vcombine.low %v2243_v8, %v2247_v36 }
 0x1b7   :  { %v2355_v12 = vld [vmem:[#allocation17 + $0xf88] sm:$0xff] }
 0x1b8   :  { %6205 = vmatpush2.bf16.msra.mxu1 %v15756_v48  ;;  %v2399_v48 = vld [vmem:[#allocation17 + $0x10e8] sm:$0xff] }
 0x1b9   :  { %6256 = vmatprep.subr.bf16.mxu1 %v16005_v59  ;;  %6224 = vmatpush1.bf16.msra.mxu0 %v15844_v50  ;;  %v15941_v59 = vcombine.high %v2363_v7, %v2367_v27  ;;  %v15973_v29 = vcombine.high %v2395_v14, %v2399_v48  ;;  %v2359_v49 = vld [vmem:[#allocation17 + $0xfa8] sm:$0xff] }
 0x1ba   :  { %6225 = vmatprep.subr.bf16.mxu0 %v15837_v23  ;;  %v2387_v45 = vld [vmem:[#allocation17 + $0x1088] sm:$0xff]  ;;  %v15972_v23 = vcombine.low %v2395_v14, %v2399_v48 }
 0x1bb   :  { %6207 = vmatmul.mubr.bf16.vlgmr.msra.gmra.mxu1 %v19151_v63  ;;  %v2391_v50 = vld [vmem:[#allocation17 + $0x10a8] sm:$0xff] }
 0x1bc   :  { %6257 = vmatpush1.bf16.msra.mxu1 %v16004_v61  ;;  %6288 = vmatprep.mubr.bf16.mxu1 %v19181_v6  ;;  %v15940_v61 = vcombine.low %v2363_v7, %v2367_v27  ;;  %v15965_v4 = vcombine.high %v2387_v45, %v2391_v50  ;;  %v2347_v20 = vld [vmem:[#allocation17 + $0xf48] sm:$0xff] }
 0x1bd   :  { %6258 = vmatprep.subr.bf16.mxu1 %v15997_v16  ;;  %6226 = vmatpush1.bf16.msra.mxu0 %v15836_v5  ;;  %v15933_v16 = vcombine.high %v2355_v12, %v2359_v49  ;;  %v2351_v1 = vld [vmem:[#allocation17 + $0xf68] sm:$0xff] }
 0x1be   :  { %6227 = vmatprep.subr.bf16.mxu0 %v15829_v51  ;;  %v2379_v40 = vld [vmem:[#allocation17 + $0x1048] sm:$0xff]  ;;  %v15964_v51 = vcombine.low %v2387_v45, %v2391_v50 }
 0x1bf   :  { %v2383_v5 = vld [vmem:[#allocation17 + $0x1068] sm:$0xff] }
 0x1c0   :  { %6259 = vmatpush1.bf16.msra.mxu1 %v15996_v22  ;;  %v15932_v22 = vcombine.low %v2355_v12, %v2359_v49  ;;  %v15957_v8 = vcombine.high %v2379_v40, %v2383_v5  ;;  %v2339_v36 = vld [vmem:[#allocation17 + $0xf08] sm:$0xff] }
 0x1c1   :  { %6260 = vmatprep.subr.bf16.mxu1 %v15989_v41  ;;  %6228 = vmatpush1.bf16.msra.mxu0 %v15828_v56  ;;  %v15925_v41 = vcombine.high %v2347_v20, %v2351_v1  ;;  %v2343_v43 = vld [vmem:[#allocation17 + $0xf28] sm:$0xff] }
 0x1c2   :  { %6229 = vmatprep.subr.bf16.mxu0 %v15821_v58  ;;  %v2371_v35 = vld [vmem:[#allocation17 + $0x1008] sm:$0xff]  ;;  %v15956_v58 = vcombine.low %v2379_v40, %v2383_v5 }
 0x1c3   :  { %v2375_v56 = vld [vmem:[#allocation17 + $0x1028] sm:$0xff] }
 0x1c4   :  { %6261 = vmatpush1.bf16.msra.mxu1 %v15988_v13  ;;  %v15924_v13 = vcombine.low %v2347_v20, %v2351_v1  ;;  %v15949_v7 = vcombine.high %v2371_v35, %v2375_v56  ;;  %v2331_v27 = vld [vmem:[#allocation17 + $0xec8] sm:$0xff] }
 0x1c5   :  { %6262 = vmatprep.subr.bf16.mxu1 %v15981_v53  ;;  %6230 = vmatpush1.bf16.msra.mxu0 %v15820_v33  ;;  %v15917_v53 = vcombine.high %v2339_v36, %v2343_v43  ;;  %v2335_v14 = vld [vmem:[#allocation17 + $0xee8] sm:$0xff] }
 0x1c6   :  { %6231 = vmatprep.subr.bf16.mxu0 %v15941_v59  ;;  %v2491_v48 = vld [vmem:[#allocation17 + $0x13c8] sm:$0xff]  ;;  %v15948_v59 = vcombine.low %v2371_v35, %v2375_v56 }
 0x1c7   :  { %v2495_v33 = vld [vmem:[#allocation17 + $0x13e8] sm:$0xff] }
 0x1c8   :  { %6263 = vmatpush1.bf16.msra.mxu1 %v15980_v38  ;;  %v15916_v38 = vcombine.low %v2339_v36, %v2343_v43  ;;  %v16069_v12 = vcombine.high %v2491_v48, %v2495_v33  ;;  %v2323_v49 = vld [vmem:[#allocation17 + $0xe88] sm:$0xff] }
 0x1c9   :  { %6264 = vmatprep.subr.bf16.mxu1 %v15973_v29  ;;  %6232 = vmatpush2.bf16.msra.mxu0 %v15940_v61  ;;  %v15909_v29 = vcombine.high %v2331_v27, %v2335_v14  ;;  %v2327_v45 = vld [vmem:[#allocation17 + $0xea8] sm:$0xff] }
 0x1ca   :  { %6233 = vmatprep.subr.bf16.mxu0 %v15933_v16  ;;  %v2483_v50 = vld [vmem:[#allocation17 + $0x1388] sm:$0xff]  ;;  %v16068_v16 = vcombine.low %v2491_v48, %v2495_v33 }
 0x1cb   :  { %v2487_v61 = vld [vmem:[#allocation17 + $0x13a8] sm:$0xff] }
 0x1cc   :  { %6265 = vmatpush1.bf16.msra.mxu1 %v15972_v23  ;;  %v15908_v23 = vcombine.low %v2331_v27, %v2335_v14  ;;  %v16061_v20 = vcombine.high %v2483_v50, %v2487_v61  ;;  %v2315_v1 = vld [vmem:[#allocation17 + $0xe48] sm:$0xff] }
 0x1cd   :  { %6266 = vmatprep.subr.bf16.mxu1 %v15965_v4  ;;  %6234 = vmatpush2.bf16.msra.mxu0 %v15932_v22  ;;  %v15901_v4 = vcombine.high %v2323_v49, %v2327_v45  ;;  %v2319_v40 = vld [vmem:[#allocation17 + $0xe68] sm:$0xff] }
 0x1ce   :  { %6235 = vmatprep.subr.bf16.mxu0 %v15925_v41  ;;  %v2475_v5 = vld [vmem:[#allocation17 + $0x1348] sm:$0xff]  ;;  %v16060_v41 = vcombine.low %v2483_v50, %v2487_v61 }
 0x1cf   :  { %v2479_v22 = vld [vmem:[#allocation17 + $0x1368] sm:$0xff] }
 0x1d0   :  { %6267 = vmatpush1.bf16.msra.mxu1 %v15964_v51  ;;  %v15900_v51 = vcombine.low %v2323_v49, %v2327_v45  ;;  %v16053_v36 = vcombine.high %v2475_v5, %v2479_v22  ;;  %v2307_v43 = vld [vmem:[#allocation17 + $0xe08] sm:$0xff] }
 0x1d1   :  { %6268 = vmatprep.subr.bf16.mxu1 %v15957_v8  ;;  %6236 = vmatpush2.bf16.msra.mxu0 %v15924_v13  ;;  %v15893_v8 = vcombine.high %v2315_v1, %v2319_v40  ;;  %v2311_v35 = vld [vmem:[#allocation17 + $0xe28] sm:$0xff] }
 0x1d2   :  { %6237 = vmatprep.subr.bf16.mxu0 %v15917_v53  ;;  %v2467_v56 = vld [vmem:[#allocation17 + $0x1308] sm:$0xff]  ;;  %v16052_v53 = vcombine.low %v2475_v5, %v2479_v22 }
 0x1d3   :  { %v2471_v13 = vld [vmem:[#allocation17 + $0x1328] sm:$0xff] }
 0x1d4   :  { %6269 = vmatpush1.bf16.msra.mxu1 %v15956_v58  ;;  %v15892_v58 = vcombine.low %v2315_v1, %v2319_v40  ;;  %v16045_v27 = vcombine.high %v2467_v56, %v2471_v13  ;;  %v2515_v14 = vld [vmem:[#allocation17 + $0x1488] sm:$0x11] }
 0x1d5   :  { %6270 = vmatprep.subr.bf16.mxu1 %v15949_v7  ;;  %6238 = vmatpush2.bf16.msra.mxu0 %v15916_v38  ;;  %v15885_v7 = vcombine.high %v2307_v43, %v2311_v35  ;;  %v2459_v48 = vld [vmem:[#allocation17 + $0x12c8] sm:$0xff]  ;;  %v15884_v38 = vcombine.low %v2307_v43, %v2311_v35 }
 0x1d6   :  { %6239 = vmatprep.subr.bf16.mxu0 %v15909_v29  ;;  %v2463_v33 = vld [vmem:[#allocation17 + $0x12e8] sm:$0xff]  ;;  %v16093_v29 = vcombine.high %v2515_v14, %v2515_v14 }
 0x1d7   :  { %v16037_v49 = vcombine.high %v2459_v48, %v2463_v33  ;;  %v2507_v45 = vld [vmem:[#allocation17 + $0x1448] sm:$0xff] }
 0x1d8   :  { %6271 = vmatpush1.bf16.msra.mxu1 %v15948_v59  ;;  %v16044_v59 = vcombine.low %v2467_v56, %v2471_v13  ;;  %v2511_v50 = vld [vmem:[#allocation17 + $0x1468] sm:$0xff] }
 0x1d9   :  { %6272 = vmatprep.subr.bf16.mxu1 %v16069_v12  ;;  %6240 = vmatpush2.bf16.msra.mxu0 %v15908_v23  ;;  %v16092_v12 = vcombine.low %v2515_v14, %v2515_v14  ;;  %v2451_v61 = vld [vmem:[#allocation17 + $0x1288] sm:$0xff] }
 0x1da   :  { %6241 = vmatprep.subr.bf16.mxu0 %v15901_v4  ;;  %v2455_v23 = vld [vmem:[#allocation17 + $0x12a8] sm:$0xff] }
 0x1db   :  { %v5829_v4 = vsel %vm5821_vm1, %v16092_v12, 0  ;;  %v16029_v1 = vcombine.high %v2451_v61, %v2455_v23  ;;  %v2499_v40 = vld [vmem:[#allocation17 + $0x1408] sm:$0xff]  ;;  %v16028_v43 = vcombine.low %v2451_v61, %v2455_v23  ;;  %v2044_v23 = vld [vmem:[#allocation17 + $0x5d0] sm:$0xff] }
 0x1dc   :  { %6273 = vmatpush2.bf16.msra.mxu1 %v16068_v16  ;;  %v16036_v16 = vcombine.low %v2459_v48, %v2463_v33  ;;  %v2503_v5 = vld [vmem:[#allocation17 + $0x1428] sm:$0xff] }
 0x1dd   :  { %6274 = vmatprep.subr.bf16.mxu1 %v16061_v20  ;;  %6242 = vmatpush2.bf16.msra.mxu0 %v15900_v51  ;;  %v16085_v20 = vcombine.high %v2507_v45, %v2511_v50  ;;  %v2443_v51 = vld [vmem:[#allocation17 + $0x1248] sm:$0xff]  ;;  %v16077_v56 = vcombine.high %v2499_v40, %v2503_v5 }
 0x1de   :  { %6243 = vmatprep.subr.bf16.mxu0 %v15893_v8  ;;  %v2435_v14 = vld [vmem:[#allocation17 + $0x1208] sm:$0xff] }
 0x1df   :  { %v2439_v48 = vld [vmem:[#allocation17 + $0x1228] sm:$0xff] }
 0x1e0   :  { %6275 = vmatpush2.bf16.msra.mxu1 %v16060_v41  ;;  %v2447_v41 = vld [vmem:[#allocation17 + $0x1268] sm:$0xff] }
 0x1e1   :  { %6276 = vmatprep.subr.bf16.mxu1 %v16053_v36  ;;  %6244 = vmatpush2.bf16.msra.mxu0 %v15892_v58  ;;  %v16084_v36 = vcombine.low %v2507_v45, %v2511_v50  ;;  %v16021_v58 = vcombine.high %v2443_v51, %v2447_v41  ;;  %v16013_v45 = vcombine.high %v2435_v14, %v2439_v48  ;;  %v1912_v50 = vld [vmem:[#allocation17 + $0x1b0] sm:$0xff] }
 0x1e2   :  { %6245 = vmatprep.subr.bf16.mxu0 %v15885_v7  ;;  %v1920_v7 = vld [vmem:[#allocation17 + $0x1f0] sm:$0xff] }
 0x1e4   :  { %6277 = vmatpush2.bf16.msra.mxu1 %v16052_v53  ;;  %v1916_v53 = vld [vmem:[#allocation17 + $0x1d0] sm:$0xff] }
 0x1e5   :  { %6278 = vmatprep.subr.bf16.mxu1 %v16045_v27  ;;  %6246 = vmatpush2.bf16.msra.mxu0 %v15884_v38  ;;  %v15495_v12 = vcombine.high %v1916_v53, %v1920_v7 }
 0x1e6   :  { %16100 = vmatprep.subr.msk.bf16.mxu0 %vm5821_vm1, %v16093_v29 }
 0x1e8   :  { %6279 = vmatpush2.bf16.msra.mxu1 %v16044_v59  ;;  %v5962_v22 = vpop.f32.mrf.mxu0  ;;  %6248 = vmatmul.mubr.bf16.vlgmr.msra.gmra.mxu0 %v19154_v44  ;;  %v16020_v59 = vcombine.low %v2443_v51, %v2447_v41  ;;  %v1900_v51 = vld [vmem:[#allocation17 + $0x150] sm:$0xff] }
 0x1e9   :  { %6280 = vmatprep.subr.bf16.mxu1 %v16037_v49  ;;  %v5963_v8 = vadd.f32 %v5962_v22, %v19195_v47  ;;  %6308 = vmatpush1.bf16.msra.mxu0 %v5829_v4  ;;  %v16076_v47 = vcombine.low %v2499_v40, %v2503_v5  ;;  %v1904_v41 = vld [vmem:[#allocation17 + $0x170] sm:$0xff] }
 0x1ea   :  { %6329 = vmatprep.mubr.bf16.mxu0 %v20497_v62  ;;  %v5964_v35 = vpop.f32.mrf.mxu0  ;;  %6309 = vmatprep.subr.bf16.mxu0 %v16085_v20  ;;  %v15494_v20 = vcombine.low %v1916_v53, %v1920_v7  ;;  %v1896_v53 = vld [vmem:[#allocation17 + $0x130] sm:$0xff] }
 0x1eb   :  { %v5965_v13 = vadd.f32 %v5964_v35, %v19197_v55  ;;  %v1908_v55 = vld [vmem:[#allocation17 + $0x190] sm:$0xff] }
 0x1ec   :  { %6281 = vmatpush2.bf16.msra.mxu1 %v16036_v16  ;;  %v5966_v27 = vpop.f32.mrf.mxu0  ;;  %v2048_v16 = vld [vmem:[#allocation17 + $0x5f0] sm:$0xff]  ;;  %v15487_v40 = vcombine.high %v1908_v55, %v1912_v50 }
 0x1ed   :  { %6282 = vmatprep.subr.bf16.mxu1 %v16029_v1  ;;  %6310 = vmatpush1.bf16.msra.mxu0 %v16084_v36  ;;  %v16012_v1 = vcombine.low %v2435_v14, %v2439_v48  ;;  %v15623_v22 = vcombine.high %v2044_v23, %v2048_v16  ;;  %v2040_v36 = vld [vmem:[#allocation17 + $0x5b0] sm:$0xff]  ;;  %v15622_v35 = vcombine.low %v2044_v23, %v2048_v16 }
 0x1ee   :  { %v5967_v29 = vpop.f32.mrf.mxu0  ;;  %6311 = vmatprep.subr.bf16.mxu0 %v16077_v56  ;;  %v15479_v56 = vcombine.high %v1900_v51, %v1904_v41  ;;  %v2028_v7 = vld [vmem:[#allocation17 + $0x550] sm:$0xff]  ;;  %v15478_v48 = vcombine.low %v1900_v51, %v1904_v41 }
 0x1ef   :  { %v6003_v33 = vpop.f32.mrf.mxu1  ;;  %v2032_v27 = vld [vmem:[#allocation17 + $0x570] sm:$0xff] }
 0x1f0   :  { %v19207_v38 = vadd.f32 %v6003_v33, %v5963_v8  ;;  %6283 = vmatpush2.bf16.msra.mxu1 %v16028_v43  ;;  %v2036_v8 = vld [vmem:[#allocation17 + $0x590] sm:$0xff]  ;;  %v15486_v43 = vcombine.low %v1908_v55, %v1912_v50  ;;  %v15607_v29 = vcombine.high %v2028_v7, %v2032_v27  ;;  %v15606_v16 = vcombine.low %v2028_v7, %v2032_v27 }
 0x1f1   :  { %v6005_v49 = vpop.f32.mrf.mxu1  ;;  %6284 = vmatprep.subr.bf16.mxu1 %v16021_v58  ;;  %6312 = vmatpush1.bf16.msra.mxu0 %v16076_v47  ;;  %v1892_v58 = vld [vmem:[#allocation17 + $0x110] sm:$0xff]  ;;  %v15614_v33 = vcombine.low %v2036_v8, %v2040_v36 }
 0x1f2   :  { %v19209_v61 = vadd.f32 %v6005_v49, %v5965_v13  ;;  %6338 = vmatprep.subr.bf16.mxu0 %v15495_v12  ;;  %v15615_v13 = vcombine.high %v2036_v8, %v2040_v36  ;;  %v15471_v47 = vcombine.high %v1892_v58, %v1896_v53  ;;  %v1884_v12 = vld [vmem:[#allocation17 + $0xd0] sm:$0xff]  ;;  %v15470_v23 = vcombine.low %v1892_v58, %v1896_v53 }
 0x1f3   :  { %v6007_v4 = vpop.f32.mrf.mxu1  ;;  %v1888_v49 = vld [vmem:[#allocation17 + $0xf0] sm:$0xff] }
 0x1f4   :  { %6285 = vmatpush2.bf16.msra.mxu1 %v16020_v59  ;;  %16101 = vmatmul.mubr.msk.bf16.vlgmr.msra.gmra.mxu0 %vm592_vm0, %v19173_v54  ;;  %v2024_v55 = vld [vmem:[#allocation17 + $0x530] sm:$0xff]  ;;  %v15463_v4 = vcombine.high %v1884_v12, %v1888_v49  ;;  %v15462_v41 = vcombine.low %v1884_v12, %v1888_v49 }
 0x1f5   :  { %v6008_v5 = vpop.f32.mrf.mxu1  ;;  %6286 = vmatprep.subr.bf16.mxu1 %v16013_v45  ;;  %6339 = vmatpush1.bf16.msra.mxu0 %v15494_v20  ;;  %v2020_v45 = vld [vmem:[#allocation17 + $0x510] sm:$0xff] }
 0x1f6   :  { %6370 = vmatprep.mubr.bf16.mxu0 %v18811_v19  ;;  %6340 = vmatprep.subr.bf16.mxu0 %v15487_v40  ;;  %v1876_v40 = vld [vmem:[#allocation17 + $0x90] sm:$0xff]  ;;  %v15598_v8 = vcombine.low %v2020_v45, %v2024_v55 }
 0x1f7   :  { %v1880_v5 = vld [vmem:[#allocation17 + $0xb0] sm:$0xff] }
 0x1f8   :  { %6287 = vmatpush2.bf16.msra.mxu1 %v16012_v1  ;;  %v15599_v1 = vcombine.high %v2020_v45, %v2024_v55  ;;  %v2016_v51 = vld [vmem:[#allocation17 + $0x4f0] sm:$0xff]  ;;  %v15455_v36 = vcombine.high %v1876_v40, %v1880_v5  ;;  %v15454_v53 = vcombine.low %v1876_v40, %v1880_v5 }
 0x1f9   :  { %6379 = vmatprep.subr.bf16.mxu1 %v15623_v22  ;;  %6341 = vmatpush1.bf16.msra.mxu0 %v15486_v43  ;;  %v2012_v22 = vld [vmem:[#allocation17 + $0x4d0] sm:$0xff] }
 0x1fa   :  { %6342 = vmatprep.subr.bf16.mxu0 %v15479_v56  ;;  %v15591_v43 = vcombine.high %v2012_v22, %v2016_v51  ;;  %v1872_v56 = vld [vmem:[#allocation17 + $0x70] sm:$0xff]  ;;  %v15590_v7 = vcombine.low %v2012_v22, %v2016_v51 }
 0x1fb   :  { %v19214_v14 = vpop.f32.mrf.mxu1  ;;  %6289 = vmatmul.mubr.bf16.vlgmr.msra.gmra.mxu1 %v19187_v31  ;;  %v2008_v58 = vld [vmem:[#allocation17 + $0x4b0] sm:$0xff] }
 0x1fc   :  { %6380 = vmatpush1.bf16.msra.mxu1 %v15622_v35  ;;  %6411 = vmatprep.mubr.bf16.mxu1 %v18831_v0  ;;  %v1868_v35 = vld [vmem:[#allocation17 + $0x50] sm:$0xff] }
 0x1fd   :  { %v19217_v59 = vpop.f32.mrf.mxu1  ;;  %6381 = vmatprep.subr.bf16.mxu1 %v15615_v13  ;;  %6343 = vmatpush1.bf16.msra.mxu0 %v15478_v48  ;;  %v2004_v13 = vld [vmem:[#allocation17 + $0x490] sm:$0xff]  ;;  %v15447_v27 = vcombine.high %v1868_v35, %v1872_v56  ;;  %v15446_v49 = vcombine.low %v1868_v35, %v1872_v56 }
 0x1fe   :  { %6344 = vmatprep.subr.bf16.mxu0 %v15471_v47  ;;  %v15583_v48 = vcombine.high %v2004_v13, %v2008_v58  ;;  %v1864_v47 = vld [vmem:[#allocation17 + $0x30] sm:$0xff]  ;;  %v15582_v45 = vcombine.low %v2004_v13, %v2008_v58 }
 0x1ff   :  { %v6089_v50 = vpop.f32.mrf.mxu1  ;;  %v2000_v12 = vld [vmem:[#allocation17 + $0x470] sm:$0xff] }
 0x200   :  { %6382 = vmatpush1.bf16.msra.mxu1 %v15614_v33  ;;  %v1860_v33 = vld [vmem:[#allocation17 + $0x10] sm:$0xff] }
 0x201   :  { %v6090_v20 = vpop.f32.mrf.mxu1  ;;  %6383 = vmatprep.subr.bf16.mxu1 %v15607_v29  ;;  %6345 = vmatpush1.bf16.msra.mxu0 %v15470_v23  ;;  %v1996_v29 = vld [vmem:[#allocation17 + $0x450] sm:$0xff]  ;;  %v15439_v55 = vcombine.high %v1860_v33, %v1864_v47 }
 0x202   :  { %6346 = vmatprep.subr.bf16.mxu0 %v15463_v4  ;;  %v15575_v50 = vcombine.high %v1996_v29, %v2000_v12  ;;  %v1980_v23 = vld [vmem:[#allocation17 + $0x3d0] sm:$0xff]  ;;  %v15574_v40 = vcombine.low %v1996_v29, %v2000_v12 }
 0x203   :  { %v1988_v4 = vld [vmem:[#allocation17 + $0x410] sm:$0xff] }
 0x204   :  { %6384 = vmatpush1.bf16.msra.mxu1 %v15606_v16  ;;  %v1984_v16 = vld [vmem:[#allocation17 + $0x3f0] sm:$0xff] }
 0x205   :  { %6385 = vmatprep.subr.bf16.mxu1 %v15599_v1  ;;  %6347 = vmatpush1.bf16.msra.mxu0 %v15462_v41  ;;  %v1992_v20 = vld [vmem:[#allocation17 + $0x430] sm:$0xff]  ;;  %v15438_v1 = vcombine.low %v1860_v33, %v1864_v47  ;;  %v15559_v5 = vcombine.high %v1980_v23, %v1984_v16 }
 0x206   :  { %6348 = vmatprep.subr.bf16.mxu0 %v15455_v36  ;;  %v15567_v22 = vcombine.high %v1988_v4, %v1992_v20  ;;  %v1972_v51 = vld [vmem:[#allocation17 + $0x390] sm:$0xff]  ;;  %v15566_v35 = vcombine.low %v1988_v4, %v1992_v20 }
 0x207   :  { %v1976_v41 = vld [vmem:[#allocation17 + $0x3b0] sm:$0xff] }
 0x208   :  { %6386 = vmatpush1.bf16.msra.mxu1 %v15598_v8  ;;  %v2108_v8 = vld [vmem:[#allocation17 + $0x7d0] sm:$0xff]  ;;  %v15551_v56 = vcombine.high %v1972_v51, %v1976_v41 }
 0x209   :  { %6387 = vmatprep.subr.bf16.mxu1 %v15591_v43  ;;  %6349 = vmatpush1.bf16.msra.mxu0 %v15454_v53  ;;  %v2112_v36 = vld [vmem:[#allocation17 + $0x7f0] sm:$0xff]  ;;  %v15558_v43 = vcombine.low %v1980_v23, %v1984_v16 }
 0x20a   :  { %6350 = vmatprep.subr.bf16.mxu0 %v15447_v27  ;;  %v15687_v13 = vcombine.high %v2108_v8, %v2112_v36  ;;  %v1964_v58 = vld [vmem:[#allocation17 + $0x350] sm:$0xff]  ;;  %v15686_v33 = vcombine.low %v2108_v8, %v2112_v36 }
 0x20b   :  { %v1968_v53 = vld [vmem:[#allocation17 + $0x370] sm:$0xff] }
 0x20c   :  { %6388 = vmatpush1.bf16.msra.mxu1 %v15590_v7  ;;  %v2100_v7 = vld [vmem:[#allocation17 + $0x790] sm:$0xff]  ;;  %v15543_v47 = vcombine.high %v1964_v58, %v1968_v53 }
 0x20d   :  { %6389 = vmatprep.subr.bf16.mxu1 %v15583_v48  ;;  %6351 = vmatpush1.bf16.msra.mxu0 %v15446_v49  ;;  %v2104_v27 = vld [vmem:[#allocation17 + $0x7b0] sm:$0xff]  ;;  %v15550_v48 = vcombine.low %v1972_v51, %v1976_v41 }
 0x20e   :  { %6352 = vmatprep.subr.bf16.mxu0 %v15439_v55  ;;  %v15679_v29 = vcombine.high %v2100_v7, %v2104_v27  ;;  %v1956_v12 = vld [vmem:[#allocation17 + $0x310] sm:$0xff]  ;;  %v15678_v23 = vcombine.low %v2100_v7, %v2104_v27 }
 0x20f   :  { %v1960_v49 = vld [vmem:[#allocation17 + $0x330] sm:$0xff] }
 0x210   :  { %6390 = vmatpush1.bf16.msra.mxu1 %v15582_v45  ;;  %v2092_v45 = vld [vmem:[#allocation17 + $0x750] sm:$0xff]  ;;  %v15535_v16 = vcombine.high %v1956_v12, %v1960_v49 }
 0x211   :  { %6391 = vmatprep.subr.bf16.mxu1 %v15575_v50  ;;  %6353 = vmatpush1.bf16.msra.mxu0 %v15438_v1  ;;  %v2096_v55 = vld [vmem:[#allocation17 + $0x770] sm:$0xff]  ;;  %v15542_v50 = vcombine.low %v1964_v58, %v1968_v53 }
 0x212   :  { %6354 = vmatprep.subr.bf16.mxu0 %v15559_v5  ;;  %v15671_v4 = vcombine.high %v2092_v45, %v2096_v55  ;;  %v1948_v20 = vld [vmem:[#allocation17 + $0x2d0] sm:$0xff]  ;;  %v15670_v51 = vcombine.low %v2092_v45, %v2096_v55 }
 0x213   :  { %v1952_v1 = vld [vmem:[#allocation17 + $0x2f0] sm:$0xff] }
 0x214   :  { %6392 = vmatpush1.bf16.msra.mxu1 %v15574_v40  ;;  %v2084_v40 = vld [vmem:[#allocation17 + $0x710] sm:$0xff]  ;;  %v15527_v41 = vcombine.high %v1948_v20, %v1952_v1 }
 0x215   :  { %6393 = vmatprep.subr.bf16.mxu1 %v15567_v22  ;;  %6355 = vmatpush2.bf16.msra.mxu0 %v15558_v43  ;;  %v2088_v5 = vld [vmem:[#allocation17 + $0x730] sm:$0xff]  ;;  %v15534_v22 = vcombine.low %v1956_v12, %v1960_v49 }
 0x216   :  { %6356 = vmatprep.subr.bf16.mxu0 %v15551_v56  ;;  %v15663_v8 = vcombine.high %v2084_v40, %v2088_v5  ;;  %v1940_v36 = vld [vmem:[#allocation17 + $0x290] sm:$0xff]  ;;  %v15662_v58 = vcombine.low %v2084_v40, %v2088_v5 }
 0x217   :  { %v1944_v43 = vld [vmem:[#allocation17 + $0x2b0] sm:$0xff] }
 0x218   :  { %6394 = vmatpush1.bf16.msra.mxu1 %v15566_v35  ;;  %v2076_v35 = vld [vmem:[#allocation17 + $0x6d0] sm:$0xff]  ;;  %v15519_v53 = vcombine.high %v1940_v36, %v1944_v43 }
 0x219   :  { %6395 = vmatprep.subr.bf16.mxu1 %v15687_v13  ;;  %6357 = vmatpush2.bf16.msra.mxu0 %v15550_v48  ;;  %v2080_v56 = vld [vmem:[#allocation17 + $0x6f0] sm:$0xff]  ;;  %v15526_v13 = vcombine.low %v1948_v20, %v1952_v1 }
 0x21a   :  { %6358 = vmatprep.subr.bf16.mxu0 %v15543_v47  ;;  %v15655_v7 = vcombine.high %v2076_v35, %v2080_v56  ;;  %v1932_v27 = vld [vmem:[#allocation17 + $0x250] sm:$0xff]  ;;  %v15654_v12 = vcombine.low %v2076_v35, %v2080_v56 }
 0x21b   :  { %v1936_v48 = vld [vmem:[#allocation17 + $0x270] sm:$0xff] }
 0x21c   :  { %6396 = vmatpush2.bf16.msra.mxu1 %v15686_v33  ;;  %v2068_v33 = vld [vmem:[#allocation17 + $0x690] sm:$0xff]  ;;  %v15511_v49 = vcombine.high %v1932_v27, %v1936_v48  ;;  %v15510_v1 = vcombine.low %v1932_v27, %v1936_v48 }
 0x21d   :  { %6397 = vmatprep.subr.bf16.mxu1 %v15679_v29  ;;  %6359 = vmatpush2.bf16.msra.mxu0 %v15542_v50  ;;  %v2072_v47 = vld [vmem:[#allocation17 + $0x6b0] sm:$0xff]  ;;  %v15518_v29 = vcombine.low %v1940_v36, %v1944_v43 }
 0x21e   :  { %6360 = vmatprep.subr.bf16.mxu0 %v15535_v16  ;;  %v15647_v45 = vcombine.high %v2068_v33, %v2072_v47  ;;  %v1924_v55 = vld [vmem:[#allocation17 + $0x210] sm:$0xff]  ;;  %v15646_v40 = vcombine.low %v2068_v33, %v2072_v47 }
 0x21f   :  { %v1928_v50 = vld [vmem:[#allocation17 + $0x230] sm:$0xff] }
 0x220   :  { %6398 = vmatpush2.bf16.msra.mxu1 %v15678_v23  ;;  %v2060_v16 = vld [vmem:[#allocation17 + $0x650] sm:$0xff] }
 0x221   :  { %6399 = vmatprep.subr.bf16.mxu1 %v15671_v4  ;;  %6361 = vmatpush2.bf16.msra.mxu0 %v15534_v22  ;;  %v2064_v4 = vld [vmem:[#allocation17 + $0x670] sm:$0xff]  ;;  %v15503_v22 = vcombine.high %v1924_v55, %v1928_v50 }
 0x222   :  { %6362 = vmatprep.subr.bf16.mxu0 %v15527_v41  ;;  %v15639_v41 = vcombine.high %v2060_v16, %v2064_v4  ;;  %v2176_v36 = vld [vmem:[#allocation17 + $0x9f0] sm:$0xff] }
 0x223   :  { %v2052_v56 = vld [vmem:[#allocation17 + $0x610] sm:$0xff] }
 0x224   :  { %6400 = vmatpush2.bf16.msra.mxu1 %v15670_v51  ;;  %v2164_v48 = vld [vmem:[#allocation17 + $0x990] sm:$0xff] }
 0x225   :  { %6401 = vmatprep.subr.bf16.mxu1 %v15663_v8  ;;  %6363 = vmatpush2.bf16.msra.mxu0 %v15526_v13  ;;  %v2172_v8 = vld [vmem:[#allocation17 + $0x9d0] sm:$0xff] }
 0x226   :  { %6364 = vmatprep.subr.bf16.mxu0 %v15519_v53  ;;  %v2056_v13 = vld [vmem:[#allocation17 + $0x630] sm:$0xff]  ;;  %v15638_v53 = vcombine.low %v2060_v16, %v2064_v4  ;;  %v15751_v27 = vcombine.high %v2172_v8, %v2176_v36 }
 0x227   :  { %v2168_v33 = vld [vmem:[#allocation17 + $0x9b0] sm:$0xff] }
 0x228   :  { %6402 = vmatpush2.bf16.msra.mxu1 %v15662_v58  ;;  %v6044_v23 = vpop.f32.mrf.mxu0  ;;  %v2300_v47 = vld [vmem:[#allocation17 + $0xdd0] sm:$0xff]  ;;  %v15742_v16 = vcombine.low %v2164_v48, %v2168_v33 }
 0x229   :  { %6403 = vmatprep.subr.bf16.mxu1 %v15655_v7  ;;  %v6045_v20 = vadd.f32 %v6044_v23, %v19207_v38  ;;  %6365 = vmatpush2.bf16.msra.mxu0 %v15518_v29  ;;  %v15502_v38 = vcombine.low %v1924_v55, %v1928_v50  ;;  %v15750_v29 = vcombine.low %v2172_v8, %v2176_v36  ;;  %v2160_v55 = vld [vmem:[#allocation17 + $0x970] sm:$0xff] }
 0x22a   :  { %v6046_v5 = vpop.f32.mrf.mxu0  ;;  %6366 = vmatprep.subr.bf16.mxu0 %v15511_v49  ;;  %v15743_v49 = vcombine.high %v2164_v48, %v2168_v33  ;;  %v2292_v50 = vld [vmem:[#allocation17 + $0xd90] sm:$0xff] }
 0x22b   :  { %v6047_v51 = vadd.f32 %v6046_v5, %v19209_v61  ;;  %v19223_v43 = vadd.f32 %v19214_v14, %v6045_v20  ;;  %v15631_v61 = vcombine.high %v2052_v56, %v2056_v13  ;;  %v2304_v14 = vld [vmem:[#allocation17 + $0xdf0] sm:$0xff] }
 0x22c   :  { %6404 = vmatpush2.bf16.msra.mxu1 %v15654_v12  ;;  %v6048_v35 = vpop.f32.mrf.mxu0  ;;  %v15630_v12 = vcombine.low %v2052_v56, %v2056_v13  ;;  %v2296_v23 = vld [vmem:[#allocation17 + $0xdb0] sm:$0xff]  ;;  %v15878_v4 = vcombine.low %v2300_v47, %v2304_v14 }
 0x22d   :  { %6405 = vmatprep.subr.bf16.mxu1 %v15647_v45  ;;  %20529 = vst [vmem:[#allocation47_spill] sm:$0xff] %v19223_v43  ;;  %6367 = vmatpush2.bf16.msra.mxu0 %v15510_v1  ;;  %v19226_v58 = vadd.f32 %v19217_v59, %v6047_v51  ;;  %v15879_v59 = vcombine.high %v2300_v47, %v2304_v14  ;;  %v2156_v45 = vld [vmem:[#allocation17 + $0x950] sm:$0xff] }
 0x22e   :  { %v6049_v7 = vpop.f32.mrf.mxu0  ;;  %6368 = vmatprep.subr.bf16.mxu0 %v15503_v22  ;;  %v15735_v20 = vcombine.high %v2156_v45, %v2160_v55  ;;  %v15871_v1 = vcombine.high %v2292_v50, %v2296_v23  ;;  %v2152_v5 = vld [vmem:[#allocation17 + $0x930] sm:$0xff]  ;;  %v15734_v8 = vcombine.low %v2156_v45, %v2160_v55  ;;  %v15870_v36 = vcombine.low %v2292_v50, %v2296_v23 }
 0x22f   :  { %20530 = vst [vmem:[#allocation48_spill] sm:$0xff] %v19226_v58  ;;  %v2284_v22 = vld [vmem:[#allocation17 + $0xd50] sm:$0xff]  ;;  %v2381_v58 = vld [vmem:[#allocation17 + $0x1058] sm:$0xff] }
 0x230   :  { %6406 = vmatpush2.bf16.msra.mxu1 %v15646_v40  ;;  %v2148_v40 = vld [vmem:[#allocation17 + $0x910] sm:$0xff] }
 0x231   :  { %6407 = vmatprep.subr.bf16.mxu1 %v15639_v41  ;;  %6369 = vmatpush2.bf16.msra.mxu0 %v15502_v38  ;;  %v2288_v51 = vld [vmem:[#allocation17 + $0xd70] sm:$0xff]  ;;  %v15727_v35 = vcombine.high %v2148_v40, %v2152_v5  ;;  %v15726_v48 = vcombine.low %v2148_v40, %v2152_v5 }
 0x232   :  { %6420 = vmatprep.subr.bf16.mxu0 %v15751_v27  ;;  %v15863_v13 = vcombine.high %v2284_v22, %v2288_v51  ;;  %v2140_v38 = vld [vmem:[#allocation17 + $0x8d0] sm:$0xff]  ;;  %v15862_v33 = vcombine.low %v2284_v22, %v2288_v51 }
 0x233   :  { %v2276_v7 = vld [vmem:[#allocation17 + $0xd10] sm:$0xff] }
 0x234   :  { %6408 = vmatpush2.bf16.msra.mxu1 %v15638_v53  ;;  %6371 = vmatmul.mubr.bf16.vlgmr.msra.gmra.mxu0 %v18851_v37  ;;  %v2144_v53 = vld [vmem:[#allocation17 + $0x8f0] sm:$0xff] }
 0x235   :  { %6409 = vmatprep.subr.bf16.mxu1 %v15631_v61  ;;  %6421 = vmatpush1.bf16.msra.mxu0 %v15750_v29  ;;  %v2280_v27 = vld [vmem:[#allocation17 + $0xd30] sm:$0xff]  ;;  %v15719_v47 = vcombine.high %v2140_v38, %v2144_v53  ;;  %v15718_v55 = vcombine.low %v2140_v38, %v2144_v53 }
 0x236   :  { %6452 = vmatprep.mubr.bf16.mxu0 %v19060_v15  ;;  %6422 = vmatprep.subr.bf16.mxu0 %v15743_v49  ;;  %v15855_v29 = vcombine.high %v2276_v7, %v2280_v27  ;;  %v2136_v49 = vld [vmem:[#allocation17 + $0x8b0] sm:$0xff]  ;;  %v15854_v50 = vcombine.low %v2276_v7, %v2280_v27 }
 0x237   :  { %v2272_v45 = vld [vmem:[#allocation17 + $0xcf0] sm:$0xff] }
 0x238   :  { %6410 = vmatpush2.bf16.msra.mxu1 %v15630_v12  ;;  %v2132_v12 = vld [vmem:[#allocation17 + $0x890] sm:$0xff] }
 0x239   :  { %6461 = vmatprep.subr.bf16.mxu1 %v15879_v59  ;;  %6423 = vmatpush1.bf16.msra.mxu0 %v15742_v16  ;;  %v2268_v59 = vld [vmem:[#allocation17 + $0xcd0] sm:$0xff]  ;;  %v15711_v23 = vcombine.high %v2132_v12, %v2136_v49  ;;  %v15710_v5 = vcombine.low %v2132_v12, %v2136_v49 }
 0x23a   :  { %6424 = vmatprep.subr.bf16.mxu0 %v15735_v20  ;;  %v15847_v16 = vcombine.high %v2268_v59, %v2272_v45  ;;  %v2128_v20 = vld [vmem:[#allocation17 + $0x870] sm:$0xff]  ;;  %v15846_v22 = vcombine.low %v2268_v59, %v2272_v45 }
 0x23b   :  { %v19230_v41 = vpop.f32.mrf.mxu1  ;;  %6412 = vmatmul.mubr.bf16.vlgmr.msra.gmra.mxu1 %v18893_v57  ;;  %v2264_v40 = vld [vmem:[#allocation17 + $0xcb0] sm:$0xff] }
 0x23c   :  { %6462 = vmatpush1.bf16.msra.mxu1 %v15878_v4  ;;  %6493 = vmatprep.mubr.bf16.mxu1 %v19094_v52  ;;  %v2124_v4 = vld [vmem:[#allocation17 + $0x850] sm:$0xff] }
 0x23d   :  { %v19233_v56 = vpop.f32.mrf.mxu1  ;;  %6463 = vmatprep.subr.bf16.mxu1 %v15871_v1  ;;  %6425 = vmatpush1.bf16.msra.mxu0 %v15734_v8  ;;  %v2260_v1 = vld [vmem:[#allocation17 + $0xc90] sm:$0xff]  ;;  %v15703_v51 = vcombine.high %v2124_v4, %v2128_v20  ;;  %v15702_v53 = vcombine.low %v2124_v4, %v2128_v20 }
 0x23e   :  { %6426 = vmatprep.subr.bf16.mxu0 %v15727_v35  ;;  %v15839_v8 = vcombine.high %v2260_v1, %v2264_v40  ;;  %v2120_v35 = vld [vmem:[#allocation17 + $0x830] sm:$0xff]  ;;  %v15838_v7 = vcombine.low %v2260_v1, %v2264_v40 }
 0x23f   :  { %v6130_v61 = vpop.f32.mrf.mxu1  ;;  %v2256_v38 = vld [vmem:[#allocation17 + $0xc70] sm:$0xff] }
 0x240   :  { %6464 = vmatpush1.bf16.msra.mxu1 %v15870_v36  ;;  %v2116_v36 = vld [vmem:[#allocation17 + $0x810] sm:$0xff] }
 0x241   :  { %v6131_v14 = vpop.f32.mrf.mxu1  ;;  %6465 = vmatprep.subr.bf16.mxu1 %v15863_v13  ;;  %6427 = vmatpush1.bf16.msra.mxu0 %v15726_v48  ;;  %v2252_v13 = vld [vmem:[#allocation17 + $0xc50] sm:$0xff]  ;;  %v15695_v27 = vcombine.high %v2116_v36, %v2120_v35 }
 0x242   :  { %6428 = vmatprep.subr.bf16.mxu0 %v15719_v47  ;;  %v15831_v61 = vcombine.high %v2252_v13, %v2256_v38  ;;  %v2236_v48 = vld [vmem:[#allocation17 + $0xbd0] sm:$0xff]  ;;  %v15830_v12 = vcombine.low %v2252_v13, %v2256_v38 }
 0x243   :  { %v2244_v47 = vld [vmem:[#allocation17 + $0xc10] sm:$0xff] }
 0x244   :  { %6466 = vmatpush1.bf16.msra.mxu1 %v15862_v33  ;;  %v2240_v33 = vld [vmem:[#allocation17 + $0xbf0] sm:$0xff] }
 0x245   :  { %6467 = vmatprep.subr.bf16.mxu1 %v15855_v29  ;;  %6429 = vmatpush1.bf16.msra.mxu0 %v15718_v55  ;;  %v2248_v14 = vld [vmem:[#allocation17 + $0xc30] sm:$0xff]  ;;  %v15694_v29 = vcombine.low %v2116_v36, %v2120_v35  ;;  %v15815_v49 = vcombine.high %v2236_v48, %v2240_v33 }
 0x246   :  { %6430 = vmatprep.subr.bf16.mxu0 %v15711_v23  ;;  %v15823_v59 = vcombine.high %v2244_v47, %v2248_v14  ;;  %v2228_v45 = vld [vmem:[#allocation17 + $0xb90] sm:$0xff]  ;;  %v15822_v4 = vcombine.low %v2244_v47, %v2248_v14 }
 0x247   :  { %v2232_v55 = vld [vmem:[#allocation17 + $0xbb0] sm:$0xff] }
 0x248   :  { %6468 = vmatpush1.bf16.msra.mxu1 %v15854_v50  ;;  %v2364_v50 = vld [vmem:[#allocation17 + $0xfd0] sm:$0xff]  ;;  %v15807_v20 = vcombine.high %v2228_v45, %v2232_v55 }
 0x249   :  { %6469 = vmatprep.subr.bf16.mxu1 %v15847_v16  ;;  %6431 = vmatpush1.bf16.msra.mxu0 %v15710_v5  ;;  %v2368_v23 = vld [vmem:[#allocation17 + $0xff0] sm:$0xff]  ;;  %v15814_v16 = vcombine.low %v2236_v48, %v2240_v33 }
 0x24a   :  { %6432 = vmatprep.subr.bf16.mxu0 %v15703_v51  ;;  %v15943_v1 = vcombine.high %v2364_v50, %v2368_v23  ;;  %v2220_v40 = vld [vmem:[#allocation17 + $0xb50] sm:$0xff]  ;;  %v15942_v36 = vcombine.low %v2364_v50, %v2368_v23 }
 0x24b   :  { %v2224_v5 = vld [vmem:[#allocation17 + $0xb70] sm:$0xff] }
 0x24c   :  { %6470 = vmatpush1.bf16.msra.mxu1 %v15846_v22  ;;  %v2356_v22 = vld [vmem:[#allocation17 + $0xf90] sm:$0xff]  ;;  %v15799_v35 = vcombine.high %v2220_v40, %v2224_v5 }
 0x24d   :  { %6471 = vmatprep.subr.bf16.mxu1 %v15839_v8  ;;  %6433 = vmatpush1.bf16.msra.mxu0 %v15702_v53  ;;  %v2360_v51 = vld [vmem:[#allocation17 + $0xfb0] sm:$0xff]  ;;  %v15806_v8 = vcombine.low %v2228_v45, %v2232_v55 }
 0x24e   :  { %6434 = vmatprep.subr.bf16.mxu0 %v15695_v27  ;;  %v15935_v13 = vcombine.high %v2356_v22, %v2360_v51  ;;  %v2212_v38 = vld [vmem:[#allocation17 + $0xb10] sm:$0xff]  ;;  %v15934_v48 = vcombine.low %v2356_v22, %v2360_v51 }
 0x24f   :  { %v2216_v53 = vld [vmem:[#allocation17 + $0xb30] sm:$0xff] }
 0x250   :  { %6472 = vmatpush1.bf16.msra.mxu1 %v15838_v7  ;;  %v2348_v7 = vld [vmem:[#allocation17 + $0xf50] sm:$0xff]  ;;  %v15791_v33 = vcombine.high %v2212_v38, %v2216_v53 }
 0x251   :  { %6473 = vmatprep.subr.bf16.mxu1 %v15831_v61  ;;  %6435 = vmatpush1.bf16.msra.mxu0 %v15694_v29  ;;  %v2352_v27 = vld [vmem:[#allocation17 + $0xf70] sm:$0xff]  ;;  %v15798_v61 = vcombine.low %v2220_v40, %v2224_v5 }
 0x252   :  { %6436 = vmatprep.subr.bf16.mxu0 %v15815_v49  ;;  %v15927_v47 = vcombine.high %v2348_v7, %v2352_v27  ;;  %v2204_v14 = vld [vmem:[#allocation17 + $0xad0] sm:$0xff]  ;;  %v15926_v45 = vcombine.low %v2348_v7, %v2352_v27 }
 0x253   :  { %v2208_v29 = vld [vmem:[#allocation17 + $0xaf0] sm:$0xff] }
 0x254   :  { %6474 = vmatpush1.bf16.msra.mxu1 %v15830_v12  ;;  %v2340_v12 = vld [vmem:[#allocation17 + $0xf10] sm:$0xff]  ;;  %v15783_v55 = vcombine.high %v2204_v14, %v2208_v29 }
 0x255   :  { %6475 = vmatprep.subr.bf16.mxu1 %v15823_v59  ;;  %6437 = vmatpush2.bf16.msra.mxu0 %v15814_v16  ;;  %v2344_v49 = vld [vmem:[#allocation17 + $0xf30] sm:$0xff]  ;;  %v15790_v59 = vcombine.low %v2212_v38, %v2216_v53 }
 0x256   :  { %6438 = vmatprep.subr.bf16.mxu0 %v15807_v20  ;;  %v15919_v50 = vcombine.high %v2340_v12, %v2344_v49  ;;  %v2196_v23 = vld [vmem:[#allocation17 + $0xa90] sm:$0xff]  ;;  %v15918_v40 = vcombine.low %v2340_v12, %v2344_v49 }
 0x257   :  { %v2200_v16 = vld [vmem:[#allocation17 + $0xab0] sm:$0xff] }
 0x258   :  { %6476 = vmatpush1.bf16.msra.mxu1 %v15822_v4  ;;  %v2332_v4 = vld [vmem:[#allocation17 + $0xed0] sm:$0xff]  ;;  %v15775_v5 = vcombine.high %v2196_v23, %v2200_v16 }
 0x259   :  { %6477 = vmatprep.subr.bf16.mxu1 %v15943_v1  ;;  %6439 = vmatpush2.bf16.msra.mxu0 %v15806_v8  ;;  %v2336_v20 = vld [vmem:[#allocation17 + $0xef0] sm:$0xff]  ;;  %v15782_v1 = vcombine.low %v2204_v14, %v2208_v29 }
 0x25a   :  { %6440 = vmatprep.subr.bf16.mxu0 %v15799_v35  ;;  %v15911_v22 = vcombine.high %v2332_v4, %v2336_v20  ;;  %v2188_v51 = vld [vmem:[#allocation17 + $0xa50] sm:$0xff]  ;;  %v15910_v38 = vcombine.low %v2332_v4, %v2336_v20 }
 0x25b   :  { %v2192_v8 = vld [vmem:[#allocation17 + $0xa70] sm:$0xff] }
 0x25c   :  { %6478 = vmatpush2.bf16.msra.mxu1 %v15942_v36  ;;  %v2324_v36 = vld [vmem:[#allocation17 + $0xe90] sm:$0xff]  ;;  %v15767_v53 = vcombine.high %v2188_v51, %v2192_v8  ;;  %v15766_v29 = vcombine.low %v2188_v51, %v2192_v8 }
 0x25d   :  { %6479 = vmatprep.subr.bf16.mxu1 %v15935_v13  ;;  %6441 = vmatpush2.bf16.msra.mxu0 %v15798_v61  ;;  %v2328_v35 = vld [vmem:[#allocation17 + $0xeb0] sm:$0xff]  ;;  %v15774_v13 = vcombine.low %v2196_v23, %v2200_v16 }
 0x25e   :  { %6442 = vmatprep.subr.bf16.mxu0 %v15791_v33  ;;  %v15903_v7 = vcombine.high %v2324_v36, %v2328_v35  ;;  %v2180_v27 = vld [vmem:[#allocation17 + $0xa10] sm:$0xff]  ;;  %v15902_v12 = vcombine.low %v2324_v36, %v2328_v35 }
 0x25f   :  { %v2184_v61 = vld [vmem:[#allocation17 + $0xa30] sm:$0xff] }
 0x260   :  { %6480 = vmatpush2.bf16.msra.mxu1 %v15934_v48  ;;  %v2316_v33 = vld [vmem:[#allocation17 + $0xe50] sm:$0xff] }
 0x261   :  { %6481 = vmatprep.subr.bf16.mxu1 %v15927_v47  ;;  %6443 = vmatpush2.bf16.msra.mxu0 %v15790_v59  ;;  %v2320_v47 = vld [vmem:[#allocation17 + $0xe70] sm:$0xff]  ;;  %v15759_v59 = vcombine.high %v2180_v27, %v2184_v61 }
 0x262   :  { %6444 = vmatprep.subr.bf16.mxu0 %v15783_v55  ;;  %v15895_v55 = vcombine.high %v2316_v33, %v2320_v47  ;;  %v2432_v23 = vld [vmem:[#allocation17 + $0x11f0] sm:$0xff] }
 0x263   :  { %v2308_v4 = vld [vmem:[#allocation17 + $0xe10] sm:$0xff] }
 0x264   :  { %6482 = vmatpush2.bf16.msra.mxu1 %v15926_v45  ;;  %v2312_v20 = vld [vmem:[#allocation17 + $0xe30] sm:$0xff] }
 0x265   :  { %6483 = vmatprep.subr.bf16.mxu1 %v15919_v50  ;;  %6445 = vmatpush2.bf16.msra.mxu0 %v15782_v1  ;;  %v2428_v50 = vld [vmem:[#allocation17 + $0x11d0] sm:$0xff]  ;;  %v15758_v1 = vcombine.low %v2180_v27, %v2184_v61  ;;  %v15886_v35 = vcombine.low %v2308_v4, %v2312_v20 }
 0x266   :  { %6446 = vmatprep.subr.bf16.mxu0 %v15775_v5  ;;  %v16007_v5 = vcombine.high %v2428_v50, %v2432_v23  ;;  %v2420_v51 = vld [vmem:[#allocation17 + $0x1190] sm:$0xff] }
 0x267   :  { %v2424_v8 = vld [vmem:[#allocation17 + $0x11b0] sm:$0xff] }
 0x268   :  { %6484 = vmatpush2.bf16.msra.mxu1 %v15918_v40  ;;  %v6167_v48 = vpop.f32.mrf.mxu0  ;;  %v2516_v36 = vld [vmem:[#allocation17 + $0x1490] sm:$0x11] }
 0x269   :  { %6485 = vmatprep.subr.bf16.mxu1 %v15911_v22  ;;  %v6168_v14 = vadd.f32 %v6167_v48, %v19230_v41  ;;  %6447 = vmatpush2.bf16.msra.mxu0 %v15774_v13  ;;  %v15894_v41 = vcombine.low %v2316_v33, %v2320_v47  ;;  %v15887_v22 = vcombine.high %v2308_v4, %v2312_v20  ;;  %v2416_v27 = vld [vmem:[#allocation17 + $0x1170] sm:$0xff] }
 0x26a   :  { %v6169_v49 = vpop.f32.mrf.mxu0  ;;  %6448 = vmatprep.subr.bf16.mxu0 %v15767_v53  ;;  %v15999_v13 = vcombine.high %v2420_v51, %v2424_v8  ;;  %v16094_v53 = vcombine.low %v2516_v36, %v2516_v36  ;;  %v2508_v61 = vld [vmem:[#allocation17 + $0x1450] sm:$0xff]  ;;  %v15998_v33 = vcombine.low %v2420_v51, %v2424_v8  ;;  %v1917_v8 = vld [vmem:[#allocation17 + $0x1d8] sm:$0xff] }
 0x26b   :  { %v6170_v45 = vadd.f32 %v6169_v49, %v19233_v56  ;;  %v16006_v56 = vcombine.low %v2428_v50, %v2432_v23  ;;  %v2512_v48 = vld [vmem:[#allocation17 + $0x1470] sm:$0xff] }
 0x26c   :  { %6486 = vmatpush2.bf16.msra.mxu1 %v15910_v38  ;;  %v6171_v16 = vpop.f32.mrf.mxu0  ;;  %v16095_v38 = vcombine.high %v2516_v36, %v2516_v36  ;;  %v2404_v49 = vld [vmem:[#allocation17 + $0x1110] sm:$0xff]  ;;  %v16086_v20 = vcombine.low %v2508_v61, %v2512_v48  ;;  %v1921_v36 = vld [vmem:[#allocation17 + $0x1f8] sm:$0xff] }
 0x26d   :  { %6487 = vmatprep.subr.bf16.mxu1 %v15903_v7  ;;  %6449 = vmatpush2.bf16.msra.mxu0 %v15766_v29  ;;  %v2412_v7 = vld [vmem:[#allocation17 + $0x1150] sm:$0xff]  ;;  %v5835_v29 = vsel %vm5821_vm1, %v16094_v53, 0  ;;  %v15497_v53 = vcombine.high %v1917_v8, %v1921_v36 }
 0x26e   :  { %v6172_v40 = vpop.f32.mrf.mxu0  ;;  %6450 = vmatprep.subr.bf16.mxu0 %v15759_v59  ;;  %v15991_v47 = vcombine.high %v2412_v7, %v2416_v27  ;;  %v2408_v59 = vld [vmem:[#allocation17 + $0x1130] sm:$0xff]  ;;  %v15990_v16 = vcombine.low %v2412_v7, %v2416_v27 }
 0x26f   :  { %v2504_v50 = vld [vmem:[#allocation17 + $0x1430] sm:$0xff] }
 0x270   :  { %6488 = vmatpush2.bf16.msra.mxu1 %v15902_v12  ;;  %v16087_v12 = vcombine.high %v2508_v61, %v2512_v48  ;;  %v2388_v7 = vld [vmem:[#allocation17 + $0x1090] sm:$0xff]  ;;  %v1909_v61 = vld [vmem:[#allocation17 + $0x198] sm:$0xff] }
 0x271   :  { %6489 = vmatprep.subr.bf16.mxu1 %v15895_v55  ;;  %6451 = vmatpush2.bf16.msra.mxu0 %v15758_v1  ;;  %v2500_v55 = vld [vmem:[#allocation17 + $0x1410] sm:$0xff]  ;;  %v15983_v1 = vcombine.high %v2404_v49, %v2408_v59  ;;  %v1913_v48 = vld [vmem:[#allocation17 + $0x1b8] sm:$0xff] }
 0x272   :  { %6502 = vmatprep.subr.bf16.mxu0 %v16007_v5  ;;  %v16079_v40 = vcombine.high %v2500_v55, %v2504_v50  ;;  %v2396_v5 = vld [vmem:[#allocation17 + $0x10d0] sm:$0xff] }
 0x273   :  { %v2392_v27 = vld [vmem:[#allocation17 + $0x10b0] sm:$0xff] }
 0x274   :  { %6490 = vmatpush2.bf16.msra.mxu1 %v15894_v41  ;;  %6453 = vmatmul.mubr.bf16.vlgmr.msra.gmra.mxu0 %v19151_v63 }
 0x275   :  { %6491 = vmatprep.subr.bf16.mxu1 %v15887_v22  ;;  %6503 = vmatpush1.bf16.msra.mxu0 %v16006_v56  ;;  %v2400_v22 = vld [vmem:[#allocation17 + $0x10f0] sm:$0xff] }
 0x276   :  { %6534 = vmatprep.mubr.bf16.mxu0 %v19181_v6  ;;  %6504 = vmatprep.subr.bf16.mxu0 %v15999_v13  ;;  %v15975_v13 = vcombine.high %v2396_v5, %v2400_v22 }
 0x278   :  { %6492 = vmatpush2.bf16.msra.mxu1 %v15886_v35  ;;  %v15982_v35 = vcombine.low %v2404_v49, %v2408_v59  ;;  %v2384_v49 = vld [vmem:[#allocation17 + $0x1070] sm:$0xff]  ;;  %v1901_v59 = vld [vmem:[#allocation17 + $0x158] sm:$0xff] }
 0x279   :  { %16102 = vmatprep.subr.msk.bf16.mxu1 %vm5821_vm1, %v16095_v38  ;;  %6505 = vmatpush1.bf16.msra.mxu0 %v15998_v33  ;;  %v15974_v33 = vcombine.low %v2396_v5, %v2400_v22  ;;  %v1897_v5 = vld [vmem:[#allocation17 + $0x138] sm:$0xff] }
 0x27a   :  { %6506 = vmatprep.subr.bf16.mxu0 %v15991_v47  ;;  %v15967_v47 = vcombine.high %v2388_v7, %v2392_v27 }
 0x27b   :  { %v6208_v23 = vpop.f32.mrf.mxu1  ;;  %6494 = vmatmul.mubr.bf16.vlgmr.msra.gmra.mxu1 %v19154_v44 }
 0x27c   :  { %v19243_v4 = vadd.f32 %v6208_v23, %v6168_v14  ;;  %6554 = vmatpush1.bf16.msra.mxu1 %v5835_v29  ;;  %6575 = vmatprep.mubr.bf16.mxu1 %v20497_v62  ;;  %v16078_v14 = vcombine.low %v2500_v55, %v2504_v50  ;;  %v15489_v29 = vcombine.high %v1909_v61, %v1913_v48  ;;  %v1905_v55 = vld [vmem:[#allocation17 + $0x178] sm:$0xff] }
 0x27d   :  { %v6210_v41 = vpop.f32.mrf.mxu1  ;;  %6555 = vmatprep.subr.bf16.mxu1 %v16087_v12  ;;  %6507 = vmatpush1.bf16.msra.mxu0 %v15990_v16  ;;  %v2380_v12 = vld [vmem:[#allocation17 + $0x1050] sm:$0xff]  ;;  %v15966_v50 = vcombine.low %v2388_v7, %v2392_v27  ;;  %v15488_v23 = vcombine.low %v1909_v61, %v1913_v48 }
 0x27e   :  { %v19246_v51 = vadd.f32 %v6210_v41, %v6170_v45  ;;  %6508 = vmatprep.subr.bf16.mxu0 %v15983_v1  ;;  %v15496_v45 = vcombine.low %v1917_v8, %v1921_v36  ;;  %v15959_v16 = vcombine.high %v2380_v12, %v2384_v49  ;;  %v2372_v1 = vld [vmem:[#allocation17 + $0x1010] sm:$0xff]  ;;  %v15958_v22 = vcombine.low %v2380_v12, %v2384_v49 }
 0x27f   :  { %v6212_v56 = vpop.f32.mrf.mxu1  ;;  %v2376_v41 = vld [vmem:[#allocation17 + $0x1030] sm:$0xff]  ;;  %v15480_v8 = vcombine.low %v1901_v59, %v1905_v55 }
 0x280   :  { %6556 = vmatpush1.bf16.msra.mxu1 %v16086_v20  ;;  %v15481_v20 = vcombine.high %v1901_v59, %v1905_v55  ;;  %v15951_v36 = vcombine.high %v2372_v1, %v2376_v41  ;;  %v2484_v61 = vld [vmem:[#allocation17 + $0x1390] sm:$0xff] }
 0x281   :  { %v6213_v38 = vpop.f32.mrf.mxu1  ;;  %6557 = vmatprep.subr.bf16.mxu1 %v16079_v40  ;;  %6509 = vmatpush1.bf16.msra.mxu0 %v15982_v35  ;;  %v1893_v40 = vld [vmem:[#allocation17 + $0x118] sm:$0xff]  ;;  %v2492_v35 = vld [vmem:[#allocation17 + $0x13d0] sm:$0xff] }
 0x282   :  { %6510 = vmatprep.subr.bf16.mxu0 %v15975_v13  ;;  %v15473_v56 = vcombine.high %v1893_v40, %v1897_v5  ;;  %v1885_v13 = vld [vmem:[#allocation17 + $0xd8] sm:$0xff]  ;;  %v15472_v7 = vcombine.low %v1893_v40, %v1897_v5  ;;  %v2488_v48 = vld [vmem:[#allocation17 + $0x13b0] sm:$0xff] }
 0x283   :  { %v1889_v38 = vld [vmem:[#allocation17 + $0xf8] sm:$0xff]  ;;  %v16063_v12 = vcombine.high %v2484_v61, %v2488_v48  ;;  %v2476_v59 = vld [vmem:[#allocation17 + $0x1350] sm:$0xff] }
 0x284   :  { %6558 = vmatpush1.bf16.msra.mxu1 %v16078_v14  ;;  %v2496_v14 = vld [vmem:[#allocation17 + $0x13f0] sm:$0xff]  ;;  %v15465_v27 = vcombine.high %v1885_v13, %v1889_v38 }
 0x285   :  { %6584 = vmatprep.subr.bf16.mxu1 %v15497_v53  ;;  %6511 = vmatpush1.bf16.msra.mxu0 %v15974_v33  ;;  %v15950_v53 = vcombine.low %v2372_v1, %v2376_v41  ;;  %v1877_v33 = vld [vmem:[#allocation17 + $0x98] sm:$0xff]  ;;  %v2480_v55 = vld [vmem:[#allocation17 + $0x1370] sm:$0xff] }
 0x286   :  { %6512 = vmatprep.subr.bf16.mxu0 %v15967_v47  ;;  %v16070_v47 = vcombine.low %v2492_v35, %v2496_v14  ;;  %v16055_v1 = vcombine.high %v2476_v59, %v2480_v55  ;;  %v2468_v40 = vld [vmem:[#allocation17 + $0x1310] sm:$0xff] }
 0x287   :  { %16103 = vmatmul.mubr.msk.bf16.vlgmr.msra.gmra.mxu1 %vm592_vm0, %v19173_v54  ;;  %v2472_v5 = vld [vmem:[#allocation17 + $0x1330] sm:$0xff] }
 0x288   :  { %6585 = vmatpush1.bf16.msra.mxu1 %v15496_v45  ;;  %6616 = vmatprep.mubr.bf16.mxu1 %v18811_v19  ;;  %v16071_v19 = vcombine.high %v2492_v35, %v2496_v14  ;;  %v1881_v45 = vld [vmem:[#allocation17 + $0xb8] sm:$0xff]  ;;  %v16047_v35 = vcombine.high %v2468_v40, %v2472_v5 }
 0x289   :  { %6586 = vmatprep.subr.bf16.mxu1 %v15489_v29  ;;  %6513 = vmatpush1.bf16.msra.mxu0 %v15966_v50  ;;  %v15464_v29 = vcombine.low %v1885_v13, %v1889_v38  ;;  %v15457_v49 = vcombine.high %v1877_v33, %v1881_v45  ;;  %v1869_v50 = vld [vmem:[#allocation17 + $0x58] sm:$0xff]  ;;  %v2460_v13 = vld [vmem:[#allocation17 + $0x12d0] sm:$0xff] }
 0x28a   :  { %6514 = vmatprep.subr.bf16.mxu0 %v15959_v16  ;;  %v16062_v16 = vcombine.low %v2484_v61, %v2488_v48  ;;  %v2464_v38 = vld [vmem:[#allocation17 + $0x12f0] sm:$0xff] }
 0x28b   :  { %v16039_v61 = vcombine.high %v2460_v13, %v2464_v38 }
 0x28c   :  { %6587 = vmatpush1.bf16.msra.mxu1 %v15488_v23  ;;  %v1873_v23 = vld [vmem:[#allocation17 + $0x78] sm:$0xff] }
 0x28d   :  { %6588 = vmatprep.subr.bf16.mxu1 %v15481_v20  ;;  %6515 = vmatpush1.bf16.msra.mxu0 %v15958_v22  ;;  %v15456_v20 = vcombine.low %v1877_v33, %v1881_v45  ;;  %v15449_v41 = vcombine.high %v1869_v50, %v1873_v23  ;;  %v1861_v22 = vld [vmem:[#allocation17 + $0x18] sm:$0xff]  ;;  %v2452_v33 = vld [vmem:[#allocation17 + $0x1290] sm:$0xff] }
 0x28e   :  { %6516 = vmatprep.subr.bf16.mxu0 %v15951_v36  ;;  %v16054_v36 = vcombine.low %v2476_v59, %v2480_v55  ;;  %v2456_v45 = vld [vmem:[#allocation17 + $0x12b0] sm:$0xff] }
 0x28f   :  { %v16031_v59 = vcombine.high %v2452_v33, %v2456_v45 }
 0x290   :  { %6589 = vmatpush1.bf16.msra.mxu1 %v15480_v8  ;;  %v1865_v8 = vld [vmem:[#allocation17 + $0x38] sm:$0xff] }
 0x291   :  { %6590 = vmatprep.subr.bf16.mxu1 %v15473_v56  ;;  %6517 = vmatpush1.bf16.msra.mxu0 %v15950_v53  ;;  %v15448_v56 = vcombine.low %v1869_v50, %v1873_v23  ;;  %v15441_v14 = vcombine.high %v1861_v22, %v1865_v8  ;;  %v1981_v53 = vld [vmem:[#allocation17 + $0x3d8] sm:$0xff]  ;;  %v2444_v50 = vld [vmem:[#allocation17 + $0x1250] sm:$0xff] }
 0x292   :  { %6518 = vmatprep.subr.bf16.mxu0 %v16071_v19  ;;  %v16046_v19 = vcombine.low %v2468_v40, %v2472_v5  ;;  %v2448_v23 = vld [vmem:[#allocation17 + $0x1270] sm:$0xff] }
 0x293   :  { %v16023_v40 = vcombine.high %v2444_v50, %v2448_v23 }
 0x294   :  { %6591 = vmatpush1.bf16.msra.mxu1 %v15472_v7  ;;  %v1985_v7 = vld [vmem:[#allocation17 + $0x3f8] sm:$0xff] }
 0x295   :  { %6592 = vmatprep.subr.bf16.mxu1 %v15465_v27  ;;  %6519 = vmatpush2.bf16.msra.mxu0 %v16070_v47  ;;  %v15440_v27 = vcombine.low %v1861_v22, %v1865_v8  ;;  %v15561_v48 = vcombine.high %v1981_v53, %v1985_v7  ;;  %v1973_v47 = vld [vmem:[#allocation17 + $0x398] sm:$0xff]  ;;  %v2436_v22 = vld [vmem:[#allocation17 + $0x1210] sm:$0xff] }
 0x296   :  { %6520 = vmatprep.subr.bf16.mxu0 %v16063_v12  ;;  %v16038_v12 = vcombine.low %v2460_v13, %v2464_v38  ;;  %v2440_v8 = vld [vmem:[#allocation17 + $0x1230] sm:$0xff]  ;;  %v16022_v13 = vcombine.low %v2444_v50, %v2448_v23  ;;  %v2041_v50 = vld [vmem:[#allocation17 + $0x5b8] sm:$0xff] }
 0x297   :  { %v1941_v23 = vld [vmem:[#allocation17 + $0x298] sm:$0xff] }
 0x298   :  { %6593 = vmatpush1.bf16.msra.mxu1 %v15464_v29  ;;  %v1977_v29 = vld [vmem:[#allocation17 + $0x3b8] sm:$0xff] }
 0x299   :  { %6594 = vmatprep.subr.bf16.mxu1 %v15457_v49  ;;  %6521 = vmatpush2.bf16.msra.mxu0 %v16062_v16  ;;  %v15560_v49 = vcombine.low %v1981_v53, %v1985_v7  ;;  %v15553_v55 = vcombine.high %v1973_v47, %v1977_v29  ;;  %v1965_v16 = vld [vmem:[#allocation17 + $0x358] sm:$0xff]  ;;  %v16015_v7 = vcombine.high %v2436_v22, %v2440_v8 }
 0x29a   :  { %6522 = vmatprep.subr.bf16.mxu0 %v16055_v1  ;;  %v16030_v1 = vcombine.low %v2452_v33, %v2456_v45  ;;  %v1949_v45 = vld [vmem:[#allocation17 + $0x2d8] sm:$0xff] }
 0x29c   :  { %6595 = vmatpush1.bf16.msra.mxu1 %v15456_v20  ;;  %v1969_v20 = vld [vmem:[#allocation17 + $0x378] sm:$0xff] }
 0x29d   :  { %6596 = vmatprep.subr.bf16.mxu1 %v15449_v41  ;;  %6523 = vmatpush2.bf16.msra.mxu0 %v16054_v36  ;;  %v15552_v41 = vcombine.low %v1973_v47, %v1977_v29  ;;  %v15545_v5 = vcombine.high %v1965_v16, %v1969_v20  ;;  %v15544_v38 = vcombine.low %v1965_v16, %v1969_v20  ;;  %v1953_v47 = vld [vmem:[#allocation17 + $0x2f8] sm:$0xff] }
 0x29e   :  { %6524 = vmatprep.subr.bf16.mxu0 %v16047_v35  ;;  %v1961_v35 = vld [vmem:[#allocation17 + $0x338] sm:$0xff]  ;;  %v16014_v29 = vcombine.low %v2436_v22, %v2440_v8  ;;  %v15528_v20 = vcombine.low %v1949_v45, %v1953_v47 }
 0x29f   :  { %v1933_v8 = vld [vmem:[#allocation17 + $0x258] sm:$0xff] }
 0x2a0   :  { %6597 = vmatpush1.bf16.msra.mxu1 %v15448_v56  ;;  %v1957_v56 = vld [vmem:[#allocation17 + $0x318] sm:$0xff] }
 0x2a1   :  { %6598 = vmatprep.subr.bf16.mxu1 %v15441_v14  ;;  %6525 = vmatpush2.bf16.msra.mxu0 %v16046_v19 }
 0x2a2   :  { %6526 = vmatprep.subr.bf16.mxu0 %v16039_v61  ;;  %v2045_v61 = vld [vmem:[#allocation17 + $0x5d8] sm:$0xff] }
 0x2a4   :  { %6599 = vmatpush1.bf16.msra.mxu1 %v15440_v27  ;;  %v15537_v27 = vcombine.high %v1957_v56, %v1961_v35 }
 0x2a5   :  { %6600 = vmatprep.subr.bf16.mxu1 %v15561_v48  ;;  %6527 = vmatpush2.bf16.msra.mxu0 %v16038_v12  ;;  %v2049_v48 = vld [vmem:[#allocation17 + $0x5f8] sm:$0xff] }
 0x2a6   :  { %6528 = vmatprep.subr.bf16.mxu0 %v16031_v59  ;;  %v15529_v59 = vcombine.high %v1949_v45, %v1953_v47  ;;  %v15624_v16 = vcombine.low %v2045_v61, %v2049_v48 }
 0x2a8   :  { %6601 = vmatpush2.bf16.msra.mxu1 %v15560_v49  ;;  %v6249_v36 = vpop.f32.mrf.mxu0  ;;  %v15625_v49 = vcombine.high %v2045_v61, %v2049_v48  ;;  %v1925_v48 = vld [vmem:[#allocation17 + $0x218] sm:$0xff] }
 0x2a9   :  { %6602 = vmatprep.subr.bf16.mxu1 %v15553_v55  ;;  %v6250_v14 = vadd.f32 %v6249_v36, %v19243_v4  ;;  %6529 = vmatpush2.bf16.msra.mxu0 %v16030_v1  ;;  %v15536_v4 = vcombine.low %v1957_v56, %v1961_v35  ;;  %v2037_v55 = vld [vmem:[#allocation17 + $0x598] sm:$0xff] }
 0x2aa   :  { %v6251_v53 = vpop.f32.mrf.mxu0  ;;  %6530 = vmatprep.subr.bf16.mxu0 %v16023_v40  ;;  %v15617_v1 = vcombine.high %v2037_v55, %v2041_v50  ;;  %v2029_v40 = vld [vmem:[#allocation17 + $0x558] sm:$0xff]  ;;  %v15616_v56 = vcombine.low %v2037_v55, %v2041_v50 }
 0x2ab   :  { %v19253_v19 = vadd.f32 %v6251_v53, %v19246_v51  ;;  %v1945_v51 = vld [vmem:[#allocation17 + $0x2b8] sm:$0xff] }
 0x2ac   :  { %6603 = vmatpush2.bf16.msra.mxu1 %v15552_v41  ;;  %v6253_v33 = vpop.f32.mrf.mxu0  ;;  %v15521_v41 = vcombine.high %v1941_v23, %v1945_v51  ;;  %v1937_v36 = vld [vmem:[#allocation17 + $0x278] sm:$0xff]  ;;  %v15520_v35 = vcombine.low %v1941_v23, %v1945_v51 }
 0x2ad   :  { %6604 = vmatprep.subr.bf16.mxu1 %v15545_v5  ;;  %6531 = vmatpush2.bf16.msra.mxu0 %v16022_v13  ;;  %v2033_v5 = vld [vmem:[#allocation17 + $0x578] sm:$0xff]  ;;  %v15513_v53 = vcombine.high %v1933_v8, %v1937_v36 }
 0x2ae   :  { %v6254_v12 = vpop.f32.mrf.mxu0  ;;  %6532 = vmatprep.subr.bf16.mxu0 %v16015_v7  ;;  %v2021_v7 = vld [vmem:[#allocation17 + $0x518] sm:$0xff]  ;;  %v15608_v47 = vcombine.low %v2029_v40, %v2033_v5 }
 0x2af   :  { %v1929_v33 = vld [vmem:[#allocation17 + $0x238] sm:$0xff] }
 0x2b0   :  { %6605 = vmatpush2.bf16.msra.mxu1 %v15544_v38  ;;  %v15609_v38 = vcombine.high %v2029_v40, %v2033_v5  ;;  %v2013_v55 = vld [vmem:[#allocation17 + $0x4d8] sm:$0xff]  ;;  %v15504_v40 = vcombine.low %v1925_v48, %v1929_v33 }
 0x2b1   :  { %6606 = vmatprep.subr.bf16.mxu1 %v15537_v27  ;;  %6533 = vmatpush2.bf16.msra.mxu0 %v16014_v29  ;;  %v2025_v27 = vld [vmem:[#allocation17 + $0x538] sm:$0xff] }
 0x2b2   :  { %6625 = vmatprep.subr.bf16.mxu0 %v15625_v49  ;;  %v15601_v12 = vcombine.high %v2021_v7, %v2025_v27  ;;  %v2017_v50 = vld [vmem:[#allocation17 + $0x4f8] sm:$0xff] }
 0x2b3   :  { %v15593_v5 = vcombine.high %v2013_v55, %v2017_v50 }
 0x2b4   :  { %6607 = vmatpush2.bf16.msra.mxu1 %v15536_v4  ;;  %v6331_v22 = vpop.f32.mrf.mxu0  ;;  %6535 = vmatmul.mubr.bf16.vlgmr.msra.gmra.mxu0 %v19187_v31 }
 0x2b5   :  { %6608 = vmatprep.subr.bf16.mxu1 %v15529_v59  ;;  %6626 = vmatpush1.bf16.msra.mxu0 %v15624_v16  ;;  %v15505_v59 = vcombine.high %v1925_v48, %v1929_v33  ;;  %v2173_v16 = vld [vmem:[#allocation17 + $0x9d8] sm:$0xff] }
 0x2b6   :  { %6657 = vmatprep.mubr.bf16.mxu0 %v18831_v0  ;;  %v6333_v13 = vpop.f32.mrf.mxu0  ;;  %6627 = vmatprep.subr.bf16.mxu0 %v15617_v1  ;;  %v15512_v0 = vcombine.low %v1933_v8, %v1937_v36  ;;  %v2005_v36 = vld [vmem:[#allocation17 + $0x498] sm:$0xff] }
 0x2b7   :  { %v1997_v48 = vld [vmem:[#allocation17 + $0x458] sm:$0xff] }
 0x2b8   :  { %6609 = vmatpush2.bf16.msra.mxu1 %v15528_v20  ;;  %v6335_v61 = vpop.f32.mrf.mxu0  ;;  %v2177_v20 = vld [vmem:[#allocation17 + $0x9f8] sm:$0xff] }
 0x2b9   :  { %6610 = vmatprep.subr.bf16.mxu1 %v15521_v41  ;;  %6628 = vmatpush1.bf16.msra.mxu0 %v15616_v56  ;;  %v2165_v56 = vld [vmem:[#allocation17 + $0x998] sm:$0xff] }
 0x2ba   :  { %v6336_v4 = vpop.f32.mrf.mxu0  ;;  %6629 = vmatprep.subr.bf16.mxu0 %v15609_v38  ;;  %v15592_v38 = vcombine.low %v2013_v55, %v2017_v50  ;;  %v2001_v33 = vld [vmem:[#allocation17 + $0x478] sm:$0xff]  ;;  %v19286_v50 = vstv %s19266_s24 }
 0x2bb   :  { %v6290_v45 = vpop.f32.mrf.mxu1  ;;  %v15577_v55 = vcombine.high %v1997_v48, %v2001_v33 }
 0x2bc   :  { %v6291_v29 = vadd.f32 %v6290_v45, %v6250_v14  ;;  %6611 = vmatpush2.bf16.msra.mxu1 %v15520_v35  ;;  %v15600_v14 = vcombine.low %v2021_v7, %v2025_v27  ;;  %v2169_v35 = vld [vmem:[#allocation17 + $0x9b8] sm:$0xff]  ;;  %v19271_v7 = vstv %s19257_s23  ;;  %v19274_v27 = vstv %s19259_s5 }
 0x2bd   :  { %v6292_v49 = vpop.f32.mrf.mxu1  ;;  %6612 = vmatprep.subr.bf16.mxu1 %v15513_v53  ;;  %6630 = vmatpush1.bf16.msra.mxu0 %v15608_v47  ;;  %v15745_v61 = vcombine.high %v2165_v56, %v2169_v35  ;;  %v2157_v45 = vld [vmem:[#allocation17 + $0x958] sm:$0xff] }
 0x2be   :  { %v19261_v23 = vadd.f32 %v6331_v22, %v6291_v29  ;;  %v6293_v51 = vadd.f32 %v6292_v49, %v19253_v19  ;;  %6631 = vmatprep.subr.bf16.mxu0 %v15601_v12  ;;  %v15753_v22 = vcombine.high %v2173_v16, %v2177_v20  ;;  %v2009_v19 = vld [vmem:[#allocation17 + $0x4b8] sm:$0xff]  ;;  %v20534_v12 = vunpack.c.h.bf16 %v18501_v3 }
 0x2bf   :  { %v6294_v1 = vpop.f32.mrf.mxu1  ;;  %v15585_v53 = vcombine.high %v2005_v36, %v2009_v19  ;;  %v2161_v47 = vld [vmem:[#allocation17 + $0x978] sm:$0xff]  ;;  %v15584_v29 = vcombine.low %v2005_v36, %v2009_v19  ;;  %v19293_v19 = vstv %s19268_s25 }
 0x2c0   :  { %20531 = vst [vmem:[#allocation49_spill] sm:$0xff] %v19261_v23  ;;  %v19264_v41 = vadd.f32 %v6333_v13, %v6293_v51  ;;  %6613 = vmatpush2.bf16.msra.mxu1 %v15512_v0  ;;  %v15752_v13 = vcombine.low %v2173_v16, %v2177_v20  ;;  %v20533_v0 = vunpack.c.h.bf16 %v18499_v2  ;;  %v306_v49 = vmul.f32 %v19274_v27, %v20534_v12  ;;  %v1989_v51 = vld [vmem:[#allocation17 + $0x418] sm:$0xff] }
 0x2c1   :  { %v6295_v8 = vpop.f32.mrf.mxu1  ;;  %6614 = vmatprep.subr.bf16.mxu1 %v15505_v59  ;;  %6632 = vmatpush1.bf16.msra.mxu0 %v15600_v14  ;;  %v15744_v59 = vcombine.low %v2165_v56, %v2169_v35  ;;  %v1993_v16 = vld [vmem:[#allocation17 + $0x438] sm:$0xff]  ;;  %v15576_v14 = vcombine.low %v1997_v48, %v2001_v33 }
 0x2c2   :  { %20532 = vst [vmem:[#allocation50_spill] sm:$0xff] %v19264_v41  ;;  %6633 = vmatprep.subr.bf16.mxu0 %v15593_v5  ;;  %v282_v4 = vmul.f32 %v19271_v7, %v20533_v0  ;;  %v2149_v20 = vld [vmem:[#allocation17 + $0x918] sm:$0xff]  ;;  %v20535_v5 = vunpack.c.h.bf16 %v18512_v9  ;;  %v15569_v36 = vcombine.high %v1989_v51, %v1993_v16 }
 0x2c3   :  { %v2153_v1 = vld [vmem:[#allocation17 + $0x938] sm:$0xff] }
 0x2c4   :  { %6615 = vmatpush2.bf16.msra.mxu1 %v15504_v40  ;;  %v317_v40 = vadd.f32 %v306_v49, %v282_v4  ;;  %v352_v8 = vmul.f32 %v19286_v50, %v20535_v5  ;;  %v15729_v56 = vcombine.high %v2149_v20, %v2153_v1  ;;  %v2109_v35 = vld [vmem:[#allocation17 + $0x7d8] sm:$0xff]  ;;  %v15728_v4 = vcombine.low %v2149_v20, %v2153_v1 }
 0x2c5   :  { %6666 = vmatprep.subr.bf16.mxu1 %v15753_v22  ;;  %6634 = vmatpush1.bf16.msra.mxu0 %v15592_v38  ;;  %v15736_v22 = vcombine.low %v2157_v45, %v2161_v47  ;;  %v20536_v38 = vunpack.c.h.bf16 %v18525_v17  ;;  %v2141_v48 = vld [vmem:[#allocation17 + $0x8d8] sm:$0xff]  ;;  %v19305_v49 = vstv %s19283_s26  ;;  %v20540_v1 = vunpack.c.h.bf16 %v18516_v11 }
 0x2c6   :  { %6635 = vmatprep.subr.bf16.mxu0 %v15585_v53  ;;  %v20537_v53 = vunpack.c.h.bf16 %v18527_v18  ;;  %v2145_v33 = vld [vmem:[#allocation17 + $0x8f8] sm:$0xff] }
 0x2c7   :  { %6617 = vmatmul.mubr.bf16.vlgmr.msra.gmra.mxu1 %v18851_v37  ;;  %v15737_v37 = vcombine.high %v2157_v45, %v2161_v47  ;;  %v15568_v45 = vcombine.low %v1989_v51, %v1993_v16  ;;  %v363_v47 = vadd.f32 %v352_v8, %v317_v40  ;;  %v20539_v51 = vunpack.c.h.bf16 %v18543_v24  ;;  %v2137_v40 = vld [vmem:[#allocation17 + $0x8b8] sm:$0xff] }
 0x2c8   :  { %6667 = vmatpush1.bf16.msra.mxu1 %v15752_v13  ;;  %6698 = vmatprep.mubr.bf16.mxu1 %v19060_v15  ;;  %v2113_v15 = vld [vmem:[#allocation17 + $0x7f8] sm:$0xff]  ;;  %v284_v13 = vmul.f32 %v19271_v7, %v20536_v38 }
 0x2c9   :  { %6668 = vmatprep.subr.bf16.mxu1 %v15745_v61  ;;  %6636 = vmatpush1.bf16.msra.mxu0 %v15584_v29  ;;  %v308_v61 = vmul.f32 %v19274_v27, %v20537_v53  ;;  %v20538_v29 = vunpack.c.h.bf16 %v18514_v10  ;;  %v15689_v12 = vcombine.high %v2109_v35, %v2113_v15  ;;  %v354_v16 = vmul.f32 %v19286_v50, %v20539_v51  ;;  %v2097_v53 = vld [vmem:[#allocation17 + $0x778] sm:$0xff] }
 0x2ca   :  { %6637 = vmatprep.subr.bf16.mxu0 %v15577_v55  ;;  %v2101_v55 = vld [vmem:[#allocation17 + $0x798] sm:$0xff]  ;;  %v15688_v8 = vcombine.low %v2109_v35, %v2113_v15 }
 0x2cb   :  { %v398_v0 = vmul.f32 %v19293_v19, %v20538_v29  ;;  %v319_v5 = vadd.f32 %v308_v61, %v284_v13  ;;  %v2093_v13 = vld [vmem:[#allocation17 + $0x758] sm:$0xff]  ;;  %v20541_v29 = vunpack.c.h.bf16 %v18545_v25 }
 0x2cc   :  { %6669 = vmatpush1.bf16.msra.mxu1 %v15744_v59  ;;  %v15721_v59 = vcombine.high %v2141_v48, %v2145_v33  ;;  %v2125_v35 = vld [vmem:[#allocation17 + $0x858] sm:$0xff] }
 0x2cd   :  { %6670 = vmatprep.subr.bf16.mxu1 %v15737_v37  ;;  %6638 = vmatpush1.bf16.msra.mxu0 %v15576_v14  ;;  %v2105_v37 = vld [vmem:[#allocation17 + $0x7b8] sm:$0xff]  ;;  %v409_v20 = vadd.f32 %v398_v0, %v363_v47  ;;  %v365_v61 = vadd.f32 %v354_v16, %v319_v5  ;;  %v20543_v16 = vunpack.c.h.bf16 %v18556_v30 }
 0x2ce   :  { %6639 = vmatprep.subr.bf16.mxu0 %v15569_v36  ;;  %v2133_v14 = vld [vmem:[#allocation17 + $0x898] sm:$0xff]  ;;  %v15720_v36 = vcombine.low %v2141_v48, %v2145_v33  ;;  %v15680_v47 = vcombine.low %v2101_v55, %v2105_v37  ;;  %v15673_v48 = vcombine.high %v2093_v13, %v2097_v53  ;;  %v19319_v33 = vstv %s19307_s27 }
 0x2cf   :  { %v15713_v38 = vcombine.high %v2133_v14, %v2137_v40  ;;  %v2129_v15 = vld [vmem:[#allocation17 + $0x878] sm:$0xff]  ;;  %20542 = vst [vmem:[#allocation51_spill] sm:$0xff] %v19319_v33 }
 0x2d0   :  { %6671 = vmatpush1.bf16.msra.mxu1 %v15736_v22  ;;  %v444_v22 = vmul.f32 %v19305_v49, %v20540_v1  ;;  %v2089_v51 = vld [vmem:[#allocation17 + $0x738] sm:$0xff]  ;;  %v446_v1 = vmul.f32 %v19305_v49, %v20543_v16 }
 0x2d1   :  { %6672 = vmatprep.subr.bf16.mxu1 %v15729_v56  ;;  %6640 = vmatpush1.bf16.msra.mxu0 %v15568_v45  ;;  %v15681_v56 = vcombine.high %v2101_v55, %v2105_v37  ;;  %v400_v45 = vmul.f32 %v19293_v19, %v20541_v29  ;;  %v2117_v29 = vld [vmem:[#allocation17 + $0x818] sm:$0xff]  ;;  %v15672_v55 = vcombine.low %v2093_v13, %v2097_v53 }
 0x2d2   :  { %6641 = vmatprep.subr.bf16.mxu0 %v15689_v12  ;;  %v455_v0 = vadd.f32 %v444_v22, %v409_v20  ;;  %v15705_v12 = vcombine.high %v2125_v35, %v2129_v15  ;;  %v2077_v20 = vld [vmem:[#allocation17 + $0x6d8] sm:$0xff]  ;;  %v15696_v13 = vcombine.low %v2117_v29, %v2121_v60 }
 0x2d3   :  { %v411_v5 = vadd.f32 %v400_v45, %v365_v61  ;;  %v2081_v22 = vld [vmem:[#allocation17 + $0x6f8] sm:$0xff] }
 0x2d4   :  { %6673 = vmatpush1.bf16.msra.mxu1 %v15728_v4  ;;  %v15712_v4 = vcombine.low %v2133_v14, %v2137_v40  ;;  %v19325_v37 = vadd.f32 %v19319_v33, %v455_v0  ;;  %v15704_v14 = vcombine.low %v2125_v35, %v2129_v15  ;;  %v15657_v53 = vcombine.high %v2077_v20, %v2081_v22  ;;  %v2069_v35 = vld [vmem:[#allocation17 + $0x698] sm:$0xff] }
 0x2d5   :  { %6674 = vmatprep.subr.bf16.mxu1 %v15721_v59  ;;  %6642 = vmatpush2.bf16.msra.mxu0 %v15688_v8  ;;  %v2085_v59 = vld [vmem:[#allocation17 + $0x718] sm:$0xff]  ;;  %v15697_v8 = vcombine.high %v2117_v29, %v2121_v60 }
 0x2d6   :  { %6643 = vmatprep.subr.bf16.mxu0 %v15681_v56  ;;  %v15665_v40 = vcombine.high %v2085_v59, %v2089_v51  ;;  %v2237_v56 = vld [vmem:[#allocation17 + $0xbd8] sm:$0xff]  ;;  %v15664_v61 = vcombine.low %v2085_v59, %v2089_v51  ;;  %v538_v45 = vrot.slane %v19325_v37, 4 }
 0x2d7   :  { %v2073_v15 = vld [vmem:[#allocation17 + $0x6b8] sm:$0xff] }
 0x2d8   :  { %6675 = vmatpush1.bf16.msra.mxu1 %v15720_v36  ;;  %v457_v36 = vadd.f32 %v446_v1, %v411_v5  ;;  %v539_v5 = vadd.f32 %v538_v45, %v19325_v37  ;;  %v15649_v51 = vcombine.high %v2069_v35, %v2073_v15  ;;  %v2061_v16 = vld [vmem:[#allocation17 + $0x658] sm:$0xff] }
 0x2d9   :  { %6676 = vmatprep.subr.bf16.mxu1 %v15713_v38  ;;  %6644 = vmatpush2.bf16.msra.mxu0 %v15680_v47  ;;  %v2241_v38 = vld [vmem:[#allocation17 + $0xbf8] sm:$0xff] }
 0x2da   :  { %6645 = vmatprep.subr.bf16.mxu0 %v15673_v48  ;;  %v15817_v47 = vcombine.high %v2237_v56, %v2241_v38  ;;  %v19329_v0 = vadd.f32 %v19319_v33, %v457_v36  ;;  %v2233_v48 = vld [vmem:[#allocation17 + $0xbb8] sm:$0xff]  ;;  %v15816_v59 = vcombine.low %v2237_v56, %v2241_v38 }
 0x2db   :  { %v2065_v1 = vld [vmem:[#allocation17 + $0x678] sm:$0xff] }
 0x2dc   :  { %6677 = vmatpush1.bf16.msra.mxu1 %v15712_v4  ;;  %v2229_v4 = vld [vmem:[#allocation17 + $0xb98] sm:$0xff]  ;;  %v550_v29 = vrot.slane %v19329_v0, 4 }
 0x2dd   :  { %6678 = vmatprep.subr.bf16.mxu1 %v15705_v12  ;;  %6646 = vmatpush2.bf16.msra.mxu0 %v15672_v55  ;;  %v15656_v12 = vcombine.low %v2077_v20, %v2081_v22  ;;  %v15809_v60 = vcombine.high %v2229_v4, %v2233_v48  ;;  %v2221_v55 = vld [vmem:[#allocation17 + $0xb58] sm:$0xff]  ;;  %v15808_v36 = vcombine.low %v2229_v4, %v2233_v48 }
 0x2de   :  { %6647 = vmatprep.subr.bf16.mxu0 %v15665_v40  ;;  %v15648_v40 = vcombine.low %v2069_v35, %v2073_v15  ;;  %v15641_v20 = vcombine.high %v2061_v16, %v2065_v1  ;;  %v2053_v56 = vld [vmem:[#allocation17 + $0x618] sm:$0xff] }
 0x2df   :  { %v2057_v38 = vld [vmem:[#allocation17 + $0x638] sm:$0xff] }
 0x2e0   :  { %6679 = vmatpush1.bf16.msra.mxu1 %v15704_v14  ;;  %v2225_v14 = vld [vmem:[#allocation17 + $0xb78] sm:$0xff]  ;;  %v15633_v35 = vcombine.high %v2053_v56, %v2057_v38 }
 0x2e1   :  { %6680 = vmatprep.subr.bf16.mxu1 %v15697_v8  ;;  %6648 = vmatpush2.bf16.msra.mxu0 %v15664_v61  ;;  %v540_v8 = vrot.slane %v539_v5, 2  ;;  %v15801_v22 = vcombine.high %v2221_v55, %v2225_v14  ;;  %v551_v61 = vadd.f32 %v550_v29, %v19329_v0  ;;  %v2213_v45 = vld [vmem:[#allocation17 + $0xb18] sm:$0xff]  ;;  %v15800_v42 = vcombine.low %v2221_v55, %v2225_v14 }
 0x2e2   :  { %6649 = vmatprep.subr.bf16.mxu0 %v15657_v53  ;;  %v15640_v53 = vcombine.low %v2061_v16, %v2065_v1  ;;  %v2301_v4 = vld [vmem:[#allocation17 + $0xdd8] sm:$0xff] }
 0x2e3   :  { %v2305_v48 = vld [vmem:[#allocation17 + $0xdf8] sm:$0xff] }
 0x2e4   :  { %6681 = vmatpush1.bf16.msra.mxu1 %v15696_v13  ;;  %v2217_v13 = vld [vmem:[#allocation17 + $0xb38] sm:$0xff] }
 0x2e5   :  { %6682 = vmatprep.subr.bf16.mxu1 %v15817_v47  ;;  %6650 = vmatpush2.bf16.msra.mxu0 %v15656_v12  ;;  %v541_v47 = vadd.f32 %v540_v8, %v539_v5  ;;  %v15793_v15 = vcombine.high %v2213_v45, %v2217_v13  ;;  %v552_v12 = vrot.slane %v551_v61, 2  ;;  %v15792_v29 = vcombine.low %v2213_v45, %v2217_v13  ;;  %v2293_v16 = vld [vmem:[#allocation17 + $0xd98] sm:$0xff] }
 0x2e6   :  { %6651 = vmatprep.subr.bf16.mxu0 %v15649_v51  ;;  %v2209_v51 = vld [vmem:[#allocation17 + $0xaf8] sm:$0xff] }
 0x2e7   :  { %v542_v62 = vrot.slane %v541_v47, 1  ;;  %v2297_v1 = vld [vmem:[#allocation17 + $0xdb8] sm:$0xff]  ;;  %v553_v55 = vadd.f32 %v552_v12, %v551_v61 }
 0x2e8   :  { %6683 = vmatpush2.bf16.msra.mxu1 %v15816_v59  ;;  %v2205_v59 = vld [vmem:[#allocation17 + $0xad8] sm:$0xff]  ;;  %v15872_v61 = vcombine.low %v2293_v16, %v2297_v1 }
 0x2e9   :  { %6684 = vmatprep.subr.bf16.mxu1 %v15809_v60  ;;  %6652 = vmatpush2.bf16.msra.mxu0 %v15648_v40  ;;  %v15632_v60 = vcombine.low %v2053_v56, %v2057_v38  ;;  %v15881_v40 = vcombine.high %v2301_v4, %v2305_v48  ;;  %v15785_v5 = vcombine.high %v2205_v59, %v2209_v51  ;;  %v2197_v14 = vld [vmem:[#allocation17 + $0xa98] sm:$0xff]  ;;  %v554_v45 = vrot.slane %v553_v55, 1 }
 0x2ea   :  { %6653 = vmatprep.subr.bf16.mxu0 %v15641_v20  ;;  %v2201_v8 = vld [vmem:[#allocation17 + $0xab8] sm:$0xff]  ;;  %v543_v20 = vadd.f32 %v542_v62, %v541_v47 }
 0x2eb   :  { %v15777_v56 = vcombine.high %v2197_v14, %v2201_v8  ;;  %v2289_v38 = vld [vmem:[#allocation17 + $0xd78] sm:$0xff]  ;;  %v15776_v62 = vcombine.low %v2197_v14, %v2201_v8 }
 0x2ec   :  { %6685 = vmatpush2.bf16.msra.mxu1 %v15808_v36  ;;  %v15880_v36 = vcombine.low %v2301_v4, %v2305_v48  ;;  %v602_v4 = vmul.f32 0.125, %v543_v20 }
 0x2ed   :  { %6686 = vmatprep.subr.bf16.mxu1 %v15801_v22  ;;  %6654 = vmatpush2.bf16.msra.mxu0 %v15640_v53  ;;  %v15784_v22 = vcombine.low %v2205_v59, %v2209_v51  ;;  %v15873_v53 = vcombine.high %v2293_v16, %v2297_v1  ;;  %v2277_v59 = vld [vmem:[#allocation17 + $0xd18] sm:$0xff] }
 0x2ee   :  { %6655 = vmatprep.subr.bf16.mxu0 %v15633_v35  ;;  %v2189_v35 = vld [vmem:[#allocation17 + $0xa58] sm:$0xff]  ;;  %v19337_v16 = vsub.f32 %v19325_v37, %v602_v4 }
 0x2ef   :  { %v2281_v51 = vld [vmem:[#allocation17 + $0xd38] sm:$0xff] }
 0x2f0   :  { %6687 = vmatpush2.bf16.msra.mxu1 %v15800_v42  ;;  %v2285_v42 = vld [vmem:[#allocation17 + $0xd58] sm:$0xff]  ;;  %v15857_v8 = vcombine.high %v2277_v59, %v2281_v51  ;;  %v15856_v37 = vcombine.low %v2277_v59, %v2281_v51  ;;  %v20545_v51 = vunpack.c.l.bf16 %v18501_v3 }
 0x2f1   :  { %6688 = vmatprep.subr.bf16.mxu1 %v15793_v15  ;;  %6656 = vmatpush2.bf16.msra.mxu0 %v15632_v60  ;;  %v2193_v15 = vld [vmem:[#allocation17 + $0xa78] sm:$0xff]  ;;  %v15865_v48 = vcombine.high %v2285_v42, %v2289_v38  ;;  %v555_v60 = vadd.f32 %v554_v45, %v553_v55 }
 0x2f2   :  { %6707 = vmatprep.subr.bf16.mxu0 %v15881_v40  ;;  %v15769_v12 = vcombine.high %v2189_v35, %v2193_v15  ;;  %v2181_v40 = vld [vmem:[#allocation17 + $0xa18] sm:$0xff]  ;;  %v15768_v1 = vcombine.low %v2189_v35, %v2193_v15 }
 0x2f3   :  { %v2269_v55 = vld [vmem:[#allocation17 + $0xcd8] sm:$0xff] }
 0x2f4   :  { %6689 = vmatpush2.bf16.msra.mxu1 %v15792_v29  ;;  %v6372_v13 = vpop.f32.mrf.mxu0  ;;  %6658 = vmatmul.mubr.bf16.vlgmr.msra.gmra.mxu0 %v18893_v57  ;;  %v2185_v57 = vld [vmem:[#allocation17 + $0xa38] sm:$0xff] }
 0x2f5   :  { %6690 = vmatprep.subr.bf16.mxu1 %v15785_v5  ;;  %6708 = vmatpush1.bf16.msra.mxu0 %v15880_v36  ;;  %v15864_v36 = vcombine.low %v2285_v42, %v2289_v38  ;;  %v2433_v42 = vld [vmem:[#allocation17 + $0x11f8] sm:$0xff]  ;;  %v15760_v35 = vcombine.low %v2181_v40, %v2185_v57 }
 0x2f6   :  { %6739 = vmatprep.mubr.bf16.mxu0 %v19094_v52  ;;  %v6374_v47 = vpop.f32.mrf.mxu0  ;;  %6709 = vmatprep.subr.bf16.mxu0 %v15873_v53  ;;  %v2273_v53 = vld [vmem:[#allocation17 + $0xcf8] sm:$0xff] }
 0x2f7   :  { %v15849_v15 = vcombine.high %v2269_v55, %v2273_v53  ;;  %v2417_v3 = vld [vmem:[#allocation17 + $0x1178] sm:$0xff] }
 0x2f8   :  { %6691 = vmatpush2.bf16.msra.mxu1 %v15784_v22  ;;  %v6376_v29 = vpop.f32.mrf.mxu0  ;;  %v15761_v22 = vcombine.high %v2181_v40, %v2185_v57  ;;  %v305_v40 = vmul.f32 %v19274_v27, %v20545_v51  ;;  %v15848_v57 = vcombine.low %v2269_v55, %v2273_v53  ;;  %v2245_v55 = vld [vmem:[#allocation17 + $0xc18] sm:$0xff] }
 0x2f9   :  { %6692 = vmatprep.subr.bf16.mxu1 %v15777_v56  ;;  %6710 = vmatpush1.bf16.msra.mxu0 %v15872_v61  ;;  %v604_v56 = vmul.f32 0.125, %v555_v60  ;;  %v2429_v61 = vld [vmem:[#allocation17 + $0x11d8] sm:$0xff] }
 0x2fa   :  { %v6377_v14 = vpop.f32.mrf.mxu0  ;;  %6711 = vmatprep.subr.bf16.mxu0 %v15865_v48  ;;  %v2261_v48 = vld [vmem:[#allocation17 + $0xc98] sm:$0xff] }
 0x2fb   :  { %v6413_v5 = vpop.f32.mrf.mxu1  ;;  %v2421_v60 = vld [vmem:[#allocation17 + $0x1198] sm:$0xff] }
 0x2fc   :  { %v19339_v52 = vadd.f32 %v6413_v5, %v6372_v13  ;;  %6693 = vmatpush2.bf16.msra.mxu1 %v15776_v62  ;;  %v624_v13 = vmul.f32 %v19337_v16, %v19337_v16  ;;  %v16009_v62 = vcombine.high %v2429_v61, %v2433_v42  ;;  %v2425_v29 = vld [vmem:[#allocation17 + $0x11b8] sm:$0xff]  ;;  %v20544_v5 = vunpack.c.l.bf16 %v18499_v2 }
 0x2fd   :  { %v6415_v20 = vpop.f32.mrf.mxu1  ;;  %6694 = vmatprep.subr.bf16.mxu1 %v15769_v12  ;;  %6712 = vmatpush1.bf16.msra.mxu0 %v15864_v36  ;;  %v2265_v12 = vld [vmem:[#allocation17 + $0xcb8] sm:$0xff] }
 0x2fe   :  { %v19341_v45 = vadd.f32 %v6415_v20, %v6374_v47  ;;  %6713 = vmatprep.subr.bf16.mxu0 %v15857_v8  ;;  %v19346_v47 = vsub.f32 %v19329_v0, %v604_v56  ;;  %v281_v59 = vmul.f32 %v19271_v7, %v20544_v5  ;;  %v2253_v36 = vld [vmem:[#allocation17 + $0xc58] sm:$0xff]  ;;  %v640_v14 = vrot.slane %v624_v13, 4 }
 0x2ff   :  { %v6417_v38 = vpop.f32.mrf.mxu1  ;;  %v16008_v8 = vcombine.low %v2429_v61, %v2433_v42  ;;  %v15841_v0 = vcombine.high %v2261_v48, %v2265_v12  ;;  %v16001_v20 = vcombine.high %v2421_v60, %v2425_v29  ;;  %v15840_v56 = vcombine.low %v2261_v48, %v2265_v12  ;;  %v2249_v53 = vld [vmem:[#allocation17 + $0xc38] sm:$0xff] }
 0x300   :  { %6695 = vmatpush2.bf16.msra.mxu1 %v15768_v1  ;;  %v2257_v1 = vld [vmem:[#allocation17 + $0xc78] sm:$0xff]  ;;  %v626_v2 = vmul.f32 %v19346_v47, %v19346_v47  ;;  %v316_v5 = vadd.f32 %v305_v40, %v281_v59  ;;  %v20546_v61 = vunpack.c.h.bf16 %v18688_v21  ;;  %v20549_v48 = vunpack.c.l.bf16 %v18512_v9 }
 0x301   :  { %v6418_v4 = vpop.f32.mrf.mxu1  ;;  %6696 = vmatprep.subr.bf16.mxu1 %v15761_v22  ;;  %6714 = vmatpush1.bf16.msra.mxu0 %v15856_v37  ;;  %v16000_v22 = vcombine.low %v2421_v60, %v2425_v29  ;;  %v2413_v38 = vld [vmem:[#allocation17 + $0x1158] sm:$0xff]  ;;  %v641_v37 = vadd.f32 %v640_v14, %v624_v13  ;;  %v20551_v13 = vunpack.c.l.bf16 %v18527_v18  ;;  %v15825_v9 = vcombine.high %v2245_v55, %v2249_v53 }
 0x302   :  { %6715 = vmatprep.subr.bf16.mxu0 %v15849_v15  ;;  %v15833_v4 = vcombine.high %v2253_v36, %v2257_v1  ;;  %v286_v42 = vmul.f32 %v19271_v7, %v20546_v61  ;;  %v351_v12 = vmul.f32 %v19286_v50, %v20549_v48  ;;  %v15993_v59 = vcombine.high %v2413_v38, %v2417_v3  ;;  %v2405_v14 = vld [vmem:[#allocation17 + $0x1118] sm:$0xff] }
 0x303   :  { %v307_v29 = vmul.f32 %v19274_v27, %v20551_v13  ;;  %v652_v51 = vrot.slane %v626_v2, 4  ;;  %v15992_v40 = vcombine.low %v2413_v38, %v2417_v3  ;;  %v2369_v61 = vld [vmem:[#allocation17 + $0xff8] sm:$0xff] }
 0x304   :  { %6697 = vmatpush2.bf16.msra.mxu1 %v15760_v35  ;;  %v20547_v35 = vld [vmem:[#allocation34_spill] sm:$0xff] }
 0x305   :  { %6748 = vmatprep.subr.bf16.mxu1 %v16009_v62  ;;  %6716 = vmatpush1.bf16.msra.mxu0 %v15848_v57  ;;  %v20548_v15 = vunpack.c.h.bf16 %v20547_v35  ;;  %v15832_v57 = vcombine.low %v2253_v36, %v2257_v1  ;;  %v20555_v1 = vunpack.c.l.bf16 %v18543_v24  ;;  %v653_v3 = vadd.f32 %v652_v51, %v626_v2 }
 0x306   :  { %6717 = vmatprep.subr.bf16.mxu0 %v15841_v0  ;;  %v2365_v0 = vld [vmem:[#allocation17 + $0xfd8] sm:$0xff] }
 0x307   :  { %6699 = vmatmul.mubr.bf16.vlgmr.msra.gmra.mxu1 %v19151_v63  ;;  %v310_v62 = vmul.f32 %v19274_v27, %v20548_v15  ;;  %v20550_v63 = vunpack.c.l.bf16 %v18525_v17  ;;  %v642_v17 = vrot.slane %v641_v37, 2  ;;  %v20552_v15 = vunpack.c.l.bf16 %v18514_v10 }
 0x308   :  { %6749 = vmatpush1.bf16.msra.mxu1 %v16008_v8  ;;  %6780 = vmatprep.mubr.bf16.mxu1 %v19181_v6  ;;  %v2409_v8 = vld [vmem:[#allocation17 + $0x1138] sm:$0xff]  ;;  %v362_v6 = vadd.f32 %v351_v12, %v316_v5  ;;  %v20557_v10 = vunpack.c.h.bf16 %v20556_v26  ;;  %v15945_v12 = vcombine.high %v2365_v0, %v2369_v61 }
 0x309   :  { %v283_v60 = vmul.f32 %v19271_v7, %v20550_v63  ;;  %6750 = vmatprep.subr.bf16.mxu1 %v16001_v20  ;;  %6718 = vmatpush1.bf16.msra.mxu0 %v15840_v56  ;;  %v397_v18 = vmul.f32 %v19293_v19, %v20552_v15  ;;  %v321_v48 = vadd.f32 %v310_v62, %v286_v42  ;;  %v20553_v63 = vld [vmem:[#allocation35_spill] sm:$0xff]  ;;  %v20558_v42 = vld [vmem:[#allocation40_spill] sm:$0xff] }
 0x30a   :  { %v20554_v20 = vunpack.c.h.bf16 %v20553_v63  ;;  %6719 = vmatprep.subr.bf16.mxu0 %v15833_v4  ;;  %v353_v56 = vmul.f32 %v19286_v50, %v20555_v1  ;;  %v15985_v38 = vcombine.high %v2405_v14, %v2409_v8  ;;  %v288_v15 = vmul.f32 %v19271_v7, %v20557_v10  ;;  %v2397_v4 = vld [vmem:[#allocation17 + $0x10d8] sm:$0xff] }
 0x30b   :  { %v318_v36 = vadd.f32 %v307_v29, %v283_v60  ;;  %v20559_v62 = vunpack.c.h.bf16 %v20558_v42  ;;  %v2401_v5 = vld [vmem:[#allocation17 + $0x10f8] sm:$0xff]  ;;  %v643_v24 = vadd.f32 %v642_v17, %v641_v37  ;;  %v20560_v60 = vunpack.c.l.bf16 %v18516_v11  ;;  %v20564_v17 = vld [vmem:[#allocation41_spill] sm:$0xff] }
 0x30c   :  { %v356_v13 = vmul.f32 %v19286_v50, %v20554_v20  ;;  %6751 = vmatpush1.bf16.msra.mxu1 %v16000_v22  ;;  %v15984_v20 = vcombine.low %v2405_v14, %v2409_v8  ;;  %v15824_v22 = vcombine.low %v2245_v55, %v2249_v53  ;;  %v2357_v10 = vld [vmem:[#allocation17 + $0xf98] sm:$0xff]  ;;  %v408_v14 = vadd.f32 %v397_v18, %v362_v6 }
 0x30d   :  { %6752 = vmatprep.subr.bf16.mxu1 %v15993_v59  ;;  %v312_v41 = vmul.f32 %v19274_v27, %v20559_v62  ;;  %6720 = vmatpush1.bf16.msra.mxu0 %v15832_v57  ;;  %v443_v29 = vmul.f32 %v19305_v49, %v20560_v60  ;;  %v20561_v59 = vld [vmem:[#allocation36_spill] sm:$0xff]  ;;  %v364_v55 = vadd.f32 %v353_v56, %v318_v36  ;;  %v20563_v53 = vunpack.c.l.bf16 %v18545_v25  ;;  %v20566_v36 = vld [vmem:[#allocation37_spill] sm:$0xff] }
 0x30e   :  { %v367_v2 = vadd.f32 %v356_v13, %v321_v48  ;;  %v20562_v51 = vunpack.c.h.bf16 %v20561_v59  ;;  %6721 = vmatprep.subr.bf16.mxu0 %v15825_v9  ;;  %v2361_v62 = vld [vmem:[#allocation17 + $0xfb8] sm:$0xff]  ;;  %v15977_v37 = vcombine.high %v2397_v4, %v2401_v5  ;;  %v654_v11 = vrot.slane %v653_v3, 2 }
 0x30f   :  { %v399_v57 = vmul.f32 %v19293_v19, %v20563_v53  ;;  %v323_v8 = vadd.f32 %v312_v41, %v288_v15  ;;  %v20565_v48 = vunpack.c.h.bf16 %v20564_v17  ;;  %v15976_v60 = vcombine.low %v2397_v4, %v2401_v5  ;;  %v2393_v9 = vld [vmem:[#allocation17 + $0x10b8] sm:$0xff] }
 0x310   :  { %v402_v1 = vmul.f32 %v19293_v19, %v20562_v51  ;;  %6753 = vmatpush1.bf16.msra.mxu1 %v15992_v40  ;;  %v15944_v51 = vcombine.low %v2365_v0, %v2369_v61  ;;  %v2389_v40 = vld [vmem:[#allocation17 + $0x1098] sm:$0xff]  ;;  %v15937_v23 = vcombine.high %v2357_v10, %v2361_v62  ;;  %v644_v18 = vrot.slane %v643_v24, 1 }
 0x311   :  { %6754 = vmatprep.subr.bf16.mxu1 %v15985_v38  ;;  %v358_v13 = vmul.f32 %v19286_v50, %v20565_v48  ;;  %6722 = vmatpush1.bf16.msra.mxu0 %v15824_v22  ;;  %v20567_v25 = vunpack.c.h.bf16 %v20566_v36  ;;  %v454_v38 = vadd.f32 %v443_v29, %v408_v14  ;;  %v410_v41 = vadd.f32 %v399_v57, %v364_v55  ;;  %v2349_v61 = vld [vmem:[#allocation17 + $0xf58] sm:$0xff]  ;;  %v20569_v48 = vld [vmem:[#allocation42_spill] sm:$0xff] }
 0x312   :  { %v413_v6 = vadd.f32 %v402_v1, %v367_v2  ;;  %6723 = vmatprep.subr.bf16.mxu0 %v15945_v12  ;;  %v20568_v15 = vunpack.c.l.bf16 %v18556_v30  ;;  %v15969_v0 = vcombine.high %v2389_v40, %v2393_v9  ;;  %v2353_v4 = vld [vmem:[#allocation17 + $0xf78] sm:$0xff]  ;;  %v655_v22 = vadd.f32 %v654_v11, %v653_v3 }
 0x313   :  { %v448_v56 = vmul.f32 %v19305_v49, %v20567_v25  ;;  %v369_v5 = vadd.f32 %v358_v13, %v323_v8  ;;  %v20570_v2 = vunpack.c.h.bf16 %v20569_v48  ;;  %v2385_v25 = vld [vmem:[#allocation17 + $0x1078] sm:$0xff]  ;;  %v15936_v12 = vcombine.low %v2357_v10, %v2361_v62 }
 0x314   :  { %6755 = vmatpush1.bf16.msra.mxu1 %v15984_v20  ;;  %v445_v53 = vmul.f32 %v19305_v49, %v20568_v15  ;;  %v15968_v20 = vcombine.low %v2389_v40, %v2393_v9  ;;  %v645_v29 = vadd.f32 %v644_v18, %v643_v24  ;;  %v15929_v30 = vcombine.high %v2349_v61, %v2353_v4  ;;  %v2345_v11 = vld [vmem:[#allocation17 + $0xf38] sm:$0xff] }
 0x315   :  { %6756 = vmatprep.subr.bf16.mxu1 %v15977_v37  ;;  %v404_v1 = vmul.f32 %v19293_v19, %v20570_v2  ;;  %6724 = vmatpush2.bf16.msra.mxu0 %v15944_v51  ;;  %v459_v14 = vadd.f32 %v448_v56, %v413_v6  ;;  %v19410_v55 = vadd.f32 %v19319_v33, %v454_v38  ;;  %v2341_v37 = vld [vmem:[#allocation17 + $0xf18] sm:$0xff]  ;;  %v656_v8 = vrot.slane %v655_v22, 1 }
 0x316   :  { %6725 = vmatprep.subr.bf16.mxu0 %v15937_v23  ;;  %v456_v57 = vadd.f32 %v445_v53, %v410_v41  ;;  %v15961_v3 = vcombine.high %v2381_v58, %v2385_v25  ;;  %v20571_v15 = vld [vmem:[#allocation43_spill] sm:$0xff]  ;;  %v15928_v62 = vcombine.low %v2349_v61, %v2353_v4  ;;  %v702_v23 = vmul.f32 0.125, %v645_v29 }
 0x317   :  { %v415_v13 = vadd.f32 %v404_v1, %v369_v5  ;;  %v20572_v2 = vunpack.c.h.bf16 %v20571_v15  ;;  %v2373_v10 = vld [vmem:[#allocation17 + $0x1018] sm:$0xff]  ;;  %v15960_v40 = vcombine.low %v2381_v58, %v2385_v25  ;;  %v15921_v9 = vcombine.high %v2341_v37, %v2345_v11 }
 0x318   :  { %6757 = vmatpush1.bf16.msra.mxu1 %v15976_v60  ;;  %v2377_v24 = vld [vmem:[#allocation17 + $0x1038] sm:$0xff]  ;;  %v19416_v60 = vadd.f32 %v19319_v33, %v459_v14  ;;  %v532_v18 = vrot.slane %v19410_v55, 4  ;;  %v19420_v6 = vadd.f32 %v19319_v33, %v456_v57  ;;  %v657_v53 = vadd.f32 %v656_v8, %v655_v22 }
 0x319   :  { %6758 = vmatprep.subr.bf16.mxu1 %v15969_v0  ;;  %v450_v51 = vmul.f32 %v19305_v49, %v20572_v2  ;;  %6726 = vmatpush2.bf16.msra.mxu0 %v15936_v12  ;;  %v15953_v56 = vcombine.high %v2373_v10, %v2377_v24  ;;  %v2333_v38 = vld [vmem:[#allocation17 + $0xed8] sm:$0xff]  ;;  %v15920_v5 = vcombine.low %v2341_v37, %v2345_v11  ;;  %v713_v1 = vadd.f32 1e-05, %v702_v23 }
 0x31a   :  { %6727 = vmatprep.subr.bf16.mxu0 %v15929_v30  ;;  %v2337_v41 = vld [vmem:[#allocation17 + $0xef8] sm:$0xff]  ;;  %v562_v58 = vrot.slane %v19416_v60, 4  ;;  %v15952_v25 = vcombine.low %v2373_v10, %v2377_v24  ;;  %v533_v12 = vadd.f32 %v532_v18, %v19410_v55  ;;  %v544_v29 = vrot.slane %v19420_v6, 4 }
 0x31b   :  { %v461_v0 = vadd.f32 %v450_v51, %v415_v13  ;;  %v2493_v61 = vld [vmem:[#allocation17 + $0x13d8] sm:$0xff]  ;;  %v704_v57 = vmul.f32 0.125, %v657_v53  ;;  %v15912_v8 = vcombine.low %v2333_v38, %v2337_v41  ;;  %17986 = vrsqrt.f32 %v713_v1 }
 0x31c   :  { %6759 = vmatpush1.bf16.msra.mxu1 %v15968_v20  ;;  %v2497_v4 = vld [vmem:[#allocation17 + $0x13f8] sm:$0xff]  ;;  %v15913_v20 = vcombine.high %v2333_v38, %v2337_v41  ;;  %v563_v13 = vadd.f32 %v562_v58, %v19416_v60  ;;  %v534_v10 = vrot.slane %v533_v12, 2  ;;  %v545_v24 = vadd.f32 %v544_v29, %v19420_v6 }
 0x31d   :  { %6760 = vmatprep.subr.bf16.mxu1 %v15961_v3  ;;  %6728 = vmatpush2.bf16.msra.mxu0 %v15928_v62  ;;  %v16073_v14 = vcombine.high %v2493_v61, %v2497_v4  ;;  %v2325_v30 = vld [vmem:[#allocation17 + $0xe98] sm:$0xff]  ;;  %v19426_v3 = vadd.f32 %v19319_v33, %v461_v0  ;;  %v16072_v2 = vcombine.low %v2493_v61, %v2497_v4 }
 0x31e   :  { %6729 = vmatprep.subr.bf16.mxu0 %v15921_v9  ;;  %v2329_v22 = vld [vmem:[#allocation17 + $0xeb8] sm:$0xff]  ;;  %v715_v9 = vadd.f32 1e-05, %v704_v57  ;;  %v564_v41 = vrot.slane %v563_v13, 2  ;;  %v535_v4 = vadd.f32 %v534_v10, %v533_v12 }
 0x31f   :  { %v2485_v37 = vld [vmem:[#allocation17 + $0x1398] sm:$0xff]  ;;  %v15905_v51 = vcombine.high %v2325_v30, %v2329_v22  ;;  %v574_v18 = vrot.slane %v19426_v3, 4  ;;  %v15904_v38 = vcombine.low %v2325_v30, %v2329_v22 }
 0x320   :  { %6761 = vmatpush1.bf16.msra.mxu1 %v15960_v40  ;;  %v2489_v11 = vld [vmem:[#allocation17 + $0x13b8] sm:$0xff]  ;;  %17988 = vrsqrt.f32 %v715_v9  ;;  %v20573_v9 = vld [vmem:[#allocation33_spill] sm:$0xff] }
 0x321   :  { %6762 = vmatprep.subr.bf16.mxu1 %v15953_v56  ;;  %6730 = vmatpush2.bf16.msra.mxu0 %v15920_v5  ;;  %v16065_v62 = vcombine.high %v2485_v37, %v2489_v11  ;;  %v2317_v23 = vld [vmem:[#allocation17 + $0xe58] sm:$0xff]  ;;  %v16064_v0 = vcombine.low %v2485_v37, %v2489_v11  ;;  %v546_v5 = vrot.slane %v545_v24, 2  ;;  %v536_v37 = vrot.slane %v535_v4, 1 }
 0x322   :  { %6731 = vmatprep.subr.bf16.mxu0 %v15913_v20  ;;  %v2321_v40 = vld [vmem:[#allocation17 + $0xe78] sm:$0xff]  ;;  %v575_v20 = vadd.f32 %v574_v18, %v19426_v3  ;;  %v19433_v43 = vsub.s32 0, %v20573_v9 }
 0x323   :  { %v2477_v56 = vld [vmem:[#allocation17 + $0x1358] sm:$0xff]  ;;  %v15897_v61 = vcombine.high %v2317_v23, %v2321_v40  ;;  %v15896_v57 = vcombine.low %v2317_v23, %v2321_v40  ;;  %v547_v11 = vadd.f32 %v546_v5, %v545_v24 }
 0x324   :  { %6763 = vmatpush1.bf16.msra.mxu1 %v15952_v25  ;;  %v2481_v53 = vld [vmem:[#allocation17 + $0x1378] sm:$0xff] }
 0x325   :  { %6764 = vmatprep.subr.bf16.mxu1 %v16073_v14  ;;  %6732 = vmatpush2.bf16.msra.mxu0 %v15912_v8  ;;  %v16057_v1 = vcombine.high %v2477_v56, %v2481_v53  ;;  %v2309_v58 = vld [vmem:[#allocation17 + $0xe18] sm:$0xff]  ;;  %v565_v8 = vadd.f32 %v564_v41, %v563_v13  ;;  %v16056_v30 = vcombine.low %v2477_v56, %v2481_v53  ;;  %v548_v24 = vrot.slane %v547_v11, 1 }
 0x326   :  { %6733 = vmatprep.subr.bf16.mxu0 %v15905_v51  ;;  %v2313_v25 = vld [vmem:[#allocation17 + $0xe38] sm:$0xff]  ;;  %v576_v51 = vrot.slane %v575_v20, 2  ;;  %v537_v53 = vadd.f32 %v536_v37, %v535_v4 }
 0x327   :  { %v2469_v29 = vld [vmem:[#allocation17 + $0x1318] sm:$0xff]  ;;  %v15889_v22 = vcombine.high %v2309_v58, %v2313_v25  ;;  %v566_v23 = vrot.slane %v565_v8, 1 }
 0x328   :  { %6765 = vmatpush2.bf16.msra.mxu1 %v16072_v2  ;;  %v2473_v14 = vld [vmem:[#allocation17 + $0x1338] sm:$0xff]  ;;  %v17987_v13 = vpop.eup %17986  ;;  %v577_v5 = vadd.f32 %v576_v51, %v575_v20  ;;  %v601_v37 = vmul.f32 0.125, %v537_v53 }
 0x329   :  { %6766 = vmatprep.subr.bf16.mxu1 %v16065_v62  ;;  %6734 = vmatpush2.bf16.msra.mxu0 %v15904_v38  ;;  %v16049_v12 = vcombine.high %v2469_v29, %v2473_v14  ;;  %v2517_v2 = vld [vmem:[#allocation17 + $0x1498] sm:$0x11]  ;;  %v16048_v18 = vcombine.low %v2469_v29, %v2473_v14  ;;  %v15888_v38 = vcombine.low %v2309_v58, %v2313_v25 }
 0x32a   :  { %6735 = vmatprep.subr.bf16.mxu0 %v15897_v61  ;;  %v2461_v10 = vld [vmem:[#allocation17 + $0x12d8] sm:$0xff]  ;;  %v16097_v40 = vcombine.high %v2517_v2, %v2517_v2  ;;  %v16096_v56 = vcombine.low %v2517_v2, %v2517_v2  ;;  %v735_v58 = vmul.f32 %v17987_v13, %v19337_v16  ;;  %v578_v16 = vrot.slane %v577_v5, 1 }
 0x32b   :  { %v2465_v62 = vld [vmem:[#allocation17 + $0x12f8] sm:$0xff] }
 0x32c   :  { %6767 = vmatpush2.bf16.msra.mxu1 %v16064_v0  ;;  %v16041_v41 = vcombine.high %v2461_v10, %v2465_v62  ;;  %v2509_v0 = vld [vmem:[#allocation17 + $0x1458] sm:$0xff]  ;;  %v16040_v14 = vcombine.low %v2461_v10, %v2465_v62  ;;  %v5841_v4 = vsel %vm5821_vm1, %v16096_v56, 0 }
 0x32d   :  { %6768 = vmatprep.subr.bf16.mxu1 %v16057_v1  ;;  %6736 = vmatpush2.bf16.msra.mxu0 %v15896_v57  ;;  %v2513_v61 = vld [vmem:[#allocation17 + $0x1478] sm:$0xff]  ;;  %v19436_v1 = vsub.s32 1, %v20573_v9 }
 0x32e   :  { %6737 = vmatprep.subr.bf16.mxu0 %v15889_v22  ;;  %v2453_v33 = vld [vmem:[#allocation17 + $0x1298] sm:$0xff]  ;;  %v16089_v20 = vcombine.high %v2509_v0, %v2513_v61 }
 0x32f   :  { %v2457_v29 = vld [vmem:[#allocation17 + $0x12b8] sm:$0xff] }
 0x330   :  { %6769 = vmatpush2.bf16.msra.mxu1 %v16056_v30  ;;  %v18036_v25 = vld [vmem:[#allocation9 + $0x8] sm:$0x1f]  ;;  %v567_v30 = vadd.f32 %v566_v23, %v565_v8  ;;  %v16033_v2 = vcombine.high %v2453_v33, %v2457_v29  ;;  %v16032_v8 = vcombine.low %v2453_v33, %v2457_v29  ;;  %v19452_v33 = vsub.f32 %v19410_v55, %v601_v37  ;;  %v1247_v29 = vld [vmem:[#allocation15 + $0x1e0] sm:$0xff] }
 0x331   :  { %6770 = vmatprep.subr.bf16.mxu1 %v16049_v12  ;;  %6738 = vmatpush2.bf16.msra.mxu0 %v15888_v38  ;;  %v752_v57 = vrot.slane %v18036_v25, %v19433_v43  ;;  %v19442_v22 = vld [vmem:[#allocation17 + $0x1258] sm:$0xff]  ;;  %v549_v12 = vadd.f32 %v548_v24, %v547_v11  ;;  %v17989_v38 = vpop.eup %17988  ;;  %v807_v11 = vrot.slane %v18036_v25, %v19436_v1 }
 0x332   :  { %16104 = vmatprep.subr.msk.bf16.mxu0 %vm5821_vm1, %v16097_v40  ;;  %v2449_v51 = vld [vmem:[#allocation17 + $0x1278] sm:$0xff]  ;;  %v20574_v40 = vmov 0   ;;  %v606_v53 = vmul.f32 0.125, %v567_v30 }
 0x333   :  { %v2501_v10 = vld [vmem:[#allocation17 + $0x1418] sm:$0xff]  ;;  %v790_v56 = vmul.f32 %v752_v57, %v735_v58  ;;  %v737_v58 = vmul.f32 %v17989_v38, %v19346_v47  ;;  %v579_v57 = vadd.f32 %v578_v16, %v577_v5  ;;  %v623_v5 = vmul.f32 %v19452_v33, %v19452_v33 }
 0x334   :  { %6771 = vmatpush2.bf16.msra.mxu1 %v16048_v18  ;;  %v2505_v62 = vld [vmem:[#allocation17 + $0x1438] sm:$0xff]  ;;  %v6454_v13 = vpop.f32.mrf.mxu0  ;;  %6740 = vmatmul.mubr.bf16.vlgmr.msra.gmra.mxu0 %v19154_v44  ;;  %v16088_v18 = vcombine.low %v2509_v0, %v2513_v61  ;;  %v1243_v61 = vld [vmem:[#allocation15 + $0x1c0] sm:$0xff] }
 0x335   :  { %6772 = vmatprep.subr.bf16.mxu1 %v16041_v41  ;;  %v6455_v23 = vadd.f32 %v6454_v13, %v19339_v52  ;;  %6800 = vmatpush1.bf16.msra.mxu0 %v5841_v4  ;;  %v16025_v41 = vcombine.high %v19442_v22, %v2449_v51  ;;  %v19449_v9 = vld [vmem:[#allocation17 + $0x1218] sm:$0xff]  ;;  %v16081_v44 = vcombine.high %v2501_v10, %v2505_v62  ;;  %v603_v52 = vmul.f32 0.125, %v549_v12 }
 0x336   :  { %6821 = vmatprep.mubr.bf16.mxu0 %v20574_v40  ;;  %v6456_v24 = vpop.f32.mrf.mxu0  ;;  %6801 = vmatprep.subr.bf16.mxu0 %v16089_v20  ;;  %v2441_v15 = vld [vmem:[#allocation17 + $0x1238] sm:$0xff]  ;;  %v16024_v4 = vcombine.low %v19442_v22, %v2449_v51  ;;  %v16080_v37 = vcombine.low %v2501_v10, %v2505_v62  ;;  %v845_v12 = vadd.f32 %v807_v11, %v790_v56  ;;  %v1235_v22 = vld [vmem:[#allocation15 + $0x180] sm:$0xff] }
 0x337   :  { %v6457_v0 = vadd.f32 %v6456_v24, %v19341_v45  ;;  %v16017_v55 = vcombine.high %v19449_v9, %v2441_v15  ;;  %v16163_v38 = vcombine.high %v1243_v61, %v1247_v29  ;;  %v1239_v51 = vld [vmem:[#allocation15 + $0x1a0] sm:$0xff]  ;;  %v19468_v62 = vsub.f32 %v19420_v6, %v603_v52 }
 0x338   :  { %6773 = vmatpush2.bf16.msra.mxu1 %v16040_v14  ;;  %v18037_v14 = vld [vmem:[#allocation9 + $0x18] sm:$0x1f]  ;;  %v6458_v30 = vpop.f32.mrf.mxu0  ;;  %v16162_v11 = vcombine.low %v1243_v61, %v1247_v29  ;;  %v634_v6 = vrot.slane %v623_v5, 4 }
 0x339   :  { %6774 = vmatprep.subr.bf16.mxu1 %v16033_v2  ;;  %v760_v25 = vrot.slane %v18037_v14, %v19433_v43  ;;  %6802 = vmatpush1.bf16.msra.mxu0 %v16088_v18  ;;  %v19460_v2 = vsub.f32 %v19416_v60, %v606_v53  ;;  %v815_v10 = vrot.slane %v18037_v14, %v19436_v1  ;;  %v608_v60 = vmul.f32 0.125, %v579_v57  ;;  %v1231_v14 = vld [vmem:[#allocation15 + $0x160] sm:$0xff] }
 0x33a   :  { %v6459_v47 = vpop.f32.mrf.mxu0  ;;  %6803 = vmatprep.subr.bf16.mxu0 %v16081_v44  ;;  %v19472_v53 = vpack.c.bf16 %v845_v12, %v845_v12  ;;  %v16155_v44 = vcombine.high %v1235_v22, %v1239_v51  ;;  %v625_v61 = vmul.f32 %v19468_v62, %v19468_v62  ;;  %v1363_v57 = vld [vmem:[#allocation15 + $0x580] sm:$0xff] }
 0x33b   :  { %v6495_v20 = vpop.f32.mrf.mxu1  ;;  %v792_v13 = vmul.f32 %v760_v25, %v737_v58  ;;  %v628_v24 = vmul.f32 %v19460_v2, %v19460_v2  ;;  %v1227_v58 = vld [vmem:[#allocation15 + $0x140] sm:$0xff]  ;;  %v19480_v29 = vsub.f32 %v19426_v3, %v608_v60  ;;  %v20578_v60 = vunpack.c.l.bf16 %v20547_v35 }
 0x33c   :  { %v19462_v45 = vadd.f32 %v6495_v20, %v6455_v23  ;;  %6775 = vmatpush2.bf16.msra.mxu1 %v16032_v8  ;;  %v1371_v8 = vld [vmem:[#allocation15 + $0x5c0] sm:$0xff]  ;;  %20575 = vst [vmem:[#allocation34_spill] sm:$0xff] %v19472_v53  ;;  %v16147_v20 = vcombine.high %v1227_v58, %v1231_v14 }
 0x33d   :  { %v6497_v16 = vpop.f32.mrf.mxu1  ;;  %6776 = vmatprep.subr.bf16.mxu1 %v16025_v41  ;;  %v1375_v23 = vld [vmem:[#allocation15 + $0x5e0] sm:$0xff]  ;;  %6804 = vmatpush1.bf16.msra.mxu0 %v16080_v37  ;;  %v16016_v41 = vcombine.low %v19449_v9, %v2441_v15  ;;  %v847_v25 = vadd.f32 %v815_v10, %v792_v13  ;;  %v16154_v9 = vcombine.low %v1235_v22, %v1239_v51  ;;  %v664_v30 = vrot.slane %v628_v24, 4 }
 0x33e   :  { %v19470_v18 = vadd.f32 %v6497_v16, %v6457_v0  ;;  %10157 = vmatprep.subr.bf16.mxu0 %v16163_v38  ;;  %v16291_v0 = vcombine.high %v1371_v8, %v1375_v23  ;;  %v1367_v15 = vld [vmem:[#allocation15 + $0x5a0] sm:$0xff]  ;;  %v646_v38 = vrot.slane %v625_v61, 4  ;;  %v16146_v16 = vcombine.low %v1227_v58, %v1231_v14 }
 0x33f   :  { %v6499_v56 = vpop.f32.mrf.mxu1  ;;  %v16283_v37 = vcombine.high %v1363_v57, %v1367_v15  ;;  %v1219_v12 = vld [vmem:[#allocation15 + $0x100] sm:$0xff]  ;;  %v19485_v47 = vpack.c.bf16 %v847_v25, %v847_v25  ;;  %v20577_v13 = vunpack.c.l.bf16 %v18688_v21 }
 0x340   :  { %6777 = vmatpush2.bf16.msra.mxu1 %v16024_v4  ;;  %16105 = vmatmul.mubr.msk.bf16.vlgmr.msra.gmra.mxu0 %vm592_vm0, %v19173_v54  ;;  %v16290_v4 = vcombine.low %v1371_v8, %v1375_v23  ;;  %v1223_v3 = vld [vmem:[#allocation15 + $0x120] sm:$0xff]  ;;  %v630_v54 = vmul.f32 %v19480_v29, %v19480_v29  ;;  %v665_v23 = vadd.f32 %v664_v30, %v628_v24  ;;  %v20579_v56 = vunpack.c.h.bf16 %v18996_v39 }
 0x341   :  { %v6500_v52 = vpop.f32.mrf.mxu1  ;;  %6778 = vmatprep.subr.bf16.mxu1 %v16017_v55  ;;  %10158 = vmatpush1.bf16.msra.mxu0 %v16162_v11  ;;  %v635_v55 = vadd.f32 %v634_v6, %v623_v5  ;;  %20576 = vst [vmem:[#allocation35_spill] sm:$0xff] %v19485_v47  ;;  %v1355_v22 = vld [vmem:[#allocation15 + $0x540] sm:$0xff]  ;;  %v285_v10 = vmul.f32 %v19271_v7, %v20577_v13  ;;  %v20581_v13 = vunpack.c.l.bf16 %v20553_v63 }
 0x342   :  { %10189 = vmatprep.mubr.bf16.mxu0 %v19472_v53  ;;  %10159 = vmatprep.subr.bf16.mxu0 %v16155_v44  ;;  %v1359_v51 = vld [vmem:[#allocation15 + $0x560] sm:$0xff]  ;;  %v309_v5 = vmul.f32 %v19274_v27, %v20578_v60  ;;  %v290_v11 = vmul.f32 %v19271_v7, %v20579_v56  ;;  %v16282_v44 = vcombine.low %v1363_v57, %v1367_v15  ;;  %v676_v14 = vrot.slane %v630_v54, 4 }
 0x343   :  { %v16139_v35 = vcombine.high %v1219_v12, %v1223_v3  ;;  %v636_v6 = vrot.slane %v635_v55, 2  ;;  %v1215_v58 = vld [vmem:[#allocation15 + $0xe0] sm:$0xff]  ;;  %v647_v24 = vadd.f32 %v646_v38, %v625_v61  ;;  %v355_v57 = vmul.f32 %v19286_v50, %v20581_v13 }
 0x344   :  { %6779 = vmatpush2.bf16.msra.mxu1 %v16016_v41  ;;  %v20580_v41 = vunpack.c.h.bf16 %v18998_v32  ;;  %v1347_v25 = vld [vmem:[#allocation15 + $0x500] sm:$0xff]  ;;  %v320_v30 = vadd.f32 %v309_v5, %v285_v10  ;;  %v20582_v15 = vunpack.c.l.bf16 %v20556_v26  ;;  %v16138_v56 = vcombine.low %v1219_v12, %v1223_v3 }
 0x345   :  { %10198 = vmatprep.subr.bf16.mxu1 %v16291_v0  ;;  %10160 = vmatpush1.bf16.msra.mxu0 %v16154_v9  ;;  %v16275_v0 = vcombine.high %v1355_v22, %v1359_v51  ;;  %v1351_v9 = vld [vmem:[#allocation15 + $0x520] sm:$0xff]  ;;  %v666_v61 = vrot.slane %v665_v23, 2  ;;  %v16274_v63 = vcombine.low %v1355_v22, %v1359_v51  ;;  %v637_v13 = vadd.f32 %v636_v6, %v635_v55 }
 0x346   :  { %v314_v21 = vmul.f32 %v19274_v27, %v20580_v41  ;;  %10161 = vmatprep.subr.bf16.mxu0 %v16147_v20  ;;  %v20583_v20 = vunpack.c.l.bf16 %v20558_v42  ;;  %v20584_v41 = vunpack.c.h.bf16 %v19011_v46  ;;  %v19519_v26 = vld [vmem:[#allocation15 + $0x4c0] sm:$0xff]  ;;  %v16267_v42 = vcombine.high %v1347_v25, %v1351_v9 }
 0x347   :  { %v19495_v8 = vpop.f32.mrf.mxu1  ;;  %6781 = vmatmul.mubr.bf16.vlgmr.msra.gmra.mxu1 %v19187_v31  ;;  %v1211_v31 = vld [vmem:[#allocation15 + $0xc0] sm:$0xff]  ;;  %v648_v12 = vrot.slane %v647_v24, 2  ;;  %v677_v3 = vadd.f32 %v676_v14, %v630_v54  ;;  %v20586_v22 = vunpack.c.l.bf16 %v20564_v17  ;;  %v16266_v54 = vcombine.low %v1347_v25, %v1351_v9 }
 0x348   :  { %10199 = vmatpush1.bf16.msra.mxu1 %v16290_v4  ;;  %10230 = vmatprep.mubr.bf16.mxu1 %v19485_v47  ;;  %v287_v4 = vmul.f32 %v19271_v7, %v20582_v15  ;;  %v325_v38 = vadd.f32 %v314_v21, %v290_v11  ;;  %v360_v10 = vmul.f32 %v19286_v50, %v20584_v41  ;;  %v20585_v21 = vunpack.c.l.bf16 %v20561_v59  ;;  %v1335_v17 = vld [vmem:[#allocation15 + $0x4a0] sm:$0xff] }
 0x349   :  { %v19504_v52 = vpop.f32.mrf.mxu1  ;;  %10200 = vmatprep.subr.bf16.mxu1 %v16283_v37  ;;  %v311_v37 = vmul.f32 %v19274_v27, %v20583_v20  ;;  %10162 = vmatpush1.bf16.msra.mxu0 %v16146_v16  ;;  %v16131_v5 = vcombine.high %v1211_v31, %v1215_v58  ;;  %v1343_v20 = vld [vmem:[#allocation15 + $0x4e0] sm:$0xff]  ;;  %v366_v11 = vadd.f32 %v355_v57, %v320_v30  ;;  %v638_v57 = vrot.slane %v637_v13, 1 }
 0x34a   :  { %10163 = vmatprep.subr.bf16.mxu0 %v16139_v35  ;;  %v1207_v16 = vld [vmem:[#allocation15 + $0xa0] sm:$0xff]  ;;  %v401_v41 = vmul.f32 %v19293_v19, %v20585_v21  ;;  %v357_v51 = vmul.f32 %v19286_v50, %v20586_v22  ;;  %v16130_v55 = vcombine.low %v1211_v31, %v1215_v58  ;;  %v667_v35 = vadd.f32 %v666_v61, %v665_v23 }
 0x34b   :  { %v6581_v60 = vpop.f32.mrf.mxu1  ;;  %v371_v6 = vadd.f32 %v360_v10, %v325_v38  ;;  %v16259_v59 = vcombine.high %v19519_v26, %v1343_v20  ;;  %v1331_v30 = vld [vmem:[#allocation15 + $0x480] sm:$0xff]  ;;  %v678_v31 = vrot.slane %v677_v3, 2  ;;  %v20591_v10 = vunpack.c.l.bf16 %v20566_v36 }
 0x34c   :  { %10201 = vmatpush1.bf16.msra.mxu1 %v16282_v44  ;;  %v1203_v60 = vld [vmem:[#allocation15 + $0x80] sm:$0xff]  ;;  %v322_v44 = vadd.f32 %v311_v37, %v287_v4  ;;  %v412_v9 = vadd.f32 %v401_v41, %v366_v11  ;;  %v16258_v11 = vcombine.low %v19519_v26, %v1343_v20  ;;  %v16251_v36 = vcombine.high %v1331_v30, %v1335_v17 }
 0x34d   :  { %v6582_v15 = vpop.f32.mrf.mxu1  ;;  %10202 = vmatprep.subr.bf16.mxu1 %v16275_v0  ;;  %10164 = vmatpush1.bf16.msra.mxu0 %v16138_v56  ;;  %v20587_v0 = vunpack.c.h.bf16 %v19026_v28  ;;  %v16123_v14 = vcombine.high %v1203_v60, %v1207_v16  ;;  %v1195_v4 = vld [vmem:[#allocation15 + $0x40] sm:$0xff]  ;;  %v649_v56 = vadd.f32 %v648_v12, %v647_v24  ;;  %v16122_v24 = vcombine.low %v1203_v60, %v1207_v16 }
 0x34e   :  { %10165 = vmatprep.subr.bf16.mxu0 %v16131_v5  ;;  %v1199_v37 = vld [vmem:[#allocation15 + $0x60] sm:$0xff]  ;;  %v368_v5 = vadd.f32 %v357_v51, %v322_v44  ;;  %v668_v12 = vrot.slane %v667_v35, 1 }
 0x34f   :  { %v406_v15 = vmul.f32 %v19293_v19, %v20587_v0  ;;  %v20588_v23 = vld [vmem:[#allocation44_spill] sm:$0xff]  ;;  %v20593_v0 = vunpack.c.h.bf16 %v19040_v34  ;;  %v16115_v41 = vcombine.high %v1195_v4, %v1199_v37 }
 0x350   :  { %10203 = vmatpush1.bf16.msra.mxu1 %v16274_v63  ;;  %v20589_v58 = vunpack.c.l.bf16 %v20588_v23  ;;  %v20590_v38 = vunpack.c.h.bf16 %v20588_v23  ;;  %v447_v63 = vmul.f32 %v19305_v49, %v20591_v10  ;;  %v1187_v44 = vld [vmem:[#allocation15] sm:$0xff]  ;;  %v650_v10 = vrot.slane %v649_v56, 1 }
 0x351   :  { %10204 = vmatprep.subr.bf16.mxu1 %v16267_v42  ;;  %v20592_v42 = vunpack.c.l.bf16 %v20569_v48  ;;  %10166 = vmatpush1.bf16.msra.mxu0 %v16130_v55  ;;  %v417_v22 = vadd.f32 %v406_v15, %v371_v6  ;;  %v452_v23 = vmul.f32 %v19305_v49, %v20593_v0  ;;  %v1191_v51 = vld [vmem:[#allocation15 + $0x20] sm:$0xff]  ;;  %v639_v48 = vadd.f32 %v638_v57, %v637_v13  ;;  %v20596_v0 = vld [vmem:[#allocation43_spill] sm:$0xff] }
 0x352   :  { %v291_v61 = vmul.f32 %v19271_v7, %v20589_v58  ;;  %v315_v25 = vmul.f32 %v19274_v27, %v20590_v38  ;;  %10167 = vmatprep.subr.bf16.mxu0 %v16123_v14  ;;  %v679_v58 = vadd.f32 %v678_v31, %v677_v3  ;;  %v20594_v55 = vld [vmem:[#allocation45_spill] sm:$0xff]  ;;  %v20597_v26 = vunpack.c.l.bf16 %v20596_v0 }
 0x353   :  { %v403_v21 = vmul.f32 %v19293_v19, %v20592_v42  ;;  %v20595_v60 = vunpack.c.l.bf16 %v20594_v55  ;;  %v1323_v6 = vld [vmem:[#allocation15 + $0x440] sm:$0xff]  ;;  %v458_v42 = vadd.f32 %v447_v63, %v412_v9  ;;  %v669_v14 = vadd.f32 %v668_v12, %v667_v35  ;;  %v20599_v35 = vld [vmem:[#allocation51_spill] sm:$0xff] }
 0x354   :  { %10205 = vmatpush1.bf16.msra.mxu1 %v16266_v54  ;;  %v326_v38 = vadd.f32 %v315_v25, %v291_v61  ;;  %v1327_v15 = vld [vmem:[#allocation15 + $0x460] sm:$0xff]  ;;  %v449_v20 = vmul.f32 %v19305_v49, %v20597_v26  ;;  %v463_v47 = vadd.f32 %v452_v23, %v417_v22  ;;  %v16250_v13 = vcombine.low %v1331_v30, %v1335_v17 }
 0x355   :  { %10206 = vmatprep.subr.bf16.mxu1 %v16259_v59  ;;  %v361_v16 = vmul.f32 %v19286_v50, %v20595_v60  ;;  %v414_v54 = vadd.f32 %v403_v21, %v368_v5  ;;  %10168 = vmatpush1.bf16.msra.mxu0 %v16122_v24  ;;  %v16114_v59 = vcombine.low %v1195_v4, %v1199_v37  ;;  %v1307_v31 = vld [vmem:[#allocation15 + $0x3c0] sm:$0xff]  ;;  %v680_v25 = vrot.slane %v679_v58, 1 }
 0x356   :  { %10169 = vmatprep.subr.bf16.mxu0 %v16115_v41  ;;  %v16107_v3 = vcombine.high %v1187_v44, %v1191_v51  ;;  %v16243_v57 = vcombine.high %v1323_v6, %v1327_v15  ;;  %v1311_v61 = vld [vmem:[#allocation15 + $0x3e0] sm:$0xff]  ;;  %v20598_v9 = vunpack.c.h.bf16 %v20594_v55  ;;  %v701_v24 = vmul.f32 0.125, %v639_v48  ;;  %v20600_v55 = vld [vmem:[#allocation46_spill] sm:$0xff] }
 0x357   :  { %v372_v60 = vadd.f32 %v361_v16, %v326_v38  ;;  %v1315_v5 = vld [vmem:[#allocation15 + $0x400] sm:$0xff]  ;;  %v651_v4 = vadd.f32 %v650_v10, %v649_v56  ;;  %v19557_v37 = vadd.f32 %v20599_v35, %v458_v42  ;;  %v460_v30 = vadd.f32 %v449_v20, %v414_v54 }
 0x358   :  { %10207 = vmatpush1.bf16.msra.mxu1 %v16258_v11  ;;  %v407_v63 = vmul.f32 %v19293_v19, %v20598_v9  ;;  %v1319_v21 = vld [vmem:[#allocation15 + $0x420] sm:$0xff]  ;;  %v16106_v17 = vcombine.low %v1187_v44, %v1191_v51  ;;  %v706_v12 = vmul.f32 0.125, %v669_v14  ;;  %v19560_v22 = vadd.f32 %v20599_v35, %v463_v47 }
 0x359   :  { %10208 = vmatprep.subr.bf16.mxu1 %v16251_v36  ;;  %10170 = vmatpush1.bf16.msra.mxu0 %v16114_v59  ;;  %v16242_v23 = vcombine.low %v1323_v6, %v1327_v15  ;;  %v16227_v11 = vcombine.high %v1307_v31, %v1311_v61  ;;  %v16235_v36 = vcombine.high %v1315_v5, %v1319_v21  ;;  %v1299_v41 = vld [vmem:[#allocation15 + $0x380] sm:$0xff]  ;;  %v20601_v16 = vunpack.c.l.bf16 %v20600_v55 }
 0x35a   :  { %10171 = vmatprep.subr.bf16.mxu0 %v16107_v3  ;;  %v1303_v38 = vld [vmem:[#allocation15 + $0x3a0] sm:$0xff]  ;;  %v681_v48 = vadd.f32 %v680_v25, %v679_v58  ;;  %v418_v56 = vadd.f32 %v407_v63, %v372_v60  ;;  %v712_v51 = vadd.f32 1e-05, %v701_v24  ;;  %v703_v54 = vmul.f32 0.125, %v651_v4 }
 0x35b   :  { %v453_v10 = vmul.f32 %v19305_v49, %v20601_v16  ;;  %v1435_v42 = vld [vmem:[#allocation15 + $0x7c0] sm:$0xff]  ;;  %v556_v47 = vrot.slane %v19557_v37, 4  ;;  %v19567_v6 = vadd.f32 %v20599_v35, %v460_v30  ;;  %v16226_v15 = vcombine.low %v1307_v31, %v1311_v61 }
 0x35c   :  { %10209 = vmatpush1.bf16.msra.mxu1 %v16250_v13  ;;  %v1439_v44 = vld [vmem:[#allocation15 + $0x7e0] sm:$0xff]  ;;  %v717_v0 = vadd.f32 1e-05, %v706_v12  ;;  %v586_v26 = vrot.slane %v19560_v22, 4  ;;  %v16234_v58 = vcombine.low %v1315_v5, %v1319_v21  ;;  %v16219_v20 = vcombine.high %v1299_v41, %v1303_v38 }
 0x35d   :  { %10210 = vmatprep.subr.bf16.mxu1 %v16243_v57  ;;  %10172 = vmatpush1.bf16.msra.mxu0 %v16106_v17  ;;  %v16355_v59 = vcombine.high %v1435_v42, %v1439_v44  ;;  %v1291_v14 = vld [vmem:[#allocation15 + $0x340] sm:$0xff]  ;;  %v708_v3 = vmul.f32 0.125, %v681_v48  ;;  %v464_v57 = vadd.f32 %v453_v10, %v418_v56  ;;  %17990 = vrsqrt.f32 %v712_v51 }
 0x35e   :  { %10173 = vmatprep.subr.bf16.mxu0 %v16227_v11  ;;  %v1295_v13 = vld [vmem:[#allocation15 + $0x360] sm:$0xff]  ;;  %v714_v9 = vadd.f32 1e-05, %v703_v54  ;;  %v557_v63 = vadd.f32 %v556_v47, %v19557_v37  ;;  %v568_v31 = vrot.slane %v19567_v6, 4  ;;  %v16218_v61 = vcombine.low %v1299_v41, %v1303_v38 }
 0x35f   :  { %v1427_v25 = vld [vmem:[#allocation15 + $0x780] sm:$0xff]  ;;  %17992 = vrsqrt.f32 %v717_v0  ;;  %v587_v5 = vadd.f32 %v586_v26, %v19560_v22  ;;  %v16354_v21 = vcombine.low %v1435_v42, %v1439_v44  ;;  %v16211_v24 = vcombine.high %v1291_v14, %v1295_v13 }
 0x360   :  { %10211 = vmatpush1.bf16.msra.mxu1 %v16242_v23  ;;  %v1431_v60 = vld [vmem:[#allocation15 + $0x7a0] sm:$0xff]  ;;  %v719_v12 = vadd.f32 1e-05, %v708_v3  ;;  %v19574_v23 = vadd.f32 %v20599_v35, %v464_v57  ;;  %17994 = vrsqrt.f32 %v714_v9  ;;  %v558_v48 = vrot.slane %v557_v63, 2 }
 0x361   :  { %10212 = vmatprep.subr.bf16.mxu1 %v16235_v36  ;;  %10174 = vmatpush2.bf16.msra.mxu0 %v16226_v15  ;;  %v16347_v4 = vcombine.high %v1427_v25, %v1431_v60  ;;  %v1283_v30 = vld [vmem:[#allocation15 + $0x300] sm:$0xff]  ;;  %v569_v41 = vadd.f32 %v568_v31, %v19567_v6  ;;  %v16210_v38 = vcombine.low %v1291_v14, %v1295_v13  ;;  %v588_v56 = vrot.slane %v587_v5, 2 }
 0x362   :  { %10175 = vmatprep.subr.bf16.mxu0 %v16219_v20  ;;  %v1287_v17 = vld [vmem:[#allocation15 + $0x320] sm:$0xff]  ;;  %v16346_v55 = vcombine.low %v1427_v25, %v1431_v60  ;;  %17996 = vrsqrt.f32 %v719_v12  ;;  %v593_v51 = vsel %vm592_vm0, %v19574_v23, 0.0  ;;  %v559_v15 = vadd.f32 %v558_v48, %v557_v63 }
 0x363   :  { %v1419_v11 = vld [vmem:[#allocation15 + $0x740] sm:$0xff]  ;;  %v16203_v16 = vcombine.high %v1283_v30, %v1287_v17  ;;  %v570_v0 = vrot.slane %v569_v41, 2  ;;  %v16202_v26 = vcombine.low %v1283_v30, %v1287_v17  ;;  %v594_v14 = vrot.slane %v593_v51, 4 }
 0x364   :  { %10213 = vmatpush1.bf16.msra.mxu1 %v16234_v58  ;;  %v1423_v36 = vld [vmem:[#allocation15 + $0x760] sm:$0xff]  ;;  %v589_v58 = vadd.f32 %v588_v56, %v587_v5  ;;  %v560_v9 = vrot.slane %v559_v15, 1 }
 0x365   :  { %10214 = vmatprep.subr.bf16.mxu1 %v16355_v59  ;;  %10176 = vmatpush2.bf16.msra.mxu0 %v16218_v61  ;;  %v16339_v10 = vcombine.high %v1419_v11, %v1423_v36  ;;  %v1275_v42 = vld [vmem:[#allocation15 + $0x2c0] sm:$0xff]  ;;  %v16338_v20 = vcombine.low %v1419_v11, %v1423_v36  ;;  %v571_v31 = vadd.f32 %v570_v0, %v569_v41  ;;  %v18039_v0 = vld [vmem:[#allocation9 + $0x28] sm:$0x1f] }
 0x366   :  { %10177 = vmatprep.subr.bf16.mxu0 %v16211_v24  ;;  %v1279_v44 = vld [vmem:[#allocation15 + $0x2e0] sm:$0xff]  ;;  %v595_v17 = vadd.f32 %v594_v14, %v593_v51 }
 0x367   :  { %v1411_v54 = vld [vmem:[#allocation15 + $0x700] sm:$0xff]  ;;  %v16195_v59 = vcombine.high %v1275_v42, %v1279_v44  ;;  %v16194_v63 = vcombine.low %v1275_v42, %v1279_v44  ;;  %v561_v42 = vadd.f32 %v560_v9, %v559_v15  ;;  %v572_v44 = vrot.slane %v571_v31, 1 }
 0x368   :  { %10215 = vmatpush2.bf16.msra.mxu1 %v16354_v21  ;;  %v1415_v47 = vld [vmem:[#allocation15 + $0x720] sm:$0xff]  ;;  %v590_v21 = vrot.slane %v589_v58, 1  ;;  %v596_v15 = vrot.slane %v595_v17, 2 }
 0x369   :  { %10216 = vmatprep.subr.bf16.mxu1 %v16347_v4  ;;  %10178 = vmatpush2.bf16.msra.mxu0 %v16210_v38  ;;  %v16331_v13 = vcombine.high %v1411_v54, %v1415_v47  ;;  %v1267_v3 = vld [vmem:[#allocation15 + $0x280] sm:$0xff]  ;;  %v16330_v5 = vcombine.low %v1411_v54, %v1415_v47 }
 0x36a   :  { %10179 = vmatprep.subr.bf16.mxu0 %v16203_v16  ;;  %v1271_v57 = vld [vmem:[#allocation15 + $0x2a0] sm:$0xff]  ;;  %v17991_v61 = vpop.eup %17990  ;;  %v18038_v16 = vld [vmem:[#allocation9] sm:$0x1f]  ;;  %v597_v53 = vadd.f32 %v596_v15, %v595_v17 }
 0x36b   :  { %v1403_v25 = vld [vmem:[#allocation15 + $0x6c0] sm:$0xff]  ;;  %v16187_v4 = vcombine.high %v1267_v3, %v1271_v57  ;;  %v16186_v51 = vcombine.low %v1267_v3, %v1271_v57 }
 0x36c   :  { %10217 = vmatpush2.bf16.msra.mxu1 %v16346_v55  ;;  %v1407_v60 = vld [vmem:[#allocation15 + $0x6e0] sm:$0xff]  ;;  %v17993_v24 = vpop.eup %17992  ;;  %v734_v55 = vmul.f32 %v17991_v61, %v19452_v33 }
 0x36d   :  { %10218 = vmatprep.subr.bf16.mxu1 %v16339_v10  ;;  %10180 = vmatpush2.bf16.msra.mxu0 %v16202_v26  ;;  %v19579_v30 = vld [vmem:[#allocation15 + $0x680] sm:$0xff]  ;;  %v16322_v12 = vcombine.low %v1403_v25, %v1407_v60  ;;  %v16323_v11 = vcombine.high %v1403_v25, %v1407_v60  ;;  %v748_v10 = vrot.slane %v18038_v16, %v19433_v43  ;;  %v17995_v54 = vpop.eup %17994 }
 0x36e   :  { %10181 = vmatprep.subr.bf16.mxu0 %v16195_v59  ;;  %v19581_v36 = vld [vmem:[#allocation15 + $0x6a0] sm:$0xff]  ;;  %v739_v47 = vmul.f32 %v17993_v24, %v19460_v2  ;;  %v768_v26 = vrot.slane %v18039_v0, %v19433_v43  ;;  %v803_v25 = vrot.slane %v18038_v16, %v19436_v1  ;;  %v605_v24 = vmul.f32 0.125, %v561_v42  ;;  %v18041_v42 = vld [vmem:[#allocation9 + $0x38] sm:$0x1f] }
 0x36f   :  { %v1259_v48 = vld [vmem:[#allocation15 + $0x240] sm:$0xff]  ;;  %v16314_v59 = vcombine.low %v19579_v30, %v19581_v36  ;;  %v16315_v33 = vcombine.high %v19579_v30, %v19581_v36  ;;  %v17997_v9 = vpop.eup %17996 }
 0x370   :  { %10219 = vmatpush2.bf16.msra.mxu1 %v16338_v20  ;;  %v1263_v38 = vld [vmem:[#allocation15 + $0x260] sm:$0xff]  ;;  %v591_v20 = vadd.f32 %v590_v21, %v589_v58  ;;  %v736_v21 = vmul.f32 %v17995_v54, %v19468_v62  ;;  %v794_v30 = vmul.f32 %v768_v26, %v739_v47  ;;  %v19610_v26 = vsub.f32 %v19557_v37, %v605_v24 }
 0x371   :  { %10220 = vmatprep.subr.bf16.mxu1 %v16331_v13  ;;  %v19583_v41 = vld [vmem:[#allocation15 + $0x640] sm:$0xff]  ;;  %10182 = vmatpush2.bf16.msra.mxu0 %v16194_v63  ;;  %v16179_v14 = vcombine.high %v1259_v48, %v1263_v38  ;;  %v16178_v13 = vcombine.low %v1259_v48, %v1263_v38  ;;  %v789_v63 = vmul.f32 %v748_v10, %v734_v55 }
 0x372   :  { %v19585_v56 = vld [vmem:[#allocation15 + $0x660] sm:$0xff]  ;;  %10183 = vmatprep.subr.bf16.mxu0 %v16187_v4  ;;  %v610_v36 = vmul.f32 0.125, %v591_v20 }
 0x373   :  { %v16307_v3 = vcombine.high %v19583_v41, %v19585_v56  ;;  %v1251_v2 = vld [vmem:[#allocation15 + $0x200] sm:$0xff]  ;;  %v844_v47 = vadd.f32 %v803_v25, %v789_v63 }
 0x374   :  { %10221 = vmatpush2.bf16.msra.mxu1 %v16330_v5  ;;  %v1255_v57 = vld [vmem:[#allocation15 + $0x220] sm:$0xff]  ;;  %v6536_v61 = vpop.f32.mrf.mxu0  ;;  %v573_v5 = vadd.f32 %v572_v44, %v571_v31  ;;  %v741_v31 = vmul.f32 %v17997_v9, %v19480_v29  ;;  %v19613_v29 = vsub.f32 %v19560_v22, %v610_v36 }
 0x375   :  { %10222 = vmatprep.subr.bf16.mxu1 %v16323_v11  ;;  %v18040_v58 = vld [vmem:[#allocation9 + $0x10] sm:$0x1f]  ;;  %v6537_v4 = vadd.f32 %v6536_v61, %v19462_v45  ;;  %10184 = vmatpush2.bf16.msra.mxu0 %v16186_v51  ;;  %v823_v11 = vrot.slane %v18039_v0, %v19436_v1  ;;  %v16170_v38 = vcombine.low %v1251_v2, %v1255_v57 }
 0x376   :  { %v756_v60 = vrot.slane %v18040_v58, %v19433_v43  ;;  %v6538_v48 = vpop.f32.mrf.mxu0  ;;  %10185 = vmatprep.subr.bf16.mxu0 %v16179_v14  ;;  %v16171_v16 = vcombine.high %v1251_v2, %v1255_v57  ;;  %v1499_v10 = vld [vmem:[#allocation15 + $0x9c0] sm:$0xff]  ;;  %v776_v45 = vrot.slane %v18041_v42, %v19433_v43  ;;  %v811_v17 = vrot.slane %v18040_v58, %v19436_v1 }
 0x377   :  { %v6539_v55 = vadd.f32 %v6538_v48, %v19470_v18  ;;  %v1503_v62 = vld [vmem:[#allocation15 + $0x9e0] sm:$0xff]  ;;  %v19606_v44 = vadd.f32 %v19495_v8, %v6537_v4  ;;  %v849_v18 = vadd.f32 %v823_v11, %v794_v30  ;;  %v607_v20 = vmul.f32 0.125, %v573_v5 }
 0x378   :  { %10223 = vmatpush2.bf16.msra.mxu1 %v16322_v12  ;;  %v6540_v54 = vpop.f32.mrf.mxu0  ;;  %v1379_v12 = vld [vmem:[#allocation15 + $0x600] sm:$0xff]  ;;  %v791_v0 = vmul.f32 %v756_v60, %v736_v21  ;;  %v16306_v8 = vcombine.low %v19583_v41, %v19585_v56  ;;  %v16419_v15 = vcombine.high %v1499_v10, %v1503_v62  ;;  %v598_v2 = vrot.slane %v597_v53, 1 }
 0x379   :  { %10224 = vmatprep.subr.bf16.mxu1 %v16315_v33  ;;  %v1383_v51 = vld [vmem:[#allocation15 + $0x620] sm:$0xff]  ;;  %10186 = vmatpush2.bf16.msra.mxu0 %v16178_v13  ;;  %v19616_v33 = vadd.f32 %v19504_v52, %v6539_v55  ;;  %v796_v25 = vmul.f32 %v776_v45, %v741_v31  ;;  %v831_v58 = vrot.slane %v18041_v42, %v19436_v1 }
 0x37a   :  { %v6541_v14 = vpop.f32.mrf.mxu0  ;;  %10187 = vmatprep.subr.bf16.mxu0 %v16171_v16  ;;  %v16299_v37 = vcombine.high %v1379_v12, %v1383_v51  ;;  %v1491_v57 = vld [vmem:[#allocation15 + $0x980] sm:$0xff]  ;;  %v19621_v22 = vpack.c.bf16 %v844_v47, %v844_v47  ;;  %v16418_v60 = vcombine.low %v1499_v10, %v1503_v62  ;;  %v846_v41 = vadd.f32 %v811_v17, %v791_v0 }
 0x37b   :  { %v1495_v13 = vld [vmem:[#allocation15 + $0x9a0] sm:$0xff]  ;;  %v19625_v56 = vpack.c.bf16 %v849_v18, %v849_v18  ;;  %v632_v61 = vmul.f32 %v19613_v29, %v19613_v29  ;;  %v16298_v63 = vcombine.low %v1379_v12, %v1383_v51  ;;  %v599_v24 = vadd.f32 %v598_v2, %v597_v53 }
 0x37c   :  { %10225 = vmatpush2.bf16.msra.mxu1 %v16314_v59  ;;  %v1627_v52 = vld [vmem:[#allocation15 + $0xdc0] sm:$0xff]  ;;  %v627_v59 = vmul.f32 %v19610_v26, %v19610_v26  ;;  %v16411_v21 = vcombine.high %v1491_v57, %v1495_v13  ;;  %v851_v11 = vadd.f32 %v831_v58, %v796_v25  ;;  %v16410_v16 = vcombine.low %v1491_v57, %v1495_v13 }
 0x37d   :  { %10226 = vmatprep.subr.bf16.mxu1 %v16307_v3  ;;  %v1631_v9 = vld [vmem:[#allocation15 + $0xde0] sm:$0xff]  ;;  %10188 = vmatpush2.bf16.msra.mxu0 %v16170_v38  ;;  %v19628_v3 = vsub.f32 %v19567_v6, %v607_v20  ;;  %v19633_v6 = vpack.c.bf16 %v846_v41, %v846_v41  ;;  %v688_v53 = vrot.slane %v632_v61, 4  ;;  %v611_v31 = vmul.f32 0.125, %v599_v24 }
 0x37e   :  { %10239 = vmatprep.subr.bf16.mxu0 %v16419_v15  ;;  %v16547_v5 = vcombine.high %v1627_v52, %v1631_v9  ;;  %v1483_v4 = vld [vmem:[#allocation15 + $0x940] sm:$0xff]  ;;  %v658_v38 = vrot.slane %v627_v59, 4  ;;  %v16546_v10 = vcombine.low %v1627_v52, %v1631_v9  ;;  %v19638_v12 = vpack.c.bf16 %v851_v11, %v851_v11 }
 0x37f   :  { %v1487_v30 = vld [vmem:[#allocation15 + $0x960] sm:$0xff]  ;;  %v629_v55 = vmul.f32 %v19628_v3, %v19628_v3  ;;  %v20602_v17 = vunpack.c.l.bf16 %v18996_v39  ;;  %v20603_v20 = vunpack.c.l.bf16 %v18998_v32  ;;  %v19650_v39 = vsub.f32 %v19574_v23, %v611_v31 }
 0x380   :  { %10227 = vmatpush2.bf16.msra.mxu1 %v16306_v8  ;;  %10190 = vmatmul.mubr.bf16.vlgmr.msra.gmra.mxu0 %v19621_v22  ;;  %v1619_v36 = vld [vmem:[#allocation15 + $0xd80] sm:$0xff]  ;;  %v16403_v62 = vcombine.high %v1483_v4, %v1487_v30  ;;  %v659_v0 = vadd.f32 %v658_v38, %v627_v59  ;;  %v16402_v15 = vcombine.low %v1483_v4, %v1487_v30  ;;  %v20604_v59 = vunpack.c.l.bf16 %v19011_v46 }
 0x381   :  { %10228 = vmatprep.subr.bf16.mxu1 %v16299_v37  ;;  %v1623_v48 = vld [vmem:[#allocation15 + $0xda0] sm:$0xff]  ;;  %10240 = vmatpush1.bf16.msra.mxu0 %v16418_v60  ;;  %v289_v18 = vmul.f32 %v19271_v7, %v20602_v17  ;;  %v313_v8 = vmul.f32 %v19274_v27, %v20603_v20  ;;  %v670_v2 = vrot.slane %v629_v55, 4  ;;  %v689_v37 = vadd.f32 %v688_v53, %v632_v61 }
 0x382   :  { %10271 = vmatprep.mubr.bf16.mxu0 %v19625_v56  ;;  %10241 = vmatprep.subr.bf16.mxu0 %v16411_v21  ;;  %v16539_v42 = vcombine.high %v1619_v36, %v1623_v48  ;;  %v1475_v45 = vld [vmem:[#allocation15 + $0x900] sm:$0xff]  ;;  %v16538_v57 = vcombine.low %v1619_v36, %v1623_v48  ;;  %v660_v52 = vrot.slane %v659_v0, 2  ;;  %v359_v41 = vmul.f32 %v19286_v50, %v20604_v59 }
 0x383   :  { %v1479_v54 = vld [vmem:[#allocation15 + $0x920] sm:$0xff]  ;;  %v324_v9 = vadd.f32 %v313_v8, %v289_v18  ;;  %v690_v21 = vrot.slane %v689_v37, 2  ;;  %v633_v4 = vmul.f32 %v19650_v39, %v19650_v39  ;;  %v20605_v53 = vunpack.c.l.bf16 %v19026_v28 }
 0x384   :  { %10229 = vmatpush2.bf16.msra.mxu1 %v16298_v63  ;;  %v1611_v51 = vld [vmem:[#allocation15 + $0xd40] sm:$0xff]  ;;  %v16395_v13 = vcombine.high %v1475_v45, %v1479_v54  ;;  %v16394_v23 = vcombine.low %v1475_v45, %v1479_v54  ;;  %v671_v63 = vadd.f32 %v670_v2, %v629_v55  ;;  %v661_v50 = vadd.f32 %v660_v52, %v659_v0 }
 0x385   :  { %10280 = vmatprep.subr.bf16.mxu1 %v16547_v5  ;;  %v1615_v47 = vld [vmem:[#allocation15 + $0xd60] sm:$0xff]  ;;  %10242 = vmatpush1.bf16.msra.mxu0 %v16410_v16  ;;  %v370_v16 = vadd.f32 %v359_v41, %v324_v9  ;;  %v405_v55 = vmul.f32 %v19293_v19, %v20605_v53  ;;  %v691_v31 = vadd.f32 %v690_v21, %v689_v37  ;;  %v694_v54 = vsel %vm592_vm0, %v633_v4, 0.0 }
 0x386   :  { %10243 = vmatprep.subr.bf16.mxu0 %v16403_v62  ;;  %v16531_v32 = vcombine.high %v1611_v51, %v1615_v47  ;;  %v1467_v27 = vld [vmem:[#allocation15 + $0x8c0] sm:$0xff]  ;;  %v16530_v24 = vcombine.low %v1611_v51, %v1615_v47  ;;  %v672_v62 = vrot.slane %v671_v63, 2  ;;  %v662_v20 = vrot.slane %v661_v50, 1 }
 0x387   :  { %v19646_v14 = vpop.f32.mrf.mxu1  ;;  %10231 = vmatmul.mubr.bf16.vlgmr.msra.gmra.mxu1 %v19633_v6  ;;  %v1471_v25 = vld [vmem:[#allocation15 + $0x8e0] sm:$0xff]  ;;  %v416_v28 = vadd.f32 %v405_v55, %v370_v16  ;;  %v20606_v19 = vunpack.c.l.bf16 %v19040_v34  ;;  %v695_v37 = vrot.slane %v694_v54, 4 }
 0x388   :  { %10281 = vmatpush1.bf16.msra.mxu1 %v16546_v10  ;;  %10312 = vmatprep.mubr.bf16.mxu1 %v19638_v12  ;;  %v1603_v58 = vld [vmem:[#allocation15 + $0xd00] sm:$0xff]  ;;  %v16387_v5 = vcombine.high %v1467_v27, %v1471_v25  ;;  %v16386_v10 = vcombine.low %v1467_v27, %v1471_v25  ;;  %v673_v2 = vadd.f32 %v672_v62, %v671_v63 }
 0x389   :  { %v19652_v7 = vpop.f32.mrf.mxu1  ;;  %10282 = vmatprep.subr.bf16.mxu1 %v16539_v42  ;;  %v1607_v60 = vld [vmem:[#allocation15 + $0xd20] sm:$0xff]  ;;  %10244 = vmatpush1.bf16.msra.mxu0 %v16402_v15  ;;  %v451_v8 = vmul.f32 %v19305_v49, %v20606_v19  ;;  %v663_v9 = vadd.f32 %v662_v20, %v661_v50  ;;  %v696_v41 = vadd.f32 %v695_v37, %v694_v54 }
 0x38a   :  { %10245 = vmatprep.subr.bf16.mxu0 %v16395_v13  ;;  %v16523_v11 = vcombine.high %v1603_v58, %v1607_v60  ;;  %v1459_v36 = vld [vmem:[#allocation15 + $0x880] sm:$0xff]  ;;  %v16522_v42 = vcombine.low %v1603_v58, %v1607_v60  ;;  %v674_v49 = vrot.slane %v673_v2, 1 }
 0x38b   :  { %v6622_v61 = vpop.f32.mrf.mxu1  ;;  %v1463_v48 = vld [vmem:[#allocation15 + $0x8a0] sm:$0xff]  ;;  %v462_v59 = vadd.f32 %v451_v8, %v416_v28 }
 0x38c   :  { %10283 = vmatpush1.bf16.msra.mxu1 %v16538_v57  ;;  %v1595_v46 = vld [vmem:[#allocation15 + $0xcc0] sm:$0xff]  ;;  %v16379_v45 = vcombine.high %v1459_v36, %v1463_v48  ;;  %v16378_v15 = vcombine.low %v1459_v36, %v1463_v48  ;;  %v692_v57 = vrot.slane %v691_v31, 1 }
 0x38d   :  { %v6623_v30 = vpop.f32.mrf.mxu1  ;;  %10284 = vmatprep.subr.bf16.mxu1 %v16531_v32  ;;  %v1599_v38 = vld [vmem:[#allocation15 + $0xce0] sm:$0xff]  ;;  %10246 = vmatpush1.bf16.msra.mxu0 %v16394_v23  ;;  %v19668_v36 = vadd.f32 %v20599_v35, %v462_v59 }
 0x38e   :  { %10247 = vmatprep.subr.bf16.mxu0 %v16387_v5  ;;  %v16515_v51 = vcombine.high %v1595_v46, %v1599_v38  ;;  %v1451_v47 = vld [vmem:[#allocation15 + $0x840] sm:$0xff]  ;;  %v16514_v13 = vcombine.low %v1595_v46, %v1599_v38  ;;  %v693_v61 = vadd.f32 %v692_v57, %v691_v31  ;;  %v675_v46 = vadd.f32 %v674_v49, %v673_v2 }
 0x38f   :  { %v1455_v17 = vld [vmem:[#allocation15 + $0x860] sm:$0xff]  ;;  %v697_v38 = vrot.slane %v696_v41, 2  ;;  %v580_v54 = vrot.slane %v19668_v36, 4 }
 0x390   :  { %10285 = vmatpush1.bf16.msra.mxu1 %v16530_v24  ;;  %v1587_v0 = vld [vmem:[#allocation15 + $0xc80] sm:$0xff]  ;;  %v16371_v32 = vcombine.high %v1451_v47, %v1455_v17  ;;  %v16370_v34 = vcombine.low %v1451_v47, %v1455_v17  ;;  %v710_v50 = vmul.f32 0.125, %v693_v61 }
 0x391   :  { %10286 = vmatprep.subr.bf16.mxu1 %v16523_v11  ;;  %v1591_v18 = vld [vmem:[#allocation15 + $0xca0] sm:$0xff]  ;;  %10248 = vmatpush1.bf16.msra.mxu0 %v16386_v10  ;;  %v705_v11 = vmul.f32 0.125, %v663_v9  ;;  %v698_v47 = vadd.f32 %v697_v38, %v696_v41  ;;  %v581_v2 = vadd.f32 %v580_v54, %v19668_v36 }
 0x392   :  { %10249 = vmatprep.subr.bf16.mxu0 %v16379_v45  ;;  %v16507_v27 = vcombine.high %v1587_v0, %v1591_v18  ;;  %v1443_v25 = vld [vmem:[#allocation15 + $0x800] sm:$0xff]  ;;  %v16506_v23 = vcombine.low %v1587_v0, %v1591_v18  ;;  %v721_v17 = vadd.f32 1e-05, %v710_v50 }
 0x393   :  { %v1447_v58 = vld [vmem:[#allocation15 + $0x820] sm:$0xff]  ;;  %v716_v45 = vadd.f32 1e-05, %v705_v11  ;;  %v582_v59 = vrot.slane %v581_v2, 2 }
 0x394   :  { %10287 = vmatpush1.bf16.msra.mxu1 %v16522_v42  ;;  %v1579_v60 = vld [vmem:[#allocation15 + $0xc40] sm:$0xff]  ;;  %v16363_v63 = vcombine.high %v1443_v25, %v1447_v58  ;;  %v16362_v48 = vcombine.low %v1443_v25, %v1447_v58 }
 0x395   :  { %10288 = vmatprep.subr.bf16.mxu1 %v16515_v51  ;;  %v1583_v52 = vld [vmem:[#allocation15 + $0xc60] sm:$0xff]  ;;  %10250 = vmatpush1.bf16.msra.mxu0 %v16378_v15  ;;  %v707_v51 = vmul.f32 0.125, %v675_v46  ;;  %17998 = vrsqrt.f32 %v716_v45 }
 0x396   :  { %10251 = vmatprep.subr.bf16.mxu0 %v16371_v32  ;;  %v16499_v21 = vcombine.high %v1579_v60, %v1583_v52  ;;  %v1563_v24 = vld [vmem:[#allocation15 + $0xbc0] sm:$0xff]  ;;  %v16498_v16 = vcombine.low %v1579_v60, %v1583_v52  ;;  %18000 = vrsqrt.f32 %v721_v17 }
 0x397   :  { %v1567_v5 = vld [vmem:[#allocation15 + $0xbe0] sm:$0xff]  ;;  %v718_v57 = vadd.f32 1e-05, %v707_v51 }
 0x398   :  { %10289 = vmatpush1.bf16.msra.mxu1 %v16514_v13  ;;  %v1571_v4 = vld [vmem:[#allocation15 + $0xc00] sm:$0xff]  ;;  %v16483_v53 = vcombine.high %v1563_v24, %v1567_v5  ;;  %v16482_v35 = vcombine.low %v1563_v24, %v1567_v5  ;;  %v699_v13 = vrot.slane %v698_v47, 1 }
 0x399   :  { %10290 = vmatprep.subr.bf16.mxu1 %v16507_v27  ;;  %v1575_v30 = vld [vmem:[#allocation15 + $0xc20] sm:$0xff]  ;;  %10252 = vmatpush1.bf16.msra.mxu0 %v16370_v34  ;;  %18002 = vrsqrt.f32 %v718_v57 }
 0x39a   :  { %10253 = vmatprep.subr.bf16.mxu0 %v16363_v63  ;;  %v16491_v55 = vcombine.high %v1571_v4, %v1575_v30  ;;  %v1555_v10 = vld [vmem:[#allocation15 + $0xb80] sm:$0xff]  ;;  %v16490_v0 = vcombine.low %v1571_v4, %v1575_v30  ;;  %v700_v49 = vadd.f32 %v699_v13, %v698_v47  ;;  %v583_v4 = vadd.f32 %v582_v59, %v581_v2 }
 0x39b   :  { %v1559_v62 = vld [vmem:[#allocation15 + $0xba0] sm:$0xff] }
 0x39c   :  { %10291 = vmatpush1.bf16.msra.mxu1 %v16506_v23  ;;  %v1691_v31 = vld [vmem:[#allocation15 + $0xfc0] sm:$0xff]  ;;  %v16475_v18 = vcombine.high %v1555_v10, %v1559_v62  ;;  %v16474_v37 = vcombine.low %v1555_v10, %v1559_v62  ;;  %v711_v11 = vmul.f32 0.125, %v700_v49  ;;  %v584_v10 = vrot.slane %v583_v4, 1 }
 0x39d   :  { %10292 = vmatprep.subr.bf16.mxu1 %v16499_v21  ;;  %v1695_v42 = vld [vmem:[#allocation15 + $0xfe0] sm:$0xff]  ;;  %10254 = vmatpush1.bf16.msra.mxu0 %v16362_v48 }
 0x39e   :  { %10255 = vmatprep.subr.bf16.mxu0 %v16483_v53  ;;  %v16611_v20 = vcombine.high %v1691_v31, %v1695_v42  ;;  %v1547_v28 = vld [vmem:[#allocation15 + $0xb40] sm:$0xff]  ;;  %v16610_v32 = vcombine.low %v1691_v31, %v1695_v42  ;;  %v722_v42 = vadd.f32 1e-05, %v711_v11 }
 0x39f   :  { %v1551_v19 = vld [vmem:[#allocation15 + $0xb60] sm:$0xff] }
 0x3a0   :  { %10293 = vmatpush1.bf16.msra.mxu1 %v16498_v16  ;;  %v1683_v8 = vld [vmem:[#allocation15 + $0xf80] sm:$0xff]  ;;  %v16467_v27 = vcombine.high %v1547_v28, %v1551_v19  ;;  %v16466_v34 = vcombine.low %v1547_v28, %v1551_v19  ;;  %v18042_v28 = vld [vmem:[#allocation9 + $0x20] sm:$0x1f]  ;;  %18004 = vrsqrt.f32 %v722_v42 }
 0x3a1   :  { %10294 = vmatprep.subr.bf16.mxu1 %v16491_v55  ;;  %v1687_v15 = vld [vmem:[#allocation15 + $0xfa0] sm:$0xff]  ;;  %10256 = vmatpush2.bf16.msra.mxu0 %v16482_v35  ;;  %v764_v19 = vrot.slane %v18042_v28, %v19433_v43  ;;  %v819_v49 = vrot.slane %v18042_v28, %v19436_v1 }
 0x3a2   :  { %10257 = vmatprep.subr.bf16.mxu0 %v16475_v18  ;;  %v16603_v25 = vcombine.high %v1683_v8, %v1687_v15  ;;  %v1539_v58 = vld [vmem:[#allocation15 + $0xb00] sm:$0xff]  ;;  %v16602_v41 = vcombine.low %v1683_v8, %v1687_v15  ;;  %v17999_v62 = vpop.eup %17998  ;;  %v585_v8 = vadd.f32 %v584_v10, %v583_v4 }
 0x3a3   :  { %v1543_v60 = vld [vmem:[#allocation15 + $0xb20] sm:$0xff]  ;;  %v18001_v45 = vpop.eup %18000 }
 0x3a4   :  { %10295 = vmatpush1.bf16.msra.mxu1 %v16490_v0  ;;  %v1675_v52 = vld [vmem:[#allocation15 + $0xf40] sm:$0xff]  ;;  %v16459_v61 = vcombine.high %v1539_v58, %v1543_v60  ;;  %v16458_v30 = vcombine.low %v1539_v58, %v1543_v60  ;;  %v743_v2 = vmul.f32 %v18001_v45, %v19613_v29 }
 0x3a5   :  { %10296 = vmatprep.subr.bf16.mxu1 %v16611_v20  ;;  %v1679_v9 = vld [vmem:[#allocation15 + $0xf60] sm:$0xff]  ;;  %10258 = vmatpush2.bf16.msra.mxu0 %v16474_v37  ;;  %v738_v20 = vmul.f32 %v17999_v62, %v19610_v26  ;;  %v18043_v37 = vld [vmem:[#allocation9 + $0x48] sm:$0x1f] }
 0x3a6   :  { %10259 = vmatprep.subr.bf16.mxu0 %v16467_v27  ;;  %v16595_v23 = vcombine.high %v1675_v52, %v1679_v9  ;;  %v1531_v63 = vld [vmem:[#allocation15 + $0xac0] sm:$0xff]  ;;  %v16594_v48 = vcombine.low %v1675_v52, %v1679_v9  ;;  %v784_v57 = vrot.slane %v18043_v37, %v19433_v43  ;;  %v18003_v13 = vpop.eup %18002 }
 0x3a7   :  { %v1535_v21 = vld [vmem:[#allocation15 + $0xae0] sm:$0xff] }
 0x3a8   :  { %10297 = vmatpush2.bf16.msra.mxu1 %v16610_v32  ;;  %v1667_v24 = vld [vmem:[#allocation15 + $0xf00] sm:$0xff]  ;;  %v16451_v46 = vcombine.high %v1531_v63, %v1535_v21  ;;  %v16450_v31 = vcombine.low %v1531_v63, %v1535_v21  ;;  %v740_v63 = vmul.f32 %v18003_v13, %v19628_v3  ;;  %v798_v21 = vmul.f32 %v784_v57, %v743_v2 }
 0x3a9   :  { %10298 = vmatprep.subr.bf16.mxu1 %v16603_v25  ;;  %v1671_v5 = vld [vmem:[#allocation15 + $0xf20] sm:$0xff]  ;;  %10260 = vmatpush2.bf16.msra.mxu0 %v16466_v34  ;;  %v793_v34 = vmul.f32 %v764_v19, %v738_v20 }
 0x3aa   :  { %10261 = vmatprep.subr.bf16.mxu0 %v16459_v61  ;;  %v16587_v38 = vcombine.high %v1667_v24, %v1671_v5  ;;  %v1523_v50 = vld [vmem:[#allocation15 + $0xa80] sm:$0xff]  ;;  %v16586_v54 = vcombine.low %v1667_v24, %v1671_v5  ;;  %v609_v61 = vmul.f32 0.125, %v585_v8  ;;  %v839_v24 = vrot.slane %v18043_v37, %v19436_v1 }
 0x3ab   :  { %v1527_v16 = vld [vmem:[#allocation15 + $0xaa0] sm:$0xff] }
 0x3ac   :  { %10299 = vmatpush2.bf16.msra.mxu1 %v16602_v41  ;;  %v1659_v53 = vld [vmem:[#allocation15 + $0xec0] sm:$0xff]  ;;  %v16443_v35 = vcombine.high %v1523_v50, %v1527_v16  ;;  %v16442_v15 = vcombine.low %v1523_v50, %v1527_v16  ;;  %v19687_v3 = vsub.f32 %v19668_v36, %v609_v61 }
 0x3ad   :  { %10300 = vmatprep.subr.bf16.mxu1 %v16595_v23  ;;  %v1663_v55 = vld [vmem:[#allocation15 + $0xee0] sm:$0xff]  ;;  %10262 = vmatpush2.bf16.msra.mxu0 %v16458_v30  ;;  %v18005_v28 = vpop.eup %18004 }
 0x3ae   :  { %10263 = vmatprep.subr.bf16.mxu0 %v16451_v46  ;;  %v16579_v51 = vcombine.high %v1659_v53, %v1663_v55  ;;  %v1515_v47 = vld [vmem:[#allocation15 + $0xa40] sm:$0xff]  ;;  %v16578_v32 = vcombine.low %v1659_v53, %v1663_v55  ;;  %v848_v53 = vadd.f32 %v819_v49, %v793_v34  ;;  %v631_v36 = vmul.f32 %v19687_v3, %v19687_v3 }
 0x3af   :  { %v1519_v17 = vld [vmem:[#allocation15 + $0xa60] sm:$0xff] }
 0x3b0   :  { %10301 = vmatpush2.bf16.msra.mxu1 %v16594_v48  ;;  %v1651_v0 = vld [vmem:[#allocation15 + $0xe80] sm:$0xff]  ;;  %v16435_v27 = vcombine.high %v1515_v47, %v1519_v17  ;;  %v16434_v26 = vcombine.low %v1515_v47, %v1519_v17  ;;  %v19690_v47 = vpack.c.bf16 %v848_v53, %v848_v53  ;;  %v1244_v53 = vld [vmem:[#allocation15 + $0x1c8] sm:$0xff] }
 0x3b1   :  { %10302 = vmatprep.subr.bf16.mxu1 %v16587_v38  ;;  %v1655_v18 = vld [vmem:[#allocation15 + $0xea0] sm:$0xff]  ;;  %10264 = vmatpush2.bf16.msra.mxu0 %v16450_v31  ;;  %v853_v31 = vadd.f32 %v839_v24, %v798_v21 }
 0x3b2   :  { %10265 = vmatprep.subr.bf16.mxu0 %v16443_v35  ;;  %v16571_v25 = vcombine.high %v1651_v0, %v1655_v18  ;;  %v1507_v58 = vld [vmem:[#allocation15 + $0xa00] sm:$0xff]  ;;  %v16570_v5 = vcombine.low %v1651_v0, %v1655_v18 }
 0x3b3   :  { %v1511_v60 = vld [vmem:[#allocation15 + $0xa20] sm:$0xff]  ;;  %v19694_v20 = vpack.c.bf16 %v853_v31, %v853_v31 }
 0x3b4   :  { %10303 = vmatpush2.bf16.msra.mxu1 %v16586_v54  ;;  %v6659_v52 = vpop.f32.mrf.mxu0  ;;  %v1643_v9 = vld [vmem:[#allocation15 + $0xe40] sm:$0xff]  ;;  %v16427_v30 = vcombine.high %v1507_v58, %v1511_v60  ;;  %v16426_v55 = vcombine.low %v1507_v58, %v1511_v60  ;;  %v744_v58 = vmul.f32 %v18005_v28, %v19650_v39 }
 0x3b5   :  { %10304 = vmatprep.subr.bf16.mxu1 %v16579_v51  ;;  %v1647_v59 = vld [vmem:[#allocation15 + $0xe60] sm:$0xff]  ;;  %v19679_v23 = vadd.f32 %v6659_v52, %v19646_v14  ;;  %10266 = vmatpush2.bf16.msra.mxu0 %v16442_v15 }
 0x3b6   :  { %v18044_v29 = vld [vmem:[#allocation9 + $0x30] sm:$0x1f]  ;;  %v6661_v4 = vpop.f32.mrf.mxu0  ;;  %10267 = vmatprep.subr.bf16.mxu0 %v16435_v27  ;;  %v16563_v48 = vcombine.high %v1643_v9, %v1647_v59  ;;  %v16562_v42 = vcombine.low %v1643_v9, %v1647_v59 }
 0x3b7   :  { %v772_v41 = vrot.slane %v18044_v29, %v19433_v43  ;;  %v19684_v11 = vadd.f32 %v6661_v4, %v19652_v7  ;;  %v1755_v46 = vld [vmem:[#allocation15 + $0x11c0] sm:$0xff]  ;;  %v827_v62 = vrot.slane %v18044_v29, %v19436_v1 }
 0x3b8   :  { %10305 = vmatpush2.bf16.msra.mxu1 %v16578_v32  ;;  %v1759_v38 = vld [vmem:[#allocation15 + $0x11e0] sm:$0xff]  ;;  %v6663_v14 = vpop.f32.mrf.mxu0 }
 0x3b9   :  { %10306 = vmatprep.subr.bf16.mxu1 %v16571_v25  ;;  %v1635_v50 = vld [vmem:[#allocation15 + $0xe00] sm:$0xff]  ;;  %10268 = vmatpush2.bf16.msra.mxu0 %v16434_v26  ;;  %v795_v10 = vmul.f32 %v772_v41, %v740_v63  ;;  %v16675_v45 = vcombine.high %v1755_v46, %v1759_v38  ;;  %v16674_v18 = vcombine.low %v1755_v46, %v1759_v38  ;;  %v682_v25 = vrot.slane %v631_v36, 4 }
 0x3ba   :  { %v1639_v16 = vld [vmem:[#allocation15 + $0xe20] sm:$0xff]  ;;  %v6664_v7 = vpop.f32.mrf.mxu0  ;;  %10269 = vmatprep.subr.bf16.mxu0 %v16427_v30 }
 0x3bb   :  { %v16555_v54 = vcombine.high %v1635_v50, %v1639_v16  ;;  %v1747_v35 = vld [vmem:[#allocation15 + $0x1180] sm:$0xff]  ;;  %v850_v0 = vadd.f32 %v827_v62, %v795_v10  ;;  %v16554_v19 = vcombine.low %v1635_v50, %v1639_v16  ;;  %v683_v63 = vadd.f32 %v682_v25, %v631_v36  ;;  %v1240_v36 = vld [vmem:[#allocation15 + $0x1a8] sm:$0xff] }
 0x3bc   :  { %10307 = vmatpush2.bf16.msra.mxu1 %v16570_v5  ;;  %v1751_v51 = vld [vmem:[#allocation15 + $0x11a0] sm:$0xff] }
 0x3bd   :  { %10308 = vmatprep.subr.bf16.mxu1 %v16563_v48  ;;  %v1843_v17 = vld [vmem:[#allocation15 + $0x1480] sm:$0x11]  ;;  %10270 = vmatpush2.bf16.msra.mxu0 %v16426_v55  ;;  %v16667_v8 = vcombine.high %v1747_v35, %v1751_v51  ;;  %v16666_v13 = vcombine.low %v1747_v35, %v1751_v51  ;;  %v19697_v26 = vpack.c.bf16 %v850_v0, %v850_v0  ;;  %v1248_v55 = vld [vmem:[#allocation15 + $0x1e8] sm:$0xff]  ;;  %v684_v10 = vrot.slane %v683_v63, 2 }
 0x3be   :  { %10321 = vmatprep.subr.bf16.mxu0 %v16675_v45  ;;  %v16763_v15 = vcombine.high %v1843_v17, %v1843_v17  ;;  %v16762_v2 = vcombine.low %v1843_v17, %v1843_v17  ;;  %v1739_v37 = vld [vmem:[#allocation15 + $0x1140] sm:$0xff]  ;;  %v1236_v17 = vld [vmem:[#allocation15 + $0x188] sm:$0xff]  ;;  %v16164_v28 = vcombine.low %v1244_v53, %v1248_v55 }
 0x3bf   :  { %v1743_v57 = vld [vmem:[#allocation15 + $0x1160] sm:$0xff] }
 0x3c0   :  { %10309 = vmatpush2.bf16.msra.mxu1 %v16562_v42  ;;  %10272 = vmatmul.mubr.bf16.vlgmr.msra.gmra.mxu0 %v19690_v47  ;;  %v1835_v32 = vld [vmem:[#allocation15 + $0x1440] sm:$0xff]  ;;  %v16659_v9 = vcombine.high %v1739_v37, %v1743_v57  ;;  %v10134_v59 = vsel %vm5821_vm1, %v16762_v2, 0  ;;  %v16658_v39 = vcombine.low %v1739_v37, %v1743_v57  ;;  %v1228_v37 = vld [vmem:[#allocation15 + $0x148] sm:$0xff] }
 0x3c1   :  { %10310 = vmatprep.subr.bf16.mxu1 %v16555_v54  ;;  %v1839_v27 = vld [vmem:[#allocation15 + $0x1460] sm:$0xff]  ;;  %10322 = vmatpush1.bf16.msra.mxu0 %v16674_v18  ;;  %v16165_v54 = vcombine.high %v1244_v53, %v1248_v55  ;;  %v1232_v57 = vld [vmem:[#allocation15 + $0x168] sm:$0xff] }
 0x3c2   :  { %v18045_v60 = vld [vmem:[#allocation9 + $0x50] sm:$0x1f]  ;;  %10353 = vmatprep.mubr.bf16.mxu0 %v19694_v20  ;;  %10323 = vmatprep.subr.bf16.mxu0 %v16667_v8  ;;  %v16755_v34 = vcombine.high %v1835_v32, %v1839_v27  ;;  %v16754_v30 = vcombine.low %v1835_v32, %v1839_v27  ;;  %v16157_v8 = vcombine.high %v1236_v17, %v1240_v36  ;;  %v1204_v55 = vld [vmem:[#allocation15 + $0x88] sm:$0xff] }
 0x3c3   :  { %v788_v52 = vrot.slane %v18045_v60, %v19433_v43  ;;  %v1731_v49 = vld [vmem:[#allocation15 + $0x1100] sm:$0xff]  ;;  %v843_v5 = vrot.slane %v18045_v60, %v19436_v1  ;;  %v16156_v27 = vcombine.low %v1236_v17, %v1240_v36 }
 0x3c4   :  { %10311 = vmatpush2.bf16.msra.mxu1 %v16554_v19  ;;  %v1735_v29 = vld [vmem:[#allocation15 + $0x1120] sm:$0xff] }
 0x3c5   :  { %16770 = vmatprep.subr.msk.bf16.mxu1 %vm5821_vm1, %v16763_v15  ;;  %v1827_v41 = vld [vmem:[#allocation15 + $0x1400] sm:$0xff]  ;;  %10324 = vmatpush1.bf16.msra.mxu0 %v16666_v13  ;;  %v799_v24 = vmul.f32 %v788_v52, %v744_v58  ;;  %v16651_v48 = vcombine.high %v1731_v49, %v1735_v29  ;;  %v16149_v58 = vcombine.high %v1228_v37, %v1232_v57 }
 0x3c6   :  { %v1831_v61 = vld [vmem:[#allocation15 + $0x1420] sm:$0xff]  ;;  %10325 = vmatprep.subr.bf16.mxu0 %v16659_v9  ;;  %v20607_v9 = vld [vmem:[#allocation34_spill] sm:$0xff] }
 0x3c7   :  { %v6700_v21 = vpop.f32.mrf.mxu1  ;;  %10313 = vmatmul.mubr.bf16.vlgmr.msra.gmra.mxu1 %v19697_v26  ;;  %v16747_v38 = vcombine.high %v1827_v41, %v1831_v61  ;;  %v1723_v14 = vld [vmem:[#allocation15 + $0x10c0] sm:$0xff]  ;;  %v854_v31 = vadd.f32 %v843_v5, %v799_v24  ;;  %v16746_v42 = vcombine.low %v1827_v41, %v1831_v61  ;;  %v16148_v41 = vcombine.low %v1228_v37, %v1232_v57  ;;  %v1212_v24 = vld [vmem:[#allocation15 + $0xc8] sm:$0xff] }
 0x3c8   :  { %v19707_v4 = vadd.f32 %v6700_v21, %v19679_v23  ;;  %10373 = vmatpush1.bf16.msra.mxu1 %v10134_v59  ;;  %10394 = vmatprep.mubr.bf16.mxu1 %v20574_v40  ;;  %v1727_v50 = vld [vmem:[#allocation15 + $0x10e0] sm:$0xff]  ;;  %v16650_v23 = vcombine.low %v1731_v49, %v1735_v29  ;;  %v1220_v59 = vld [vmem:[#allocation15 + $0x108] sm:$0xff] }
 0x3c9   :  { %v6702_v46 = vpop.f32.mrf.mxu1  ;;  %10374 = vmatprep.subr.bf16.mxu1 %v16755_v34  ;;  %10326 = vmatpush1.bf16.msra.mxu0 %v16658_v39  ;;  %v16643_v7 = vcombine.high %v1723_v14, %v1727_v50  ;;  %v1715_v35 = vld [vmem:[#allocation15 + $0x1080] sm:$0xff]  ;;  %v19713_v0 = vpack.c.bf16 %v854_v31, %v854_v31  ;;  %v16642_v18 = vcombine.low %v1723_v14, %v1727_v50  ;;  %v1224_v34 = vld [vmem:[#allocation15 + $0x128] sm:$0xff] }
 0x3ca   :  { %v19711_v16 = vadd.f32 %v6702_v46, %v19684_v11  ;;  %10327 = vmatprep.subr.bf16.mxu0 %v16651_v48  ;;  %v1719_v51 = vld [vmem:[#allocation15 + $0x10a0] sm:$0xff]  ;;  %v685_v11 = vadd.f32 %v684_v10, %v683_v63  ;;  %v16141_v63 = vcombine.high %v1220_v59, %v1224_v34  ;;  %v1216_v5 = vld [vmem:[#allocation15 + $0xe8] sm:$0xff]  ;;  %v16140_v46 = vcombine.low %v1220_v59, %v1224_v34 }
 0x3cb   :  { %v6704_v62 = vpop.f32.mrf.mxu1  ;;  %v16635_v19 = vcombine.high %v1715_v35, %v1719_v51  ;;  %v1707_v15 = vld [vmem:[#allocation15 + $0x1040] sm:$0xff]  ;;  %v16634_v32 = vcombine.low %v1715_v35, %v1719_v51  ;;  %v16133_v14 = vcombine.high %v1212_v24, %v1216_v5  ;;  %v1208_v10 = vld [vmem:[#allocation15 + $0xa8] sm:$0xff]  ;;  %v16132_v31 = vcombine.low %v1212_v24, %v1216_v5 }
 0x3cc   :  { %10375 = vmatpush1.bf16.msra.mxu1 %v16754_v30  ;;  %v1711_v2 = vld [vmem:[#allocation15 + $0x1060] sm:$0xff]  ;;  %v686_v13 = vrot.slane %v685_v11, 1  ;;  %v1196_v35 = vld [vmem:[#allocation15 + $0x48] sm:$0xff]  ;;  %v16124_v36 = vcombine.low %v1204_v55, %v1208_v10 }
 0x3cd   :  { %v6705_v45 = vpop.f32.mrf.mxu1  ;;  %10376 = vmatprep.subr.bf16.mxu1 %v16747_v38  ;;  %10328 = vmatpush1.bf16.msra.mxu0 %v16650_v23  ;;  %v16627_v25 = vcombine.high %v1707_v15, %v1711_v2  ;;  %v1699_v60 = vld [vmem:[#allocation15 + $0x1000] sm:$0xff]  ;;  %v16626_v29 = vcombine.low %v1707_v15, %v1711_v2  ;;  %v1200_v51 = vld [vmem:[#allocation15 + $0x68] sm:$0xff] }
 0x3ce   :  { %10329 = vmatprep.subr.bf16.mxu0 %v16643_v7  ;;  %v1703_v52 = vld [vmem:[#allocation15 + $0x1020] sm:$0xff]  ;;  %v687_v49 = vadd.f32 %v686_v13, %v685_v11  ;;  %v16125_v7 = vcombine.high %v1204_v55, %v1208_v10  ;;  %v1192_v15 = vld [vmem:[#allocation15 + $0x28] sm:$0xff]  ;;  %v16116_v37 = vcombine.low %v1196_v35, %v1200_v51 }
 0x3cf   :  { %v16619_v61 = vcombine.high %v1699_v60, %v1703_v52  ;;  %v1819_v21 = vld [vmem:[#allocation15 + $0x13c0] sm:$0xff]  ;;  %v16618_v48 = vcombine.low %v1699_v60, %v1703_v52 }
 0x3d0   :  { %10377 = vmatpush1.bf16.msra.mxu1 %v16746_v42  ;;  %v1823_v39 = vld [vmem:[#allocation15 + $0x13e0] sm:$0xff]  ;;  %v709_v30 = vmul.f32 0.125, %v687_v49 }
 0x3d1   :  { %10403 = vmatprep.subr.bf16.mxu1 %v16165_v54  ;;  %10330 = vmatpush1.bf16.msra.mxu0 %v16642_v18  ;;  %v16739_v38 = vcombine.high %v1819_v21, %v1823_v39  ;;  %v1811_v50 = vld [vmem:[#allocation15 + $0x1380] sm:$0xff]  ;;  %v16738_v23 = vcombine.low %v1819_v21, %v1823_v39  ;;  %v16117_v18 = vcombine.high %v1196_v35, %v1200_v51 }
 0x3d2   :  { %10331 = vmatprep.subr.bf16.mxu0 %v16635_v19  ;;  %v1815_v53 = vld [vmem:[#allocation15 + $0x13a0] sm:$0xff]  ;;  %v720_v62 = vadd.f32 1e-05, %v709_v30 }
 0x3d3   :  { %16771 = vmatmul.mubr.msk.bf16.vlgmr.msra.gmra.mxu1 %vm592_vm0, %v19713_v0  ;;  %v16731_v42 = vcombine.high %v1811_v50, %v1815_v53  ;;  %v1803_v45 = vld [vmem:[#allocation15 + $0x1340] sm:$0xff]  ;;  %v16730_v17 = vcombine.low %v1811_v50, %v1815_v53  ;;  %v18046_v50 = vld [vmem:[#allocation9 + $0x40] sm:$0x1f] }
 0x3d4   :  { %10404 = vmatpush1.bf16.msra.mxu1 %v16164_v28  ;;  %10435 = vmatprep.mubr.bf16.mxu1 %v20607_v9  ;;  %v1807_v54 = vld [vmem:[#allocation15 + $0x1360] sm:$0xff]  ;;  %18006 = vrsqrt.f32 %v720_v62  ;;  %v780_v53 = vrot.slane %v18046_v50, %v19433_v43  ;;  %v835_v51 = vrot.slane %v18046_v50, %v19436_v1 }
 0x3d5   :  { %10405 = vmatprep.subr.bf16.mxu1 %v16157_v8  ;;  %10332 = vmatpush1.bf16.msra.mxu0 %v16634_v32  ;;  %v16723_v11 = vcombine.high %v1803_v45, %v1807_v54  ;;  %v1795_v28 = vld [vmem:[#allocation15 + $0x1300] sm:$0xff]  ;;  %v1188_v8 = vld [vmem:[#allocation15 + $0x8] sm:$0xff]  ;;  %v16722_v2 = vcombine.low %v1803_v45, %v1807_v54 }
 0x3d6   :  { %10333 = vmatprep.subr.bf16.mxu0 %v16627_v25  ;;  %v1799_v19 = vld [vmem:[#allocation15 + $0x1320] sm:$0xff]  ;;  %v16109_v13 = vcombine.high %v1188_v8, %v1192_v15  ;;  %v1308_v25 = vld [vmem:[#allocation15 + $0x3c8] sm:$0xff]  ;;  %v16108_v52 = vcombine.low %v1188_v8, %v1192_v15 }
 0x3d7   :  { %v16715_v57 = vcombine.high %v1795_v28, %v1799_v19  ;;  %v1787_v32 = vld [vmem:[#allocation15 + $0x12c0] sm:$0xff]  ;;  %v16714_v60 = vcombine.low %v1795_v28, %v1799_v19  ;;  %v1284_v45 = vld [vmem:[#allocation15 + $0x308] sm:$0xff] }
 0x3d8   :  { %10406 = vmatpush1.bf16.msra.mxu1 %v16156_v27  ;;  %v1791_v27 = vld [vmem:[#allocation15 + $0x12e0] sm:$0xff]  ;;  %v1288_v54 = vld [vmem:[#allocation15 + $0x328] sm:$0xff] }
 0x3d9   :  { %10407 = vmatprep.subr.bf16.mxu1 %v16149_v58  ;;  %10334 = vmatpush1.bf16.msra.mxu0 %v16626_v29  ;;  %v1312_v58 = vld [vmem:[#allocation15 + $0x3e8] sm:$0xff]  ;;  %v16707_v59 = vcombine.high %v1787_v32, %v1791_v27  ;;  %v1779_v49 = vld [vmem:[#allocation15 + $0x1280] sm:$0xff]  ;;  %v16706_v21 = vcombine.low %v1787_v32, %v1791_v27  ;;  %v16205_v19 = vcombine.high %v1284_v45, %v1288_v54 }
 0x3da   :  { %10335 = vmatprep.subr.bf16.mxu0 %v16619_v61  ;;  %v16229_v34 = vcombine.high %v1308_v25, %v1312_v58  ;;  %v1783_v29 = vld [vmem:[#allocation15 + $0x12a0] sm:$0xff]  ;;  %v1304_v61 = vld [vmem:[#allocation15 + $0x3a8] sm:$0xff]  ;;  %v16228_v39 = vcombine.low %v1308_v25, %v1312_v58  ;;  %v16204_v32 = vcombine.low %v1284_v45, %v1288_v54 }
 0x3db   :  { %v16699_v24 = vcombine.high %v1779_v49, %v1783_v29  ;;  %v1771_v30 = vld [vmem:[#allocation15 + $0x1240] sm:$0xff]  ;;  %v16698_v55 = vcombine.low %v1779_v49, %v1783_v29  ;;  %v1372_v8 = vld [vmem:[#allocation15 + $0x5c8] sm:$0xff] }
 0x3dc   :  { %10408 = vmatpush1.bf16.msra.mxu1 %v16148_v41  ;;  %v1300_v41 = vld [vmem:[#allocation15 + $0x388] sm:$0xff] }
 0x3dd   :  { %10409 = vmatprep.subr.bf16.mxu1 %v16141_v63  ;;  %10336 = vmatpush1.bf16.msra.mxu0 %v16618_v48  ;;  %v16221_v5 = vcombine.high %v1300_v41, %v1304_v61  ;;  %v1775_v48 = vld [vmem:[#allocation15 + $0x1260] sm:$0xff]  ;;  %v16220_v10 = vcombine.low %v1300_v41, %v1304_v61  ;;  %v1376_v15 = vld [vmem:[#allocation15 + $0x5e8] sm:$0xff] }
 0x3de   :  { %10337 = vmatprep.subr.bf16.mxu0 %v16739_v38  ;;  %v1296_v38 = vld [vmem:[#allocation15 + $0x368] sm:$0xff]  ;;  %v16691_v62 = vcombine.high %v1771_v30, %v1775_v48  ;;  %v16293_v25 = vcombine.high %v1372_v8, %v1376_v15  ;;  %v16292_v49 = vcombine.low %v1372_v8, %v1376_v15 }
 0x3df   :  { %v1500_v8 = vld [vmem:[#allocation15 + $0x9c8] sm:$0xff] }
 0x3e0   :  { %10410 = vmatpush1.bf16.msra.mxu1 %v16140_v46  ;;  %v1292_v46 = vld [vmem:[#allocation15 + $0x348] sm:$0xff] }
 0x3e1   :  { %10411 = vmatprep.subr.bf16.mxu1 %v16133_v14  ;;  %10338 = vmatpush2.bf16.msra.mxu0 %v16738_v23  ;;  %v18007_v63 = vpop.eup %18006  ;;  %v16213_v23 = vcombine.high %v1292_v46, %v1296_v38  ;;  %v1504_v15 = vld [vmem:[#allocation15 + $0x9e8] sm:$0xff] }
 0x3e2   :  { %10339 = vmatprep.subr.bf16.mxu0 %v16731_v42  ;;  %v742_v14 = vmul.f32 %v18007_v63, %v19687_v3  ;;  %v1767_v42 = vld [vmem:[#allocation15 + $0x1220] sm:$0xff]  ;;  %v1356_v63 = vld [vmem:[#allocation15 + $0x548] sm:$0xff] }
 0x3e4   :  { %10412 = vmatpush1.bf16.msra.mxu1 %v16132_v31  ;;  %v1763_v31 = vld [vmem:[#allocation15 + $0x1200] sm:$0xff]  ;;  %v797_v35 = vmul.f32 %v780_v53, %v742_v14  ;;  %v1348_v53 = vld [vmem:[#allocation15 + $0x508] sm:$0xff] }
 0x3e5   :  { %10413 = vmatprep.subr.bf16.mxu1 %v16125_v7  ;;  %10340 = vmatpush2.bf16.msra.mxu0 %v16730_v17  ;;  %v16690_v17 = vcombine.low %v1771_v30, %v1775_v48  ;;  %v20608_v48 = vld [vmem:[#allocation35_spill] sm:$0xff] }
 0x3e6   :  { %10341 = vmatprep.subr.bf16.mxu0 %v16723_v11 }
 0x3e8   :  { %10414 = vmatpush1.bf16.msra.mxu1 %v16124_v36  ;;  %v16212_v36 = vcombine.low %v1292_v46, %v1296_v38 }
 0x3e9   :  { %10415 = vmatprep.subr.bf16.mxu1 %v16117_v18  ;;  %10342 = vmatpush2.bf16.msra.mxu0 %v16722_v2  ;;  %v16683_v18 = vcombine.high %v1763_v31, %v1767_v42 }
 0x3ea   :  { %10343 = vmatprep.subr.bf16.mxu0 %v16715_v57  ;;  %v1280_v57 = vld [vmem:[#allocation15 + $0x2e8] sm:$0xff] }
 0x3ec   :  { %10416 = vmatpush1.bf16.msra.mxu1 %v16116_v37  ;;  %v1276_v37 = vld [vmem:[#allocation15 + $0x2c8] sm:$0xff] }
 0x3ed   :  { %10417 = vmatprep.subr.bf16.mxu1 %v16109_v13  ;;  %10344 = vmatpush2.bf16.msra.mxu0 %v16714_v60  ;;  %v852_v13 = vadd.f32 %v835_v51, %v797_v35  ;;  %v16197_v58 = vcombine.high %v1276_v37, %v1280_v57  ;;  %v1364_v60 = vld [vmem:[#allocation15 + $0x588] sm:$0xff]  ;;  %v16196_v29 = vcombine.low %v1276_v37, %v1280_v57 }
 0x3ee   :  { %10345 = vmatprep.subr.bf16.mxu0 %v16707_v59  ;;  %v1268_v59 = vld [vmem:[#allocation15 + $0x288] sm:$0xff] }
 0x3f0   :  { %10418 = vmatpush1.bf16.msra.mxu1 %v16108_v52  ;;  %v1368_v52 = vld [vmem:[#allocation15 + $0x5a8] sm:$0xff] }
 0x3f1   :  { %10419 = vmatprep.subr.bf16.mxu1 %v16229_v34  ;;  %10346 = vmatpush2.bf16.msra.mxu0 %v16706_v21  ;;  %v1272_v34 = vld [vmem:[#allocation15 + $0x2a8] sm:$0xff]  ;;  %v16285_v41 = vcombine.high %v1364_v60, %v1368_v52  ;;  %v16284_v30 = vcombine.low %v1364_v60, %v1368_v52  ;;  %v16420_v52 = vcombine.low %v1500_v8, %v1504_v15 }
 0x3f2   :  { %10347 = vmatprep.subr.bf16.mxu0 %v16699_v24  ;;  %v16189_v61 = vcombine.high %v1268_v59, %v1272_v34  ;;  %v1360_v21 = vld [vmem:[#allocation15 + $0x568] sm:$0xff]  ;;  %v16188_v46 = vcombine.low %v1268_v59, %v1272_v34 }
 0x3f3   :  { %v1260_v24 = vld [vmem:[#allocation15 + $0x248] sm:$0xff]  ;;  %v16277_v14 = vcombine.high %v1356_v63, %v1360_v21 }
 0x3f4   :  { %10420 = vmatpush2.bf16.msra.mxu1 %v16228_v39  ;;  %v6741_v7 = vpop.f32.mrf.mxu0  ;;  %v1496_v60 = vld [vmem:[#allocation15 + $0x9a8] sm:$0xff] }
 0x3f5   :  { %10421 = vmatprep.subr.bf16.mxu1 %v16221_v5  ;;  %v19722_v3 = vadd.f32 %v6741_v7, %v19707_v4  ;;  %10348 = vmatpush2.bf16.msra.mxu0 %v16698_v55  ;;  %v16682_v4 = vcombine.low %v1763_v31, %v1767_v42  ;;  %v1264_v5 = vld [vmem:[#allocation15 + $0x268] sm:$0xff]  ;;  %v16276_v42 = vcombine.low %v1356_v63, %v1360_v21 }
 0x3f6   :  { %v6743_v11 = vpop.f32.mrf.mxu0  ;;  %10349 = vmatprep.subr.bf16.mxu0 %v16691_v62  ;;  %v16181_v50 = vcombine.high %v1260_v24, %v1264_v5  ;;  %v1352_v55 = vld [vmem:[#allocation15 + $0x528] sm:$0xff]  ;;  %v16180_v45 = vcombine.low %v1260_v24, %v1264_v5 }
 0x3f7   :  { %v19725_v28 = vadd.f32 %v6743_v11, %v19711_v16  ;;  %v19727_v16 = vpack.c.bf16 %v852_v13, %v852_v13  ;;  %v1252_v62 = vld [vmem:[#allocation15 + $0x208] sm:$0xff]  ;;  %v16269_v35 = vcombine.high %v1348_v53, %v1352_v55  ;;  %v16268_v37 = vcombine.low %v1348_v53, %v1352_v55 }
 0x3f8   :  { %10422 = vmatpush2.bf16.msra.mxu1 %v16220_v10  ;;  %v6745_v2 = vpop.f32.mrf.mxu0  ;;  %v1344_v11 = vld [vmem:[#allocation15 + $0x4e8] sm:$0xff] }
 0x3f9   :  { %10423 = vmatprep.subr.bf16.mxu1 %v16213_v23  ;;  %10350 = vmatpush2.bf16.msra.mxu0 %v16690_v17  ;;  %v1256_v23 = vld [vmem:[#allocation15 + $0x228] sm:$0xff] }
 0x3fa   :  { %v6746_v27 = vpop.f32.mrf.mxu0  ;;  %10351 = vmatprep.subr.bf16.mxu0 %v16683_v18  ;;  %v16173_v17 = vcombine.high %v1252_v62, %v1256_v23  ;;  %v16172_v57 = vcombine.low %v1252_v62, %v1256_v23  ;;  %v1316_v5 = vld [vmem:[#allocation15 + $0x408] sm:$0xff] }
 0x3fb   :  { %v1332_v27 = vld [vmem:[#allocation15 + $0x488] sm:$0xff] }
 0x3fc   :  { %10424 = vmatpush2.bf16.msra.mxu1 %v16212_v36  ;;  %v1340_v36 = vld [vmem:[#allocation15 + $0x4c8] sm:$0xff] }
 0x3fd   :  { %10425 = vmatprep.subr.bf16.mxu1 %v16205_v19  ;;  %10352 = vmatpush2.bf16.msra.mxu0 %v16682_v4  ;;  %v16261_v13 = vcombine.high %v1340_v36, %v1344_v11  ;;  %v1440_v62 = vld [vmem:[#allocation15 + $0x7e8] sm:$0xff] }
 0x3fe   :  { %10444 = vmatprep.subr.bf16.mxu0 %v16293_v25  ;;  %v1336_v25 = vld [vmem:[#allocation15 + $0x4a8] sm:$0xff] }
 0x3ff   :  { %v16253_v59 = vcombine.high %v1332_v27, %v1336_v25  ;;  %v16252_v63 = vcombine.low %v1332_v27, %v1336_v25  ;;  %v1468_v23 = vld [vmem:[#allocation15 + $0x8c8] sm:$0xff] }
 0x400   :  { %10426 = vmatpush2.bf16.msra.mxu1 %v16204_v32  ;;  %v6823_v39 = vpop.f32.mrf.mxu0  ;;  %10354 = vmatmul.mubr.bf16.vlgmr.msra.gmra.mxu0 %v19727_v16  ;;  %v16421_v32 = vcombine.high %v1500_v8, %v1504_v15 }
 0x401   :  { %10427 = vmatprep.subr.bf16.mxu1 %v16197_v58  ;;  %10445 = vmatpush1.bf16.msra.mxu0 %v16292_v49  ;;  %v1492_v58 = vld [vmem:[#allocation15 + $0x988] sm:$0xff] }
 0x402   :  { %10476 = vmatprep.mubr.bf16.mxu0 %v20608_v48  ;;  %v6825_v38 = vpop.f32.mrf.mxu0  ;;  %10446 = vmatprep.subr.bf16.mxu0 %v16285_v41  ;;  %v16413_v34 = vcombine.high %v1492_v58, %v1496_v60  ;;  %v1324_v49 = vld [vmem:[#allocation15 + $0x448] sm:$0xff]  ;;  %v16412_v21 = vcombine.low %v1492_v58, %v1496_v60 }
 0x403   :  { %v1484_v41 = vld [vmem:[#allocation15 + $0x948] sm:$0xff] }
 0x404   :  { %10428 = vmatpush2.bf16.msra.mxu1 %v16196_v29  ;;  %v6827_v10 = vpop.f32.mrf.mxu0  ;;  %v1328_v29 = vld [vmem:[#allocation15 + $0x468] sm:$0xff] }
 0x405   :  { %10429 = vmatprep.subr.bf16.mxu1 %v16189_v61  ;;  %10447 = vmatpush1.bf16.msra.mxu0 %v16284_v30  ;;  %v1488_v61 = vld [vmem:[#allocation15 + $0x968] sm:$0xff] }
 0x406   :  { %v6828_v54 = vpop.f32.mrf.mxu0  ;;  %10448 = vmatprep.subr.bf16.mxu0 %v16277_v14  ;;  %v16405_v24 = vcombine.high %v1484_v41, %v1488_v61  ;;  %v1320_v30 = vld [vmem:[#allocation15 + $0x428] sm:$0xff]  ;;  %v16244_v14 = vcombine.low %v1324_v49, %v1328_v29 }
 0x407   :  { %v6782_v31 = vpop.f32.mrf.mxu1  ;;  %v16237_v53 = vcombine.high %v1316_v5, %v1320_v30  ;;  %v1436_v10 = vld [vmem:[#allocation15 + $0x7c8] sm:$0xff] }
 0x408   :  { %v6783_v7 = vadd.f32 %v6782_v31, %v19722_v3  ;;  %10430 = vmatpush2.bf16.msra.mxu1 %v16188_v46  ;;  %v1476_v46 = vld [vmem:[#allocation15 + $0x908] sm:$0xff] }
 0x409   :  { %v6784_v51 = vpop.f32.mrf.mxu1  ;;  %10431 = vmatprep.subr.bf16.mxu1 %v16181_v50  ;;  %10449 = vmatpush1.bf16.msra.mxu0 %v16276_v42  ;;  %v16404_v50 = vcombine.low %v1484_v41, %v1488_v61  ;;  %v1472_v31 = vld [vmem:[#allocation15 + $0x8e8] sm:$0xff]  ;;  %v16236_v42 = vcombine.low %v1316_v5, %v1320_v30 }
 0x40a   :  { %v19732_v18 = vadd.f32 %v6823_v39, %v6783_v7  ;;  %v6785_v19 = vadd.f32 %v6784_v51, %v19725_v28  ;;  %10450 = vmatprep.subr.bf16.mxu0 %v16269_v35  ;;  %v16260_v28 = vcombine.low %v1340_v36, %v1344_v11  ;;  %v16245_v39 = vcombine.high %v1324_v49, %v1328_v29  ;;  %v1428_v35 = vld [vmem:[#allocation15 + $0x788] sm:$0xff] }
 0x40b   :  { %v6786_v2 = vpop.f32.mrf.mxu1  ;;  %v16389_v54 = vcombine.high %v1468_v23, %v1472_v31  ;;  %v1432_v51 = vld [vmem:[#allocation15 + $0x7a8] sm:$0xff]  ;;  %v16356_v11 = vcombine.low %v1436_v10, %v1440_v62 }
 0x40c   :  { %v19735_v3 = vadd.f32 %v6825_v38, %v6785_v19  ;;  %10432 = vmatpush2.bf16.msra.mxu1 %v16180_v45  ;;  %v1480_v38 = vld [vmem:[#allocation15 + $0x928] sm:$0xff]  ;;  %v16357_v45 = vcombine.high %v1436_v10, %v1440_v62  ;;  %v16388_v19 = vcombine.low %v1468_v23, %v1472_v31  ;;  %v16349_v8 = vcombine.high %v1428_v35, %v1432_v51 }
 0x40d   :  { %v6787_v4 = vpop.f32.mrf.mxu1  ;;  %10433 = vmatprep.subr.bf16.mxu1 %v16173_v17  ;;  %10451 = vmatpush1.bf16.msra.mxu0 %v16268_v37  ;;  %v16397_v55 = vcombine.high %v1476_v46, %v1480_v38  ;;  %v16396_v7 = vcombine.low %v1476_v46, %v1480_v38  ;;  %v1460_v17 = vld [vmem:[#allocation15 + $0x888] sm:$0xff] }
 0x40e   :  { %10452 = vmatprep.subr.bf16.mxu0 %v16261_v13  ;;  %v1464_v36 = vld [vmem:[#allocation15 + $0x8a8] sm:$0xff]  ;;  %v16348_v4 = vcombine.low %v1428_v35, %v1432_v51 }
 0x40f   :  { %v16381_v15 = vcombine.high %v1460_v17, %v1464_v36  ;;  %v1420_v2 = vld [vmem:[#allocation15 + $0x748] sm:$0xff] }
 0x410   :  { %10434 = vmatpush2.bf16.msra.mxu1 %v16172_v57  ;;  %v1424_v37 = vld [vmem:[#allocation15 + $0x768] sm:$0xff] }
 0x411   :  { %10485 = vmatprep.subr.bf16.mxu1 %v16421_v32  ;;  %10453 = vmatpush1.bf16.msra.mxu0 %v16260_v28  ;;  %v1452_v57 = vld [vmem:[#allocation15 + $0x848] sm:$0xff]  ;;  %v16380_v32 = vcombine.low %v1460_v17, %v1464_v36  ;;  %v16341_v27 = vcombine.high %v1420_v2, %v1424_v37 }
 0x412   :  { %10454 = vmatprep.subr.bf16.mxu0 %v16253_v59  ;;  %v1456_v13 = vld [vmem:[#allocation15 + $0x868] sm:$0xff]  ;;  %v16340_v59 = vcombine.low %v1420_v2, %v1424_v37 }
 0x413   :  { %10436 = vmatmul.mubr.bf16.vlgmr.msra.gmra.mxu1 %v19621_v22  ;;  %v16373_v25 = vcombine.high %v1452_v57, %v1456_v13  ;;  %v1412_v58 = vld [vmem:[#allocation15 + $0x708] sm:$0xff] }
 0x414   :  { %10486 = vmatpush1.bf16.msra.mxu1 %v16420_v52  ;;  %10517 = vmatprep.mubr.bf16.mxu1 %v19625_v56  ;;  %v1416_v60 = vld [vmem:[#allocation15 + $0x728] sm:$0xff] }
 0x415   :  { %10487 = vmatprep.subr.bf16.mxu1 %v16413_v34  ;;  %10455 = vmatpush1.bf16.msra.mxu0 %v16252_v63  ;;  %v1444_v28 = vld [vmem:[#allocation15 + $0x808] sm:$0xff]  ;;  %v16372_v34 = vcombine.low %v1452_v57, %v1456_v13  ;;  %v16333_v49 = vcombine.high %v1412_v58, %v1416_v60 }
 0x416   :  { %10456 = vmatprep.subr.bf16.mxu0 %v16245_v39  ;;  %v1448_v52 = vld [vmem:[#allocation15 + $0x828] sm:$0xff]  ;;  %v16332_v39 = vcombine.low %v1412_v58, %v1416_v60 }
 0x417   :  { %v16365_v29 = vcombine.high %v1444_v28, %v1448_v52  ;;  %v1404_v41 = vld [vmem:[#allocation15 + $0x6c8] sm:$0xff] }
 0x418   :  { %10488 = vmatpush1.bf16.msra.mxu1 %v16412_v21  ;;  %v1408_v61 = vld [vmem:[#allocation15 + $0x6e8] sm:$0xff] }
 0x419   :  { %10489 = vmatprep.subr.bf16.mxu1 %v16405_v24  ;;  %10457 = vmatpush1.bf16.msra.mxu0 %v16244_v14  ;;  %v1564_v63 = vld [vmem:[#allocation15 + $0xbc8] sm:$0xff]  ;;  %v16364_v24 = vcombine.low %v1444_v28, %v1448_v52  ;;  %v16325_v5 = vcombine.high %v1404_v41, %v1408_v61 }
 0x41a   :  { %10458 = vmatprep.subr.bf16.mxu0 %v16237_v53  ;;  %v1568_v21 = vld [vmem:[#allocation15 + $0xbe8] sm:$0xff]  ;;  %v16324_v53 = vcombine.low %v1404_v41, %v1408_v61 }
 0x41b   :  { %v16485_v30 = vcombine.high %v1564_v63, %v1568_v21  ;;  %v1396_v46 = vld [vmem:[#allocation15 + $0x688] sm:$0xff] }
 0x41c   :  { %10490 = vmatpush1.bf16.msra.mxu1 %v16404_v50  ;;  %v1400_v38 = vld [vmem:[#allocation15 + $0x6a8] sm:$0xff] }
 0x41d   :  { %10491 = vmatprep.subr.bf16.mxu1 %v16397_v55  ;;  %10459 = vmatpush1.bf16.msra.mxu0 %v16236_v42  ;;  %v1556_v14 = vld [vmem:[#allocation15 + $0xb88] sm:$0xff]  ;;  %v16484_v55 = vcombine.low %v1564_v63, %v1568_v21  ;;  %v16317_v10 = vcombine.high %v1396_v46, %v1400_v38 }
 0x41e   :  { %10460 = vmatprep.subr.bf16.mxu0 %v16357_v45  ;;  %v1560_v50 = vld [vmem:[#allocation15 + $0xba8] sm:$0xff]  ;;  %v16316_v45 = vcombine.low %v1396_v46, %v1400_v38 }
 0x41f   :  { %v16477_v62 = vcombine.high %v1556_v14, %v1560_v50  ;;  %v1388_v23 = vld [vmem:[#allocation15 + $0x648] sm:$0xff] }
 0x420   :  { %10492 = vmatpush1.bf16.msra.mxu1 %v16396_v7  ;;  %v1392_v31 = vld [vmem:[#allocation15 + $0x668] sm:$0xff] }
 0x421   :  { %10493 = vmatprep.subr.bf16.mxu1 %v16389_v54  ;;  %10461 = vmatpush2.bf16.msra.mxu0 %v16356_v11  ;;  %v1548_v42 = vld [vmem:[#allocation15 + $0xb48] sm:$0xff]  ;;  %v16476_v54 = vcombine.low %v1556_v14, %v1560_v50  ;;  %v16309_v35 = vcombine.high %v1388_v23, %v1392_v31 }
 0x422   :  { %10462 = vmatprep.subr.bf16.mxu0 %v16349_v8  ;;  %v1552_v7 = vld [vmem:[#allocation15 + $0xb68] sm:$0xff]  ;;  %v16308_v8 = vcombine.low %v1388_v23, %v1392_v31 }
 0x423   :  { %v16469_v51 = vcombine.high %v1548_v42, %v1552_v7  ;;  %v1380_v17 = vld [vmem:[#allocation15 + $0x608] sm:$0xff] }
 0x424   :  { %10494 = vmatpush1.bf16.msra.mxu1 %v16388_v19  ;;  %v1384_v36 = vld [vmem:[#allocation15 + $0x628] sm:$0xff] }
 0x425   :  { %10495 = vmatprep.subr.bf16.mxu1 %v16381_v15  ;;  %10463 = vmatpush2.bf16.msra.mxu0 %v16348_v4  ;;  %v1540_v11 = vld [vmem:[#allocation15 + $0xb08] sm:$0xff]  ;;  %v16468_v15 = vcombine.low %v1548_v42, %v1552_v7  ;;  %v16301_v2 = vcombine.high %v1380_v17, %v1384_v36 }
 0x426   :  { %10464 = vmatprep.subr.bf16.mxu0 %v16341_v27  ;;  %v1544_v19 = vld [vmem:[#allocation15 + $0xb28] sm:$0xff]  ;;  %v16300_v27 = vcombine.low %v1380_v17, %v1384_v36 }
 0x427   :  { %v16461_v37 = vcombine.high %v1540_v11, %v1544_v19  ;;  %v1628_v57 = vld [vmem:[#allocation15 + $0xdc8] sm:$0xff] }
 0x428   :  { %10496 = vmatpush1.bf16.msra.mxu1 %v16380_v32  ;;  %v1632_v13 = vld [vmem:[#allocation15 + $0xde8] sm:$0xff] }
 0x429   :  { %10497 = vmatprep.subr.bf16.mxu1 %v16373_v25  ;;  %10465 = vmatpush2.bf16.msra.mxu0 %v16340_v59  ;;  %v1532_v4 = vld [vmem:[#allocation15 + $0xac8] sm:$0xff]  ;;  %v16460_v25 = vcombine.low %v1540_v11, %v1544_v19  ;;  %v16549_v58 = vcombine.high %v1628_v57, %v1632_v13 }
 0x42a   :  { %10466 = vmatprep.subr.bf16.mxu0 %v16333_v49  ;;  %v1536_v32 = vld [vmem:[#allocation15 + $0xae8] sm:$0xff]  ;;  %v16548_v49 = vcombine.low %v1628_v57, %v1632_v13 }
 0x42b   :  { %v16453_v60 = vcombine.high %v1532_v4, %v1536_v32  ;;  %v1620_v28 = vld [vmem:[#allocation15 + $0xd88] sm:$0xff] }
 0x42c   :  { %10498 = vmatpush1.bf16.msra.mxu1 %v16372_v34  ;;  %v1624_v52 = vld [vmem:[#allocation15 + $0xda8] sm:$0xff] }
 0x42d   :  { %10499 = vmatprep.subr.bf16.mxu1 %v16365_v29  ;;  %10467 = vmatpush2.bf16.msra.mxu0 %v16332_v39  ;;  %v1524_v59 = vld [vmem:[#allocation15 + $0xa88] sm:$0xff]  ;;  %v16452_v29 = vcombine.low %v1532_v4, %v1536_v32  ;;  %v16541_v41 = vcombine.high %v1620_v28, %v1624_v52  ;;  %v16540_v38 = vcombine.low %v1620_v28, %v1624_v52 }
 0x42e   :  { %10468 = vmatprep.subr.bf16.mxu0 %v16325_v5  ;;  %v1528_v34 = vld [vmem:[#allocation15 + $0xaa8] sm:$0xff] }
 0x42f   :  { %v16445_v61 = vcombine.high %v1524_v59, %v1528_v34  ;;  %v1612_v63 = vld [vmem:[#allocation15 + $0xd48] sm:$0xff]  ;;  %v16444_v14 = vcombine.low %v1524_v59, %v1528_v34 }
 0x430   :  { %10500 = vmatpush1.bf16.msra.mxu1 %v16364_v24  ;;  %v1616_v21 = vld [vmem:[#allocation15 + $0xd68] sm:$0xff] }
 0x431   :  { %10501 = vmatprep.subr.bf16.mxu1 %v16485_v30  ;;  %10469 = vmatpush2.bf16.msra.mxu0 %v16324_v53  ;;  %v1516_v24 = vld [vmem:[#allocation15 + $0xa48] sm:$0xff]  ;;  %v20609_v30 = vld [vmem:[#allocation47_spill] sm:$0xff]  ;;  %v16533_v53 = vcombine.high %v1612_v63, %v1616_v21 }
 0x432   :  { %10470 = vmatprep.subr.bf16.mxu0 %v16317_v10  ;;  %v1520_v5 = vld [vmem:[#allocation15 + $0xa68] sm:$0xff] }
 0x433   :  { %v1604_v23 = vld [vmem:[#allocation15 + $0xd08] sm:$0xff]  ;;  %v16436_v17 = vcombine.low %v1516_v24, %v1520_v5 }
 0x434   :  { %10502 = vmatpush2.bf16.msra.mxu1 %v16484_v55  ;;  %v20610_v55 = vld [vmem:[#allocation48_spill] sm:$0xff]  ;;  %v1608_v31 = vld [vmem:[#allocation15 + $0xd28] sm:$0xff] }
 0x435   :  { %10503 = vmatprep.subr.bf16.mxu1 %v16477_v62  ;;  %10471 = vmatpush2.bf16.msra.mxu0 %v16316_v45  ;;  %v16437_v62 = vcombine.high %v1516_v24, %v1520_v5  ;;  %v1508_v7 = vld [vmem:[#allocation15 + $0xa08] sm:$0xff]  ;;  %v16525_v11 = vcombine.high %v1604_v23, %v1608_v31  ;;  %v16524_v32 = vcombine.low %v1604_v23, %v1608_v31 }
 0x436   :  { %10472 = vmatprep.subr.bf16.mxu0 %v16309_v35  ;;  %v1512_v45 = vld [vmem:[#allocation15 + $0xa28] sm:$0xff]  ;;  %v16532_v35 = vcombine.low %v1612_v63, %v1616_v21 }
 0x437   :  { %v1756_v57 = vld [vmem:[#allocation15 + $0x11c8] sm:$0xff] }
 0x438   :  { %10504 = vmatpush2.bf16.msra.mxu1 %v16476_v54  ;;  %v1760_v13 = vld [vmem:[#allocation15 + $0x11e8] sm:$0xff] }
 0x439   :  { %10505 = vmatprep.subr.bf16.mxu1 %v16469_v51  ;;  %10473 = vmatpush2.bf16.msra.mxu0 %v16308_v8  ;;  %v16429_v8 = vcombine.high %v1508_v7, %v1512_v45  ;;  %v1588_v28 = vld [vmem:[#allocation15 + $0xc88] sm:$0xff] }
 0x43a   :  { %10474 = vmatprep.subr.bf16.mxu0 %v16301_v2  ;;  %v1600_v2 = vld [vmem:[#allocation15 + $0xce8] sm:$0xff] }
 0x43b   :  { %v1592_v52 = vld [vmem:[#allocation15 + $0xca8] sm:$0xff] }
 0x43c   :  { %10506 = vmatpush2.bf16.msra.mxu1 %v16468_v15  ;;  %v1596_v15 = vld [vmem:[#allocation15 + $0xcc8] sm:$0xff]  ;;  %v16508_v5 = vcombine.low %v1588_v28, %v1592_v52 }
 0x43d   :  { %10507 = vmatprep.subr.bf16.mxu1 %v16461_v37  ;;  %10475 = vmatpush2.bf16.msra.mxu0 %v16300_v27  ;;  %v16428_v27 = vcombine.low %v1508_v7, %v1512_v45  ;;  %v1748_v59 = vld [vmem:[#allocation15 + $0x1188] sm:$0xff] }
 0x43e   :  { %10526 = vmatprep.subr.bf16.mxu0 %v16549_v58  ;;  %v1752_v34 = vld [vmem:[#allocation15 + $0x11a8] sm:$0xff] }
 0x43f   :  { %v1580_v63 = vld [vmem:[#allocation15 + $0xc48] sm:$0xff] }
 0x440   :  { %10508 = vmatpush2.bf16.msra.mxu1 %v16460_v25  ;;  %v10191_v39 = vpop.f32.mrf.mxu0  ;;  %10477 = vmatmul.mubr.bf16.vlgmr.msra.gmra.mxu0 %v19633_v6  ;;  %v16517_v25 = vcombine.high %v1596_v15, %v1600_v2  ;;  %v1584_v21 = vld [vmem:[#allocation15 + $0xc68] sm:$0xff] }
 0x441   :  { %10509 = vmatprep.subr.bf16.mxu1 %v16453_v60  ;;  %v10192_v46 = vadd.f32 %v10191_v39, %v20609_v30  ;;  %10527 = vmatpush1.bf16.msra.mxu0 %v16548_v49  ;;  %v16677_v60 = vcombine.high %v1756_v57, %v1760_v13  ;;  %v16516_v49 = vcombine.low %v1596_v15, %v1600_v2  ;;  %v1740_v39 = vld [vmem:[#allocation15 + $0x1148] sm:$0xff] }
 0x442   :  { %10558 = vmatprep.mubr.bf16.mxu0 %v19638_v12  ;;  %v10193_v50 = vpop.f32.mrf.mxu0  ;;  %10528 = vmatprep.subr.bf16.mxu0 %v16541_v41  ;;  %v16509_v41 = vcombine.high %v1588_v28, %v1592_v52  ;;  %v1744_v24 = vld [vmem:[#allocation15 + $0x1168] sm:$0xff]  ;;  %v16668_v30 = vcombine.low %v1748_v59, %v1752_v34 }
 0x443   :  { %v10194_v10 = vadd.f32 %v10193_v50, %v20610_v55  ;;  %v1576_v50 = vld [vmem:[#allocation15 + $0xc28] sm:$0xff] }
 0x444   :  { %10510 = vmatpush2.bf16.msra.mxu1 %v16452_v29  ;;  %v10195_v42 = vpop.f32.mrf.mxu0  ;;  %v16676_v29 = vcombine.low %v1756_v57, %v1760_v13  ;;  %v1736_v55 = vld [vmem:[#allocation15 + $0x1128] sm:$0xff] }
 0x445   :  { %10511 = vmatprep.subr.bf16.mxu1 %v16445_v61  ;;  %10529 = vmatpush1.bf16.msra.mxu0 %v16540_v38  ;;  %v16669_v61 = vcombine.high %v1748_v59, %v1752_v34  ;;  %v16661_v38 = vcombine.high %v1740_v39, %v1744_v24  ;;  %v1692_v42 = vld [vmem:[#allocation15 + $0xfc8] sm:$0xff] }
 0x446   :  { %v10196_v36 = vpop.f32.mrf.mxu0  ;;  %10530 = vmatprep.subr.bf16.mxu0 %v16533_v53  ;;  %v1732_v53 = vld [vmem:[#allocation15 + $0x1108] sm:$0xff] }
 0x447   :  { %v10232_v54 = vpop.f32.mrf.mxu1  ;;  %v16653_v31 = vcombine.high %v1732_v53, %v1736_v55  ;;  %v1696_v7 = vld [vmem:[#allocation15 + $0xfe8] sm:$0xff] }
 0x448   :  { %v19743_v51 = vadd.f32 %v10232_v54, %v10192_v46  ;;  %10512 = vmatpush2.bf16.msra.mxu1 %v16444_v14  ;;  %v16501_v46 = vcombine.high %v1580_v63, %v1584_v21  ;;  %v1572_v14 = vld [vmem:[#allocation15 + $0xc08] sm:$0xff]  ;;  %v16613_v36 = vcombine.high %v1692_v42, %v1696_v7  ;;  %v16612_v57 = vcombine.low %v1692_v42, %v1696_v7 }
 0x449   :  { %v10234_v19 = vpop.f32.mrf.mxu1  ;;  %10513 = vmatprep.subr.bf16.mxu1 %v16437_v62  ;;  %10531 = vmatpush1.bf16.msra.mxu0 %v16532_v35  ;;  %v16660_v62 = vcombine.low %v1740_v39, %v1744_v24  ;;  %v16493_v23 = vcombine.high %v1572_v14, %v1576_v50  ;;  %v1724_v45 = vld [vmem:[#allocation15 + $0x10c8] sm:$0xff]  ;;  %v16492_v35 = vcombine.low %v1572_v14, %v1576_v50 }
 0x44a   :  { %v19745_v37 = vadd.f32 %v10234_v19, %v10194_v10  ;;  %10532 = vmatprep.subr.bf16.mxu0 %v16525_v11  ;;  %v16500_v10 = vcombine.low %v1580_v63, %v1584_v21  ;;  %v1728_v54 = vld [vmem:[#allocation15 + $0x10e8] sm:$0xff] }
 0x44b   :  { %v10236_v4 = vpop.f32.mrf.mxu1  ;;  %v16645_v11 = vcombine.high %v1724_v45, %v1728_v54  ;;  %v1684_v19 = vld [vmem:[#allocation15 + $0xf88] sm:$0xff]  ;;  %v16644_v13 = vcombine.low %v1724_v45, %v1728_v54 }
 0x44c   :  { %10514 = vmatpush2.bf16.msra.mxu1 %v16436_v17  ;;  %v16652_v17 = vcombine.low %v1732_v53, %v1736_v55  ;;  %v1716_v15 = vld [vmem:[#allocation15 + $0x1088] sm:$0xff] }
 0x44d   :  { %v10237_v58 = vpop.f32.mrf.mxu1  ;;  %10515 = vmatprep.subr.bf16.mxu1 %v16429_v8  ;;  %10533 = vmatpush1.bf16.msra.mxu0 %v16524_v32  ;;  %v1688_v8 = vld [vmem:[#allocation15 + $0xfa8] sm:$0xff] }
 0x44e   :  { %10534 = vmatprep.subr.bf16.mxu0 %v16517_v25  ;;  %v1720_v2 = vld [vmem:[#allocation15 + $0x10a8] sm:$0xff]  ;;  %v16605_v4 = vcombine.high %v1684_v19, %v1688_v8  ;;  %v16604_v28 = vcombine.low %v1684_v19, %v1688_v8 }
 0x44f   :  { %v16637_v32 = vcombine.high %v1716_v15, %v1720_v2  ;;  %v1680_v25 = vld [vmem:[#allocation15 + $0xf68] sm:$0xff]  ;;  %v16636_v52 = vcombine.low %v1716_v15, %v1720_v2 }
 0x450   :  { %10516 = vmatpush2.bf16.msra.mxu1 %v16428_v27  ;;  %v1676_v27 = vld [vmem:[#allocation15 + $0xf48] sm:$0xff] }
 0x451   :  { %10567 = vmatprep.subr.bf16.mxu1 %v16677_v60  ;;  %10535 = vmatpush1.bf16.msra.mxu0 %v16516_v49  ;;  %v1708_v58 = vld [vmem:[#allocation15 + $0x1048] sm:$0xff]  ;;  %v16597_v59 = vcombine.high %v1676_v27, %v1680_v25  ;;  %v16596_v63 = vcombine.low %v1676_v27, %v1680_v25 }
 0x452   :  { %10536 = vmatprep.subr.bf16.mxu0 %v16509_v41  ;;  %v1712_v60 = vld [vmem:[#allocation15 + $0x1068] sm:$0xff] }
 0x453   :  { %10518 = vmatmul.mubr.bf16.vlgmr.msra.gmra.mxu1 %v19690_v47  ;;  %v16629_v34 = vcombine.high %v1708_v58, %v1712_v60  ;;  %v1668_v49 = vld [vmem:[#allocation15 + $0xf08] sm:$0xff]  ;;  %v16628_v21 = vcombine.low %v1708_v58, %v1712_v60 }
 0x454   :  { %10568 = vmatpush1.bf16.msra.mxu1 %v16676_v29  ;;  %10599 = vmatprep.mubr.bf16.mxu1 %v19694_v20  ;;  %v1672_v29 = vld [vmem:[#allocation15 + $0xf28] sm:$0xff] }
 0x455   :  { %10569 = vmatprep.subr.bf16.mxu1 %v16669_v61  ;;  %10537 = vmatpush1.bf16.msra.mxu0 %v16508_v5  ;;  %v1700_v41 = vld [vmem:[#allocation15 + $0x1008] sm:$0xff]  ;;  %v16589_v39 = vcombine.high %v1668_v49, %v1672_v29  ;;  %v16588_v14 = vcombine.low %v1668_v49, %v1672_v29 }
 0x456   :  { %10538 = vmatprep.subr.bf16.mxu0 %v16501_v46  ;;  %v1704_v61 = vld [vmem:[#allocation15 + $0x1028] sm:$0xff] }
 0x457   :  { %v16621_v24 = vcombine.high %v1700_v41, %v1704_v61  ;;  %v1660_v5 = vld [vmem:[#allocation15 + $0xec8] sm:$0xff]  ;;  %v16620_v50 = vcombine.low %v1700_v41, %v1704_v61 }
 0x458   :  { %10570 = vmatpush1.bf16.msra.mxu1 %v16668_v30  ;;  %v1664_v30 = vld [vmem:[#allocation15 + $0xee8] sm:$0xff] }
 0x459   :  { %10571 = vmatprep.subr.bf16.mxu1 %v16661_v38  ;;  %10539 = vmatpush1.bf16.msra.mxu0 %v16500_v10  ;;  %v1820_v46 = vld [vmem:[#allocation15 + $0x13c8] sm:$0xff]  ;;  %v16581_v53 = vcombine.high %v1660_v5, %v1664_v30  ;;  %v16580_v42 = vcombine.low %v1660_v5, %v1664_v30 }
 0x45a   :  { %10540 = vmatprep.subr.bf16.mxu0 %v16493_v23  ;;  %v1824_v38 = vld [vmem:[#allocation15 + $0x13e8] sm:$0xff] }
 0x45b   :  { %v16741_v55 = vcombine.high %v1820_v46, %v1824_v38  ;;  %v1652_v10 = vld [vmem:[#allocation15 + $0xe88] sm:$0xff]  ;;  %v16740_v7 = vcombine.low %v1820_v46, %v1824_v38 }
 0x45c   :  { %10572 = vmatpush1.bf16.msra.mxu1 %v16660_v62  ;;  %v1656_v62 = vld [vmem:[#allocation15 + $0xea8] sm:$0xff] }
 0x45d   :  { %10573 = vmatprep.subr.bf16.mxu1 %v16653_v31  ;;  %10541 = vmatpush1.bf16.msra.mxu0 %v16492_v35  ;;  %v1812_v23 = vld [vmem:[#allocation15 + $0x1388] sm:$0xff]  ;;  %v16573_v45 = vcombine.high %v1652_v10, %v1656_v62  ;;  %v16572_v19 = vcombine.low %v1652_v10, %v1656_v62 }
 0x45e   :  { %10542 = vmatprep.subr.bf16.mxu0 %v16613_v36  ;;  %v1816_v31 = vld [vmem:[#allocation15 + $0x13a8] sm:$0xff] }
 0x45f   :  { %v16733_v54 = vcombine.high %v1812_v23, %v1816_v31  ;;  %v1644_v35 = vld [vmem:[#allocation15 + $0xe48] sm:$0xff]  ;;  %v16732_v8 = vcombine.low %v1812_v23, %v1816_v31 }
 0x460   :  { %10574 = vmatpush1.bf16.msra.mxu1 %v16652_v17  ;;  %v1648_v17 = vld [vmem:[#allocation15 + $0xe68] sm:$0xff] }
 0x461   :  { %10575 = vmatprep.subr.bf16.mxu1 %v16645_v11  ;;  %10543 = vmatpush2.bf16.msra.mxu0 %v16612_v57  ;;  %v1804_v36 = vld [vmem:[#allocation15 + $0x1348] sm:$0xff]  ;;  %v16565_v15 = vcombine.high %v1644_v35, %v1648_v17  ;;  %v16564_v27 = vcombine.low %v1644_v35, %v1648_v17  ;;  %v1245_v35 = vld [vmem:[#allocation15 + $0x1d0] sm:$0xff] }
 0x462   :  { %10544 = vmatprep.subr.bf16.mxu0 %v16605_v4  ;;  %v1808_v11 = vld [vmem:[#allocation15 + $0x1368] sm:$0xff]  ;;  %v1249_v17 = vld [vmem:[#allocation15 + $0x1f0] sm:$0xff] }
 0x463   :  { %v16725_v2 = vcombine.high %v1804_v36, %v1808_v11  ;;  %v1636_v57 = vld [vmem:[#allocation15 + $0xe08] sm:$0xff]  ;;  %v16724_v25 = vcombine.low %v1804_v36, %v1808_v11 }
 0x464   :  { %10576 = vmatpush1.bf16.msra.mxu1 %v16644_v13  ;;  %v1640_v13 = vld [vmem:[#allocation15 + $0xe28] sm:$0xff] }
 0x465   :  { %10577 = vmatprep.subr.bf16.mxu1 %v16637_v32  ;;  %10545 = vmatpush2.bf16.msra.mxu0 %v16604_v28  ;;  %v1796_v4 = vld [vmem:[#allocation15 + $0x1308] sm:$0xff]  ;;  %v16557_v58 = vcombine.high %v1636_v57, %v1640_v13 }
 0x466   :  { %10546 = vmatprep.subr.bf16.mxu0 %v16597_v59  ;;  %v1800_v32 = vld [vmem:[#allocation15 + $0x1328] sm:$0xff] }
 0x467   :  { %v16717_v60 = vcombine.high %v1796_v4, %v1800_v32  ;;  %v1844_v28 = vld [vmem:[#allocation15 + $0x1488] sm:$0x11]  ;;  %v16716_v49 = vcombine.low %v1796_v4, %v1800_v32 }
 0x468   :  { %10578 = vmatpush1.bf16.msra.mxu1 %v16636_v52  ;;  %v1788_v52 = vld [vmem:[#allocation15 + $0x12c8] sm:$0xff]  ;;  %v16765_v29 = vcombine.high %v1844_v28, %v1844_v28  ;;  %v16764_v41 = vcombine.low %v1844_v28, %v1844_v28 }
 0x469   :  { %10579 = vmatprep.subr.bf16.mxu1 %v16629_v34  ;;  %10547 = vmatpush2.bf16.msra.mxu0 %v16596_v63  ;;  %v1792_v59 = vld [vmem:[#allocation15 + $0x12e8] sm:$0xff]  ;;  %v16556_v34 = vcombine.low %v1636_v57, %v1640_v13  ;;  %v16167_v13 = vcombine.high %v1245_v35, %v1249_v17 }
 0x46a   :  { %10548 = vmatprep.subr.bf16.mxu0 %v16589_v39  ;;  %v16709_v61 = vcombine.high %v1788_v52, %v1792_v59  ;;  %v1836_v63 = vld [vmem:[#allocation15 + $0x1448] sm:$0xff]  ;;  %v16708_v5 = vcombine.low %v1788_v52, %v1792_v59  ;;  %v10140_v30 = vsel %vm5821_vm1, %v16764_v41, 0  ;;  %v16166_v52 = vcombine.low %v1245_v35, %v1249_v17  ;;  %v1229_v41 = vld [vmem:[#allocation15 + $0x150] sm:$0xff] }
 0x46b   :  { %v1780_v39 = vld [vmem:[#allocation15 + $0x1288] sm:$0xff] }
 0x46c   :  { %10580 = vmatpush1.bf16.msra.mxu1 %v16628_v21  ;;  %v1840_v21 = vld [vmem:[#allocation15 + $0x1468] sm:$0xff] }
 0x46d   :  { %10581 = vmatprep.subr.bf16.mxu1 %v16621_v24  ;;  %10549 = vmatpush2.bf16.msra.mxu0 %v16588_v14  ;;  %v1784_v24 = vld [vmem:[#allocation15 + $0x12a8] sm:$0xff]  ;;  %v16757_v46 = vcombine.high %v1836_v63, %v1840_v21  ;;  %v16756_v23 = vcombine.low %v1836_v63, %v1840_v21  ;;  %v1365_v63 = vld [vmem:[#allocation15 + $0x590] sm:$0xff] }
 0x46e   :  { %10550 = vmatprep.subr.bf16.mxu0 %v16581_v53  ;;  %v16701_v38 = vcombine.high %v1780_v39, %v1784_v24  ;;  %v1828_v14 = vld [vmem:[#allocation15 + $0x1408] sm:$0xff]  ;;  %v16700_v31 = vcombine.low %v1780_v39, %v1784_v24  ;;  %v1369_v21 = vld [vmem:[#allocation15 + $0x5b0] sm:$0xff] }
 0x46f   :  { %v1776_v10 = vld [vmem:[#allocation15 + $0x1268] sm:$0xff] }
 0x470   :  { %10582 = vmatpush1.bf16.msra.mxu1 %v16620_v50  ;;  %v1832_v50 = vld [vmem:[#allocation15 + $0x1428] sm:$0xff] }
 0x471   :  { %10583 = vmatprep.subr.bf16.mxu1 %v16741_v55  ;;  %10551 = vmatpush2.bf16.msra.mxu0 %v16580_v42  ;;  %v1772_v55 = vld [vmem:[#allocation15 + $0x1248] sm:$0xff] }
 0x472   :  { %10552 = vmatprep.subr.bf16.mxu0 %v16573_v45  ;;  %v1764_v11 = vld [vmem:[#allocation15 + $0x1208] sm:$0xff] }
 0x474   :  { %10584 = vmatpush2.bf16.msra.mxu1 %v16740_v7  ;;  %v16749_v7 = vcombine.high %v1828_v14, %v1832_v50 }
 0x475   :  { %10585 = vmatprep.subr.bf16.mxu1 %v16733_v54  ;;  %10553 = vmatpush2.bf16.msra.mxu0 %v16572_v19  ;;  %v16693_v54 = vcombine.high %v1772_v55, %v1776_v10  ;;  %v1768_v19 = vld [vmem:[#allocation15 + $0x1228] sm:$0xff] }
 0x476   :  { %10554 = vmatprep.subr.bf16.mxu0 %v16565_v15  ;;  %v16685_v32 = vcombine.high %v1764_v11, %v1768_v19  ;;  %v16684_v59 = vcombine.low %v1764_v11, %v1768_v19 }
 0x478   :  { %10586 = vmatpush2.bf16.msra.mxu1 %v16732_v8 }
 0x479   :  { %10587 = vmatprep.subr.bf16.mxu1 %v16725_v2  ;;  %10555 = vmatpush2.bf16.msra.mxu0 %v16564_v27  ;;  %v16692_v2 = vcombine.low %v1772_v55, %v1776_v10  ;;  %v1241_v27 = vld [vmem:[#allocation15 + $0x1b0] sm:$0xff]  ;;  %v16286_v10 = vcombine.low %v1365_v63, %v1369_v21 }
 0x47a   :  { %10556 = vmatprep.subr.bf16.mxu0 %v16557_v58  ;;  %v1373_v58 = vld [vmem:[#allocation15 + $0x5d0] sm:$0xff] }
 0x47c   :  { %10588 = vmatpush2.bf16.msra.mxu1 %v16724_v25 }
 0x47d   :  { %10589 = vmatprep.subr.bf16.mxu1 %v16717_v60  ;;  %10557 = vmatpush2.bf16.msra.mxu0 %v16556_v34  ;;  %v1377_v60 = vld [vmem:[#allocation15 + $0x5f0] sm:$0xff] }
 0x47e   :  { %16772 = vmatprep.subr.msk.bf16.mxu0 %vm5821_vm1, %v16765_v29  ;;  %v16295_v29 = vcombine.high %v1373_v58, %v1377_v60  ;;  %v16294_v24 = vcombine.low %v1373_v58, %v1377_v60  ;;  %v1197_v58 = vld [vmem:[#allocation15 + $0x50] sm:$0xff] }
 0x47f   :  { %v1201_v60 = vld [vmem:[#allocation15 + $0x70] sm:$0xff] }
 0x480   :  { %10590 = vmatpush2.bf16.msra.mxu1 %v16716_v49  ;;  %v10273_v53 = vpop.f32.mrf.mxu0  ;;  %10559 = vmatmul.mubr.bf16.vlgmr.msra.gmra.mxu0 %v19697_v26 }
 0x481   :  { %10591 = vmatprep.subr.bf16.mxu1 %v16709_v61  ;;  %v10274_v62 = vadd.f32 %v10273_v53, %v19743_v51  ;;  %10619 = vmatpush1.bf16.msra.mxu0 %v10140_v30  ;;  %v16748_v51 = vcombine.low %v1828_v14, %v1832_v50  ;;  %v1233_v61 = vld [vmem:[#allocation15 + $0x170] sm:$0xff]  ;;  %v16287_v30 = vcombine.high %v1365_v63, %v1369_v21 }
 0x482   :  { %10640 = vmatprep.mubr.bf16.mxu0 %v20574_v40  ;;  %v10275_v42 = vpop.f32.mrf.mxu0  ;;  %10620 = vmatprep.subr.bf16.mxu0 %v16757_v46  ;;  %v1221_v46 = vld [vmem:[#allocation15 + $0x110] sm:$0xff]  ;;  %v16150_v55 = vcombine.low %v1229_v41, %v1233_v61 }
 0x483   :  { %v10276_v45 = vadd.f32 %v10275_v42, %v19745_v37  ;;  %v1237_v37 = vld [vmem:[#allocation15 + $0x190] sm:$0xff] }
 0x484   :  { %10592 = vmatpush2.bf16.msra.mxu1 %v16708_v5  ;;  %v10277_v36 = vpop.f32.mrf.mxu0  ;;  %v16159_v34 = vcombine.high %v1237_v37, %v1241_v27  ;;  %v16158_v39 = vcombine.low %v1237_v37, %v1241_v27  ;;  %v16151_v5 = vcombine.high %v1229_v41, %v1233_v61  ;;  %v1357_v14 = vld [vmem:[#allocation15 + $0x550] sm:$0xff] }
 0x485   :  { %10593 = vmatprep.subr.bf16.mxu1 %v16701_v38  ;;  %10621 = vmatpush1.bf16.msra.mxu0 %v16756_v23  ;;  %v1225_v38 = vld [vmem:[#allocation15 + $0x130] sm:$0xff] }
 0x486   :  { %v10278_v57 = vpop.f32.mrf.mxu0  ;;  %10622 = vmatprep.subr.bf16.mxu0 %v16749_v7  ;;  %v1361_v50 = vld [vmem:[#allocation15 + $0x570] sm:$0xff]  ;;  %v16142_v17 = vcombine.low %v1221_v46, %v1225_v38 }
 0x487   :  { %v10314_v8 = vpop.f32.mrf.mxu1  ;;  %v1213_v42 = vld [vmem:[#allocation15 + $0xd0] sm:$0xff]  ;;  %v16278_v36 = vcombine.low %v1357_v14, %v1361_v50 }
 0x488   :  { %v19755_v15 = vadd.f32 %v10314_v8, %v10274_v62  ;;  %10594 = vmatpush2.bf16.msra.mxu1 %v16700_v31  ;;  %v16143_v62 = vcombine.high %v1221_v46, %v1225_v38  ;;  %v16279_v31 = vcombine.high %v1357_v14, %v1361_v50  ;;  %v1217_v7 = vld [vmem:[#allocation15 + $0xf0] sm:$0xff] }
 0x489   :  { %v10316_v4 = vpop.f32.mrf.mxu1  ;;  %10595 = vmatprep.subr.bf16.mxu1 %v16693_v54  ;;  %10623 = vmatpush1.bf16.msra.mxu0 %v16748_v51  ;;  %v1353_v54 = vld [vmem:[#allocation15 + $0x530] sm:$0xff]  ;;  %v16135_v11 = vcombine.high %v1213_v42, %v1217_v7 }
 0x48a   :  { %v19757_v25 = vadd.f32 %v10316_v4, %v10276_v45  ;;  %10649 = vmatprep.subr.bf16.mxu0 %v16167_v13  ;;  %v1349_v45 = vld [vmem:[#allocation15 + $0x510] sm:$0xff]  ;;  %v16134_v4 = vcombine.low %v1213_v42, %v1217_v7 }
 0x48b   :  { %v10318_v28 = vpop.f32.mrf.mxu1  ;;  %v16271_v8 = vcombine.high %v1349_v45, %v1353_v54  ;;  %v1205_v51 = vld [vmem:[#allocation15 + $0x90] sm:$0xff] }
 0x48c   :  { %10596 = vmatpush2.bf16.msra.mxu1 %v16692_v2  ;;  %16773 = vmatmul.mubr.msk.bf16.vlgmr.msra.gmra.mxu0 %vm592_vm0, %v19713_v0  ;;  %v1209_v2 = vld [vmem:[#allocation15 + $0xb0] sm:$0xff] }
 0x48d   :  { %v10319_v49 = vpop.f32.mrf.mxu1  ;;  %10597 = vmatprep.subr.bf16.mxu1 %v16685_v32  ;;  %10650 = vmatpush1.bf16.msra.mxu0 %v16166_v52  ;;  %v1341_v57 = vld [vmem:[#allocation15 + $0x4d0] sm:$0xff]  ;;  %v16270_v32 = vcombine.low %v1349_v45, %v1353_v54  ;;  %v16127_v37 = vcombine.high %v1205_v51, %v1209_v2 }
 0x48e   :  { %10681 = vmatprep.mubr.bf16.mxu0 %v20607_v9  ;;  %10651 = vmatprep.subr.bf16.mxu0 %v16159_v34  ;;  %v1345_v13 = vld [vmem:[#allocation15 + $0x4f0] sm:$0xff]  ;;  %v16119_v49 = vcombine.high %v1197_v58, %v1201_v60 }
 0x48f   :  { %v16263_v27 = vcombine.high %v1341_v57, %v1345_v13  ;;  %v1333_v28 = vld [vmem:[#allocation15 + $0x490] sm:$0xff]  ;;  %v16262_v34 = vcombine.low %v1341_v57, %v1345_v13 }
 0x490   :  { %10598 = vmatpush2.bf16.msra.mxu1 %v16684_v59  ;;  %v1337_v52 = vld [vmem:[#allocation15 + $0x4b0] sm:$0xff]  ;;  %v16126_v59 = vcombine.low %v1205_v51, %v1209_v2 }
 0x491   :  { %10690 = vmatprep.subr.bf16.mxu1 %v16295_v29  ;;  %10652 = vmatpush1.bf16.msra.mxu0 %v16158_v39  ;;  %v16255_v29 = vcombine.high %v1333_v28, %v1337_v52  ;;  %v1189_v41 = vld [vmem:[#allocation15 + $0x10] sm:$0xff]  ;;  %v16118_v39 = vcombine.low %v1197_v58, %v1201_v60 }
 0x492   :  { %10653 = vmatprep.subr.bf16.mxu0 %v16151_v5  ;;  %v1193_v61 = vld [vmem:[#allocation15 + $0x30] sm:$0xff] }
 0x493   :  { %v19762_v53 = vpop.f32.mrf.mxu1  ;;  %10600 = vmatmul.mubr.bf16.vlgmr.msra.gmra.mxu1 %v19727_v16  ;;  %v1325_v63 = vld [vmem:[#allocation15 + $0x450] sm:$0xff]  ;;  %v16111_v5 = vcombine.high %v1189_v41, %v1193_v61 }
 0x494   :  { %10691 = vmatpush1.bf16.msra.mxu1 %v16294_v24  ;;  %10722 = vmatprep.mubr.bf16.mxu1 %v20608_v48  ;;  %v1329_v21 = vld [vmem:[#allocation15 + $0x470] sm:$0xff]  ;;  %v16254_v24 = vcombine.low %v1333_v28, %v1337_v52 }
 0x495   :  { %v19765_v23 = vpop.f32.mrf.mxu1  ;;  %10692 = vmatprep.subr.bf16.mxu1 %v16287_v30  ;;  %10654 = vmatpush1.bf16.msra.mxu0 %v16150_v55  ;;  %v16247_v30 = vcombine.high %v1325_v63, %v1329_v21  ;;  %v1309_v46 = vld [vmem:[#allocation15 + $0x3d0] sm:$0xff]  ;;  %v16110_v55 = vcombine.low %v1189_v41, %v1193_v61 }
 0x496   :  { %10655 = vmatprep.subr.bf16.mxu0 %v16143_v62  ;;  %v1313_v38 = vld [vmem:[#allocation15 + $0x3f0] sm:$0xff] }
 0x497   :  { %v10400_v35 = vpop.f32.mrf.mxu1  ;;  %v1317_v14 = vld [vmem:[#allocation15 + $0x410] sm:$0xff]  ;;  %v16231_v62 = vcombine.high %v1309_v46, %v1313_v38 }
 0x498   :  { %10693 = vmatpush1.bf16.msra.mxu1 %v16286_v10  ;;  %v1321_v50 = vld [vmem:[#allocation15 + $0x430] sm:$0xff]  ;;  %v16246_v10 = vcombine.low %v1325_v63, %v1329_v21  ;;  %v16230_v35 = vcombine.low %v1309_v46, %v1313_v38 }
 0x499   :  { %v10401_v19 = vpop.f32.mrf.mxu1  ;;  %10694 = vmatprep.subr.bf16.mxu1 %v16279_v31  ;;  %10656 = vmatpush1.bf16.msra.mxu0 %v16142_v17  ;;  %v16239_v31 = vcombine.high %v1317_v14, %v1321_v50  ;;  %v1301_v42 = vld [vmem:[#allocation15 + $0x390] sm:$0xff]  ;;  %v16238_v17 = vcombine.low %v1317_v14, %v1321_v50 }
 0x49a   :  { %10657 = vmatprep.subr.bf16.mxu0 %v16135_v11  ;;  %v1305_v7 = vld [vmem:[#allocation15 + $0x3b0] sm:$0xff] }
 0x49b   :  { %v1437_v45 = vld [vmem:[#allocation15 + $0x7d0] sm:$0xff]  ;;  %v16222_v57 = vcombine.low %v1301_v42, %v1305_v7 }
 0x49c   :  { %10695 = vmatpush1.bf16.msra.mxu1 %v16278_v36  ;;  %v1441_v54 = vld [vmem:[#allocation15 + $0x7f0] sm:$0xff]  ;;  %v16223_v36 = vcombine.high %v1301_v42, %v1305_v7 }
 0x49d   :  { %10696 = vmatprep.subr.bf16.mxu1 %v16271_v8  ;;  %10658 = vmatpush1.bf16.msra.mxu0 %v16134_v4  ;;  %v16359_v11 = vcombine.high %v1437_v45, %v1441_v54  ;;  %v1293_v19 = vld [vmem:[#allocation15 + $0x350] sm:$0xff]  ;;  %v16358_v13 = vcombine.low %v1437_v45, %v1441_v54 }
 0x49e   :  { %10659 = vmatprep.subr.bf16.mxu0 %v16127_v37  ;;  %v1297_v8 = vld [vmem:[#allocation15 + $0x370] sm:$0xff] }
 0x49f   :  { %v1429_v51 = vld [vmem:[#allocation15 + $0x790] sm:$0xff]  ;;  %v16215_v4 = vcombine.high %v1293_v19, %v1297_v8  ;;  %v16214_v28 = vcombine.low %v1293_v19, %v1297_v8 }
 0x4a0   :  { %10697 = vmatpush1.bf16.msra.mxu1 %v16270_v32  ;;  %v1433_v2 = vld [vmem:[#allocation15 + $0x7b0] sm:$0xff] }
 0x4a1   :  { %10698 = vmatprep.subr.bf16.mxu1 %v16263_v27  ;;  %10660 = vmatpush1.bf16.msra.mxu0 %v16126_v59  ;;  %v16351_v32 = vcombine.high %v1429_v51, %v1433_v2  ;;  %v1285_v37 = vld [vmem:[#allocation15 + $0x310] sm:$0xff]  ;;  %v16350_v52 = vcombine.low %v1429_v51, %v1433_v2 }
 0x4a2   :  { %10661 = vmatprep.subr.bf16.mxu0 %v16119_v49  ;;  %v1289_v27 = vld [vmem:[#allocation15 + $0x330] sm:$0xff] }
 0x4a3   :  { %v1421_v58 = vld [vmem:[#allocation15 + $0x750] sm:$0xff]  ;;  %v16207_v59 = vcombine.high %v1285_v37, %v1289_v27  ;;  %v16206_v63 = vcombine.low %v1285_v37, %v1289_v27 }
 0x4a4   :  { %10699 = vmatpush1.bf16.msra.mxu1 %v16262_v34  ;;  %v1425_v60 = vld [vmem:[#allocation15 + $0x770] sm:$0xff] }
 0x4a5   :  { %10700 = vmatprep.subr.bf16.mxu1 %v16255_v29  ;;  %10662 = vmatpush1.bf16.msra.mxu0 %v16118_v39  ;;  %v16343_v34 = vcombine.high %v1421_v58, %v1425_v60  ;;  %v1277_v49 = vld [vmem:[#allocation15 + $0x2d0] sm:$0xff]  ;;  %v16342_v21 = vcombine.low %v1421_v58, %v1425_v60 }
 0x4a6   :  { %10663 = vmatprep.subr.bf16.mxu0 %v16111_v5  ;;  %v1281_v29 = vld [vmem:[#allocation15 + $0x2f0] sm:$0xff] }
 0x4a7   :  { %v1413_v41 = vld [vmem:[#allocation15 + $0x710] sm:$0xff]  ;;  %v16199_v39 = vcombine.high %v1277_v49, %v1281_v29  ;;  %v16198_v14 = vcombine.low %v1277_v49, %v1281_v29 }
 0x4a8   :  { %10701 = vmatpush1.bf16.msra.mxu1 %v16254_v24  ;;  %v1417_v61 = vld [vmem:[#allocation15 + $0x730] sm:$0xff] }
 0x4a9   :  { %10702 = vmatprep.subr.bf16.mxu1 %v16247_v30  ;;  %10664 = vmatpush1.bf16.msra.mxu0 %v16110_v55  ;;  %v16335_v24 = vcombine.high %v1413_v41, %v1417_v61  ;;  %v1269_v5 = vld [vmem:[#allocation15 + $0x290] sm:$0xff]  ;;  %v16334_v50 = vcombine.low %v1413_v41, %v1417_v61  ;;  %v19768_v55 = vld [vmem:[#allocation11] sm:$0x77] }
 0x4aa   :  { %10665 = vmatprep.subr.bf16.mxu0 %v16231_v62  ;;  %v1273_v30 = vld [vmem:[#allocation15 + $0x2b0] sm:$0xff]  ;;  %v11148_v54 = vrot.slane %v19768_v55, %v19433_v43 }
 0x4ab   :  { %v1405_v46 = vld [vmem:[#allocation15 + $0x6d0] sm:$0xff] }
 0x4ac   :  { %10703 = vmatpush1.bf16.msra.mxu1 %v16246_v10  ;;  %v1409_v38 = vld [vmem:[#allocation15 + $0x6f0] sm:$0xff]  ;;  %v16191_v10 = vcombine.high %v1269_v5, %v1273_v30 }
 0x4ad   :  { %10704 = vmatprep.subr.bf16.mxu1 %v16239_v31  ;;  %10666 = vmatpush2.bf16.msra.mxu0 %v16230_v35  ;;  %v16327_v62 = vcombine.high %v1405_v46, %v1409_v38  ;;  %v1261_v31 = vld [vmem:[#allocation15 + $0x250] sm:$0xff]  ;;  %v16190_v35 = vcombine.low %v1269_v5, %v1273_v30 }
 0x4ae   :  { %10667 = vmatprep.subr.bf16.mxu0 %v16223_v36  ;;  %v1265_v42 = vld [vmem:[#allocation15 + $0x270] sm:$0xff] }
 0x4af   :  { %v1397_v7 = vld [vmem:[#allocation15 + $0x690] sm:$0xff]  ;;  %v16183_v36 = vcombine.high %v1261_v31, %v1265_v42 }
 0x4b0   :  { %10705 = vmatpush1.bf16.msra.mxu1 %v16238_v17  ;;  %v1401_v45 = vld [vmem:[#allocation15 + $0x6b0] sm:$0xff]  ;;  %v16326_v17 = vcombine.low %v1405_v46, %v1409_v38 }
 0x4b1   :  { %10706 = vmatprep.subr.bf16.mxu1 %v16359_v11  ;;  %10668 = vmatpush2.bf16.msra.mxu0 %v16222_v57  ;;  %v16319_v11 = vcombine.high %v1397_v7, %v1401_v45  ;;  %v1253_v19 = vld [vmem:[#allocation15 + $0x210] sm:$0xff]  ;;  %v16318_v37 = vcombine.low %v1397_v7, %v1401_v45 }
 0x4b2   :  { %10669 = vmatprep.subr.bf16.mxu0 %v16215_v4  ;;  %v1257_v8 = vld [vmem:[#allocation15 + $0x230] sm:$0xff]  ;;  %v11188_v4 = vrot.slane %v11148_v54, %v19433_v43 }
 0x4b3   :  { %v1389_v2 = vld [vmem:[#allocation15 + $0x650] sm:$0xff]  ;;  %v16175_v58 = vcombine.high %v1253_v19, %v1257_v8 }
 0x4b4   :  { %10707 = vmatpush2.bf16.msra.mxu1 %v16358_v13  ;;  %v1393_v57 = vld [vmem:[#allocation15 + $0x670] sm:$0xff] }
 0x4b5   :  { %10708 = vmatprep.subr.bf16.mxu1 %v16351_v32  ;;  %10670 = vmatpush2.bf16.msra.mxu0 %v16214_v28  ;;  %v16182_v32 = vcombine.low %v1261_v31, %v1265_v42  ;;  %v1381_v29 = vld [vmem:[#allocation15 + $0x610] sm:$0xff] }
 0x4b6   :  { %10671 = vmatprep.subr.bf16.mxu0 %v16207_v59  ;;  %v1501_v59 = vld [vmem:[#allocation15 + $0x9d0] sm:$0xff] }
 0x4b7   :  { %v1493_v5 = vld [vmem:[#allocation15 + $0x990] sm:$0xff] }
 0x4b8   :  { %10709 = vmatpush2.bf16.msra.mxu1 %v16350_v52  ;;  %v16311_v52 = vcombine.high %v1389_v2, %v1393_v57  ;;  %v1497_v30 = vld [vmem:[#allocation15 + $0x9b0] sm:$0xff] }
 0x4b9   :  { %10710 = vmatprep.subr.bf16.mxu1 %v16343_v34  ;;  %10672 = vmatpush2.bf16.msra.mxu0 %v16206_v63  ;;  %v1505_v34 = vld [vmem:[#allocation15 + $0x9f0] sm:$0xff]  ;;  %v16174_v63 = vcombine.low %v1253_v19, %v1257_v8 }
 0x4ba   :  { %10673 = vmatprep.subr.bf16.mxu0 %v16199_v39  ;;  %v1629_v46 = vld [vmem:[#allocation15 + $0xdd0] sm:$0xff] }
 0x4bb   :  { %v1633_v38 = vld [vmem:[#allocation15 + $0xdf0] sm:$0xff] }
 0x4bc   :  { %10711 = vmatpush2.bf16.msra.mxu1 %v16342_v21  ;;  %v16310_v21 = vcombine.low %v1389_v2, %v1393_v57  ;;  %v16551_v31 = vcombine.high %v1629_v46, %v1633_v38  ;;  %v1485_v42 = vld [vmem:[#allocation15 + $0x950] sm:$0xff] }
 0x4bd   :  { %10712 = vmatprep.subr.bf16.mxu1 %v16335_v24  ;;  %10674 = vmatpush2.bf16.msra.mxu0 %v16198_v14  ;;  %v1489_v7 = vld [vmem:[#allocation15 + $0x970] sm:$0xff] }
 0x4be   :  { %10675 = vmatprep.subr.bf16.mxu0 %v16191_v10  ;;  %v16415_v10 = vcombine.high %v1493_v5, %v1497_v30  ;;  %v1621_v45 = vld [vmem:[#allocation15 + $0xd90] sm:$0xff] }
 0x4bf   :  { %v1625_v54 = vld [vmem:[#allocation15 + $0xdb0] sm:$0xff] }
 0x4c0   :  { %10713 = vmatpush2.bf16.msra.mxu1 %v16334_v50  ;;  %v10355_v51 = vpop.f32.mrf.mxu0  ;;  %v16543_v8 = vcombine.high %v1621_v45, %v1625_v54  ;;  %v1481_v2 = vld [vmem:[#allocation15 + $0x930] sm:$0xff] }
 0x4c1   :  { %10714 = vmatprep.subr.bf16.mxu1 %v16327_v62  ;;  %v10356_v13 = vadd.f32 %v10355_v51, %v19755_v15  ;;  %10676 = vmatpush2.bf16.msra.mxu0 %v16190_v35  ;;  %v1385_v15 = vld [vmem:[#allocation15 + $0x630] sm:$0xff] }
 0x4c2   :  { %v10357_v27 = vpop.f32.mrf.mxu0  ;;  %10677 = vmatprep.subr.bf16.mxu0 %v16183_v36  ;;  %v16303_v24 = vcombine.high %v1381_v29, %v1385_v15  ;;  %v16302_v50 = vcombine.low %v1381_v29, %v1385_v15  ;;  %v16550_v36 = vcombine.low %v1629_v46, %v1633_v38  ;;  %v1477_v51 = vld [vmem:[#allocation15 + $0x910] sm:$0xff] }
 0x4c3   :  { %v10397_v60 = vadd.f32 %v19762_v53, %v10356_v13  ;;  %v10358_v28 = vadd.f32 %v10357_v27, %v19757_v25  ;;  %v16423_v53 = vcombine.high %v1501_v59, %v1505_v34  ;;  %v1613_v57 = vld [vmem:[#allocation15 + $0xd50] sm:$0xff]  ;;  %v20611_v27 = vld [vmem:[#allocation49_spill] sm:$0xff] }
 0x4c4   :  { %10715 = vmatpush2.bf16.msra.mxu1 %v16326_v17  ;;  %v10359_v49 = vpop.f32.mrf.mxu0  ;;  %v16414_v17 = vcombine.low %v1493_v5, %v1497_v30  ;;  %v1617_v13 = vld [vmem:[#allocation15 + $0xd70] sm:$0xff] }
 0x4c5   :  { %10716 = vmatprep.subr.bf16.mxu1 %v16319_v11  ;;  %v19776_v41 = vadd.f32 %v11188_v4, %v10397_v60  ;;  %v19779_v61 = vadd.f32 %v19765_v23, %v10358_v28  ;;  %10678 = vmatpush2.bf16.msra.mxu0 %v16182_v32  ;;  %v16422_v23 = vcombine.low %v1501_v59, %v1505_v34  ;;  %v1469_v49 = vld [vmem:[#allocation15 + $0x8d0] sm:$0xff] }
 0x4c6   :  { %v10360_v39 = vpop.f32.mrf.mxu0  ;;  %10679 = vmatprep.subr.bf16.mxu0 %v16175_v58  ;;  %v16407_v11 = vcombine.high %v1485_v42, %v1489_v7  ;;  %v16542_v60 = vcombine.low %v1621_v45, %v1625_v54  ;;  %v16399_v28 = vcombine.high %v1477_v51, %v1481_v2  ;;  %v16535_v34 = vcombine.high %v1613_v57, %v1617_v13  ;;  %v1473_v29 = vld [vmem:[#allocation15 + $0x8f0] sm:$0xff] }
 0x4c7   :  { %v11225_v25 = vrot.slane %v19776_v41, 4  ;;  %v20612_v15 = vld [vmem:[#allocation50_spill] sm:$0xff]  ;;  %v16534_v5 = vcombine.low %v1613_v57, %v1617_v13  ;;  %v16391_v30 = vcombine.high %v1469_v49, %v1473_v29 }
 0x4c8   :  { %10717 = vmatpush2.bf16.msra.mxu1 %v16318_v37  ;;  %v16406_v37 = vcombine.low %v1485_v42, %v1489_v7  ;;  %v1609_v39 = vld [vmem:[#allocation15 + $0xd30] sm:$0xff] }
 0x4c9   :  { %10718 = vmatprep.subr.bf16.mxu1 %v16311_v52  ;;  %v11226_v14 = vadd.f32 %v11225_v25, %v19776_v41  ;;  %10680 = vmatpush2.bf16.msra.mxu0 %v16174_v63 }
 0x4ca   :  { %10731 = vmatprep.subr.bf16.mxu0 %v16423_v53 }
 0x4cb   :  { %v11227_v62 = vrot.slane %v11226_v14, 2 }
 0x4cc   :  { %10719 = vmatpush2.bf16.msra.mxu1 %v16310_v21  ;;  %10682 = vmatmul.mubr.bf16.vlgmr.msra.gmra.mxu0 %v19621_v22  ;;  %v1605_v21 = vld [vmem:[#allocation15 + $0xd10] sm:$0xff] }
 0x4cd   :  { %10720 = vmatprep.subr.bf16.mxu1 %v16303_v24  ;;  %v11228_v35 = vadd.f32 %v11227_v62, %v11226_v14  ;;  %10732 = vmatpush1.bf16.msra.mxu0 %v16422_v23  ;;  %v16398_v24 = vcombine.low %v1477_v51, %v1481_v2  ;;  %v16527_v14 = vcombine.high %v1605_v21, %v1609_v39  ;;  %v1461_v23 = vld [vmem:[#allocation15 + $0x890] sm:$0xff] }
 0x4ce   :  { %10763 = vmatprep.mubr.bf16.mxu0 %v19625_v56  ;;  %10733 = vmatprep.subr.bf16.mxu0 %v16415_v10  ;;  %v1597_v10 = vld [vmem:[#allocation15 + $0xcd0] sm:$0xff]  ;;  %v16526_v42 = vcombine.low %v1605_v21, %v1609_v39 }
 0x4cf   :  { %v11229_v19 = vrot.slane %v11228_v35, 1  ;;  %v1601_v62 = vld [vmem:[#allocation15 + $0xcf0] sm:$0xff] }
 0x4d0   :  { %10721 = vmatpush2.bf16.msra.mxu1 %v16302_v50  ;;  %v1465_v50 = vld [vmem:[#allocation15 + $0x8b0] sm:$0xff]  ;;  %v16519_v54 = vcombine.high %v1597_v10, %v1601_v62  ;;  %v16518_v51 = vcombine.low %v1597_v10, %v1601_v62 }
 0x4d1   :  { %10772 = vmatprep.subr.bf16.mxu1 %v16551_v31  ;;  %v11230_v4 = vadd.f32 %v11229_v19, %v11228_v35  ;;  %10734 = vmatpush1.bf16.msra.mxu0 %v16414_v17  ;;  %v16383_v7 = vcombine.high %v1461_v23, %v1465_v50  ;;  %v1453_v35 = vld [vmem:[#allocation15 + $0x850] sm:$0xff] }
 0x4d2   :  { %10735 = vmatprep.subr.bf16.mxu0 %v16407_v11  ;;  %v1457_v17 = vld [vmem:[#allocation15 + $0x870] sm:$0xff] }
 0x4d3   :  { %v10437_v32 = vpop.f32.mrf.mxu1  ;;  %10723 = vmatmul.mubr.bf16.vlgmr.msra.gmra.mxu1 %v19633_v6  ;;  %v11275_v52 = vmul.f32 0.125, %v11230_v4  ;;  %v1593_v11 = vld [vmem:[#allocation15 + $0xcb0] sm:$0xff]  ;;  %v16375_v2 = vcombine.high %v1453_v35, %v1457_v17 }
 0x4d4   :  { %v19787_v58 = vadd.f32 %v10437_v32, %v20611_v27  ;;  %10773 = vmatpush1.bf16.msra.mxu1 %v16550_v36  ;;  %10804 = vmatprep.mubr.bf16.mxu1 %v19638_v12  ;;  %v1589_v36 = vld [vmem:[#allocation15 + $0xc90] sm:$0xff] }
 0x4d5   :  { %v10439_v59 = vpop.f32.mrf.mxu1  ;;  %10774 = vmatprep.subr.bf16.mxu1 %v16543_v8  ;;  %v19794_v53 = vsub.f32 %v19776_v41, %v11275_v52  ;;  %10736 = vmatpush1.bf16.msra.mxu0 %v16406_v37  ;;  %v16390_v41 = vcombine.low %v1469_v49, %v1473_v29  ;;  %v16382_v8 = vcombine.low %v1461_v23, %v1465_v50  ;;  %v1445_v4 = vld [vmem:[#allocation15 + $0x810] sm:$0xff] }
 0x4d6   :  { %v19791_v63 = vadd.f32 %v10439_v59, %v20612_v15  ;;  %10737 = vmatprep.subr.bf16.mxu0 %v16399_v28  ;;  %v16511_v13 = vcombine.high %v1589_v36, %v1593_v11  ;;  %v1449_v32 = vld [vmem:[#allocation15 + $0x830] sm:$0xff]  ;;  %v16374_v28 = vcombine.low %v1453_v35, %v1457_v17  ;;  %v16510_v52 = vcombine.low %v1589_v36, %v1593_v11 }
 0x4d7   :  { %v10441_v25 = vpop.f32.mrf.mxu1  ;;  %v11291_v46 = vmul.f32 %v19794_v53, %v19794_v53  ;;  %v1581_v37 = vld [vmem:[#allocation15 + $0xc50] sm:$0xff]  ;;  %v16367_v59 = vcombine.high %v1445_v4, %v1449_v32 }
 0x4d8   :  { %10775 = vmatpush1.bf16.msra.mxu1 %v16542_v60  ;;  %v1585_v27 = vld [vmem:[#allocation15 + $0xc70] sm:$0xff] }
 0x4d9   :  { %v10442_v38 = vpop.f32.mrf.mxu1  ;;  %10776 = vmatprep.subr.bf16.mxu1 %v16535_v34  ;;  %v11299_v31 = vrot.slane %v11291_v46, 4  ;;  %10738 = vmatpush1.bf16.msra.mxu0 %v16398_v24  ;;  %v16503_v49 = vcombine.high %v1581_v37, %v1585_v27  ;;  %v1565_v29 = vld [vmem:[#allocation15 + $0xbd0] sm:$0xff]  ;;  %v16366_v24 = vcombine.low %v1445_v4, %v1449_v32 }
 0x4da   :  { %10739 = vmatprep.subr.bf16.mxu0 %v16391_v30  ;;  %v1569_v15 = vld [vmem:[#allocation15 + $0xbf0] sm:$0xff] }
 0x4db   :  { %v11300_v45 = vadd.f32 %v11299_v31, %v11291_v46  ;;  %v1573_v21 = vld [vmem:[#allocation15 + $0xc10] sm:$0xff]  ;;  %v16487_v30 = vcombine.high %v1565_v29, %v1569_v15  ;;  %v16486_v62 = vcombine.low %v1565_v29, %v1569_v15 }
 0x4dc   :  { %10777 = vmatpush1.bf16.msra.mxu1 %v16534_v5  ;;  %v1577_v39 = vld [vmem:[#allocation15 + $0xc30] sm:$0xff]  ;;  %v16502_v5 = vcombine.low %v1581_v37, %v1585_v27 }
 0x4dd   :  { %10778 = vmatprep.subr.bf16.mxu1 %v16527_v14  ;;  %v11301_v19 = vrot.slane %v11300_v45, 2  ;;  %10740 = vmatpush1.bf16.msra.mxu0 %v16390_v41  ;;  %v16495_v38 = vcombine.high %v1573_v21, %v1577_v39  ;;  %v1557_v14 = vld [vmem:[#allocation15 + $0xb90] sm:$0xff]  ;;  %v16494_v31 = vcombine.low %v1573_v21, %v1577_v39 }
 0x4de   :  { %10741 = vmatprep.subr.bf16.mxu0 %v16383_v7  ;;  %v1561_v23 = vld [vmem:[#allocation15 + $0xbb0] sm:$0xff] }
 0x4df   :  { %v11302_v57 = vadd.f32 %v11301_v19, %v11300_v45  ;;  %v1693_v50 = vld [vmem:[#allocation15 + $0xfd0] sm:$0xff]  ;;  %v16479_v41 = vcombine.high %v1557_v14, %v1561_v23  ;;  %v16478_v17 = vcombine.low %v1557_v14, %v1561_v23 }
 0x4e0   :  { %10779 = vmatpush1.bf16.msra.mxu1 %v16526_v42  ;;  %v1697_v10 = vld [vmem:[#allocation15 + $0xff0] sm:$0xff] }
 0x4e1   :  { %10780 = vmatprep.subr.bf16.mxu1 %v16519_v54  ;;  %v11303_v60 = vrot.slane %v11302_v57, 1  ;;  %10742 = vmatpush1.bf16.msra.mxu0 %v16382_v8  ;;  %v16615_v42 = vcombine.high %v1693_v50, %v1697_v10  ;;  %v1549_v7 = vld [vmem:[#allocation15 + $0xb50] sm:$0xff]  ;;  %v16614_v36 = vcombine.low %v1693_v50, %v1697_v10 }
 0x4e2   :  { %10743 = vmatprep.subr.bf16.mxu0 %v16375_v2  ;;  %v1553_v45 = vld [vmem:[#allocation15 + $0xb70] sm:$0xff] }
 0x4e3   :  { %v11304_v34 = vadd.f32 %v11303_v60, %v11302_v57  ;;  %v1685_v54 = vld [vmem:[#allocation15 + $0xf90] sm:$0xff]  ;;  %v16471_v11 = vcombine.high %v1549_v7, %v1553_v45  ;;  %v16470_v4 = vcombine.low %v1549_v7, %v1553_v45 }
 0x4e4   :  { %10781 = vmatpush1.bf16.msra.mxu1 %v16518_v51  ;;  %v1689_v35 = vld [vmem:[#allocation15 + $0xfb0] sm:$0xff] }
 0x4e5   :  { %10782 = vmatprep.subr.bf16.mxu1 %v16511_v13  ;;  %v11348_v25 = vmul.f32 0.125, %v11304_v34  ;;  %10744 = vmatpush1.bf16.msra.mxu0 %v16374_v28  ;;  %v16607_v19 = vcombine.high %v1685_v54, %v1689_v35  ;;  %v1541_v8 = vld [vmem:[#allocation15 + $0xb10] sm:$0xff]  ;;  %v11383_v13 = vrot.slane %v19768_v55, %v19436_v1  ;;  %v16606_v32 = vcombine.low %v1685_v54, %v1689_v35 }
 0x4e6   :  { %10745 = vmatprep.subr.bf16.mxu0 %v16367_v59  ;;  %v1545_v51 = vld [vmem:[#allocation15 + $0xb30] sm:$0xff] }
 0x4e7   :  { %v11356_v46 = vadd.f32 1e-05, %v11348_v25  ;;  %v1677_v2 = vld [vmem:[#allocation15 + $0xf50] sm:$0xff]  ;;  %v16463_v37 = vcombine.high %v1541_v8, %v1545_v51  ;;  %v11423_v29 = vrot.slane %v11383_v13, %v19436_v1  ;;  %v16462_v15 = vcombine.low %v1541_v8, %v1545_v51 }
 0x4e8   :  { %10783 = vmatpush1.bf16.msra.mxu1 %v16510_v52  ;;  %v1681_v57 = vld [vmem:[#allocation15 + $0xf70] sm:$0xff] }
 0x4e9   :  { %10784 = vmatprep.subr.bf16.mxu1 %v16503_v49  ;;  %18008 = vrsqrt.f32 %v11356_v46  ;;  %10746 = vmatpush1.bf16.msra.mxu0 %v16366_v24  ;;  %v16599_v27 = vcombine.high %v1677_v2, %v1681_v57  ;;  %v1533_v60 = vld [vmem:[#allocation15 + $0xad0] sm:$0xff]  ;;  %v16598_v39 = vcombine.low %v1677_v2, %v1681_v57 }
 0x4ea   :  { %10747 = vmatprep.subr.bf16.mxu0 %v16487_v30  ;;  %v1537_v28 = vld [vmem:[#allocation15 + $0xaf0] sm:$0xff] }
 0x4eb   :  { %v20613_v52 = vld [vmem:[#allocation38_spill] sm:$0xff]  ;;  %v16455_v25 = vcombine.high %v1533_v60, %v1537_v28  ;;  %v16454_v50 = vcombine.low %v1533_v60, %v1537_v28 }
 0x4ec   :  { %10785 = vmatpush1.bf16.msra.mxu1 %v16502_v5  ;;  %v11463_v59 = vrot.slane %v19768_v55, %v20613_v52  ;;  %v1669_v34 = vld [vmem:[#allocation15 + $0xf10] sm:$0xff] }
 0x4ed   :  { %10786 = vmatprep.subr.bf16.mxu1 %v16495_v38  ;;  %10748 = vmatpush2.bf16.msra.mxu0 %v16486_v62  ;;  %v1673_v49 = vld [vmem:[#allocation15 + $0xf30] sm:$0xff] }
 0x4ee   :  { %10749 = vmatprep.subr.bf16.mxu0 %v16479_v41  ;;  %v16591_v5 = vcombine.high %v1669_v34, %v1673_v49  ;;  %v1525_v30 = vld [vmem:[#allocation15 + $0xa90] sm:$0xff]  ;;  %v11503_v38 = vrot.slane %v11463_v59, %v20613_v52  ;;  %v16590_v10 = vcombine.low %v1669_v34, %v1673_v49 }
 0x4ef   :  { %v1529_v46 = vld [vmem:[#allocation15 + $0xab0] sm:$0xff] }
 0x4f0   :  { %10787 = vmatpush1.bf16.msra.mxu1 %v16494_v31  ;;  %v1661_v55 = vld [vmem:[#allocation15 + $0xed0] sm:$0xff]  ;;  %v16447_v62 = vcombine.high %v1525_v30, %v1529_v46  ;;  %v16446_v54 = vcombine.low %v1525_v30, %v1529_v46 }
 0x4f1   :  { %10788 = vmatprep.subr.bf16.mxu1 %v16615_v42  ;;  %10750 = vmatpush2.bf16.msra.mxu0 %v16478_v17  ;;  %v1665_v14 = vld [vmem:[#allocation15 + $0xef0] sm:$0xff] }
 0x4f2   :  { %10751 = vmatprep.subr.bf16.mxu0 %v16471_v11  ;;  %v16583_v31 = vcombine.high %v1661_v55, %v1665_v14  ;;  %v1517_v41 = vld [vmem:[#allocation15 + $0xa50] sm:$0xff]  ;;  %v16582_v35 = vcombine.low %v1661_v55, %v1665_v14 }
 0x4f3   :  { %v1521_v42 = vld [vmem:[#allocation15 + $0xa70] sm:$0xff] }
 0x4f4   :  { %10789 = vmatpush2.bf16.msra.mxu1 %v16614_v36  ;;  %v1653_v7 = vld [vmem:[#allocation15 + $0xe90] sm:$0xff]  ;;  %v16439_v17 = vcombine.high %v1517_v41, %v1521_v42  ;;  %v16438_v13 = vcombine.low %v1517_v41, %v1521_v42 }
 0x4f5   :  { %10790 = vmatprep.subr.bf16.mxu1 %v16607_v19  ;;  %10752 = vmatpush2.bf16.msra.mxu0 %v16470_v4  ;;  %v1657_v45 = vld [vmem:[#allocation15 + $0xeb0] sm:$0xff] }
 0x4f6   :  { %v18009_v21 = vpop.eup %18008  ;;  %10753 = vmatprep.subr.bf16.mxu0 %v16463_v37  ;;  %v16575_v36 = vcombine.high %v1653_v7, %v1657_v45  ;;  %v1509_v11 = vld [vmem:[#allocation15 + $0xa10] sm:$0xff]  ;;  %v16574_v4 = vcombine.low %v1653_v7, %v1657_v45 }
 0x4f7   :  { %v11372_v24 = vmul.f32 %v18009_v21, %v19794_v53  ;;  %v1513_v19 = vld [vmem:[#allocation15 + $0xa30] sm:$0xff] }
 0x4f8   :  { %10791 = vmatpush2.bf16.msra.mxu1 %v16606_v32  ;;  %v1645_v51 = vld [vmem:[#allocation15 + $0xe50] sm:$0xff]  ;;  %v16431_v37 = vcombine.high %v1509_v11, %v1513_v19 }
 0x4f9   :  { %10792 = vmatprep.subr.bf16.mxu1 %v16599_v27  ;;  %v11452_v23 = vmul.f32 %v11423_v29, %v11372_v24  ;;  %10754 = vmatpush2.bf16.msra.mxu0 %v16462_v15  ;;  %v1649_v2 = vld [vmem:[#allocation15 + $0xe70] sm:$0xff]  ;;  %v16430_v15 = vcombine.low %v1509_v11, %v1513_v19 }
 0x4fa   :  { %10755 = vmatprep.subr.bf16.mxu0 %v16455_v25  ;;  %v16567_v60 = vcombine.high %v1645_v51, %v1649_v2  ;;  %v1757_v28 = vld [vmem:[#allocation15 + $0x11d0] sm:$0xff] }
 0x4fb   :  { %v19805_v53 = vadd.f32 %v11503_v38, %v11452_v23  ;;  %v1761_v59 = vld [vmem:[#allocation15 + $0x11f0] sm:$0xff] }
 0x4fc   :  { %10793 = vmatpush2.bf16.msra.mxu1 %v16598_v39  ;;  %v1637_v49 = vld [vmem:[#allocation15 + $0xe10] sm:$0xff]  ;;  %v16679_v39 = vcombine.high %v1757_v28, %v1761_v59 }
 0x4fd   :  { %10794 = vmatprep.subr.bf16.mxu1 %v16591_v5  ;;  %10756 = vmatpush2.bf16.msra.mxu0 %v16454_v50  ;;  %v1641_v29 = vld [vmem:[#allocation15 + $0xe30] sm:$0xff]  ;;  %vm11540_vm4 = vcmp.gt.f32.partialorder %v19805_v53, 0.0 }
 0x4fe   :  { %10757 = vmatprep.subr.bf16.mxu0 %v16447_v62  ;;  %v16559_v25 = vcombine.high %v1637_v49, %v1641_v29  ;;  %v1749_v24 = vld [vmem:[#allocation15 + $0x1190] sm:$0xff]  ;;  %v16558_v46 = vcombine.low %v1637_v49, %v1641_v29 }
 0x4ff   :  { %v1753_v5 = vld [vmem:[#allocation15 + $0x11b0] sm:$0xff] }
 0x500   :  { %10795 = vmatpush2.bf16.msra.mxu1 %v16590_v10  ;;  %v10478_v8 = vpop.f32.mrf.mxu0  ;;  %v1845_v30 = vld [vmem:[#allocation15 + $0x1490] sm:$0x11]  ;;  %v16671_v38 = vcombine.high %v1749_v24, %v1753_v5 }
 0x501   :  { %10796 = vmatprep.subr.bf16.mxu1 %v16583_v31  ;;  %v10479_v57 = vadd.f32 %v10478_v8, %v19787_v58  ;;  %10758 = vmatpush2.bf16.msra.mxu0 %v16446_v54  ;;  %v16566_v58 = vcombine.low %v1645_v51, %v1649_v2  ;;  %v16767_v55 = vcombine.high %v1845_v30, %v1845_v30  ;;  %v1741_v23 = vld [vmem:[#allocation15 + $0x1150] sm:$0xff] }
 0x502   :  { %v10480_v32 = vpop.f32.mrf.mxu0  ;;  %10759 = vmatprep.subr.bf16.mxu0 %v16439_v17  ;;  %v16766_v14 = vcombine.low %v1845_v30, %v1845_v30  ;;  %v1745_v50 = vld [vmem:[#allocation15 + $0x1170] sm:$0xff]  ;;  %v16670_v31 = vcombine.low %v1749_v24, %v1753_v5 }
 0x503   :  { %v10481_v27 = vadd.f32 %v10480_v32, %v19791_v63  ;;  %v16678_v63 = vcombine.low %v1757_v28, %v1761_v59  ;;  %v1837_v10 = vld [vmem:[#allocation15 + $0x1450] sm:$0xff]  ;;  %v16663_v41 = vcombine.high %v1741_v23, %v1745_v50  ;;  %v16662_v11 = vcombine.low %v1741_v23, %v1745_v50  ;;  %v1250_v28 = vld [vmem:[#allocation15 + $0x1f8] sm:$0xff] }
 0x504   :  { %10797 = vmatpush2.bf16.msra.mxu1 %v16582_v35  ;;  %v10482_v34 = vpop.f32.mrf.mxu0  ;;  %v1841_v62 = vld [vmem:[#allocation15 + $0x1470] sm:$0xff]  ;;  %v10146_v42 = vsel %vm5821_vm1, %v16766_v14, 0 }
 0x505   :  { %10798 = vmatprep.subr.bf16.mxu1 %v16575_v36  ;;  %10760 = vmatpush2.bf16.msra.mxu0 %v16438_v13  ;;  %v16759_v7 = vcombine.high %v1837_v10, %v1841_v62  ;;  %v1733_v45 = vld [vmem:[#allocation15 + $0x1110] sm:$0xff]  ;;  %v16758_v8 = vcombine.low %v1837_v10, %v1841_v62 }
 0x506   :  { %v10483_v21 = vpop.f32.mrf.mxu0  ;;  %10761 = vmatprep.subr.bf16.mxu0 %v16431_v37  ;;  %v1737_v54 = vld [vmem:[#allocation15 + $0x1130] sm:$0xff] }
 0x507   :  { %v1829_v35 = vld [vmem:[#allocation15 + $0x1410] sm:$0xff]  ;;  %v16655_v51 = vcombine.high %v1733_v45, %v1737_v54  ;;  %v16654_v34 = vcombine.low %v1733_v45, %v1737_v54 }
 0x508   :  { %10799 = vmatpush2.bf16.msra.mxu1 %v16574_v4  ;;  %v1833_v17 = vld [vmem:[#allocation15 + $0x1430] sm:$0xff] }
 0x509   :  { %10800 = vmatprep.subr.bf16.mxu1 %v16567_v60  ;;  %10762 = vmatpush2.bf16.msra.mxu0 %v16430_v15  ;;  %v16751_v13 = vcombine.high %v1829_v35, %v1833_v17  ;;  %v1725_v4 = vld [vmem:[#allocation15 + $0x10d0] sm:$0xff]  ;;  %v1246_v60 = vld [vmem:[#allocation15 + $0x1d8] sm:$0xff] }
 0x50a   :  { %10813 = vmatprep.subr.bf16.mxu0 %v16679_v39  ;;  %v1729_v32 = vld [vmem:[#allocation15 + $0x10f0] sm:$0xff]  ;;  %v16169_v15 = vcombine.high %v1246_v60, %v1250_v28  ;;  %v1238_v39 = vld [vmem:[#allocation15 + $0x198] sm:$0xff] }
 0x50b   :  { %v16647_v49 = vcombine.high %v1725_v4, %v1729_v32  ;;  %v1721_v21 = vld [vmem:[#allocation15 + $0x10b0] sm:$0xff]  ;;  %v16646_v24 = vcombine.low %v1725_v4, %v1729_v32 }
 0x50c   :  { %10801 = vmatpush2.bf16.msra.mxu1 %v16566_v58  ;;  %10764 = vmatmul.mubr.bf16.vlgmr.msra.gmra.mxu0 %v19690_v47  ;;  %v1717_v58 = vld [vmem:[#allocation15 + $0x1090] sm:$0xff] }
 0x50d   :  { %10802 = vmatprep.subr.bf16.mxu1 %v16559_v25  ;;  %10814 = vmatpush1.bf16.msra.mxu0 %v16678_v63  ;;  %v1242_v25 = vld [vmem:[#allocation15 + $0x1b8] sm:$0xff]  ;;  %v16639_v5 = vcombine.high %v1717_v58, %v1721_v21  ;;  %v1709_v63 = vld [vmem:[#allocation15 + $0x1050] sm:$0xff]  ;;  %v16638_v14 = vcombine.low %v1717_v58, %v1721_v21 }
 0x50e   :  { %10845 = vmatprep.mubr.bf16.mxu0 %v19694_v20  ;;  %10815 = vmatprep.subr.bf16.mxu0 %v16671_v38  ;;  %v16161_v30 = vcombine.high %v1238_v39, %v1242_v25  ;;  %v1230_v38 = vld [vmem:[#allocation15 + $0x158] sm:$0xff]  ;;  %v16160_v23 = vcombine.low %v1238_v39, %v1242_v25  ;;  %v1701_v62 = vld [vmem:[#allocation15 + $0x1010] sm:$0xff] }
 0x50f   :  { %v1813_v4 = vld [vmem:[#allocation15 + $0x1390] sm:$0xff]  ;;  %v1198_v58 = vld [vmem:[#allocation15 + $0x58] sm:$0xff] }
 0x510   :  { %10803 = vmatpush2.bf16.msra.mxu1 %v16558_v46  ;;  %v1713_v46 = vld [vmem:[#allocation15 + $0x1070] sm:$0xff]  ;;  %v1202_v21 = vld [vmem:[#allocation15 + $0x78] sm:$0xff] }
 0x511   :  { %16774 = vmatprep.subr.msk.bf16.mxu1 %vm5821_vm1, %v16767_v55  ;;  %10816 = vmatpush1.bf16.msra.mxu0 %v16670_v31  ;;  %v1234_v55 = vld [vmem:[#allocation15 + $0x178] sm:$0xff]  ;;  %v16631_v50 = vcombine.high %v1709_v63, %v1713_v46  ;;  %v1705_v31 = vld [vmem:[#allocation15 + $0x1030] sm:$0xff] }
 0x512   :  { %10817 = vmatprep.subr.bf16.mxu0 %v16663_v41  ;;  %v16153_v10 = vcombine.high %v1230_v38, %v1234_v55  ;;  %v1222_v41 = vld [vmem:[#allocation15 + $0x118] sm:$0xff]  ;;  %v16152_v45 = vcombine.low %v1230_v38, %v1234_v55  ;;  %v16623_v54 = vcombine.high %v1701_v62, %v1705_v31  ;;  %v1817_v32 = vld [vmem:[#allocation15 + $0x13b0] sm:$0xff]  ;;  %v16120_v55 = vcombine.low %v1198_v58, %v1202_v21 }
 0x513   :  { %v10519_v36 = vpop.f32.mrf.mxu1  ;;  %10805 = vmatmul.mubr.bf16.vlgmr.msra.gmra.mxu1 %v19697_v26  ;;  %v16734_v39 = vcombine.low %v1813_v4, %v1817_v32 }
 0x514   :  { %v19814_v19 = vadd.f32 %v10519_v36, %v10479_v57  ;;  %10865 = vmatpush1.bf16.msra.mxu1 %v10146_v42  ;;  %10886 = vmatprep.mubr.bf16.mxu1 %v20574_v40  ;;  %v16750_v57 = vcombine.low %v1829_v35, %v1833_v17  ;;  %v1226_v42 = vld [vmem:[#allocation15 + $0x138] sm:$0xff]  ;;  %v1821_v17 = vld [vmem:[#allocation15 + $0x13d0] sm:$0xff] }
 0x515   :  { %v10521_v2 = vpop.f32.mrf.mxu1  ;;  %10866 = vmatprep.subr.bf16.mxu1 %v16759_v7  ;;  %10818 = vmatpush1.bf16.msra.mxu0 %v16662_v11  ;;  %v16630_v7 = vcombine.low %v1709_v63, %v1713_v46  ;;  %v16145_v35 = vcombine.high %v1222_v41, %v1226_v42  ;;  %v1825_v36 = vld [vmem:[#allocation15 + $0x13f0] sm:$0xff]  ;;  %v1214_v11 = vld [vmem:[#allocation15 + $0xd8] sm:$0xff] }
 0x516   :  { %v19817_v37 = vadd.f32 %v10521_v2, %v10481_v27  ;;  %10819 = vmatprep.subr.bf16.mxu0 %v16655_v51  ;;  %v16168_v27 = vcombine.low %v1246_v60, %v1250_v28  ;;  %v16622_v51 = vcombine.low %v1701_v62, %v1705_v31  ;;  %v16144_v2 = vcombine.low %v1222_v41, %v1226_v42  ;;  %v1206_v60 = vld [vmem:[#allocation15 + $0x98] sm:$0xff] }
 0x517   :  { %v10523_v59 = vpop.f32.mrf.mxu1  ;;  %v1210_v28 = vld [vmem:[#allocation15 + $0xb8] sm:$0xff] }
 0x518   :  { %10867 = vmatpush1.bf16.msra.mxu1 %v16758_v8  ;;  %v1218_v8 = vld [vmem:[#allocation15 + $0xf8] sm:$0xff]  ;;  %v16742_v59 = vcombine.low %v1821_v17, %v1825_v36  ;;  %v16128_v25 = vcombine.low %v1206_v60, %v1210_v28 }
 0x519   :  { %v10524_v29 = vpop.f32.mrf.mxu1  ;;  %10868 = vmatprep.subr.bf16.mxu1 %v16751_v13  ;;  %10820 = vmatpush1.bf16.msra.mxu0 %v16654_v34  ;;  %v16137_v13 = vcombine.high %v1214_v11, %v1218_v8  ;;  %v16136_v34 = vcombine.low %v1214_v11, %v1218_v8  ;;  %v1190_v63 = vld [vmem:[#allocation15 + $0x18] sm:$0xff] }
 0x51a   :  { %10821 = vmatprep.subr.bf16.mxu0 %v16647_v49  ;;  %v16129_v49 = vcombine.high %v1206_v60, %v1210_v28  ;;  %v1805_v29 = vld [vmem:[#allocation15 + $0x1350] sm:$0xff]  ;;  %v1194_v46 = vld [vmem:[#allocation15 + $0x38] sm:$0xff] }
 0x51b   :  { %v1310_v62 = vld [vmem:[#allocation15 + $0x3d8] sm:$0xff]  ;;  %v16112_v42 = vcombine.low %v1190_v63, %v1194_v46 }
 0x51c   :  { %10869 = vmatpush1.bf16.msra.mxu1 %v16750_v57  ;;  %v16735_v57 = vcombine.high %v1813_v4, %v1817_v32  ;;  %v1314_v31 = vld [vmem:[#allocation15 + $0x3f8] sm:$0xff] }
 0x51d   :  { %10895 = vmatprep.subr.bf16.mxu1 %v16169_v15  ;;  %10822 = vmatpush1.bf16.msra.mxu0 %v16646_v24  ;;  %v1809_v15 = vld [vmem:[#allocation15 + $0x1370] sm:$0xff]  ;;  %v16232_v8 = vcombine.low %v1310_v62, %v1314_v31  ;;  %v1294_v4 = vld [vmem:[#allocation15 + $0x358] sm:$0xff] }
 0x51e   :  { %10823 = vmatprep.subr.bf16.mxu0 %v16639_v5  ;;  %v16727_v24 = vcombine.high %v1805_v29, %v1809_v15  ;;  %v1797_v5 = vld [vmem:[#allocation15 + $0x1310] sm:$0xff]  ;;  %v16726_v38 = vcombine.low %v1805_v29, %v1809_v15  ;;  %v1298_v32 = vld [vmem:[#allocation15 + $0x378] sm:$0xff] }
 0x51f   :  { %16775 = vmatmul.mubr.msk.bf16.vlgmr.msra.gmra.mxu1 %vm592_vm0, %v19713_v0  ;;  %v1286_v15 = vld [vmem:[#allocation15 + $0x318] sm:$0xff] }
 0x520   :  { %10896 = vmatpush1.bf16.msra.mxu1 %v16168_v27  ;;  %10927 = vmatprep.mubr.bf16.mxu1 %v20607_v9  ;;  %v16743_v9 = vcombine.high %v1821_v17, %v1825_v36  ;;  %v16121_v27 = vcombine.high %v1198_v58, %v1202_v21  ;;  %v1302_v17 = vld [vmem:[#allocation15 + $0x398] sm:$0xff] }
 0x521   :  { %10897 = vmatprep.subr.bf16.mxu1 %v16161_v30  ;;  %10824 = vmatpush1.bf16.msra.mxu0 %v16638_v14  ;;  %v1801_v30 = vld [vmem:[#allocation15 + $0x1330] sm:$0xff]  ;;  %v1306_v36 = vld [vmem:[#allocation15 + $0x3b8] sm:$0xff] }
 0x522   :  { %10825 = vmatprep.subr.bf16.mxu0 %v16631_v50  ;;  %v16719_v14 = vcombine.high %v1797_v5, %v1801_v30  ;;  %v1789_v50 = vld [vmem:[#allocation15 + $0x12d0] sm:$0xff]  ;;  %v16718_v41 = vcombine.low %v1797_v5, %v1801_v30  ;;  %v16224_v28 = vcombine.low %v1302_v17, %v1306_v36  ;;  %v1290_v58 = vld [vmem:[#allocation15 + $0x338] sm:$0xff] }
 0x523   :  { %v16209_v30 = vcombine.high %v1286_v15, %v1290_v58 }
 0x524   :  { %10898 = vmatpush1.bf16.msra.mxu1 %v16160_v23  ;;  %v16113_v23 = vcombine.high %v1190_v63, %v1194_v46  ;;  %v1374_v63 = vld [vmem:[#allocation15 + $0x5d8] sm:$0xff] }
 0x525   :  { %10899 = vmatprep.subr.bf16.mxu1 %v16153_v10  ;;  %10826 = vmatpush1.bf16.msra.mxu0 %v16630_v7  ;;  %v1793_v10 = vld [vmem:[#allocation15 + $0x12f0] sm:$0xff]  ;;  %v1378_v46 = vld [vmem:[#allocation15 + $0x5f8] sm:$0xff] }
 0x526   :  { %10827 = vmatprep.subr.bf16.mxu0 %v16623_v54  ;;  %v16711_v7 = vcombine.high %v1789_v50, %v1793_v10  ;;  %v1781_v54 = vld [vmem:[#allocation15 + $0x1290] sm:$0xff]  ;;  %v16710_v11 = vcombine.low %v1789_v50, %v1793_v10  ;;  %v16297_v10 = vcombine.high %v1374_v63, %v1378_v46 }
 0x528   :  { %10900 = vmatpush1.bf16.msra.mxu1 %v16152_v45  ;;  %v16233_v45 = vcombine.high %v1310_v62, %v1314_v31  ;;  %v1366_v31 = vld [vmem:[#allocation15 + $0x598] sm:$0xff] }
 0x529   :  { %10901 = vmatprep.subr.bf16.mxu1 %v16145_v35  ;;  %10828 = vmatpush1.bf16.msra.mxu0 %v16622_v51  ;;  %v1785_v35 = vld [vmem:[#allocation15 + $0x12b0] sm:$0xff] }
 0x52a   :  { %10829 = vmatprep.subr.bf16.mxu0 %v16743_v9  ;;  %v16703_v51 = vcombine.high %v1781_v54, %v1785_v35  ;;  %v1773_v9 = vld [vmem:[#allocation15 + $0x1250] sm:$0xff]  ;;  %v16702_v60 = vcombine.low %v1781_v54, %v1785_v35 }
 0x52b   :  { %v19828_v54 = vld [vmem:[#allocation11 + $0x8] sm:$0x77] }
 0x52c   :  { %10902 = vmatpush1.bf16.msra.mxu1 %v16144_v2  ;;  %v16225_v2 = vcombine.high %v1302_v17, %v1306_v36  ;;  %v1358_v36 = vld [vmem:[#allocation15 + $0x558] sm:$0xff] }
 0x52d   :  { %10903 = vmatprep.subr.bf16.mxu1 %v16137_v13  ;;  %10830 = vmatpush2.bf16.msra.mxu0 %v16742_v59  ;;  %v1777_v13 = vld [vmem:[#allocation15 + $0x1270] sm:$0xff] }
 0x52e   :  { %10831 = vmatprep.subr.bf16.mxu0 %v16735_v57  ;;  %v16695_v59 = vcombine.high %v1773_v9, %v1777_v13  ;;  %v1765_v57 = vld [vmem:[#allocation15 + $0x1210] sm:$0xff] }
 0x530   :  { %10904 = vmatpush1.bf16.msra.mxu1 %v16136_v34  ;;  %v16217_v34 = vcombine.high %v1294_v4, %v1298_v32 }
 0x531   :  { %10905 = vmatprep.subr.bf16.mxu1 %v16129_v49  ;;  %10832 = vmatpush2.bf16.msra.mxu0 %v16734_v39  ;;  %v1769_v49 = vld [vmem:[#allocation15 + $0x1230] sm:$0xff]  ;;  %v16694_v39 = vcombine.low %v1773_v9, %v1777_v13  ;;  %v11156_v9 = vrot.slane %v19828_v54, %v19433_v43 }
 0x532   :  { %10833 = vmatprep.subr.bf16.mxu0 %v16727_v24 }
 0x534   :  { %10906 = vmatpush1.bf16.msra.mxu1 %v16128_v25  ;;  %v16216_v25 = vcombine.low %v1294_v4, %v1298_v32 }
 0x535   :  { %10907 = vmatprep.subr.bf16.mxu1 %v16121_v27  ;;  %10834 = vmatpush2.bf16.msra.mxu0 %v16726_v38  ;;  %v16687_v27 = vcombine.high %v1765_v57, %v1769_v49 }
 0x536   :  { %10835 = vmatprep.subr.bf16.mxu0 %v16719_v14  ;;  %v1282_v14 = vld [vmem:[#allocation15 + $0x2f8] sm:$0xff] }
 0x538   :  { %10908 = vmatpush1.bf16.msra.mxu1 %v16120_v55  ;;  %v1278_v55 = vld [vmem:[#allocation15 + $0x2d8] sm:$0xff] }
 0x539   :  { %10909 = vmatprep.subr.bf16.mxu1 %v16113_v23  ;;  %10836 = vmatpush2.bf16.msra.mxu0 %v16718_v41  ;;  %v16208_v23 = vcombine.low %v1286_v15, %v1290_v58  ;;  %v16201_v62 = vcombine.high %v1278_v55, %v1282_v14  ;;  %v1370_v41 = vld [vmem:[#allocation15 + $0x5b8] sm:$0xff]  ;;  %v11196_v58 = vrot.slane %v11156_v9, %v19433_v43 }
 0x53a   :  { %10837 = vmatprep.subr.bf16.mxu0 %v16711_v7  ;;  %v16296_v7 = vcombine.low %v1374_v63, %v1378_v46  ;;  %v16289_v35 = vcombine.high %v1366_v31, %v1370_v41  ;;  %v16288_v13 = vcombine.low %v1366_v31, %v1370_v41  ;;  %v1342_v46 = vld [vmem:[#allocation15 + $0x4d8] sm:$0xff] }
 0x53b   :  { %v1326_v9 = vld [vmem:[#allocation15 + $0x458] sm:$0xff] }
 0x53c   :  { %10910 = vmatpush1.bf16.msra.mxu1 %v16112_v42  ;;  %v1270_v42 = vld [vmem:[#allocation15 + $0x298] sm:$0xff] }
 0x53d   :  { %10911 = vmatprep.subr.bf16.mxu1 %v16233_v45  ;;  %10838 = vmatpush2.bf16.msra.mxu0 %v16710_v11  ;;  %v16200_v45 = vcombine.low %v1278_v55, %v1282_v14  ;;  %v1362_v11 = vld [vmem:[#allocation15 + $0x578] sm:$0xff] }
 0x53e   :  { %10839 = vmatprep.subr.bf16.mxu0 %v16703_v51  ;;  %v1262_v51 = vld [vmem:[#allocation15 + $0x258] sm:$0xff] }
 0x540   :  { %10912 = vmatpush2.bf16.msra.mxu1 %v16232_v8  ;;  %v10560_v29 = vpop.f32.mrf.mxu0 }
 0x541   :  { %10913 = vmatprep.subr.bf16.mxu1 %v16225_v2  ;;  %v19823_v21 = vadd.f32 %v10560_v29, %v19814_v19  ;;  %10840 = vmatpush2.bf16.msra.mxu0 %v16702_v60  ;;  %v16686_v19 = vcombine.low %v1765_v57, %v1769_v49  ;;  %v1266_v2 = vld [vmem:[#allocation15 + $0x278] sm:$0xff]  ;;  %v16281_v60 = vcombine.high %v1358_v36, %v1362_v11 }
 0x542   :  { %v10562_v24 = vpop.f32.mrf.mxu0  ;;  %10841 = vmatprep.subr.bf16.mxu0 %v16695_v59  ;;  %v1350_v59 = vld [vmem:[#allocation15 + $0x518] sm:$0xff] }
 0x543   :  { %v19826_v5 = vadd.f32 %v10562_v24, %v19817_v37  ;;  %v1274_v37 = vld [vmem:[#allocation15 + $0x2b8] sm:$0xff] }
 0x544   :  { %10914 = vmatpush2.bf16.msra.mxu1 %v16224_v28  ;;  %v10564_v38 = vpop.f32.mrf.mxu0  ;;  %v16193_v17 = vcombine.high %v1270_v42, %v1274_v37  ;;  %v16192_v4 = vcombine.low %v1270_v42, %v1274_v37  ;;  %v16185_v28 = vcombine.high %v1262_v51, %v1266_v2  ;;  %v1254_v49 = vld [vmem:[#allocation15 + $0x218] sm:$0xff] }
 0x545   :  { %10915 = vmatprep.subr.bf16.mxu1 %v16217_v34  ;;  %10842 = vmatpush2.bf16.msra.mxu0 %v16694_v39  ;;  %v1354_v34 = vld [vmem:[#allocation15 + $0x538] sm:$0xff]  ;;  %v16280_v39 = vcombine.low %v1358_v36, %v1362_v11 }
 0x546   :  { %v10565_v50 = vpop.f32.mrf.mxu0  ;;  %10843 = vmatprep.subr.bf16.mxu0 %v16687_v27  ;;  %v1258_v29 = vld [vmem:[#allocation15 + $0x238] sm:$0xff]  ;;  %v16273_v27 = vcombine.high %v1350_v59, %v1354_v34 }
 0x547   :  { %v16177_v63 = vcombine.high %v1254_v49, %v1258_v29  ;;  %v1346_v38 = vld [vmem:[#allocation15 + $0x4f8] sm:$0xff] }
 0x548   :  { %10916 = vmatpush2.bf16.msra.mxu1 %v16216_v25  ;;  %v16265_v41 = vcombine.high %v1342_v46, %v1346_v38  ;;  %v16264_v36 = vcombine.low %v1342_v46, %v1346_v38  ;;  %v1438_v38 = vld [vmem:[#allocation15 + $0x7d8] sm:$0xff] }
 0x549   :  { %10917 = vmatprep.subr.bf16.mxu1 %v16209_v30  ;;  %10844 = vmatpush2.bf16.msra.mxu0 %v16686_v19  ;;  %v1502_v19 = vld [vmem:[#allocation15 + $0x9d8] sm:$0xff] }
 0x54a   :  { %10936 = vmatprep.subr.bf16.mxu0 %v16297_v10  ;;  %v16176_v10 = vcombine.low %v1254_v49, %v1258_v29  ;;  %v1318_v29 = vld [vmem:[#allocation15 + $0x418] sm:$0xff] }
 0x54c   :  { %10918 = vmatpush2.bf16.msra.mxu1 %v16208_v23  ;;  %v10642_v8 = vpop.f32.mrf.mxu0  ;;  %10846 = vmatmul.mubr.bf16.vlgmr.msra.gmra.mxu0 %v19727_v16  ;;  %v1506_v23 = vld [vmem:[#allocation15 + $0x9f8] sm:$0xff] }
 0x54d   :  { %10919 = vmatprep.subr.bf16.mxu1 %v16201_v62  ;;  %10937 = vmatpush1.bf16.msra.mxu0 %v16296_v7  ;;  %v16272_v62 = vcombine.low %v1350_v59, %v1354_v34  ;;  %v16425_v37 = vcombine.high %v1502_v19, %v1506_v23  ;;  %v1334_v7 = vld [vmem:[#allocation15 + $0x498] sm:$0xff] }
 0x54e   :  { %10968 = vmatprep.mubr.bf16.mxu0 %v20608_v48  ;;  %v10644_v32 = vpop.f32.mrf.mxu0  ;;  %10938 = vmatprep.subr.bf16.mxu0 %v16289_v35  ;;  %v16184_v48 = vcombine.low %v1262_v51, %v1266_v2 }
 0x550   :  { %10920 = vmatpush2.bf16.msra.mxu1 %v16200_v45  ;;  %v10646_v57 = vpop.f32.mrf.mxu0  ;;  %v1338_v45 = vld [vmem:[#allocation15 + $0x4b8] sm:$0xff] }
 0x551   :  { %10921 = vmatprep.subr.bf16.mxu1 %v16193_v17  ;;  %10939 = vmatpush1.bf16.msra.mxu0 %v16288_v13  ;;  %v1494_v17 = vld [vmem:[#allocation15 + $0x998] sm:$0xff]  ;;  %v16257_v51 = vcombine.high %v1334_v7, %v1338_v45 }
 0x552   :  { %v10647_v24 = vpop.f32.mrf.mxu0  ;;  %10940 = vmatprep.subr.bf16.mxu0 %v16281_v60  ;;  %v1330_v13 = vld [vmem:[#allocation15 + $0x478] sm:$0xff] }
 0x553   :  { %v10601_v15 = vpop.f32.mrf.mxu1  ;;  %v1490_v60 = vld [vmem:[#allocation15 + $0x978] sm:$0xff]  ;;  %v16249_v57 = vcombine.high %v1326_v9, %v1330_v13 }
 0x554   :  { %v10602_v25 = vadd.f32 %v10601_v15, %v19823_v21  ;;  %10922 = vmatpush2.bf16.msra.mxu1 %v16192_v4  ;;  %v1322_v15 = vld [vmem:[#allocation15 + $0x438] sm:$0xff] }
 0x555   :  { %v10603_v30 = vpop.f32.mrf.mxu1  ;;  %10923 = vmatprep.subr.bf16.mxu1 %v16185_v28  ;;  %10941 = vmatpush1.bf16.msra.mxu0 %v16280_v39  ;;  %v16256_v28 = vcombine.low %v1334_v7, %v1338_v45  ;;  %v1482_v24 = vld [vmem:[#allocation15 + $0x938] sm:$0xff] }
 0x556   :  { %v10643_v55 = vadd.f32 %v10642_v8, %v10602_v25  ;;  %v10604_v14 = vadd.f32 %v10603_v30, %v19826_v5  ;;  %10942 = vmatprep.subr.bf16.mxu0 %v16273_v27  ;;  %v1498_v5 = vld [vmem:[#allocation15 + $0x9b8] sm:$0xff]  ;;  %v16424_v8 = vcombine.low %v1502_v19, %v1506_v23 }
 0x557   :  { %v10605_v50 = vpop.f32.mrf.mxu1  ;;  %v16417_v2 = vcombine.high %v1494_v17, %v1498_v5  ;;  %v16416_v34 = vcombine.low %v1494_v17, %v1498_v5  ;;  %v1470_v23 = vld [vmem:[#allocation15 + $0x8d8] sm:$0xff] }
 0x558   :  { %v11219_v21 = vadd.f32 %v11196_v58, %v10643_v55  ;;  %v19837_v31 = vadd.f32 %v10644_v32, %v10604_v14  ;;  %10924 = vmatpush2.bf16.msra.mxu1 %v16184_v48  ;;  %v1486_v32 = vld [vmem:[#allocation15 + $0x958] sm:$0xff]  ;;  %v20614_v58 = vld [vmem:[#allocation33_spill] sm:$0xff] }
 0x559   :  { %v10606_v42 = vpop.f32.mrf.mxu1  ;;  %10925 = vmatprep.subr.bf16.mxu1 %v16177_v63  ;;  %10943 = vmatpush1.bf16.msra.mxu0 %v16272_v62  ;;  %v16409_v49 = vcombine.high %v1486_v32, %v1490_v60  ;;  %v19842_v39 = vsub.s32 4, %v20614_v58  ;;  %v1478_v48 = vld [vmem:[#allocation15 + $0x918] sm:$0xff]  ;;  %v16408_v30 = vcombine.low %v1486_v32, %v1490_v60  ;;  %v16241_v63 = vcombine.high %v1318_v29, %v1322_v15  ;;  %v19844_v14 = vld [vmem:[#allocation11] sm:$0x77] }
 0x55a   :  { %v11237_v35 = vrot.slane %v11219_v21, 4  ;;  %10944 = vmatprep.subr.bf16.mxu0 %v16265_v41  ;;  %v16401_v46 = vcombine.high %v1478_v48, %v1482_v24  ;;  %v1442_v55 = vld [vmem:[#allocation15 + $0x7f8] sm:$0xff]  ;;  %v16400_v41 = vcombine.low %v1478_v48, %v1482_v24 }
 0x55b   :  { %v1474_v50 = vld [vmem:[#allocation15 + $0x8f8] sm:$0xff]  ;;  %v16361_v42 = vcombine.high %v1438_v38, %v1442_v55 }
 0x55c   :  { %v11238_v11 = vadd.f32 %v11237_v35, %v11219_v21  ;;  %10926 = vmatpush2.bf16.msra.mxu1 %v16176_v10  ;;  %v16240_v10 = vcombine.low %v1318_v29, %v1322_v15  ;;  %v1430_v7 = vld [vmem:[#allocation15 + $0x798] sm:$0xff] }
 0x55d   :  { %10977 = vmatprep.subr.bf16.mxu1 %v16425_v37  ;;  %10945 = vmatpush1.bf16.msra.mxu0 %v16264_v36  ;;  %v16393_v37 = vcombine.high %v1470_v23, %v1474_v50  ;;  %v1434_v45 = vld [vmem:[#allocation15 + $0x7b8] sm:$0xff] }
 0x55e   :  { %v11239_v4 = vrot.slane %v11238_v11, 2  ;;  %10946 = vmatprep.subr.bf16.mxu0 %v16257_v51  ;;  %v1462_v5 = vld [vmem:[#allocation15 + $0x898] sm:$0xff]  ;;  %v16392_v51 = vcombine.low %v1470_v23, %v1474_v50 }
 0x55f   :  { %10928 = vmatmul.mubr.bf16.vlgmr.msra.gmra.mxu1 %v19621_v22  ;;  %v16248_v22 = vcombine.low %v1326_v9, %v1330_v13  ;;  %v1466_v36 = vld [vmem:[#allocation15 + $0x8b8] sm:$0xff] }
 0x560   :  { %v11240_v59 = vadd.f32 %v11239_v4, %v11238_v11  ;;  %10978 = vmatpush1.bf16.msra.mxu1 %v16424_v8  ;;  %11009 = vmatprep.mubr.bf16.mxu1 %v19625_v56  ;;  %v11152_v56 = vrot.slane %v19844_v14, %v19842_v39  ;;  %v11160_v11 = vrot.slane %v19828_v54, %v19842_v39  ;;  %v1422_v13 = vld [vmem:[#allocation15 + $0x758] sm:$0xff] }
 0x561   :  { %10979 = vmatprep.subr.bf16.mxu1 %v16417_v2  ;;  %10947 = vmatpush1.bf16.msra.mxu0 %v16256_v28  ;;  %v16353_v2 = vcombine.high %v1430_v7, %v1434_v45  ;;  %v16385_v9 = vcombine.high %v1462_v5, %v1466_v36  ;;  %v1426_v4 = vld [vmem:[#allocation15 + $0x778] sm:$0xff]  ;;  %v16384_v29 = vcombine.low %v1462_v5, %v1466_v36 }
 0x562   :  { %v11241_v25 = vrot.slane %v11240_v59, 1  ;;  %10948 = vmatprep.subr.bf16.mxu0 %v16249_v57  ;;  %v11192_v35 = vrot.slane %v11152_v56, %v19433_v43  ;;  %v1454_v28 = vld [vmem:[#allocation15 + $0x858] sm:$0xff]  ;;  %v16352_v57 = vcombine.low %v1430_v7, %v1434_v45  ;;  %v16345_v15 = vcombine.high %v1422_v13, %v1426_v4 }
 0x563   :  { %v1414_v48 = vld [vmem:[#allocation15 + $0x718] sm:$0xff] }
 0x564   :  { %v11242_v27 = vadd.f32 %v11241_v25, %v11240_v59  ;;  %10980 = vmatpush1.bf16.msra.mxu1 %v16416_v34  ;;  %v19856_v32 = vadd.f32 %v11192_v35, %v19779_v61  ;;  %v1458_v59 = vld [vmem:[#allocation15 + $0x878] sm:$0xff]  ;;  %v11200_v34 = vrot.slane %v11160_v11, %v19433_v43 }
 0x565   :  { %10981 = vmatprep.subr.bf16.mxu1 %v16409_v49  ;;  %10949 = vmatpush1.bf16.msra.mxu0 %v16248_v22  ;;  %v16377_v25 = vcombine.high %v1454_v28, %v1458_v59  ;;  %v1418_v24 = vld [vmem:[#allocation15 + $0x738] sm:$0xff] }
 0x566   :  { %v11277_v19 = vmul.f32 0.125, %v11242_v27  ;;  %10950 = vmatprep.subr.bf16.mxu0 %v16241_v63  ;;  %v11231_v22 = vrot.slane %v19856_v32, 4  ;;  %v1446_v27 = vld [vmem:[#allocation15 + $0x818] sm:$0xff]  ;;  %v19861_v63 = vadd.f32 %v11200_v34, %v19837_v31  ;;  %v16337_v56 = vcombine.high %v1414_v48, %v1418_v24 }
 0x567   :  { %v1406_v23 = vld [vmem:[#allocation15 + $0x6d8] sm:$0xff]  ;;  %v16336_v31 = vcombine.low %v1414_v48, %v1418_v24 }
 0x568   :  { %v19848_v62 = vsub.f32 %v11219_v21, %v11277_v19  ;;  %10982 = vmatpush1.bf16.msra.mxu1 %v16408_v30  ;;  %v16360_v21 = vcombine.low %v1438_v38, %v1442_v55  ;;  %v1450_v30 = vld [vmem:[#allocation15 + $0x838] sm:$0xff]  ;;  %v16376_v55 = vcombine.low %v1454_v28, %v1458_v59  ;;  %v11243_v7 = vrot.slane %v19861_v63, 4 }
 0x569   :  { %10983 = vmatprep.subr.bf16.mxu1 %v16401_v46  ;;  %10951 = vmatpush1.bf16.msra.mxu0 %v16240_v10  ;;  %v16344_v46 = vcombine.low %v1422_v13, %v1426_v4  ;;  %v16369_v19 = vcombine.high %v1446_v27, %v1450_v30  ;;  %v1410_v50 = vld [vmem:[#allocation15 + $0x6f8] sm:$0xff]  ;;  %v11232_v10 = vadd.f32 %v11231_v22, %v19856_v32 }
 0x56a   :  { %v11293_v17 = vmul.f32 %v19848_v62, %v19848_v62  ;;  %10952 = vmatprep.subr.bf16.mxu0 %v16361_v42  ;;  %v1566_v42 = vld [vmem:[#allocation15 + $0xbd8] sm:$0xff]  ;;  %v16368_v35 = vcombine.low %v1446_v27, %v1450_v30  ;;  %v16328_v13 = vcombine.low %v1406_v23, %v1410_v50 }
 0x56b   :  { %v1398_v36 = vld [vmem:[#allocation15 + $0x698] sm:$0xff] }
 0x56c   :  { %v11311_v8 = vrot.slane %v11293_v17, 4  ;;  %10984 = vmatpush1.bf16.msra.mxu1 %v16400_v41  ;;  %v1402_v11 = vld [vmem:[#allocation15 + $0x6b8] sm:$0xff] }
 0x56d   :  { %10985 = vmatprep.subr.bf16.mxu1 %v16393_v37  ;;  %10953 = vmatpush2.bf16.msra.mxu0 %v16360_v21  ;;  %v1570_v37 = vld [vmem:[#allocation15 + $0xbf8] sm:$0xff]  ;;  %v11233_v21 = vrot.slane %v11232_v10, 2 }
 0x56e   :  { %v11312_v60 = vadd.f32 %v11311_v8, %v11293_v17  ;;  %10954 = vmatprep.subr.bf16.mxu0 %v16353_v2  ;;  %v16329_v17 = vcombine.high %v1406_v23, %v1410_v50  ;;  %v16489_v5 = vcombine.high %v1566_v42, %v1570_v37  ;;  %v1562_v2 = vld [vmem:[#allocation15 + $0xbb8] sm:$0xff]  ;;  %v16488_v4 = vcombine.low %v1566_v42, %v1570_v37 }
 0x56f   :  { %v1390_v59 = vld [vmem:[#allocation15 + $0x658] sm:$0xff] }
 0x570   :  { %v11313_v49 = vrot.slane %v11312_v60, 2  ;;  %10986 = vmatpush1.bf16.msra.mxu1 %v16392_v51  ;;  %v1558_v51 = vld [vmem:[#allocation15 + $0xb98] sm:$0xff] }
 0x571   :  { %10987 = vmatprep.subr.bf16.mxu1 %v16385_v9  ;;  %10955 = vmatpush2.bf16.msra.mxu0 %v16352_v57  ;;  %v11244_v9 = vadd.f32 %v11243_v7, %v19861_v63  ;;  %v16481_v28 = vcombine.high %v1558_v51, %v1562_v2  ;;  %v1394_v34 = vld [vmem:[#allocation15 + $0x678] sm:$0xff]  ;;  %v11234_v57 = vadd.f32 %v11233_v21, %v11232_v10 }
 0x572   :  { %v11314_v61 = vadd.f32 %v11313_v49, %v11312_v60  ;;  %10956 = vmatprep.subr.bf16.mxu0 %v16345_v15  ;;  %v16321_v60 = vcombine.high %v1398_v36, %v1402_v11  ;;  %v1550_v49 = vld [vmem:[#allocation15 + $0xb58] sm:$0xff]  ;;  %v16480_v48 = vcombine.low %v1558_v51, %v1562_v2  ;;  %v16313_v24 = vcombine.high %v1390_v59, %v1394_v34 }
 0x573   :  { %v11245_v15 = vrot.slane %v11244_v9, 2  ;;  %v1386_v27 = vld [vmem:[#allocation15 + $0x638] sm:$0xff]  ;;  %v11235_v30 = vrot.slane %v11234_v57, 1 }
 0x574   :  { %v11315_v38 = vrot.slane %v11314_v61, 1  ;;  %10988 = vmatpush1.bf16.msra.mxu1 %v16384_v29  ;;  %v1554_v29 = vld [vmem:[#allocation15 + $0xb78] sm:$0xff] }
 0x575   :  { %10989 = vmatprep.subr.bf16.mxu1 %v16377_v25  ;;  %10957 = vmatpush2.bf16.msra.mxu0 %v16344_v46  ;;  %v16320_v25 = vcombine.low %v1398_v36, %v1402_v11  ;;  %v16473_v22 = vcombine.high %v1550_v49, %v1554_v29  ;;  %v1542_v46 = vld [vmem:[#allocation15 + $0xb18] sm:$0xff]  ;;  %v16472_v23 = vcombine.low %v1550_v49, %v1554_v29 }
 0x576   :  { %v11316_v41 = vadd.f32 %v11315_v38, %v11314_v61  ;;  %10958 = vmatprep.subr.bf16.mxu0 %v16337_v56  ;;  %v1382_v61 = vld [vmem:[#allocation15 + $0x618] sm:$0xff]  ;;  %v16312_v56 = vcombine.low %v1390_v59, %v1394_v34  ;;  %v11236_v37 = vadd.f32 %v11235_v30, %v11234_v57 }
 0x577   :  { %v1546_v38 = vld [vmem:[#allocation15 + $0xb38] sm:$0xff]  ;;  %v16305_v50 = vcombine.high %v1382_v61, %v1386_v27 }
 0x578   :  { %v11350_v45 = vmul.f32 0.125, %v11316_v41  ;;  %10990 = vmatpush1.bf16.msra.mxu1 %v16376_v55  ;;  %v11246_v55 = vadd.f32 %v11245_v15, %v11244_v9  ;;  %v16465_v10 = vcombine.high %v1542_v46, %v1546_v38  ;;  %v1630_v41 = vld [vmem:[#allocation15 + $0xdd8] sm:$0xff]  ;;  %v16464_v36 = vcombine.low %v1542_v46, %v1546_v38 }
 0x579   :  { %10991 = vmatprep.subr.bf16.mxu1 %v16369_v19  ;;  %10959 = vmatpush2.bf16.msra.mxu0 %v16336_v31  ;;  %v11391_v19 = vrot.slane %v19828_v54, %v19436_v1  ;;  %v1634_v42 = vld [vmem:[#allocation15 + $0xdf8] sm:$0xff]  ;;  %v11276_v9 = vmul.f32 0.125, %v11236_v37 }
 0x57a   :  { %v11358_v8 = vadd.f32 1e-05, %v11350_v45  ;;  %10960 = vmatprep.subr.bf16.mxu0 %v16329_v17  ;;  %v1534_v7 = vld [vmem:[#allocation15 + $0xad8] sm:$0xff]  ;;  %v11471_v45 = vrot.slane %v19828_v54, %v20613_v52  ;;  %v16304_v17 = vcombine.low %v1382_v61, %v1386_v27  ;;  %v16553_v11 = vcombine.high %v1630_v41, %v1634_v42 }
 0x57b   :  { %v1538_v31 = vld [vmem:[#allocation15 + $0xaf8] sm:$0xff]  ;;  %v16552_v34 = vcombine.low %v1630_v41, %v1634_v42 }
 0x57c   :  { %18010 = vrsqrt.f32 %v11358_v8  ;;  %10992 = vmatpush1.bf16.msra.mxu1 %v16368_v35  ;;  %v11247_v35 = vrot.slane %v11246_v55, 1  ;;  %v16457_v8 = vcombine.high %v1534_v7, %v1538_v31  ;;  %v1622_v51 = vld [vmem:[#allocation15 + $0xd98] sm:$0xff]  ;;  %v16456_v49 = vcombine.low %v1534_v7, %v1538_v31 }
 0x57d   :  { %10993 = vmatprep.subr.bf16.mxu1 %v16489_v5  ;;  %10961 = vmatpush2.bf16.msra.mxu0 %v16328_v13  ;;  %v11431_v5 = vrot.slane %v11391_v19, %v19436_v1  ;;  %v1626_v2 = vld [vmem:[#allocation15 + $0xdb8] sm:$0xff] }
 0x57e   :  { %10962 = vmatprep.subr.bf16.mxu0 %v16321_v60  ;;  %v1530_v60 = vld [vmem:[#allocation15 + $0xab8] sm:$0xff]  ;;  %v11248_v59 = vadd.f32 %v11247_v35, %v11246_v55  ;;  %v16545_v29 = vcombine.high %v1622_v51, %v1626_v2  ;;  %v16544_v38 = vcombine.low %v1622_v51, %v1626_v2 }
 0x57f   :  { %v1522_v61 = vld [vmem:[#allocation15 + $0xa78] sm:$0xff] }
 0x580   :  { %10994 = vmatpush2.bf16.msra.mxu1 %v16488_v4  ;;  %v1526_v4 = vld [vmem:[#allocation15 + $0xa98] sm:$0xff]  ;;  %v11278_v30 = vmul.f32 0.125, %v11248_v59 }
 0x581   :  { %10995 = vmatprep.subr.bf16.mxu1 %v16481_v28  ;;  %10963 = vmatpush2.bf16.msra.mxu0 %v16320_v25  ;;  %v11511_v28 = vrot.slane %v11471_v45, %v20613_v52  ;;  %v16449_v15 = vcombine.high %v1526_v4, %v1530_v60  ;;  %v1614_v25 = vld [vmem:[#allocation15 + $0xd58] sm:$0xff]  ;;  %v16448_v55 = vcombine.low %v1526_v4, %v1530_v60 }
 0x582   :  { %10964 = vmatprep.subr.bf16.mxu0 %v16313_v24  ;;  %v19874_v24 = vsub.f32 %v19856_v32, %v11276_v9  ;;  %v1514_v42 = vld [vmem:[#allocation15 + $0xa38] sm:$0xff]  ;;  %v19885_v37 = vsub.f32 %v19861_v63, %v11278_v30 }
 0x583   :  { %v1758_v63 = vld [vmem:[#allocation15 + $0x11d8] sm:$0xff] }
 0x584   :  { %10996 = vmatpush2.bf16.msra.mxu1 %v16480_v48  ;;  %v1618_v48 = vld [vmem:[#allocation15 + $0xd78] sm:$0xff]  ;;  %v11294_v2 = vmul.f32 %v19885_v37, %v19885_v37 }
 0x585   :  { %10997 = vmatprep.subr.bf16.mxu1 %v16473_v22  ;;  %10965 = vmatpush2.bf16.msra.mxu0 %v16312_v56  ;;  %v1518_v22 = vld [vmem:[#allocation15 + $0xa58] sm:$0xff]  ;;  %v16537_v32 = vcombine.high %v1614_v25, %v1618_v48  ;;  %v16536_v7 = vcombine.low %v1614_v25, %v1618_v48 }
 0x586   :  { %10966 = vmatprep.subr.bf16.mxu0 %v16305_v50  ;;  %v1610_v50 = vld [vmem:[#allocation15 + $0xd38] sm:$0xff]  ;;  %v16440_v45 = vcombine.low %v1518_v22, %v1522_v61  ;;  %v11317_v25 = vrot.slane %v11294_v2, 4 }
 0x587   :  { %v1762_v51 = vld [vmem:[#allocation15 + $0x11f8] sm:$0xff] }
 0x588   :  { %10998 = vmatpush2.bf16.msra.mxu1 %v16472_v23  ;;  %v1606_v23 = vld [vmem:[#allocation15 + $0xd18] sm:$0xff]  ;;  %v16681_v59 = vcombine.high %v1758_v63, %v1762_v51 }
 0x589   :  { %v18011_v21 = vpop.eup %18010  ;;  %10999 = vmatprep.subr.bf16.mxu1 %v16465_v10  ;;  %10967 = vmatpush2.bf16.msra.mxu0 %v16304_v17  ;;  %v11292_v10 = vmul.f32 %v19874_v24, %v19874_v24  ;;  %v16529_v35 = vcombine.high %v1606_v23, %v1610_v50  ;;  %v1582_v30 = vld [vmem:[#allocation15 + $0xc58] sm:$0xff] }
 0x58a   :  { %v11374_v13 = vmul.f32 %v18011_v21, %v19848_v62  ;;  %11018 = vmatprep.subr.bf16.mxu0 %v16553_v11  ;;  %v1602_v11 = vld [vmem:[#allocation15 + $0xcf8] sm:$0xff] }
 0x58b   :  { %v11305_v21 = vrot.slane %v11292_v10, 4 }
 0x58c   :  { %v11454_v57 = vmul.f32 %v11431_v5, %v11374_v13  ;;  %11000 = vmatpush2.bf16.msra.mxu1 %v16464_v36  ;;  %v10683_v62 = vpop.f32.mrf.mxu0  ;;  %10969 = vmatmul.mubr.bf16.vlgmr.msra.gmra.mxu0 %v19633_v6  ;;  %v16441_v6 = vcombine.high %v1518_v22, %v1522_v61  ;;  %v1598_v36 = vld [vmem:[#allocation15 + $0xcd8] sm:$0xff]  ;;  %v16528_v13 = vcombine.low %v1606_v23, %v1610_v50 }
 0x58d   :  { %11001 = vmatprep.subr.bf16.mxu1 %v16457_v8  ;;  %v10684_v46 = vadd.f32 %v10683_v62, %v19606_v44  ;;  %11019 = vmatpush1.bf16.msra.mxu0 %v16552_v34  ;;  %v1510_v44 = vld [vmem:[#allocation15 + $0xa18] sm:$0xff]  ;;  %v16521_v60 = vcombine.high %v1598_v36, %v1602_v11  ;;  %v16520_v48 = vcombine.low %v1598_v36, %v1602_v11 }
 0x58e   :  { %v19877_v27 = vadd.f32 %v11511_v28, %v11454_v57  ;;  %11050 = vmatprep.mubr.bf16.mxu0 %v19638_v12  ;;  %v10685_v56 = vpop.f32.mrf.mxu0  ;;  %11020 = vmatprep.subr.bf16.mxu0 %v16545_v29  ;;  %v16433_v5 = vcombine.high %v1510_v44, %v1514_v42  ;;  %v16432_v4 = vcombine.low %v1510_v44, %v1514_v42  ;;  %v1590_v34 = vld [vmem:[#allocation15 + $0xc98] sm:$0xff] }
 0x58f   :  { %v10686_v19 = vadd.f32 %v10685_v56, %v19616_v33  ;;  %v1594_v57 = vld [vmem:[#allocation15 + $0xcb8] sm:$0xff]  ;;  %v16680_v62 = vcombine.low %v1758_v63, %v1762_v51 }
 0x590   :  { %11002 = vmatpush2.bf16.msra.mxu1 %v16456_v49  ;;  %v10687_v41 = vpop.f32.mrf.mxu0  ;;  %v11306_v49 = vadd.f32 %v11305_v21, %v11292_v10  ;;  %v1750_v29 = vld [vmem:[#allocation15 + $0x1198] sm:$0xff]  ;;  %v16513_v22 = vcombine.high %v1590_v34, %v1594_v57  ;;  %vm11542_vm5 = vcmp.gt.f32.partialorder %v19877_v27, 0.0 }
 0x591   :  { %11003 = vmatprep.subr.bf16.mxu1 %v16449_v15  ;;  %11021 = vmatpush1.bf16.msra.mxu0 %v16544_v38  ;;  %v1754_v15 = vld [vmem:[#allocation15 + $0x11b8] sm:$0xff] }
 0x592   :  { %v10688_v33 = vpop.f32.mrf.mxu0  ;;  %11022 = vmatprep.subr.bf16.mxu0 %v16537_v32  ;;  %v16673_v61 = vcombine.high %v1750_v29, %v1754_v15  ;;  %v11307_v38 = vrot.slane %v11306_v49, 2  ;;  %v1746_v56 = vld [vmem:[#allocation15 + $0x1178] sm:$0xff]  ;;  %v11318_v32 = vadd.f32 %v11317_v25, %v11294_v2 }
 0x593   :  { %v10724_v12 = vpop.f32.mrf.mxu1  ;;  %v1574_v10 = vld [vmem:[#allocation15 + $0xc18] sm:$0xff] }
 0x594   :  { %v19887_v31 = vadd.f32 %v10724_v12, %v10684_v46  ;;  %11004 = vmatpush2.bf16.msra.mxu1 %v16448_v55  ;;  %v1586_v46 = vld [vmem:[#allocation15 + $0xc78] sm:$0xff]  ;;  %v11308_v44 = vadd.f32 %v11307_v38, %v11306_v49 }
 0x595   :  { %v10726_v17 = vpop.f32.mrf.mxu1  ;;  %11005 = vmatprep.subr.bf16.mxu1 %v16441_v6  ;;  %11023 = vmatpush1.bf16.msra.mxu0 %v16536_v7  ;;  %v1742_v55 = vld [vmem:[#allocation15 + $0x1158] sm:$0xff]  ;;  %v16672_v6 = vcombine.low %v1750_v29, %v1754_v15  ;;  %v16505_v23 = vcombine.high %v1582_v30, %v1586_v46  ;;  %v11319_v7 = vrot.slane %v11318_v32, 2 }
 0x596   :  { %v19889_v8 = vadd.f32 %v10726_v17, %v10686_v19  ;;  %11024 = vmatprep.subr.bf16.mxu0 %v16529_v35  ;;  %v16512_v19 = vcombine.low %v1590_v34, %v1594_v57  ;;  %v16665_v50 = vcombine.high %v1742_v55, %v1746_v56  ;;  %v1578_v41 = vld [vmem:[#allocation15 + $0xc38] sm:$0xff]  ;;  %v11309_v36 = vrot.slane %v11308_v44, 1 }
 0x597   :  { %v10728_v9 = vpop.f32.mrf.mxu1  ;;  %v1734_v42 = vld [vmem:[#allocation15 + $0x1118] sm:$0xff]  ;;  %v16497_v33 = vcombine.high %v1574_v10, %v1578_v41  ;;  %v11320_v63 = vadd.f32 %v11319_v7, %v11318_v32 }
 0x598   :  { %11006 = vmatpush2.bf16.msra.mxu1 %v16440_v45  ;;  %v1738_v12 = vld [vmem:[#allocation15 + $0x1138] sm:$0xff]  ;;  %v16504_v45 = vcombine.low %v1582_v30, %v1586_v46 }
 0x599   :  { %v10729_v28 = vpop.f32.mrf.mxu1  ;;  %11007 = vmatprep.subr.bf16.mxu1 %v16433_v5  ;;  %11025 = vmatpush1.bf16.msra.mxu0 %v16528_v13  ;;  %v16657_v35 = vcombine.high %v1734_v42, %v1738_v12  ;;  %v1694_v17 = vld [vmem:[#allocation15 + $0xfd8] sm:$0xff]  ;;  %v16656_v51 = vcombine.low %v1734_v42, %v1738_v12  ;;  %v11321_v34 = vrot.slane %v11320_v63, 1 }
 0x59a   :  { %11026 = vmatprep.subr.bf16.mxu0 %v16521_v60  ;;  %v1698_v5 = vld [vmem:[#allocation15 + $0xff8] sm:$0xff]  ;;  %v11310_v60 = vadd.f32 %v11309_v36, %v11308_v44 }
 0x59b   :  { %v1726_v11 = vld [vmem:[#allocation15 + $0x10d8] sm:$0xff]  ;;  %v16617_v2 = vcombine.high %v1694_v17, %v1698_v5  ;;  %v16616_v57 = vcombine.low %v1694_v17, %v1698_v5  ;;  %v11322_v30 = vadd.f32 %v11321_v34, %v11320_v63 }
 0x59c   :  { %11008 = vmatpush2.bf16.msra.mxu1 %v16432_v4  ;;  %v1730_v21 = vld [vmem:[#allocation15 + $0x10f8] sm:$0xff] }
 0x59d   :  { %11059 = vmatprep.subr.bf16.mxu1 %v16681_v59  ;;  %11027 = vmatpush1.bf16.msra.mxu0 %v16520_v48  ;;  %v16649_v9 = vcombine.high %v1726_v11, %v1730_v21  ;;  %v1686_v13 = vld [vmem:[#allocation15 + $0xf98] sm:$0xff]  ;;  %v16648_v49 = vcombine.low %v1726_v11, %v1730_v21 }
 0x59e   :  { %11028 = vmatprep.subr.bf16.mxu0 %v16513_v22  ;;  %v1690_v4 = vld [vmem:[#allocation15 + $0xfb8] sm:$0xff] }
 0x59f   :  { %11010 = vmatmul.mubr.bf16.vlgmr.msra.gmra.mxu1 %v19690_v47  ;;  %v16664_v47 = vcombine.low %v1742_v55, %v1746_v56  ;;  %v1718_v28 = vld [vmem:[#allocation15 + $0x1098] sm:$0xff]  ;;  %v16609_v29 = vcombine.high %v1686_v13, %v1690_v4  ;;  %v16608_v46 = vcombine.low %v1686_v13, %v1690_v4 }
 0x5a0   :  { %11060 = vmatpush1.bf16.msra.mxu1 %v16680_v62  ;;  %11091 = vmatprep.mubr.bf16.mxu1 %v19694_v20  ;;  %v16496_v20 = vcombine.low %v1574_v10, %v1578_v41  ;;  %v1722_v59 = vld [vmem:[#allocation15 + $0x10b8] sm:$0xff]  ;;  %v11349_v62 = vmul.f32 0.125, %v11310_v60  ;;  %v11351_v10 = vmul.f32 0.125, %v11322_v30 }
 0x5a1   :  { %11061 = vmatprep.subr.bf16.mxu1 %v16673_v61  ;;  %11029 = vmatpush1.bf16.msra.mxu0 %v16512_v19  ;;  %v16641_v15 = vcombine.high %v1718_v28, %v1722_v59  ;;  %v1678_v25 = vld [vmem:[#allocation15 + $0xf58] sm:$0xff]  ;;  %v16640_v38 = vcombine.low %v1718_v28, %v1722_v59 }
 0x5a2   :  { %11030 = vmatprep.subr.bf16.mxu0 %v16505_v23  ;;  %v1682_v48 = vld [vmem:[#allocation15 + $0xf78] sm:$0xff] }
 0x5a3   :  { %v1710_v22 = vld [vmem:[#allocation15 + $0x1058] sm:$0xff]  ;;  %v16601_v55 = vcombine.high %v1678_v25, %v1682_v48  ;;  %v16600_v41 = vcombine.low %v1678_v25, %v1682_v48 }
 0x5a4   :  { %11062 = vmatpush1.bf16.msra.mxu1 %v16672_v6  ;;  %v1714_v61 = vld [vmem:[#allocation15 + $0x1078] sm:$0xff]  ;;  %v11357_v6 = vadd.f32 1e-05, %v11349_v62 }
 0x5a5   :  { %11063 = vmatprep.subr.bf16.mxu1 %v16665_v50  ;;  %11031 = vmatpush1.bf16.msra.mxu0 %v16504_v45  ;;  %v16633_v56 = vcombine.high %v1710_v22, %v1714_v61  ;;  %v1670_v32 = vld [vmem:[#allocation15 + $0xf18] sm:$0xff]  ;;  %v16632_v44 = vcombine.low %v1710_v22, %v1714_v61 }
 0x5a6   :  { %11032 = vmatprep.subr.bf16.mxu0 %v16497_v33  ;;  %v1674_v19 = vld [vmem:[#allocation15 + $0xf38] sm:$0xff]  ;;  %18012 = vrsqrt.f32 %v11357_v6 }
 0x5a7   :  { %v1702_v23 = vld [vmem:[#allocation15 + $0x1018] sm:$0xff]  ;;  %v16593_v42 = vcombine.high %v1670_v32, %v1674_v19  ;;  %v16592_v17 = vcombine.low %v1670_v32, %v1674_v19 }
 0x5a8   :  { %11064 = vmatpush1.bf16.msra.mxu1 %v16664_v47  ;;  %v1706_v50 = vld [vmem:[#allocation15 + $0x1038] sm:$0xff] }
 0x5a9   :  { %11065 = vmatprep.subr.bf16.mxu1 %v16657_v35  ;;  %11033 = vmatpush1.bf16.msra.mxu0 %v16496_v20  ;;  %v16625_v12 = vcombine.high %v1702_v23, %v1706_v50  ;;  %v1662_v7 = vld [vmem:[#allocation15 + $0xed8] sm:$0xff]  ;;  %v11359_v35 = vadd.f32 1e-05, %v11351_v10  ;;  %v16624_v5 = vcombine.low %v1702_v23, %v1706_v50 }
 0x5aa   :  { %11034 = vmatprep.subr.bf16.mxu0 %v16617_v2  ;;  %v1666_v45 = vld [vmem:[#allocation15 + $0xef8] sm:$0xff] }
 0x5ab   :  { %v1822_v47 = vld [vmem:[#allocation15 + $0x13d8] sm:$0xff]  ;;  %v16585_v36 = vcombine.high %v1662_v7, %v1666_v45  ;;  %18014 = vrsqrt.f32 %v11359_v35  ;;  %v16584_v2 = vcombine.low %v1662_v7, %v1666_v45 }
 0x5ac   :  { %11066 = vmatpush1.bf16.msra.mxu1 %v16656_v51  ;;  %v1826_v33 = vld [vmem:[#allocation15 + $0x13f8] sm:$0xff] }
 0x5ad   :  { %11067 = vmatprep.subr.bf16.mxu1 %v16649_v9  ;;  %11035 = vmatpush2.bf16.msra.mxu0 %v16616_v57  ;;  %v16745_v11 = vcombine.high %v1822_v47, %v1826_v33  ;;  %v1654_v21 = vld [vmem:[#allocation15 + $0xe98] sm:$0xff]  ;;  %v16744_v9 = vcombine.low %v1822_v47, %v1826_v33  ;;  %v19896_v57 = vsub.s32 5, %v20614_v58 }
 0x5ae   :  { %11036 = vmatprep.subr.bf16.mxu0 %v16609_v29  ;;  %v1658_v63 = vld [vmem:[#allocation15 + $0xeb8] sm:$0xff] }
 0x5af   :  { %v1814_v20 = vld [vmem:[#allocation15 + $0x1398] sm:$0xff]  ;;  %v16577_v13 = vcombine.high %v1654_v21, %v1658_v63  ;;  %v11387_v30 = vrot.slane %v19844_v14, %v19896_v57 }
 0x5b0   :  { %11068 = vmatpush1.bf16.msra.mxu1 %v16648_v49  ;;  %v1818_v51 = vld [vmem:[#allocation15 + $0x13b8] sm:$0xff]  ;;  %v16576_v49 = vcombine.low %v1654_v21, %v1658_v63 }
 0x5b1   :  { %11069 = vmatprep.subr.bf16.mxu1 %v16641_v15  ;;  %11037 = vmatpush2.bf16.msra.mxu0 %v16608_v46  ;;  %v16737_v4 = vcombine.high %v1814_v20, %v1818_v51  ;;  %v1646_v60 = vld [vmem:[#allocation15 + $0xe58] sm:$0xff]  ;;  %v16736_v29 = vcombine.low %v1814_v20, %v1818_v51  ;;  %v19901_v46 = vsub.s32 6, %v20614_v58 }
 0x5b2   :  { %11038 = vmatprep.subr.bf16.mxu0 %v16601_v55  ;;  %v1650_v28 = vld [vmem:[#allocation15 + $0xe78] sm:$0xff] }
 0x5b3   :  { %v1806_v59 = vld [vmem:[#allocation15 + $0x1358] sm:$0xff]  ;;  %v16569_v15 = vcombine.high %v1646_v60, %v1650_v28  ;;  %v16568_v55 = vcombine.low %v1646_v60, %v1650_v28  ;;  %v11467_v58 = vrot.slane %v19844_v14, %v19901_v46 }
 0x5b4   :  { %11070 = vmatpush1.bf16.msra.mxu1 %v16640_v38  ;;  %v1810_v34 = vld [vmem:[#allocation15 + $0x1378] sm:$0xff]  ;;  %v18013_v38 = vpop.eup %18012 }
 0x5b5   :  { %11071 = vmatprep.subr.bf16.mxu1 %v16633_v56  ;;  %11039 = vmatpush2.bf16.msra.mxu0 %v16600_v41  ;;  %v16729_v25 = vcombine.high %v1806_v59, %v1810_v34  ;;  %v1638_v48 = vld [vmem:[#allocation15 + $0xe18] sm:$0xff]  ;;  %v16728_v56 = vcombine.low %v1806_v59, %v1810_v34  ;;  %v11373_v23 = vmul.f32 %v18013_v38, %v19874_v24 }
 0x5b6   :  { %11040 = vmatprep.subr.bf16.mxu0 %v16593_v42  ;;  %v1642_v62 = vld [vmem:[#allocation15 + $0xe38] sm:$0xff]  ;;  %v11427_v41 = vrot.slane %v11387_v30, %v19436_v1  ;;  %v11395_v42 = vrot.slane %v19828_v54, %v19896_v57  ;;  %v11507_v14 = vrot.slane %v11467_v58, %v20613_v52  ;;  %v17290_v58 = vld [vmem:[#allocation18 + $0xe0] ss:$16 sps:$4 sm:$0xff]  }
 0x5b7   :  { %v1798_v22 = vld [vmem:[#allocation15 + $0x1318] sm:$0xff]  ;;  %v16561_v32 = vcombine.high %v1638_v48, %v1642_v62 }
 0x5b8   :  { %11072 = vmatpush1.bf16.msra.mxu1 %v16632_v44  ;;  %v1802_v61 = vld [vmem:[#allocation15 + $0x1338] sm:$0xff]  ;;  %v16560_v44 = vcombine.low %v1638_v48, %v1642_v62  ;;  %v11435_v63 = vrot.slane %v11395_v42, %v19436_v1 }
 0x5b9   :  { %11073 = vmatprep.subr.bf16.mxu1 %v16625_v12  ;;  %11041 = vmatpush2.bf16.msra.mxu0 %v16592_v17  ;;  %v16721_v19 = vcombine.high %v1798_v22, %v1802_v61  ;;  %v1846_v6 = vld [vmem:[#allocation15 + $0x1498] sm:$0x11]  ;;  %v18015_v12 = vpop.eup %18014  ;;  %v16720_v7 = vcombine.low %v1798_v22, %v1802_v61 }
 0x5ba   :  { %11042 = vmatprep.subr.bf16.mxu0 %v16585_v36  ;;  %v1790_v50 = vld [vmem:[#allocation15 + $0x12d8] sm:$0xff]  ;;  %v16769_v45 = vcombine.high %v1846_v6, %v1846_v6  ;;  %v16768_v47 = vcombine.low %v1846_v6, %v1846_v6  ;;  %v11453_v36 = vmul.f32 %v11427_v41, %v11373_v23  ;;  %v11375_v21 = vmul.f32 %v18015_v12, %v19885_v37  ;;  %v17292_v6 = vld [vmem:[#allocation18 + $0xe4] ss:$16 sps:$4 sm:$0xff]  }
 0x5bb   :  { %v1794_v10 = vld [vmem:[#allocation15 + $0x12f8] sm:$0xff]  ;;  %v17298_v12 = vld [vmem:[#allocation18 + $0xc4] ss:$16 sps:$4 sm:$0xff]  }
 0x5bc   :  { %11074 = vmatpush1.bf16.msra.mxu1 %v16624_v5  ;;  %v16713_v24 = vcombine.high %v1790_v50, %v1794_v10  ;;  %v1838_v33 = vld [vmem:[#allocation15 + $0x1458] sm:$0xff]  ;;  %v16712_v20 = vcombine.low %v1790_v50, %v1794_v10  ;;  %v10152_v51 = vsel %vm5821_vm1, %v16768_v47, 0  ;;  %v11533_v37 = vadd.f32 %v11507_v14, %v11453_v36 }
 0x5bd   :  { %11075 = vmatprep.subr.bf16.mxu1 %v16745_v11  ;;  %11043 = vmatpush2.bf16.msra.mxu0 %v16584_v2  ;;  %v1842_v35 = vld [vmem:[#allocation15 + $0x1478] sm:$0xff]  ;;  %v11475_v11 = vrot.slane %v19828_v54, %v19901_v46 }
 0x5be   :  { %11044 = vmatprep.subr.bf16.mxu0 %v16577_v13  ;;  %v1782_v17 = vld [vmem:[#allocation15 + $0x1298] sm:$0xff]  ;;  %v16761_v2 = vcombine.high %v1838_v33, %v1842_v35  ;;  %v11549_v30 = vmul.f32 0.01, %v11533_v37  ;;  %vm11541_vm2 = vcmp.gt.f32.partialorder %v11533_v37, 0.0 }
 0x5bf   :  { %v1786_v5 = vld [vmem:[#allocation15 + $0x12b8] sm:$0xff]  ;;  %v11515_v59 = vrot.slane %v11475_v11, %v20613_v52  ;;  %v17302_v11 = vld [vmem:[#allocation18 + $0xa0] ss:$16 sps:$4 sm:$0xff]  }
 0x5c0   :  { %11076 = vmatpush2.bf16.msra.mxu1 %v16744_v9  ;;  %v16705_v9 = vcombine.high %v1782_v17, %v1786_v5  ;;  %v1830_v13 = vld [vmem:[#allocation15 + $0x1418] sm:$0xff]  ;;  %v11557_v10 = vsel %vm11541_vm2, %v11533_v37, %v11549_v30  ;;  %v17319_v37 = vld [vmem:[#allocation18 + $0x264] ss:$16 sps:$4 sm:$0xff]  }
 0x5c1   :  { %11077 = vmatprep.subr.bf16.mxu1 %v16737_v4  ;;  %11045 = vmatpush2.bf16.msra.mxu0 %v16576_v49  ;;  %v1834_v4 = vld [vmem:[#allocation15 + $0x1438] sm:$0xff]  ;;  %v16760_v49 = vcombine.low %v1838_v33, %v1842_v35  ;;  %v19926_v47 = vpack.c.bf16 %v11557_v10, %v11557_v10  ;;  %v17296_v33 = vld [vmem:[#allocation18 + $0xc0] ss:$16 sps:$4 sm:$0xff]   ;;  %v17340_v30 = vld [vmem:[#allocation18 + $0x1e4] ss:$16 sps:$4 sm:$0xff]  }
 0x5c2   :  { %11046 = vmatprep.subr.bf16.mxu0 %v16569_v15  ;;  %v1774_v54 = vld [vmem:[#allocation15 + $0x1258] sm:$0xff]  ;;  %v16704_v15 = vcombine.low %v1782_v17, %v1786_v5  ;;  %v16753_v48 = vcombine.high %v1830_v13, %v1834_v4  ;;  %v17293_v35 = vld [vmem:[#allocation18 + $0x2e0] ss:$16 sps:$4 sm:$0xff]   ;;  %v17301_v17 = vld [vmem:[#allocation18 + $0x2c4] ss:$16 sps:$4 sm:$0xff]  }
 0x5c3   :  { %v1778_v28 = vld [vmem:[#allocation15 + $0x1278] sm:$0xff]  ;;  %v17304_v5 = vld [vmem:[#allocation18 + $0xa4] ss:$16 sps:$4 sm:$0xff]  }
 0x5c4   :  { %11078 = vmatpush2.bf16.msra.mxu1 %v16736_v29  ;;  %v11455_v29 = vmul.f32 %v11435_v63, %v11375_v21  ;;  %v1766_v22 = vld [vmem:[#allocation15 + $0x1218] sm:$0xff]  ;;  %v17310_v21 = vld [vmem:[#allocation18 + $0x84] ss:$16 sps:$4 sm:$0xff]  }
 0x5c5   :  { %11079 = vmatprep.subr.bf16.mxu1 %v16729_v25  ;;  %11047 = vmatpush2.bf16.msra.mxu0 %v16568_v55  ;;  %v1770_v61 = vld [vmem:[#allocation15 + $0x1238] sm:$0xff]  ;;  %v17352_v10 = vld [vmem:[#allocation18 + $0x1a4] ss:$16 sps:$4 sm:$0xff]  }
 0x5c6   :  { %11048 = vmatprep.subr.bf16.mxu0 %v16561_v32  ;;  %v11535_v55 = vadd.f32 %v11515_v59, %v11455_v29  ;;  %v16696_v32 = vcombine.low %v1774_v54, %v1778_v28  ;;  %v16689_v50 = vcombine.high %v1766_v22, %v1770_v61  ;;  %v16688_v42 = vcombine.low %v1766_v22, %v1770_v61  ;;  %v17320_v59 = vld [vmem:[#allocation18 + $0x40] ss:$16 sps:$4 sm:$0xff]   ;;  %v17325_v29 = vld [vmem:[#allocation18 + $0x244] ss:$16 sps:$4 sm:$0xff]  }
 0x5c7   :  { %v17332_v22 = vld [vmem:[#allocation18] ss:$16 sps:$4 sm:$0xff]  }
 0x5c8   :  { %11080 = vmatpush2.bf16.msra.mxu1 %v16728_v56  ;;  %vm11543_vm3 = vcmp.gt.f32.partialorder %v11535_v55, 0.0  ;;  %v17329_v61 = vld [vmem:[#allocation18 + $0x220] ss:$16 sps:$4 sm:$0xff]  }
 0x5c9   :  { %11081 = vmatprep.subr.bf16.mxu1 %v16721_v19  ;;  %11049 = vmatpush2.bf16.msra.mxu0 %v16560_v44  ;;  %v11551_v44 = vmul.f32 0.01, %v11535_v55 }
 0x5ca   :  { %16776 = vmatprep.subr.msk.bf16.mxu0 %vm5821_vm1, %v16769_v45  ;;  %v17295_v45 = vld [vmem:[#allocation18 + $0x2e4] ss:$16 sps:$4 sm:$0xff]  }
 0x5cc   :  { %11082 = vmatpush2.bf16.msra.mxu1 %v16720_v7  ;;  %v10765_v60 = vpop.f32.mrf.mxu0  ;;  %11051 = vmatmul.mubr.bf16.vlgmr.msra.gmra.mxu0 %v19697_v26  ;;  %v16697_v26 = vcombine.high %v1774_v54, %v1778_v28  ;;  %v17311_v54 = vld [vmem:[#allocation18 + $0x280] ss:$16 sps:$4 sm:$0xff]   ;;  %v17322_v28 = vld [vmem:[#allocation18 + $0x44] ss:$16 sps:$4 sm:$0xff]  }
 0x5cd   :  { %11083 = vmatprep.subr.bf16.mxu1 %v16713_v24  ;;  %v10766_v34 = vadd.f32 %v10765_v60, %v19887_v31  ;;  %11111 = vmatpush1.bf16.msra.mxu0 %v10152_v51  ;;  %v16752_v31 = vcombine.low %v1830_v13, %v1834_v4  ;;  %v11559_v24 = vsel %vm11543_vm3, %v11535_v55, %v11551_v44  ;;  %v17316_v13 = vld [vmem:[#allocation18 + $0x64] ss:$16 sps:$4 sm:$0xff]   ;;  %v17314_v60 = vld [vmem:[#allocation18 + $0x60] ss:$16 sps:$4 sm:$0xff]   ;;  %vm14119_vm3 = vcmask 588800  }
 0x5ce   :  { %11132 = vmatprep.mubr.bf16.mxu0 %v20574_v40  ;;  %v19920_v25 = vpop.f32.mrf.mxu0  ;;  %11112 = vmatprep.subr.bf16.mxu0 %v16761_v2  ;;  %v19931_v36 = vpack.c.bf16 %v11559_v24, %v11559_v24  ;;  %v17308_v2 = vld [vmem:[#allocation18 + $0x80] ss:$16 sps:$4 sm:$0xff]   ;;  %v17313_v4 = vld [vmem:[#allocation18 + $0x284] ss:$16 sps:$4 sm:$0xff]  }
 0x5cf   :  { %v17335_v55 = vld [vmem:[#allocation18 + $0x200] ss:$16 sps:$4 sm:$0xff]   ;;  %v17364_v24 = vld [vmem:[#allocation18 + $0x164] ss:$16 sps:$4 sm:$0xff]  }
 0x5d0   :  { %11084 = vmatpush2.bf16.msra.mxu1 %v16712_v20  ;;  %v10769_v62 = vpop.f32.mrf.mxu0  ;;  %v17307_v20 = vld [vmem:[#allocation18 + $0x2a4] ss:$16 sps:$4 sm:$0xff]   ;;  %v17347_v44 = vld [vmem:[#allocation18 + $0x3c0] ss:$16 sps:$4 sm:$0xff]  }
 0x5d1   :  { %11085 = vmatprep.subr.bf16.mxu1 %v16705_v9  ;;  %11113 = vmatpush1.bf16.msra.mxu0 %v16760_v49  ;;  %v17305_v9 = vld [vmem:[#allocation18 + $0x2a0] ss:$16 sps:$4 sm:$0xff]   ;;  %v17328_v49 = vld [vmem:[#allocation18 + $0x24] ss:$16 sps:$4 sm:$0xff]  }
 0x5d2   :  { %v10770_v19 = vpop.f32.mrf.mxu0  ;;  %11114 = vmatprep.subr.bf16.mxu0 %v16753_v48  ;;  %v17323_v48 = vld [vmem:[#allocation18 + $0x240] ss:$16 sps:$4 sm:$0xff]   ;;  %v17331_v62 = vld [vmem:[#allocation18 + $0x224] ss:$16 sps:$4 sm:$0xff]  }
 0x5d3   :  { %v10806_v38 = vpop.f32.mrf.mxu1  ;;  %v17343_v19 = vld [vmem:[#allocation18 + $0x3e4] ss:$16 sps:$4 sm:$0xff]  }
 0x5d4   :  { %v19922_v56 = vadd.f32 %v10806_v38, %v10766_v34  ;;  %11086 = vmatpush2.bf16.msra.mxu1 %v16704_v15  ;;  %v17317_v34 = vld [vmem:[#allocation18 + $0x260] ss:$16 sps:$4 sm:$0xff]   ;;  %v17337_v38 = vld [vmem:[#allocation18 + $0x204] ss:$16 sps:$4 sm:$0xff]  }
 0x5d5   :  { %v19924_v23 = vpop.f32.mrf.mxu1  ;;  %11087 = vmatprep.subr.bf16.mxu1 %v16697_v26  ;;  %11115 = vmatpush1.bf16.msra.mxu0 %v16752_v31  ;;  %v17326_v15 = vld [vmem:[#allocation18 + $0x20] ss:$16 sps:$4 sm:$0xff]   ;;  %v17334_v26 = vld [vmem:[#allocation18 + $0x4] ss:$16 sps:$4 sm:$0xff]  }
 0x5d6   :  { %13126 = vmatprep.subr.bf16.mxu0 %v17292_v6  ;;  %v17338_v31 = vld [vmem:[#allocation18 + $0x1e0] ss:$16 sps:$4 sm:$0xff]  }
 0x5d7   :  { %v10810_v41 = vpop.f32.mrf.mxu1  ;;  %v17344_v6 = vld [vmem:[#allocation18 + $0x1c0] ss:$16 sps:$4 sm:$0xff]  }
 0x5d8   :  { %11088 = vmatpush2.bf16.msra.mxu1 %v16696_v32  ;;  %16777 = vmatmul.mubr.msk.bf16.vlgmr.msra.gmra.mxu0 %vm592_vm0, %v19713_v0  ;;  %v17299_v0 = vld [vmem:[#allocation18 + $0x2c0] ss:$16 sps:$4 sm:$0xff]   ;;  %v17346_v32 = vld [vmem:[#allocation18 + $0x1c4] ss:$16 sps:$4 sm:$0xff]  }
 0x5d9   :  { %v10811_v7 = vpop.f32.mrf.mxu1  ;;  %11089 = vmatprep.subr.bf16.mxu1 %v16689_v50  ;;  %13127 = vmatpush1.bf16.msra.mxu0 %v17290_v58  ;;  %v17341_v50 = vld [vmem:[#allocation18 + $0x3e0] ss:$16 sps:$4 sm:$0xff]   ;;  %v17349_v41 = vld [vmem:[#allocation18 + $0x3c4] ss:$16 sps:$4 sm:$0xff]  }
 0x5da   :  { %13158 = vmatprep.mubr.bf16.mxu0 %v19926_v47  ;;  %13128 = vmatprep.subr.bf16.mxu0 %v17298_v12  ;;  %v17350_v58 = vld [vmem:[#allocation18 + $0x1a0] ss:$16 sps:$4 sm:$0xff]   ;;  %v17355_v12 = vld [vmem:[#allocation18 + $0x3a4] ss:$16 sps:$4 sm:$0xff]  }
 0x5db   :  { %v17356_v7 = vld [vmem:[#allocation18 + $0x180] ss:$16 sps:$4 sm:$0xff]  }
 0x5dc   :  { %11090 = vmatpush2.bf16.msra.mxu1 %v16688_v42  ;;  %v17358_v42 = vld [vmem:[#allocation18 + $0x184] ss:$16 sps:$4 sm:$0xff]  }
 0x5dd   :  { %13167 = vmatprep.subr.bf16.mxu1 %v17295_v45  ;;  %13129 = vmatpush1.bf16.msra.mxu0 %v17296_v33  ;;  %v17353_v45 = vld [vmem:[#allocation18 + $0x3a0] ss:$16 sps:$4 sm:$0xff]   ;;  %v17361_v33 = vld [vmem:[#allocation18 + $0x384] ss:$16 sps:$4 sm:$0xff]  }
 0x5de   :  { %13130 = vmatprep.subr.bf16.mxu0 %v17304_v5  ;;  %v19939_v5 = vld [vmem:[#allocation11 + $0x10] sm:$0x77] }
 0x5df   :  { %v19933_v14 = vpop.f32.mrf.mxu1  ;;  %11092 = vmatmul.mubr.bf16.vlgmr.msra.gmra.mxu1 %v19727_v16 }
 0x5e0   :  { %13168 = vmatpush1.bf16.msra.mxu1 %v17293_v35  ;;  %13199 = vmatprep.mubr.bf16.mxu1 %v19931_v36  ;;  %v17362_v35 = vld [vmem:[#allocation18 + $0x160] ss:$16 sps:$4 sm:$0xff]  }
 0x5e1   :  { %v19937_v63 = vpop.f32.mrf.mxu1  ;;  %13169 = vmatprep.subr.bf16.mxu1 %v17301_v17  ;;  %13131 = vmatpush1.bf16.msra.mxu0 %v17302_v11  ;;  %v17359_v17 = vld [vmem:[#allocation18 + $0x380] ss:$16 sps:$4 sm:$0xff]   ;;  %v17370_v11 = vld [vmem:[#allocation18 + $0x144] ss:$16 sps:$4 sm:$0xff]  }
 0x5e2   :  { %13132 = vmatprep.subr.bf16.mxu0 %v17310_v21  ;;  %v10768_v21 = vadd.f32 %v19920_v25, %v19889_v8  ;;  %v17374_v25 = vld [vmem:[#allocation18 + $0x120] ss:$16 sps:$4 sm:$0xff]  }
 0x5e3   :  { %v10892_v51 = vpop.f32.mrf.mxu1 }
 0x5e4   :  { %13170 = vmatpush1.bf16.msra.mxu1 %v17299_v0  ;;  %v17367_v0 = vld [vmem:[#allocation18 + $0x364] ss:$16 sps:$4 sm:$0xff]   ;;  %v17368_v51 = vld [vmem:[#allocation18 + $0x140] ss:$16 sps:$4 sm:$0xff]  }
 0x5e5   :  { %v10893_v16 = vpop.f32.mrf.mxu1  ;;  %13171 = vmatprep.subr.bf16.mxu1 %v17307_v20  ;;  %13133 = vmatpush1.bf16.msra.mxu0 %v17308_v2  ;;  %v11164_v20 = vrot.slane %v19939_v5, %v19433_v43  ;;  %v17365_v2 = vld [vmem:[#allocation18 + $0x360] ss:$16 sps:$4 sm:$0xff]  }
 0x5e6   :  { %13134 = vmatprep.subr.bf16.mxu0 %v17316_v13  ;;  %v17373_v13 = vld [vmem:[#allocation18 + $0x344] ss:$16 sps:$4 sm:$0xff]   ;;  %v11168_v16 = vrot.slane %v19939_v5, %v19842_v39 }
 0x5e7   :  { %v11204_v8 = vrot.slane %v11164_v20, %v19433_v43  ;;  %v17397_v20 = vld [vmem:[#allocation18 + $0x484] ss:$16 sps:$4 sm:$0xff]  }
 0x5e8   :  { %13172 = vmatpush1.bf16.msra.mxu1 %v17305_v9  ;;  %v17376_v9 = vld [vmem:[#allocation18 + $0x124] ss:$16 sps:$4 sm:$0xff]  }
 0x5e9   :  { %13173 = vmatprep.subr.bf16.mxu1 %v17313_v4  ;;  %13135 = vmatpush1.bf16.msra.mxu0 %v17314_v60  ;;  %v10809_v60 = vadd.f32 %v19924_v23, %v10768_v21  ;;  %v11548_v23 = vmul.f32 0.01, %v19805_v53  ;;  %v17392_v21 = vld [vmem:[#allocation18 + $0x4a0] ss:$16 sps:$4 sm:$0xff]  }
 0x5ea   :  { %13136 = vmatprep.subr.bf16.mxu0 %v17322_v28  ;;  %v17371_v28 = vld [vmem:[#allocation18 + $0x340] ss:$16 sps:$4 sm:$0xff]  }
 0x5ec   :  { %13174 = vmatpush1.bf16.msra.mxu1 %v17311_v54 }
 0x5ed   :  { %13175 = vmatprep.subr.bf16.mxu1 %v17319_v37  ;;  %13137 = vmatpush1.bf16.msra.mxu0 %v17320_v59  ;;  %v17382_v59 = vld [vmem:[#allocation18 + $0x104] ss:$16 sps:$4 sm:$0xff]  }
 0x5ee   :  { %13138 = vmatprep.subr.bf16.mxu0 %v17328_v49 }
 0x5f0   :  { %13176 = vmatpush1.bf16.msra.mxu1 %v17317_v34 }
 0x5f1   :  { %13177 = vmatprep.subr.bf16.mxu1 %v17325_v29  ;;  %13139 = vmatpush1.bf16.msra.mxu0 %v17326_v15  ;;  %v11208_v29 = vrot.slane %v11168_v16, %v19433_v43  ;;  %v17379_v15 = vld [vmem:[#allocation18 + $0x324] ss:$16 sps:$4 sm:$0xff]  }
 0x5f2   :  { %13140 = vmatprep.subr.bf16.mxu0 %v17334_v26 }
 0x5f4   :  { %13178 = vmatpush1.bf16.msra.mxu1 %v17323_v48 }
 0x5f5   :  { %13179 = vmatprep.subr.bf16.mxu1 %v17331_v62  ;;  %13141 = vmatpush1.bf16.msra.mxu0 %v17332_v22  ;;  %v17380_v62 = vld [vmem:[#allocation18 + $0x100] ss:$16 sps:$4 sm:$0xff]  }
 0x5f6   :  { %13142 = vmatprep.subr.bf16.mxu0 %v17340_v30  ;;  %v17377_v22 = vld [vmem:[#allocation18 + $0x320] ss:$16 sps:$4 sm:$0xff]  }
 0x5f8   :  { %13180 = vmatpush1.bf16.msra.mxu1 %v17329_v61 }
 0x5f9   :  { %13181 = vmatprep.subr.bf16.mxu1 %v17337_v38  ;;  %13143 = vmatpush2.bf16.msra.mxu0 %v17338_v31  ;;  %v17385_v31 = vld [vmem:[#allocation18 + $0x304] ss:$16 sps:$4 sm:$0xff]  }
 0x5fa   :  { %13144 = vmatprep.subr.bf16.mxu0 %v17346_v32  ;;  %v11550_v32 = vmul.f32 0.01, %v19877_v27 }
 0x5fc   :  { %13182 = vmatpush1.bf16.msra.mxu1 %v17335_v55  ;;  %v11556_v55 = vsel %vm11540_vm4, %v19805_v53, %v11548_v23  ;;  %v11558_v53 = vsel %vm11542_vm5, %v19877_v27, %v11550_v32  ;;  %v17496_v32 = vld [vmem:[#allocation18 + $0x6a4] ss:$16 sps:$4 sm:$0xff]  }
 0x5fd   :  { %13183 = vmatprep.subr.bf16.mxu1 %v17343_v19  ;;  %13145 = vmatpush2.bf16.msra.mxu0 %v17344_v6 }
 0x5fe   :  { %13146 = vmatprep.subr.bf16.mxu0 %v17352_v10  ;;  %v19958_v10 = vpack.c.bf16 %v11556_v55, %v11556_v55  ;;  %v17404_v55 = vld [vmem:[#allocation18 + $0x420] ss:$16 sps:$4 sm:$0xff]  }
 0x600   :  { %13184 = vmatpush2.bf16.msra.mxu1 %v17341_v50  ;;  %v17383_v50 = vld [vmem:[#allocation18 + $0x300] ss:$16 sps:$4 sm:$0xff]  }
 0x601   :  { %13185 = vmatprep.subr.bf16.mxu1 %v17349_v41  ;;  %13147 = vmatpush2.bf16.msra.mxu0 %v17350_v58  ;;  %v17391_v41 = vld [vmem:[#allocation18 + $0x4c4] ss:$16 sps:$4 sm:$0xff]  }
 0x602   :  { %13148 = vmatprep.subr.bf16.mxu0 %v17358_v42 }
 0x604   :  { %13186 = vmatpush2.bf16.msra.mxu1 %v17347_v44 }
 0x605   :  { %13187 = vmatprep.subr.bf16.mxu1 %v17355_v12  ;;  %13149 = vmatpush2.bf16.msra.mxu0 %v17356_v7  ;;  %v17389_v7 = vld [vmem:[#allocation18 + $0x4c0] ss:$16 sps:$4 sm:$0xff]  }
 0x606   :  { %13150 = vmatprep.subr.bf16.mxu0 %v17364_v24 }
 0x608   :  { %13188 = vmatpush2.bf16.msra.mxu1 %v17353_v45  ;;  %v17394_v45 = vld [vmem:[#allocation18 + $0x4a4] ss:$16 sps:$4 sm:$0xff]  }
 0x609   :  { %13189 = vmatprep.subr.bf16.mxu1 %v17361_v33  ;;  %13151 = vmatpush2.bf16.msra.mxu0 %v17362_v35  ;;  %v19962_v35 = vpack.c.bf16 %v11558_v53, %v11558_v53  ;;  %v17502_v53 = vld [vmem:[#allocation18 + $0x684] ss:$16 sps:$4 sm:$0xff]  }
 0x60a   :  { %13152 = vmatprep.subr.bf16.mxu0 %v17370_v11 }
 0x60c   :  { %13190 = vmatpush2.bf16.msra.mxu1 %v17359_v17  ;;  %v10847_v4 = vpop.f32.mrf.mxu0 }
 0x60d   :  { %13191 = vmatprep.subr.bf16.mxu1 %v17367_v0  ;;  %v10848_v54 = vadd.f32 %v10847_v4, %v19922_v56  ;;  %13153 = vmatpush2.bf16.msra.mxu0 %v17368_v51 }
 0x60e   :  { %v10849_v37 = vpop.f32.mrf.mxu0  ;;  %13154 = vmatprep.subr.bf16.mxu0 %v17376_v9 }
 0x60f   :  { %v10889_v34 = vadd.f32 %v19933_v14, %v10848_v54  ;;  %v10850_v49 = vadd.f32 %v10849_v37, %v10809_v60  ;;  %v17388_v14 = vld [vmem:[#allocation18 + $0x4e4] ss:$16 sps:$4 sm:$0xff]   ;;  %v17395_v54 = vld [vmem:[#allocation18 + $0x480] ss:$16 sps:$4 sm:$0xff]  }
 0x610   :  { %13192 = vmatpush2.bf16.msra.mxu1 %v17365_v2  ;;  %v10851_v48 = vpop.f32.mrf.mxu0 }
 0x611   :  { %13193 = vmatprep.subr.bf16.mxu1 %v17373_v13  ;;  %v11221_v56 = vadd.f32 %v11204_v8, %v10889_v34  ;;  %v10891_v26 = vadd.f32 %v19937_v63, %v10850_v49  ;;  %13155 = vmatpush2.bf16.msra.mxu0 %v17374_v25  ;;  %v17386_v63 = vld [vmem:[#allocation18 + $0x4e0] ss:$16 sps:$4 sm:$0xff]   ;;  %v17400_v8 = vld [vmem:[#allocation18 + $0x464] ss:$16 sps:$4 sm:$0xff]  }
 0x612   :  { %v10852_v61 = vpop.f32.mrf.mxu0  ;;  %13156 = vmatprep.subr.bf16.mxu0 %v17382_v59  ;;  %v17484_v34 = vld [vmem:[#allocation18 + $0x6e4] ss:$16 sps:$4 sm:$0xff]  }
 0x613   :  { %v11249_v30 = vrot.slane %v11221_v56, 4  ;;  %v11222_v38 = vadd.f32 %v11208_v29, %v10891_v26  ;;  %v17403_v49 = vld [vmem:[#allocation18 + $0x444] ss:$16 sps:$4 sm:$0xff]   ;;  %v17482_v29 = vld [vmem:[#allocation18 + $0x6e0] ss:$16 sps:$4 sm:$0xff]  }
 0x614   :  { %13194 = vmatpush2.bf16.msra.mxu1 %v17371_v28  ;;  %v17401_v26 = vld [vmem:[#allocation18 + $0x440] ss:$16 sps:$4 sm:$0xff]  }
 0x615   :  { %13195 = vmatprep.subr.bf16.mxu1 %v17379_v15  ;;  %v11250_v19 = vadd.f32 %v11249_v30, %v11221_v56  ;;  %v11255_v6 = vrot.slane %v11222_v38, 4  ;;  %13157 = vmatpush2.bf16.msra.mxu0 %v17380_v62  ;;  %v17490_v62 = vld [vmem:[#allocation18 + $0x6c4] ss:$16 sps:$4 sm:$0xff]   ;;  %v17488_v61 = vld [vmem:[#allocation18 + $0x6c0] ss:$16 sps:$4 sm:$0xff]  }
 0x616   :  { %13208 = vmatprep.subr.bf16.mxu0 %v17388_v14 }
 0x617   :  { %v11251_v58 = vrot.slane %v11250_v19, 2  ;;  %v11256_v44 = vadd.f32 %v11255_v6, %v11222_v38  ;;  %v17494_v6 = vld [vmem:[#allocation18 + $0x6a0] ss:$16 sps:$4 sm:$0xff]  }
 0x618   :  { %13196 = vmatpush2.bf16.msra.mxu1 %v17377_v22  ;;  %13159 = vmatmul.mubr.bf16.vlgmr.msra.gmra.mxu0 %v19958_v10  ;;  %v17406_v22 = vld [vmem:[#allocation18 + $0x424] ss:$16 sps:$4 sm:$0xff]  }
 0x619   :  { %13197 = vmatprep.subr.bf16.mxu1 %v17385_v31  ;;  %v11252_v42 = vadd.f32 %v11251_v58, %v11250_v19  ;;  %v11257_v12 = vrot.slane %v11256_v44, 2  ;;  %13209 = vmatpush1.bf16.msra.mxu0 %v17386_v63  ;;  %v17409_v19 = vld [vmem:[#allocation18 + $0x404] ss:$16 sps:$4 sm:$0xff]  }
 0x61a   :  { %13210 = vmatprep.subr.bf16.mxu0 %v17391_v41 }
 0x61b   :  { %v11253_v24 = vrot.slane %v11252_v42, 1  ;;  %v11258_v33 = vadd.f32 %v11257_v12, %v11256_v44  ;;  %v17407_v44 = vld [vmem:[#allocation18 + $0x400] ss:$16 sps:$4 sm:$0xff]  }
 0x61c   :  { %13198 = vmatpush2.bf16.msra.mxu1 %v17383_v50  ;;  %v17500_v12 = vld [vmem:[#allocation18 + $0x680] ss:$16 sps:$4 sm:$0xff]  }
 0x61d   :  { %v11254_v17 = vadd.f32 %v11253_v24, %v11252_v42  ;;  %v11259_v11 = vrot.slane %v11258_v33, 1  ;;  %13211 = vmatpush1.bf16.msra.mxu0 %v17389_v7  ;;  %13249 = vmatprep.subr.bf16.mxu1 %v17484_v34  ;;  %v17412_v42 = vld [vmem:[#allocation18 + $0x5e4] ss:$16 sps:$4 sm:$0xff]  }
 0x61e   :  { %13212 = vmatprep.subr.bf16.mxu0 %v17394_v45  ;;  %v17424_v34 = vld [vmem:[#allocation18 + $0x564] ss:$16 sps:$4 sm:$0xff]  }
 0x61f   :  { %v10929_v0 = vpop.f32.mrf.mxu1  ;;  %13200 = vmatmul.mubr.bf16.vlgmr.msra.gmra.mxu1 %v19962_v35  ;;  %v11279_v51 = vmul.f32 0.125, %v11254_v17  ;;  %v11260_v2 = vadd.f32 %v11259_v11, %v11258_v33  ;;  %v17410_v33 = vld [vmem:[#allocation18 + $0x5e0] ss:$16 sps:$4 sm:$0xff]   ;;  %v17508_v17 = vld [vmem:[#allocation18 + $0x664] ss:$16 sps:$4 sm:$0xff]  }
 0x620   :  { %v19966_v27 = vadd.f32 %v10929_v0, %v19732_v18  ;;  %13250 = vmatpush1.bf16.msra.mxu1 %v17482_v29  ;;  %v17415_v11 = vld [vmem:[#allocation18 + $0x5c4] ss:$16 sps:$4 sm:$0xff]   ;;  %v17506_v0 = vld [vmem:[#allocation18 + $0x660] ss:$16 sps:$4 sm:$0xff]  }
 0x621   :  { %v10931_v9 = vpop.f32.mrf.mxu1  ;;  %v19971_v16 = vsub.f32 %v11221_v56, %v11279_v51  ;;  %v11280_v4 = vmul.f32 0.125, %v11260_v2  ;;  %13213 = vmatpush1.bf16.msra.mxu0 %v17392_v21  ;;  %13251 = vmatprep.subr.bf16.mxu1 %v17490_v62  ;;  %v17413_v21 = vld [vmem:[#allocation18 + $0x5c0] ss:$16 sps:$4 sm:$0xff]   ;;  %v17418_v51 = vld [vmem:[#allocation18 + $0x5a4] ss:$16 sps:$4 sm:$0xff]  }
 0x622   :  { %v19969_v13 = vadd.f32 %v10931_v9, %v19735_v3  ;;  %13214 = vmatprep.subr.bf16.mxu0 %v17397_v20  ;;  %v17398_v3 = vld [vmem:[#allocation18 + $0x460] ss:$16 sps:$4 sm:$0xff]   ;;  %v17514_v20 = vld [vmem:[#allocation18 + $0x644] ss:$16 sps:$4 sm:$0xff]  }
 0x623   :  { %v10933_v60 = vpop.f32.mrf.mxu1  ;;  %v11295_v18 = vmul.f32 %v19971_v16, %v19971_v16  ;;  %v19975_v25 = vsub.f32 %v11222_v38, %v11280_v4  ;;  %v17512_v2 = vld [vmem:[#allocation18 + $0x640] ss:$16 sps:$4 sm:$0xff]   ;;  %v17520_v4 = vld [vmem:[#allocation18 + $0x624] ss:$16 sps:$4 sm:$0xff]  }
 0x624   :  { %13252 = vmatpush1.bf16.msra.mxu1 %v17488_v61  ;;  %v17416_v9 = vld [vmem:[#allocation18 + $0x5a0] ss:$16 sps:$4 sm:$0xff]   ;;  %v17421_v60 = vld [vmem:[#allocation18 + $0x584] ss:$16 sps:$4 sm:$0xff]  }
 0x625   :  { %v10934_v28 = vpop.f32.mrf.mxu1  ;;  %v11323_v37 = vrot.slane %v11295_v18, 4  ;;  %v11296_v59 = vmul.f32 %v19975_v25, %v19975_v25  ;;  %13215 = vmatpush1.bf16.msra.mxu0 %v17395_v54  ;;  %13253 = vmatprep.subr.bf16.mxu1 %v17496_v32  ;;  %v17518_v54 = vld [vmem:[#allocation18 + $0x620] ss:$16 sps:$4 sm:$0xff]  }
 0x626   :  { %13216 = vmatprep.subr.bf16.mxu0 %v17400_v8  ;;  %v11399_v8 = vrot.slane %v19939_v5, %v19436_v1  ;;  %v17419_v28 = vld [vmem:[#allocation18 + $0x580] ss:$16 sps:$4 sm:$0xff]  }
 0x627   :  { %v11324_v15 = vadd.f32 %v11323_v37, %v11295_v18  ;;  %v11329_v23 = vrot.slane %v11296_v59, 4  ;;  %v11403_v18 = vrot.slane %v19939_v5, %v19896_v57  ;;  %v11483_v37 = vrot.slane %v19939_v5, %v19901_v46 }
 0x628   :  { %13254 = vmatpush1.bf16.msra.mxu1 %v17494_v6  ;;  %v17430_v6 = vld [vmem:[#allocation18 + $0x524] ss:$16 sps:$4 sm:$0xff]  }
 0x629   :  { %v11325_v48 = vrot.slane %v11324_v15, 2  ;;  %v11330_v56 = vadd.f32 %v11329_v23, %v11296_v59  ;;  %13217 = vmatpush1.bf16.msra.mxu0 %v17398_v3  ;;  %13255 = vmatprep.subr.bf16.mxu1 %v17502_v53  ;;  %v17526_v59 = vld [vmem:[#allocation18 + $0x604] ss:$16 sps:$4 sm:$0xff]   ;;  %v11443_v23 = vrot.slane %v11403_v18, %v19436_v1  ;;  %v11523_v61 = vrot.slane %v11483_v37, %v20613_v52  ;;  %v17428_v53 = vld [vmem:[#allocation18 + $0x520] ss:$16 sps:$4 sm:$0xff]  }
 0x62a   :  { %13218 = vmatprep.subr.bf16.mxu0 %v17403_v49  ;;  %v17524_v49 = vld [vmem:[#allocation18 + $0x600] ss:$16 sps:$4 sm:$0xff]   ;;  %v17560_v18 = vld [vmem:[#allocation18 + $0x724] ss:$16 sps:$4 sm:$0xff]   ;;  %v17437_v37 = vld [vmem:[#allocation18 + $0x2c8] ss:$16 sps:$4 sm:$0xff]  }
 0x62b   :  { %v11326_v14 = vadd.f32 %v11325_v48, %v11324_v15  ;;  %v11331_v30 = vrot.slane %v11330_v56, 2  ;;  %v11439_v15 = vrot.slane %v11399_v8, %v19436_v1  ;;  %v11479_v48 = vrot.slane %v19939_v5, %v20613_v52  ;;  %v17552_v8 = vld [vmem:[#allocation18 + $0x740] ss:$16 sps:$4 sm:$0xff]  }
 0x62c   :  { %13256 = vmatpush1.bf16.msra.mxu1 %v17500_v12  ;;  %v17542_v12 = vld [vmem:[#allocation18 + $0x784] ss:$16 sps:$4 sm:$0xff]  }
 0x62d   :  { %v11327_v38 = vrot.slane %v11326_v14, 1  ;;  %v11332_v31 = vadd.f32 %v11331_v30, %v11330_v56  ;;  %13219 = vmatpush1.bf16.msra.mxu0 %v17401_v26  ;;  %13257 = vmatprep.subr.bf16.mxu1 %v17508_v17  ;;  %v11820_v26 = vld [vmem:[#allocation18 + $0x7c0] sm:$0xff] }
 0x62e   :  { %13220 = vmatprep.subr.bf16.mxu0 %v17406_v22  ;;  %v17422_v22 = vld [vmem:[#allocation18 + $0x560] ss:$16 sps:$4 sm:$0xff]   ;;  %v17026_v30 = vcombine.low %v11820_v26, %v11820_v26 }
 0x62f   :  { %v11328_v63 = vadd.f32 %v11327_v38, %v11326_v14  ;;  %v11333_v50 = vrot.slane %v11332_v31, 1  ;;  %v17027_v14 = vcombine.high %v11820_v26, %v11820_v26  ;;  %v17572_v26 = vld [vmem:[#allocation18 + $0xec] ss:$16 sps:$4 sm:$0xff]  }
 0x630   :  { %13258 = vmatpush1.bf16.msra.mxu1 %v17506_v0  ;;  %v13115_v5 = vsel %vm13113_vm6, %v17026_v30, 0  ;;  %v17449_v30 = vld [vmem:[#allocation18 + $0x248] ss:$16 sps:$4 sm:$0xff]  }
 0x631   :  { %v11352_v41 = vmul.f32 0.125, %v11328_v63  ;;  %v11334_v58 = vadd.f32 %v11333_v50, %v11332_v31  ;;  %13221 = vmatpush1.bf16.msra.mxu0 %v17404_v55  ;;  %13259 = vmatprep.subr.bf16.mxu1 %v17514_v20  ;;  %v11519_v55 = vrot.slane %v11479_v48, %v20613_v52  ;;  %v17534_v63 = vld [vmem:[#allocation18 + $0x7a0] ss:$16 sps:$4 sm:$0xff]  }
 0x632   :  { %13222 = vmatprep.subr.bf16.mxu0 %v17409_v19  ;;  %v17536_v19 = vld [vmem:[#allocation18 + $0x7a4] ss:$16 sps:$4 sm:$0xff]  }
 0x633   :  { %v11360_v7 = vadd.f32 1e-05, %v11352_v41  ;;  %v11353_v45 = vmul.f32 0.125, %v11334_v58 }
 0x634   :  { %13260 = vmatpush1.bf16.msra.mxu1 %v17512_v2  ;;  %v17546_v2 = vld [vmem:[#allocation18 + $0x760] ss:$16 sps:$4 sm:$0xff]  }
 0x635   :  { %18016 = vrsqrt.f32 %v11360_v7  ;;  %v11361_v24 = vadd.f32 1e-05, %v11353_v45  ;;  %13223 = vmatpush1.bf16.msra.mxu0 %v17407_v44  ;;  %13261 = vmatprep.subr.bf16.mxu1 %v17520_v4  ;;  %v17554_v4 = vld [vmem:[#allocation18 + $0x744] ss:$16 sps:$4 sm:$0xff]  }
 0x636   :  { %13224 = vmatprep.subr.bf16.mxu0 %v17412_v42 }
 0x637   :  { %18018 = vrsqrt.f32 %v11361_v24  ;;  %v17433_v24 = vld [vmem:[#allocation18 + $0x504] ss:$16 sps:$4 sm:$0xff]  }
 0x638   :  { %13262 = vmatpush1.bf16.msra.mxu1 %v17518_v54  ;;  %v17439_v54 = vld [vmem:[#allocation18 + $0x2cc] ss:$16 sps:$4 sm:$0xff]  }
 0x639   :  { %13225 = vmatpush2.bf16.msra.mxu0 %v17410_v33  ;;  %13263 = vmatprep.subr.bf16.mxu1 %v17526_v59  ;;  %v17540_v33 = vld [vmem:[#allocation18 + $0x780] ss:$16 sps:$4 sm:$0xff]   ;;  %v17442_v59 = vld [vmem:[#allocation18 + $0x2ac] ss:$16 sps:$4 sm:$0xff]  }
 0x63a   :  { %13226 = vmatprep.subr.bf16.mxu0 %v17415_v11 }
 0x63c   :  { %13264 = vmatpush1.bf16.msra.mxu1 %v17524_v49  ;;  %v17566_v49 = vld [vmem:[#allocation18 + $0x704] ss:$16 sps:$4 sm:$0xff]  }
 0x63d   :  { %13227 = vmatpush2.bf16.msra.mxu0 %v17413_v21  ;;  %17030 = vmatprep.subr.msk.bf16.mxu1 %vm13113_vm6, %v17027_v14  ;;  %v17548_v21 = vld [vmem:[#allocation18 + $0x764] ss:$16 sps:$4 sm:$0xff]   ;;  %v17451_v14 = vld [vmem:[#allocation18 + $0x24c] ss:$16 sps:$4 sm:$0xff]  }
 0x63e   :  { %13228 = vmatprep.subr.bf16.mxu0 %v17418_v51  ;;  %v17436_v51 = vld [vmem:[#allocation18 + $0x2ec] ss:$16 sps:$4 sm:$0xff]  }
 0x640   :  { %13268 = vmatpush2.bf16.msra.mxu1 %v13115_v5  ;;  %v17460_v5 = vld [vmem:[#allocation18 + $0x3ec] ss:$16 sps:$4 sm:$0xff]  }
 0x641   :  { %13229 = vmatpush2.bf16.msra.mxu0 %v17416_v9  ;;  %13269 = vmatprep.subr.bf16.mxu1 %v17536_v19  ;;  %v17461_v19 = vld [vmem:[#allocation18 + $0x3c8] ss:$16 sps:$4 sm:$0xff]  }
 0x642   :  { %v18017_v3 = vpop.eup %18016  ;;  %13230 = vmatprep.subr.bf16.mxu0 %v17421_v60 }
 0x643   :  { %v11376_v29 = vmul.f32 %v18017_v3, %v19971_v16  ;;  %v17427_v16 = vld [vmem:[#allocation18 + $0x544] ss:$16 sps:$4 sm:$0xff]  }
 0x644   :  { %v18019_v56 = vpop.eup %18018  ;;  %13270 = vmatpush2.bf16.msra.mxu1 %v17534_v63  ;;  %v17464_v63 = vld [vmem:[#allocation18 + $0x3a8] ss:$16 sps:$4 sm:$0xff]  }
 0x645   :  { %v11377_v62 = vmul.f32 %v18019_v56, %v19975_v25  ;;  %13231 = vmatpush2.bf16.msra.mxu0 %v17419_v28  ;;  %v11456_v38 = vmul.f32 %v11439_v15, %v11376_v29  ;;  %v17425_v25 = vld [vmem:[#allocation18 + $0x540] ss:$16 sps:$4 sm:$0xff]   ;;  %13271 = vmatprep.subr.bf16.mxu1 %v17542_v12  ;;  %v17445_v15 = vld [vmem:[#allocation18 + $0x28c] ss:$16 sps:$4 sm:$0xff]  }
 0x646   :  { %13232 = vmatprep.subr.bf16.mxu0 %v17424_v34  ;;  %v17558_v28 = vld [vmem:[#allocation18 + $0x720] ss:$16 sps:$4 sm:$0xff]   ;;  %v17440_v34 = vld [vmem:[#allocation18 + $0x2a8] ss:$16 sps:$4 sm:$0xff]   ;;  %v17478_v12 = vld [vmem:[#allocation18 + $0x32c] ss:$16 sps:$4 sm:$0xff]  }
 0x647   :  { %v11457_v31 = vmul.f32 %v11443_v23, %v11377_v62  ;;  %v11536_v41 = vadd.f32 %v11519_v55, %v11456_v38  ;;  %v17564_v23 = vld [vmem:[#allocation18 + $0x700] ss:$16 sps:$4 sm:$0xff]   ;;  %v17448_v62 = vld [vmem:[#allocation18 + $0x26c] ss:$16 sps:$4 sm:$0xff]   ;;  %v17452_v38 = vld [vmem:[#allocation18 + $0x228] ss:$16 sps:$4 sm:$0xff]  }
 0x648   :  { %13272 = vmatpush2.bf16.msra.mxu1 %v17540_v33  ;;  %v17455_v55 = vld [vmem:[#allocation18 + $0x208] ss:$16 sps:$4 sm:$0xff]  }
 0x649   :  { %13233 = vmatpush2.bf16.msra.mxu0 %v17422_v22  ;;  %v11537_v32 = vadd.f32 %v11523_v61, %v11457_v31  ;;  %v11552_v11 = vmul.f32 0.01, %v11536_v41  ;;  %vm11544_vm8 = vcmp.gt.f32.partialorder %v11536_v41, 0.0  ;;  %13273 = vmatprep.subr.bf16.mxu1 %v17548_v21  ;;  %v17446_v61 = vld [vmem:[#allocation18 + $0x268] ss:$16 sps:$4 sm:$0xff]  }
 0x64a   :  { %13234 = vmatprep.subr.bf16.mxu0 %v17427_v16  ;;  %v17454_v16 = vld [vmem:[#allocation18 + $0x22c] ss:$16 sps:$4 sm:$0xff]  }
 0x64b   :  { %vm11545_vm7 = vcmp.gt.f32.partialorder %v11537_v32, 0.0  ;;  %v11553_v50 = vmul.f32 0.01, %v11537_v32  ;;  %v11560_v9 = vsel %vm11544_vm8, %v11536_v41, %v11552_v11  ;;  %v17457_v31 = vld [vmem:[#allocation18 + $0x20c] ss:$16 sps:$4 sm:$0xff]  }
 0x64c   :  { %v10970_v58 = vpop.f32.mrf.mxu0  ;;  %13274 = vmatpush2.bf16.msra.mxu1 %v17546_v2  ;;  %v20002_v60 = vpack.c.bf16 %v11560_v9, %v11560_v9  ;;  %v17467_v41 = vld [vmem:[#allocation18 + $0x388] ss:$16 sps:$4 sm:$0xff]   ;;  %v17481_v11 = vld [vmem:[#allocation18 + $0x30c] ss:$16 sps:$4 sm:$0xff]   ;;  %v20010_v9 = vld [vmem:[#allocation11 + $0x18] sm:$0x77] }
 0x64d   :  { %v10971_v44 = vadd.f32 %v10970_v58, %v19966_v27  ;;  %13235 = vmatpush2.bf16.msra.mxu0 %v17425_v25  ;;  %v11561_v42 = vsel %vm11545_vm7, %v11537_v32, %v11553_v50  ;;  %v17431_v27 = vld [vmem:[#allocation18 + $0x500] ss:$16 sps:$4 sm:$0xff]   ;;  %13275 = vmatprep.subr.bf16.mxu1 %v17554_v4  ;;  %v17458_v25 = vld [vmem:[#allocation18 + $0x3e8] ss:$16 sps:$4 sm:$0xff]   ;;  %v17463_v32 = vld [vmem:[#allocation18 + $0x3cc] ss:$16 sps:$4 sm:$0xff]  }
 0x64e   :  { %v10972_v7 = vpop.f32.mrf.mxu0  ;;  %13236 = vmatprep.subr.bf16.mxu0 %v17430_v6  ;;  %v19996_v45 = vpack.c.bf16 %v11561_v42, %v11561_v42  ;;  %v17466_v6 = vld [vmem:[#allocation18 + $0x3ac] ss:$16 sps:$4 sm:$0xff]   ;;  %v17473_v42 = vld [vmem:[#allocation18 + $0x348] ss:$16 sps:$4 sm:$0xff]  }
 0x64f   :  { %v19999_v17 = vadd.f32 %v10972_v7, %v19969_v13  ;;  %v17434_v13 = vld [vmem:[#allocation18 + $0x2e8] ss:$16 sps:$4 sm:$0xff]   ;;  %v17469_v50 = vld [vmem:[#allocation18 + $0x38c] ss:$16 sps:$4 sm:$0xff]  }
 0x650   :  { %v10974_v0 = vpop.f32.mrf.mxu0  ;;  %13240 = vmatprep.mubr.bf16.mxu0 %v19996_v45  ;;  %13276 = vmatpush2.bf16.msra.mxu1 %v17552_v8  ;;  %v17472_v58 = vld [vmem:[#allocation18 + $0x36c] ss:$16 sps:$4 sm:$0xff]   ;;  %v17491_v4 = vld [vmem:[#allocation18 + $0x6c8] ss:$16 sps:$4 sm:$0xff]  }
 0x651   :  { %13237 = vmatpush2.bf16.msra.mxu0 %v17428_v53  ;;  %13277 = vmatprep.subr.bf16.mxu1 %v17560_v18  ;;  %v17475_v53 = vld [vmem:[#allocation18 + $0x34c] ss:$16 sps:$4 sm:$0xff]  }
 0x652   :  { %v10975_v20 = vpop.f32.mrf.mxu0  ;;  %13238 = vmatprep.subr.bf16.mxu0 %v17433_v24  ;;  %v17476_v24 = vld [vmem:[#allocation18 + $0x328] ss:$16 sps:$4 sm:$0xff]   ;;  %v17493_v2 = vld [vmem:[#allocation18 + $0x6cc] ss:$16 sps:$4 sm:$0xff]  }
 0x653   :  { %v17487_v20 = vld [vmem:[#allocation18 + $0x6ec] ss:$16 sps:$4 sm:$0xff]  }
 0x654   :  { %13278 = vmatpush2.bf16.msra.mxu1 %v17558_v28  ;;  %v17499_v18 = vld [vmem:[#allocation18 + $0x6ac] ss:$16 sps:$4 sm:$0xff]  }
 0x655   :  { %13239 = vmatpush2.bf16.msra.mxu0 %v17431_v27  ;;  %13279 = vmatprep.subr.bf16.mxu1 %v17566_v49  ;;  %v17479_v27 = vld [vmem:[#allocation18 + $0x308] ss:$16 sps:$4 sm:$0xff]  }
 0x656   :  { %13331 = vmatprep.subr.bf16.mxu0 %v17436_v51  ;;  %v17485_v51 = vld [vmem:[#allocation18 + $0x6e8] ss:$16 sps:$4 sm:$0xff]  }
 0x658   :  { %13241 = vmatmul.mubr.bf16.vlgmr.msra.gmra.mxu0 %v20002_v60  ;;  %13280 = vmatpush2.bf16.msra.mxu1 %v17564_v23 }
 0x659   :  { %13332 = vmatpush1.bf16.msra.mxu0 %v17434_v13  ;;  %13363 = vmatprep.mubr.bf16.mxu0 %v19931_v36  ;;  %v17443_v36 = vld [vmem:[#allocation18 + $0x288] ss:$16 sps:$4 sm:$0xff]  }
 0x65a   :  { %13333 = vmatprep.subr.bf16.mxu0 %v17439_v54  ;;  %13290 = vmatprep.subr.bf16.mxu1 %v17572_v26  ;;  %v11172_v54 = vrot.slane %v20010_v9, %v19433_v43 }
 0x65c   :  { %v11212_v23 = vrot.slane %v11172_v54, %v19433_v43 }
 0x65d   :  { %13334 = vmatpush1.bf16.msra.mxu0 %v17437_v37 }
 0x65e   :  { %13335 = vmatprep.subr.bf16.mxu0 %v17442_v59  ;;  %v11176_v59 = vrot.slane %v20010_v9, %v19842_v39 }
 0x65f   :  { %v11011_v3 = vpop.f32.mrf.mxu1 }
 0x660   :  { %v20006_v29 = vadd.f32 %v11011_v3, %v10971_v44  ;;  %v17470_v44 = vld [vmem:[#allocation18 + $0x368] ss:$16 sps:$4 sm:$0xff]  }
 0x661   :  { %v20008_v48 = vpop.f32.mrf.mxu1  ;;  %13336 = vmatpush1.bf16.msra.mxu0 %v17440_v34 }
 0x662   :  { %13337 = vmatprep.subr.bf16.mxu0 %v17445_v15  ;;  %v11014_v28 = vadd.f32 %v20008_v48, %v19999_v17  ;;  %v11216_v17 = vrot.slane %v11176_v59, %v19433_v43  ;;  %v17503_v48 = vld [vmem:[#allocation18 + $0x688] ss:$16 sps:$4 sm:$0xff]  }
 0x663   :  { %v11015_v56 = vpop.f32.mrf.mxu1 }
 0x665   :  { %v11016_v22 = vpop.f32.mrf.mxu1  ;;  %13338 = vmatpush1.bf16.msra.mxu0 %v17443_v36  ;;  %v17505_v36 = vld [vmem:[#allocation18 + $0x68c] ss:$16 sps:$4 sm:$0xff]  }
 0x666   :  { %13339 = vmatprep.subr.bf16.mxu0 %v17448_v62 }
 0x669   :  { %13340 = vmatpush1.bf16.msra.mxu0 %v17446_v61 }
 0x66a   :  { %13341 = vmatprep.subr.bf16.mxu0 %v17451_v14 }
 0x66d   :  { %13342 = vmatpush1.bf16.msra.mxu0 %v17449_v30  ;;  %v17511_v30 = vld [vmem:[#allocation18 + $0x66c] ss:$16 sps:$4 sm:$0xff]  }
 0x66e   :  { %13343 = vmatprep.subr.bf16.mxu0 %v17454_v16 }
 0x671   :  { %13344 = vmatpush1.bf16.msra.mxu0 %v17452_v38 }
 0x672   :  { %13345 = vmatprep.subr.bf16.mxu0 %v17457_v31 }
 0x675   :  { %13346 = vmatpush1.bf16.msra.mxu0 %v17455_v55  ;;  %v17509_v55 = vld [vmem:[#allocation18 + $0x668] ss:$16 sps:$4 sm:$0xff]  }
 0x676   :  { %13347 = vmatprep.subr.bf16.mxu0 %v17460_v5 }
 0x679   :  { %13348 = vmatpush2.bf16.msra.mxu0 %v17458_v25  ;;  %v17517_v25 = vld [vmem:[#allocation18 + $0x64c] ss:$16 sps:$4 sm:$0xff]  }
 0x67a   :  { %13349 = vmatprep.subr.bf16.mxu0 %v17463_v32 }
 0x67d   :  { %13350 = vmatpush2.bf16.msra.mxu0 %v17461_v19 }
 0x67e   :  { %13351 = vmatprep.subr.bf16.mxu0 %v17466_v6 }
 0x681   :  { %13352 = vmatpush2.bf16.msra.mxu0 %v17464_v63  ;;  %v17515_v63 = vld [vmem:[#allocation18 + $0x648] ss:$16 sps:$4 sm:$0xff]  }
 0x682   :  { %13353 = vmatprep.subr.bf16.mxu0 %v17469_v50 }
 0x685   :  { %13354 = vmatpush2.bf16.msra.mxu0 %v17467_v41 }
 0x686   :  { %13355 = vmatprep.subr.bf16.mxu0 %v17472_v58  ;;  %v17523_v58 = vld [vmem:[#allocation18 + $0x62c] ss:$16 sps:$4 sm:$0xff]  }
 0x689   :  { %13356 = vmatpush2.bf16.msra.mxu0 %v17470_v44 }
 0x68a   :  { %13357 = vmatprep.subr.bf16.mxu0 %v17475_v53 }
 0x68c   :  { %v11052_v7 = vpop.f32.mrf.mxu0 }
 0x68d   :  { %13358 = vmatpush2.bf16.msra.mxu0 %v17473_v42  ;;  %v11053_v37 = vadd.f32 %v11052_v7, %v20006_v29  ;;  %v17521_v42 = vld [vmem:[#allocation18 + $0x628] ss:$16 sps:$4 sm:$0xff]  }
 0x68e   :  { %v11054_v33 = vpop.f32.mrf.mxu0  ;;  %13359 = vmatprep.subr.bf16.mxu0 %v17478_v12 }
 0x68f   :  { %v11055_v49 = vadd.f32 %v11054_v33, %v11014_v28  ;;  %v11821_v33 = vld [vmem:[#allocation18 + $0x7c8] sm:$0xff] }
 0x690   :  { %v11056_v0 = vpop.f32.mrf.mxu0  ;;  %v17539_v28 = vld [vmem:[#allocation18 + $0x7ac] ss:$16 sps:$4 sm:$0xff]  }
 0x691   :  { %13360 = vmatpush2.bf16.msra.mxu0 %v17476_v24  ;;  %v17529_v24 = vld [vmem:[#allocation18 + $0x60c] ss:$16 sps:$4 sm:$0xff]  }
 0x692   :  { %v11057_v21 = vpop.f32.mrf.mxu0  ;;  %13361 = vmatprep.subr.bf16.mxu0 %v17481_v11 }
 0x695   :  { %13362 = vmatpush2.bf16.msra.mxu0 %v17479_v27  ;;  %v17527_v27 = vld [vmem:[#allocation18 + $0x608] ss:$16 sps:$4 sm:$0xff]  }
 0x696   :  { %13413 = vmatprep.subr.bf16.mxu0 %v17487_v20 }
 0x698   :  { %v11134_v13 = vpop.f32.mrf.mxu0  ;;  %13364 = vmatmul.mubr.bf16.vlgmr.msra.gmra.mxu0 %v19962_v35  ;;  %v17497_v35 = vld [vmem:[#allocation18 + $0x6a8] ss:$16 sps:$4 sm:$0xff]  }
 0x699   :  { %13414 = vmatpush1.bf16.msra.mxu0 %v17485_v51  ;;  %v17029_v51 = vcombine.high %v11821_v33, %v11821_v33 }
 0x69a   :  { %v11136_v8 = vpop.f32.mrf.mxu0  ;;  %13415 = vmatprep.subr.bf16.mxu0 %v17493_v2  ;;  %v17028_v2 = vcombine.low %v11821_v33, %v11821_v33 }
 0x69c   :  { %v11138_v3 = vpop.f32.mrf.mxu0 }
 0x69d   :  { %13416 = vmatpush1.bf16.msra.mxu0 %v17491_v4  ;;  %v17537_v3 = vld [vmem:[#allocation18 + $0x7a8] ss:$16 sps:$4 sm:$0xff]  }
 0x69e   :  { %v11139_v56 = vpop.f32.mrf.mxu0  ;;  %13417 = vmatprep.subr.bf16.mxu0 %v17499_v18  ;;  %v13121_v18 = vsel %vm13113_vm6, %v17028_v2, 0 }
 0x69f   :  { %v11093_v34 = vpop.f32.mrf.mxu1 }
 0x6a0   :  { %v11094_v15 = vadd.f32 %v11093_v34, %v11053_v37 }
 0x6a1   :  { %v11095_v26 = vpop.f32.mrf.mxu1  ;;  %13418 = vmatpush1.bf16.msra.mxu0 %v17497_v35 }
 0x6a2   :  { %v11135_v62 = vadd.f32 %v11134_v13, %v11094_v15  ;;  %v11096_v22 = vadd.f32 %v11095_v26, %v11055_v49  ;;  %13419 = vmatprep.subr.bf16.mxu0 %v17505_v36  ;;  %v17545_v49 = vld [vmem:[#allocation18 + $0x78c] ss:$16 sps:$4 sm:$0xff]   ;;  %v17543_v36 = vld [vmem:[#allocation18 + $0x788] ss:$16 sps:$4 sm:$0xff]  }
 0x6a3   :  { %v11097_v29 = vpop.f32.mrf.mxu1 }
 0x6a4   :  { %v11223_v61 = vadd.f32 %v11212_v23, %v11135_v62  ;;  %v11137_v14 = vadd.f32 %v11136_v8, %v11096_v22  ;;  %v17551_v62 = vld [vmem:[#allocation18 + $0x76c] ss:$16 sps:$4 sm:$0xff]  }
 0x6a5   :  { %v11098_v16 = vpop.f32.mrf.mxu1  ;;  %13420 = vmatpush1.bf16.msra.mxu0 %v17503_v48  ;;  %v17549_v48 = vld [vmem:[#allocation18 + $0x768] ss:$16 sps:$4 sm:$0xff]  }
 0x6a6   :  { %v11261_v38 = vrot.slane %v11223_v61, 4  ;;  %v11224_v31 = vadd.f32 %v11216_v17, %v11137_v14  ;;  %13421 = vmatprep.subr.bf16.mxu0 %v17511_v30  ;;  %v17557_v14 = vld [vmem:[#allocation18 + $0x74c] ss:$16 sps:$4 sm:$0xff]  }
 0x6a8   :  { %v11262_v5 = vadd.f32 %v11261_v38, %v11223_v61  ;;  %v11268_v32 = vsel %vm11267_vm9, %v11224_v31, 0.0 }
 0x6a9   :  { %v11269_v19 = vrot.slane %v11268_v32, 4  ;;  %13422 = vmatpush1.bf16.msra.mxu0 %v17509_v55  ;;  %v17563_v55 = vld [vmem:[#allocation18 + $0x72c] ss:$16 sps:$4 sm:$0xff]  }
 0x6aa   :  { %v11263_v6 = vrot.slane %v11262_v5, 2  ;;  %13423 = vmatprep.subr.bf16.mxu0 %v17517_v25 }
 0x6ab   :  { %v11270_v50 = vadd.f32 %v11269_v19, %v11268_v32  ;;  %v17561_v32 = vld [vmem:[#allocation18 + $0x728] ss:$16 sps:$4 sm:$0xff]   ;;  %v17569_v19 = vld [vmem:[#allocation18 + $0x70c] ss:$16 sps:$4 sm:$0xff]  }
 0x6ac   :  { %v11264_v41 = vadd.f32 %v11263_v6, %v11262_v5  ;;  %v17567_v6 = vld [vmem:[#allocation18 + $0x708] ss:$16 sps:$4 sm:$0xff]  }
 0x6ad   :  { %v11271_v44 = vrot.slane %v11270_v50, 2  ;;  %13424 = vmatpush1.bf16.msra.mxu0 %v17515_v63  ;;  %v11407_v63 = vrot.slane %v20010_v9, %v19436_v1 }
 0x6ae   :  { %v11265_v53 = vrot.slane %v11264_v41, 1  ;;  %13425 = vmatprep.subr.bf16.mxu0 %v17523_v58 }
 0x6af   :  { %v11272_v12 = vadd.f32 %v11271_v44, %v11270_v50  ;;  %v20032_v50 = vld [vmem:[#allocation12] sm:$0x77]  ;;  %v11447_v58 = vrot.slane %v11407_v63, %v19436_v1 }
 0x6b0   :  { %v11266_v7 = vadd.f32 %v11265_v53, %v11264_v41  ;;  %v11487_v41 = vrot.slane %v20010_v9, %v20613_v52  ;;  %v11827_v44 = vrot.slane %v20032_v50, %v19433_v43  ;;  %v11411_v53 = vrot.slane %v20010_v9, %v19896_v57  ;;  %v17596_v63 = vld [vmem:[#allocation18 + $0x1ec] ss:$16 sps:$4 sm:$0xff]  }
 0x6b1   :  { %v11273_v11 = vrot.slane %v11272_v12, 1  ;;  %13426 = vmatpush1.bf16.msra.mxu0 %v17521_v42 }
 0x6b2   :  { %v11281_v0 = vmul.f32 0.125, %v11266_v7  ;;  %13427 = vmatprep.subr.bf16.mxu0 %v17529_v24  ;;  %v11831_v7 = vrot.slane %v20032_v50, %v19842_v39  ;;  %v11491_v24 = vrot.slane %v20010_v9, %v19901_v46  ;;  %v11527_v33 = vrot.slane %v11487_v41, %v20613_v52  ;;  %v17594_v41 = vld [vmem:[#allocation18 + $0x1e8] ss:$16 sps:$4 sm:$0xff]  }
 0x6b3   :  { %v11274_v21 = vadd.f32 %v11273_v11, %v11272_v12 }
 0x6b4   :  { %v11289_v20 = vsub.f32 %v11223_v61, %v11281_v0  ;;  %v11847_v0 = vrot.slane %v11827_v44, %v19433_v43  ;;  %v11851_v2 = vrot.slane %v11831_v7, %v19433_v43  ;;  %v17597_v44 = vld [vmem:[#allocation18 + $0x1c8] ss:$16 sps:$4 sm:$0xff]  }
 0x6b5   :  { %v11282_v13 = vmul.f32 0.125, %v11274_v21  ;;  %13428 = vmatpush1.bf16.msra.mxu0 %v17527_v27  ;;  %v11451_v27 = vrot.slane %v11411_v53, %v19436_v1  ;;  %v17602_v53 = vld [vmem:[#allocation18 + $0x1ac] ss:$16 sps:$4 sm:$0xff]   ;;  %v17603_v7 = vld [vmem:[#allocation18 + $0x188] ss:$16 sps:$4 sm:$0xff]  }
 0x6b6   :  { %v11297_v4 = vmul.f32 %v11289_v20, %v11289_v20  ;;  %17032 = vmatprep.subr.msk.bf16.mxu0 %vm13113_vm6, %v17029_v51 }
 0x6b7   :  { %v20023_v54 = vsub.f32 %v11224_v31, %v11282_v13  ;;  %v17555_v31 = vld [vmem:[#allocation18 + $0x748] ss:$16 sps:$4 sm:$0xff]  }
 0x6b8   :  { %v11335_v8 = vrot.slane %v11297_v4, 4 }
 0x6b9   :  { %v11298_v37 = vmul.f32 %v20023_v54, %v20023_v54  ;;  %13432 = vmatpush2.bf16.msra.mxu0 %v13121_v18 }
 0x6ba   :  { %v11336_v59 = vadd.f32 %v11335_v8, %v11297_v4  ;;  %13433 = vmatprep.subr.bf16.mxu0 %v17539_v28 }
 0x6bb   :  { %v11341_v34 = vsel %vm11267_vm9, %v11298_v37, 0.0 }
 0x6bc   :  { %v11337_v35 = vrot.slane %v11336_v59, 2  ;;  %v11342_v15 = vrot.slane %v11341_v34, 4 }
 0x6bd   :  { %13434 = vmatpush2.bf16.msra.mxu0 %v17537_v3 }
 0x6be   :  { %v11338_v23 = vadd.f32 %v11337_v35, %v11336_v59  ;;  %v11343_v56 = vadd.f32 %v11342_v15, %v11341_v34  ;;  %13435 = vmatprep.subr.bf16.mxu0 %v17545_v49 }
 0x6c0   :  { %v11339_v26 = vrot.slane %v11338_v23, 1  ;;  %v11344_v22 = vrot.slane %v11343_v56, 2 }
 0x6c1   :  { %13436 = vmatpush2.bf16.msra.mxu0 %v17543_v36 }
 0x6c2   :  { %v11340_v17 = vadd.f32 %v11339_v26, %v11338_v23  ;;  %v11345_v29 = vadd.f32 %v11344_v22, %v11343_v56  ;;  %13437 = vmatprep.subr.bf16.mxu0 %v17551_v62  ;;  %v17570_v22 = vld [vmem:[#allocation18 + $0xe8] ss:$16 sps:$4 sm:$0xff]  }
 0x6c4   :  { %v11354_v61 = vmul.f32 0.125, %v11340_v17  ;;  %v11346_v30 = vrot.slane %v11345_v29, 1 }
 0x6c5   :  { %13438 = vmatpush2.bf16.msra.mxu0 %v17549_v48 }
 0x6c6   :  { %v11362_v16 = vadd.f32 1e-05, %v11354_v61  ;;  %v11347_v38 = vadd.f32 %v11346_v30, %v11345_v29  ;;  %13439 = vmatprep.subr.bf16.mxu0 %v17557_v14  ;;  %v17575_v29 = vld [vmem:[#allocation18 + $0xcc] ss:$16 sps:$4 sm:$0xff]   ;;  %v17573_v61 = vld [vmem:[#allocation18 + $0xc8] ss:$16 sps:$4 sm:$0xff]  }
 0x6c7   :  { %v17578_v14 = vld [vmem:[#allocation18 + $0xac] ss:$16 sps:$4 sm:$0xff]   ;;  %v17576_v30 = vld [vmem:[#allocation18 + $0xa8] ss:$16 sps:$4 sm:$0xff]  }
 0x6c8   :  { %18020 = vrsqrt.f32 %v11362_v16  ;;  %v11355_v5 = vmul.f32 0.125, %v11347_v38  ;;  %v17581_v16 = vld [vmem:[#allocation18 + $0x8c] ss:$16 sps:$4 sm:$0xff]   ;;  %v17579_v38 = vld [vmem:[#allocation18 + $0x88] ss:$16 sps:$4 sm:$0xff]  }
 0x6c9   :  { %13440 = vmatpush2.bf16.msra.mxu0 %v17555_v31  ;;  %v17584_v31 = vld [vmem:[#allocation18 + $0x6c] ss:$16 sps:$4 sm:$0xff]  }
 0x6ca   :  { %v11363_v25 = vadd.f32 1e-05, %v11355_v5  ;;  %13441 = vmatprep.subr.bf16.mxu0 %v17563_v55  ;;  %v17582_v55 = vld [vmem:[#allocation18 + $0x68] ss:$16 sps:$4 sm:$0xff]   ;;  %v17587_v5 = vld [vmem:[#allocation18 + $0x4c] ss:$16 sps:$4 sm:$0xff]  }
 0x6cc   :  { %18022 = vrsqrt.f32 %v11363_v25  ;;  %v17585_v25 = vld [vmem:[#allocation18 + $0x48] ss:$16 sps:$4 sm:$0xff]  }
 0x6cd   :  { %13442 = vmatpush2.bf16.msra.mxu0 %v17561_v32  ;;  %v17590_v32 = vld [vmem:[#allocation18 + $0x2c] ss:$16 sps:$4 sm:$0xff]  }
 0x6ce   :  { %13443 = vmatprep.subr.bf16.mxu0 %v17569_v19  ;;  %v17593_v19 = vld [vmem:[#allocation18 + $0xc] ss:$16 sps:$4 sm:$0xff]  }
 0x6d1   :  { %13444 = vmatpush2.bf16.msra.mxu0 %v17567_v6  ;;  %v17591_v6 = vld [vmem:[#allocation18 + $0x8] ss:$16 sps:$4 sm:$0xff]  }
 0x6d5   :  { %v18021_v42 = vpop.eup %18020 }
 0x6d6   :  { %v11378_v12 = vmul.f32 %v18021_v42, %v11289_v20  ;;  %v11531_v20 = vrot.slane %v11491_v24, %v20613_v52  ;;  %v17600_v42 = vld [vmem:[#allocation18 + $0x1a8] ss:$16 sps:$4 sm:$0xff]   ;;  %v17608_v24 = vld [vmem:[#allocation18 + $0x16c] ss:$16 sps:$4 sm:$0xff]  }
 0x6d8   :  { %v11458_v11 = vmul.f32 %v11447_v58, %v11378_v12  ;;  %v13160_v51 = vpop.f32.mrf.mxu0  ;;  %v17599_v58 = vld [vmem:[#allocation18 + $0x1cc] ss:$16 sps:$4 sm:$0xff]  }
 0x6d9   :  { %v18023_v21 = vpop.eup %18022  ;;  %v13161_v8 = vadd.f32 %v13160_v51, %v11847_v0  ;;  %v17605_v12 = vld [vmem:[#allocation18 + $0x18c] ss:$16 sps:$4 sm:$0xff]   ;;  %v17609_v0 = vld [vmem:[#allocation18 + $0x148] ss:$16 sps:$4 sm:$0xff]  }
 0x6da   :  { %v11379_v13 = vmul.f32 %v18023_v21, %v20023_v54  ;;  %v11538_v4 = vadd.f32 %v11527_v33, %v11458_v11  ;;  %v13162_v18 = vpop.f32.mrf.mxu0  ;;  %v17606_v33 = vld [vmem:[#allocation18 + $0x168] ss:$16 sps:$4 sm:$0xff]   ;;  %v17611_v11 = vld [vmem:[#allocation18 + $0x14c] ss:$16 sps:$4 sm:$0xff]  }
 0x6db   :  { %v13163_v37 = vadd.f32 %v13162_v18, %v11851_v2  ;;  %v17612_v51 = vld [vmem:[#allocation18 + $0x128] ss:$16 sps:$4 sm:$0xff]  }
 0x6dc   :  { %v11459_v28 = vmul.f32 %v11451_v27, %v11379_v13  ;;  %v11554_v9 = vmul.f32 0.01, %v11538_v4  ;;  %v13164_v59 = vpop.f32.mrf.mxu0  ;;  %vm11546_vm10 = vcmp.gt.f32.partialorder %v11538_v4, 0.0  ;;  %v17614_v27 = vld [vmem:[#allocation18 + $0x12c] ss:$16 sps:$4 sm:$0xff]  }
 0x6dd   :  { %v17615_v18 = vld [vmem:[#allocation18 + $0x108] ss:$16 sps:$4 sm:$0xff]   ;;  %v17623_v59 = vld [vmem:[#allocation18 + $0x4cc] ss:$16 sps:$4 sm:$0xff]  }
 0x6de   :  { %v11539_v3 = vadd.f32 %v11531_v20, %v11459_v28  ;;  %v13165_v49 = vpop.f32.mrf.mxu0  ;;  %v11562_v56 = vsel %vm11546_vm10, %v11538_v4, %v11554_v9  ;;  %v17617_v20 = vld [vmem:[#allocation18 + $0x10c] ss:$16 sps:$4 sm:$0xff]  }
 0x6df   :  { %v13201_v34 = vpop.f32.mrf.mxu1  ;;  %v11570_v17 = vpack.c.bf16 %v11562_v56, %v11562_v56  ;;  %v17620_v9 = vld [vmem:[#allocation18 + $0x4ec] ss:$16 sps:$4 sm:$0xff]   ;;  %v17674_v56 = vld [vmem:[%s20418_s10 + $0x54] ss:$8 sps:$4 sm:$0xff]  }
 0x6e0   :  { %v20051_v35 = vadd.f32 %v13201_v34, %v13161_v8  ;;  %vm11547_vm11 = vcmp.gt.f32.partialorder %v11539_v3, 0.0  ;;  %v11555_v15 = vmul.f32 0.01, %v11539_v3  ;;  %v17621_v34 = vld [vmem:[#allocation18 + $0x4c8] ss:$16 sps:$4 sm:$0xff]  }
 0x6e1   :  { %v13203_v23 = vpop.f32.mrf.mxu1  ;;  %v17626_v49 = vld [vmem:[#allocation18 + $0x4ac] ss:$16 sps:$4 sm:$0xff]  }
 0x6e2   :  { %v20053_v54 = vadd.f32 %v13203_v23, %v13163_v37  ;;  %v11563_v36 = vsel %vm11547_vm11, %v11539_v3, %v11555_v15  ;;  %v17618_v37 = vld [vmem:[#allocation18 + $0x4e8] ss:$16 sps:$4 sm:$0xff]   ;;  %v17669_v23 = vld [vmem:[%s20418_s10 + $0x60] ss:$8 sps:$4 sm:$0xff]  }
 0x6e3   :  { %v13205_v26 = vpop.f32.mrf.mxu1  ;;  %v11571_v62 = vpack.c.bf16 %v11563_v36, %v11563_v36  ;;  %v17668_v3 = vld [vmem:[%s20418_s10 + $0x74] ss:$8 sps:$4 sm:$0xff]   ;;  %v17672_v36 = vld [vmem:[%s20418_s10 + $0x50] ss:$8 sps:$4 sm:$0xff]  }
 0x6e4   :  { %14036 = vmatprep.subr.bf16.mxu0 %v17668_v3  ;;  %v17624_v15 = vld [vmem:[#allocation18 + $0x4a8] ss:$16 sps:$4 sm:$0xff]   ;;  %v17632_v26 = vld [vmem:[#allocation18 + $0x46c] ss:$16 sps:$4 sm:$0xff]  }
 0x6e5   :  { %v13206_v48 = vpop.f32.mrf.mxu1  ;;  %17031 = vmatprep.mubr.msk.bf16.mxu1 %vm11267_vm9, %v11571_v62  ;;  %17033 = vmatprep.mubr.msk.bf16.mxu0 %vm11267_vm9, %v11571_v62  ;;  %v17677_v62 = vld [vmem:[%s20418_s10 + $0x44] ss:$8 sps:$4 sm:$0xff]  }
 0x6e6   :  { %13282 = vmatmul.mubr.bf16.vlgmr.msra.gmra.mxu1 %v11570_v17  ;;  %13446 = vmatmul.mubr.bf16.vlgmr.msra.gmra.mxu0 %v11570_v17  ;;  %v17675_v17 = vld [vmem:[%s20418_s10 + $0x40] ss:$8 sps:$4 sm:$0xff]   ;;  %v17680_v48 = vld [vmem:[%s20418_s10 + $0x34] ss:$8 sps:$4 sm:$0xff]   ;;  %v17707_v3 = vld [vmem:[%s20418_s10 + $0xa4] ss:$8 sps:$4 sm:$0xff]  }
 0x6e7   :  { %13291 = vmatpush1.bf16.msra.mxu1 %v17570_v22  ;;  %13322 = vmatprep.mubr.bf16.mxu1 %v19926_v47  ;;  %v17588_v47 = vld [vmem:[#allocation18 + $0x28] ss:$16 sps:$4 sm:$0xff]  }
 0x6e8   :  { %13292 = vmatprep.subr.bf16.mxu1 %v17575_v29  ;;  %v17630_v22 = vld [vmem:[#allocation18 + $0x468] ss:$16 sps:$4 sm:$0xff]   ;;  %v17635_v29 = vld [vmem:[#allocation18 + $0x44c] ss:$16 sps:$4 sm:$0xff]  }
 0x6eb   :  { %13293 = vmatpush1.bf16.msra.mxu1 %v17573_v61  ;;  %v17633_v61 = vld [vmem:[#allocation18 + $0x448] ss:$16 sps:$4 sm:$0xff]  }
 0x6ec   :  { %13294 = vmatprep.subr.bf16.mxu1 %v17578_v14  ;;  %v17678_v14 = vld [vmem:[%s20418_s10 + $0x30] ss:$8 sps:$4 sm:$0xff]  }
 0x6ef   :  { %13295 = vmatpush1.bf16.msra.mxu1 %v17576_v30  ;;  %v17638_v30 = vld [vmem:[#allocation18 + $0x42c] ss:$16 sps:$4 sm:$0xff]  }
 0x6f0   :  { %13296 = vmatprep.subr.bf16.mxu1 %v17581_v16  ;;  %v17683_v16 = vld [vmem:[%s20418_s10 + $0x24] ss:$8 sps:$4 sm:$0xff]  }
 0x6f3   :  { %13297 = vmatpush1.bf16.msra.mxu1 %v17579_v38  ;;  %v17636_v38 = vld [vmem:[#allocation18 + $0x428] ss:$16 sps:$4 sm:$0xff]  }
 0x6f4   :  { %13298 = vmatprep.subr.bf16.mxu1 %v17584_v31  ;;  %v17681_v31 = vld [vmem:[%s20418_s10 + $0x20] ss:$8 sps:$4 sm:$0xff]  }
 0x6f7   :  { %13299 = vmatpush1.bf16.msra.mxu1 %v17582_v55  ;;  %v17641_v55 = vld [vmem:[#allocation18 + $0x40c] ss:$16 sps:$4 sm:$0xff]  }
 0x6f8   :  { %13300 = vmatprep.subr.bf16.mxu1 %v17587_v5  ;;  %v17686_v5 = vld [vmem:[%s20418_s10 + $0x14] ss:$8 sps:$4 sm:$0xff]  }
 0x6fb   :  { %13301 = vmatpush1.bf16.msra.mxu1 %v17585_v25  ;;  %v17639_v25 = vld [vmem:[#allocation18 + $0x408] ss:$16 sps:$4 sm:$0xff]  }
 0x6fc   :  { %13302 = vmatprep.subr.bf16.mxu1 %v17590_v32  ;;  %v17684_v32 = vld [vmem:[%s20418_s10 + $0x10] ss:$8 sps:$4 sm:$0xff]  }
 0x6ff   :  { %13303 = vmatpush1.bf16.msra.mxu1 %v17588_v47  ;;  %v17644_v47 = vld [vmem:[#allocation18 + $0x5ec] ss:$16 sps:$4 sm:$0xff]  }
 0x700   :  { %13304 = vmatprep.subr.bf16.mxu1 %v17593_v19  ;;  %v17689_v19 = vld [vmem:[%s20418_s10 + $0x4] ss:$8 sps:$4 sm:$0xff]  }
 0x703   :  { %13305 = vmatpush1.bf16.msra.mxu1 %v17591_v6  ;;  %v17642_v6 = vld [vmem:[#allocation18 + $0x5e8] ss:$16 sps:$4 sm:$0xff]  }
 0x704   :  { %13306 = vmatprep.subr.bf16.mxu1 %v17596_v63  ;;  %v17687_v63 = vld [vmem:[%s20418_s10] ss:$8 sps:$4 sm:$0xff]  }
 0x707   :  { %13307 = vmatpush2.bf16.msra.mxu1 %v17594_v41  ;;  %v17647_v41 = vld [vmem:[#allocation18 + $0x5cc] ss:$16 sps:$4 sm:$0xff]  }
 0x708   :  { %13308 = vmatprep.subr.bf16.mxu1 %v17599_v58  ;;  %v17692_v58 = vld [vmem:[%s20418_s10 + $0xf4] ss:$8 sps:$4 sm:$0xff]  }
 0x70b   :  { %13309 = vmatpush2.bf16.msra.mxu1 %v17597_v44  ;;  %v17645_v44 = vld [vmem:[#allocation18 + $0x5c8] ss:$16 sps:$4 sm:$0xff]  }
 0x70c   :  { %13310 = vmatprep.subr.bf16.mxu1 %v17602_v53  ;;  %v17690_v53 = vld [vmem:[%s20418_s10 + $0xf0] ss:$8 sps:$4 sm:$0xff]  }
 0x70f   :  { %13311 = vmatpush2.bf16.msra.mxu1 %v17600_v42  ;;  %v17650_v42 = vld [vmem:[#allocation18 + $0x5ac] ss:$16 sps:$4 sm:$0xff]  }
 0x710   :  { %13312 = vmatprep.subr.bf16.mxu1 %v17605_v12  ;;  %v17695_v12 = vld [vmem:[%s20418_s10 + $0xe4] ss:$8 sps:$4 sm:$0xff]  }
 0x713   :  { %13313 = vmatpush2.bf16.msra.mxu1 %v17603_v7  ;;  %v17648_v7 = vld [vmem:[#allocation18 + $0x5a8] ss:$16 sps:$4 sm:$0xff]  }
 0x714   :  { %13314 = vmatprep.subr.bf16.mxu1 %v17608_v24  ;;  %v17693_v24 = vld [vmem:[%s20418_s10 + $0xe0] ss:$8 sps:$4 sm:$0xff]  }
 0x717   :  { %13315 = vmatpush2.bf16.msra.mxu1 %v17606_v33  ;;  %v17653_v33 = vld [vmem:[#allocation18 + $0x58c] ss:$16 sps:$4 sm:$0xff]  }
 0x718   :  { %13316 = vmatprep.subr.bf16.mxu1 %v17611_v11  ;;  %v13242_v21 = vpop.f32.mrf.mxu0  ;;  %v17698_v11 = vld [vmem:[%s20418_s10 + $0xd4] ss:$8 sps:$4 sm:$0xff]  }
 0x719   :  { %v20059_v2 = vadd.f32 %v13242_v21, %v20051_v35  ;;  %v17666_v35 = vld [vmem:[%s20418_s10 + $0x70] ss:$8 sps:$4 sm:$0xff]  }
 0x71a   :  { %v13244_v13 = vpop.f32.mrf.mxu0  ;;  %14037 = vmatpush1.bf16.msra.mxu0 %v17666_v35  ;;  %v17656_v21 = vld [vmem:[#allocation18 + $0x56c] ss:$16 sps:$4 sm:$0xff]  }
 0x71b   :  { %13317 = vmatpush2.bf16.msra.mxu1 %v17609_v0  ;;  %v20062_v4 = vadd.f32 %v13244_v13, %v20053_v54  ;;  %v17627_v54 = vld [vmem:[#allocation18 + $0x488] ss:$16 sps:$4 sm:$0xff]   ;;  %v17705_v35 = vld [vmem:[%s20418_s10 + $0xa0] ss:$8 sps:$4 sm:$0xff]  }
 0x71c   :  { %13318 = vmatprep.subr.bf16.mxu1 %v17614_v27  ;;  %v13246_v8 = vpop.f32.mrf.mxu0  ;;  %v17651_v0 = vld [vmem:[#allocation18 + $0x588] ss:$16 sps:$4 sm:$0xff]   ;;  %v17696_v27 = vld [vmem:[%s20418_s10 + $0xd0] ss:$8 sps:$4 sm:$0xff]  }
 0x71d   :  { %v17654_v13 = vld [vmem:[#allocation18 + $0x568] ss:$16 sps:$4 sm:$0xff]   ;;  %v17659_v8 = vld [vmem:[#allocation18 + $0x54c] ss:$16 sps:$4 sm:$0xff]  }
 0x71e   :  { %v13247_v28 = vpop.f32.mrf.mxu0 }
 0x71f   :  { %13319 = vmatpush2.bf16.msra.mxu1 %v17612_v51  ;;  %v17701_v51 = vld [vmem:[%s20418_s10 + $0xc4] ss:$8 sps:$4 sm:$0xff]  }
 0x720   :  { %13320 = vmatprep.subr.bf16.mxu1 %v17617_v20  ;;  %v17699_v20 = vld [vmem:[%s20418_s10 + $0xc0] ss:$8 sps:$4 sm:$0xff]   ;;  %v17657_v28 = vld [vmem:[#allocation18 + $0x548] ss:$16 sps:$4 sm:$0xff]  }
 0x723   :  { %13321 = vmatpush2.bf16.msra.mxu1 %v17615_v18  ;;  %v17704_v18 = vld [vmem:[%s20418_s10 + $0xb4] ss:$8 sps:$4 sm:$0xff]  }
 0x724   :  { %13372 = vmatprep.subr.bf16.mxu1 %v17620_v9  ;;  %v17702_v9 = vld [vmem:[%s20418_s10 + $0xb0] ss:$8 sps:$4 sm:$0xff]  }
 0x726   :  { %13323 = vmatmul.mubr.bf16.vlgmr.msra.gmra.mxu1 %v19958_v10  ;;  %v17671_v10 = vld [vmem:[%s20418_s10 + $0x64] ss:$8 sps:$4 sm:$0xff]  }
 0x727   :  { %13373 = vmatpush1.bf16.msra.mxu1 %v17618_v37  ;;  %13404 = vmatprep.mubr.bf16.mxu1 %v19996_v45  ;;  %v17629_v45 = vld [vmem:[#allocation18 + $0x48c] ss:$16 sps:$4 sm:$0xff]  }
 0x728   :  { %13374 = vmatprep.subr.bf16.mxu1 %v17623_v59  ;;  %14038 = vmatprep.subr.bf16.mxu0 %v17671_v10  ;;  %v17662_v37 = vld [vmem:[#allocation18 + $0x52c] ss:$16 sps:$4 sm:$0xff]  }
 0x729   :  { %14039 = vmatpush1.bf16.msra.mxu0 %v17669_v23  ;;  %v17665_v10 = vld [vmem:[#allocation18 + $0x50c] ss:$16 sps:$4 sm:$0xff]   ;;  %v17710_v23 = vld [vmem:[%s20418_s10 + $0x94] ss:$8 sps:$4 sm:$0xff]  }
 0x72a   :  { %14040 = vmatprep.subr.bf16.mxu0 %v17674_v56  ;;  %v17708_v56 = vld [vmem:[%s20418_s10 + $0x90] ss:$8 sps:$4 sm:$0xff]  }
 0x72b   :  { %13375 = vmatpush1.bf16.msra.mxu1 %v17621_v34  ;;  %v17660_v34 = vld [vmem:[#allocation18 + $0x528] ss:$16 sps:$4 sm:$0xff]  }
 0x72c   :  { %13376 = vmatprep.subr.bf16.mxu1 %v17626_v49 }
 0x72d   :  { %14041 = vmatpush1.bf16.msra.mxu0 %v17672_v36 }
 0x72e   :  { %14042 = vmatprep.subr.bf16.mxu0 %v17677_v62 }
 0x72f   :  { %13377 = vmatpush1.bf16.msra.mxu1 %v17624_v15 }
 0x730   :  { %13378 = vmatprep.subr.bf16.mxu1 %v17629_v45  ;;  %v17663_v45 = vld [vmem:[#allocation18 + $0x508] ss:$16 sps:$4 sm:$0xff]  }
 0x731   :  { %14043 = vmatpush1.bf16.msra.mxu0 %v17675_v17 }
 0x732   :  { %14044 = vmatprep.subr.bf16.mxu0 %v17680_v48 }
 0x733   :  { %13379 = vmatpush1.bf16.msra.mxu1 %v17627_v54  ;;  %v17713_v54 = vld [vmem:[%s20418_s10 + $0x84] ss:$8 sps:$4 sm:$0xff]  }
 0x734   :  { %13380 = vmatprep.subr.bf16.mxu1 %v17632_v26  ;;  %v17711_v26 = vld [vmem:[%s20418_s10 + $0x80] ss:$8 sps:$4 sm:$0xff]  }
 0x735   :  { %14045 = vmatpush1.bf16.msra.mxu0 %v17678_v14 }
 0x736   :  { %14046 = vmatprep.subr.bf16.mxu0 %v17683_v16 }
 0x737   :  { %13381 = vmatpush1.bf16.msra.mxu1 %v17630_v22 }
 0x738   :  { %13382 = vmatprep.subr.bf16.mxu1 %v17635_v29 }
 0x739   :  { %14047 = vmatpush1.bf16.msra.mxu0 %v17681_v31 }
 0x73a   :  { %14048 = vmatprep.subr.bf16.mxu0 %v17686_v5 }
 0x73b   :  { %13383 = vmatpush1.bf16.msra.mxu1 %v17633_v61 }
 0x73c   :  { %13384 = vmatprep.subr.bf16.mxu1 %v17638_v30  ;;  %v17716_v30 = vld [vmem:[%s20418_s10 + $0x174] ss:$8 sps:$4 sm:$0xff]  }
 0x73d   :  { %14049 = vmatpush1.bf16.msra.mxu0 %v17684_v32 }
 0x73e   :  { %14050 = vmatprep.subr.bf16.mxu0 %v17689_v19 }
 0x73f   :  { %13385 = vmatpush1.bf16.msra.mxu1 %v17636_v38 }
 0x740   :  { %13386 = vmatprep.subr.bf16.mxu1 %v17641_v55 }
 0x741   :  { %14051 = vmatpush1.bf16.msra.mxu0 %v17687_v63 }
 0x742   :  { %14052 = vmatprep.subr.bf16.mxu0 %v17692_v58  ;;  %v17722_v58 = vld [vmem:[%s20418_s10 + $0x154] ss:$8 sps:$4 sm:$0xff]  }
 0x743   :  { %13387 = vmatpush1.bf16.msra.mxu1 %v17639_v25 }
 0x744   :  { %13388 = vmatprep.subr.bf16.mxu1 %v17644_v47  ;;  %v17717_v47 = vld [vmem:[%s20418_s10 + $0x160] ss:$8 sps:$4 sm:$0xff]  }
 0x745   :  { %14053 = vmatpush2.bf16.msra.mxu0 %v17690_v53 }
 0x746   :  { %14054 = vmatprep.subr.bf16.mxu0 %v17695_v12 }
 0x747   :  { %13389 = vmatpush2.bf16.msra.mxu1 %v17642_v6 }
 0x748   :  { %13390 = vmatprep.subr.bf16.mxu1 %v17647_v41 }
 0x749   :  { %14055 = vmatpush2.bf16.msra.mxu0 %v17693_v24  ;;  %v17725_v24 = vld [vmem:[%s20418_s10 + $0x144] ss:$8 sps:$4 sm:$0xff]  }
 0x74a   :  { %14056 = vmatprep.subr.bf16.mxu0 %v17698_v11 }
 0x74b   :  { %13391 = vmatpush2.bf16.msra.mxu1 %v17645_v44  ;;  %v17720_v44 = vld [vmem:[%s20418_s10 + $0x150] ss:$8 sps:$4 sm:$0xff]  }
 0x74c   :  { %13392 = vmatprep.subr.bf16.mxu1 %v17650_v42 }
 0x74d   :  { %14057 = vmatpush2.bf16.msra.mxu0 %v17696_v27 }
 0x74e   :  { %14058 = vmatprep.subr.bf16.mxu0 %v17701_v51  ;;  %v17728_v51 = vld [vmem:[%s20418_s10 + $0x134] ss:$8 sps:$4 sm:$0xff]  }
 0x74f   :  { %13393 = vmatpush2.bf16.msra.mxu1 %v17648_v7 }
 0x750   :  { %13394 = vmatprep.subr.bf16.mxu1 %v17653_v33  ;;  %v17723_v33 = vld [vmem:[%s20418_s10 + $0x140] ss:$8 sps:$4 sm:$0xff]  }
 0x751   :  { %14059 = vmatpush2.bf16.msra.mxu0 %v17699_v20 }
 0x752   :  { %14060 = vmatprep.subr.bf16.mxu0 %v17704_v18 }
 0x753   :  { %13395 = vmatpush2.bf16.msra.mxu1 %v17651_v0 }
 0x754   :  { %13396 = vmatprep.subr.bf16.mxu1 %v17656_v21 }
 0x755   :  { %14061 = vmatpush2.bf16.msra.mxu0 %v17702_v9  ;;  %v17731_v9 = vld [vmem:[%s20418_s10 + $0x124] ss:$8 sps:$4 sm:$0xff]  }
 0x756   :  { %14062 = vmatprep.subr.bf16.mxu0 %v17707_v3 }
 0x757   :  { %13397 = vmatpush2.bf16.msra.mxu1 %v17654_v13  ;;  %v17726_v13 = vld [vmem:[%s20418_s10 + $0x130] ss:$8 sps:$4 sm:$0xff]  }
 0x758   :  { %13398 = vmatprep.subr.bf16.mxu1 %v17659_v8  ;;  %v20144_v59 = vpop.f32.mrf.mxu0 }
 0x759   :  { %14063 = vmatpush2.bf16.msra.mxu0 %v17705_v35 }
 0x75a   :  { %v20152_v49 = vpop.f32.mrf.mxu0  ;;  %14064 = vmatprep.subr.bf16.mxu0 %v17710_v23  ;;  %v17732_v23 = vld [vmem:[%s20418_s10 + $0x110] ss:$8 sps:$4 sm:$0xff]  }
 0x75b   :  { %13399 = vmatpush2.bf16.msra.mxu1 %v17657_v28 }
 0x75c   :  { %13400 = vmatprep.subr.bf16.mxu1 %v17662_v37  ;;  %v13369_v15 = vpop.f32.mrf.mxu0  ;;  %v17729_v37 = vld [vmem:[%s20418_s10 + $0x120] ss:$8 sps:$4 sm:$0xff]  }
 0x75d   :  { %14065 = vmatpush2.bf16.msra.mxu0 %v17708_v56  ;;  %v17734_v15 = vld [vmem:[%s20418_s10 + $0x114] ss:$8 sps:$4 sm:$0xff]  }
 0x75e   :  { %v13370_v36 = vpop.f32.mrf.mxu0  ;;  %14066 = vmatprep.subr.bf16.mxu0 %v17713_v54 }
 0x75f   :  { %13401 = vmatpush2.bf16.msra.mxu1 %v17660_v34 }
 0x760   :  { %13402 = vmatprep.subr.bf16.mxu1 %v17665_v10 }
 0x761   :  { %14067 = vmatpush2.bf16.msra.mxu0 %v17711_v26  ;;  %v17737_v26 = vld [vmem:[%s20418_s10 + $0x104] ss:$8 sps:$4 sm:$0xff]  }
 0x763   :  { %13403 = vmatpush2.bf16.msra.mxu1 %v17663_v45 }
 0x764   :  { %14077 = vmatprep.subr.bf16.mxu1 %v17716_v30 }
 0x766   :  { %13405 = vmatmul.mubr.bf16.vlgmr.msra.gmra.mxu1 %v20002_v60  ;;  %v17714_v60 = vld [vmem:[%s20418_s10 + $0x170] ss:$8 sps:$4 sm:$0xff]  }
 0x767   :  { %14078 = vmatpush1.bf16.msra.mxu1 %v17714_v60 }
 0x7a6   :  { %v13283_v62 = vpop.f32.mrf.mxu1  ;;  %v20167_v22 = vpop.f32.mrf.mxu0 }
 0x7a7   :  { %v13284_v17 = vadd.f32 %v13283_v62, %v20059_v2  ;;  %v17735_v62 = vld [vmem:[%s20418_s10 + $0x100] ss:$8 sps:$4 sm:$0xff]  }
 0x7a8   :  { %v13285_v29 = vpop.f32.mrf.mxu1  ;;  %v20170_v48 = vpop.f32.mrf.mxu0 }
 0x7a9   :  { %v13454_v61 = vrot.slane %v13284_v17, 4  ;;  %v13286_v14 = vadd.f32 %v13285_v29, %v20062_v4  ;;  %v17719_v4 = vld [vmem:[%s20418_s10 + $0x164] ss:$8 sps:$4 sm:$0xff]  }
 0x7aa   :  { %v13287_v16 = vpop.f32.mrf.mxu1  ;;  %v13451_v38 = vpop.f32.mrf.mxu0  ;;  %14079 = vmatprep.subr.bf16.mxu1 %v17719_v4  ;;  %v13576_v4 = vrot.slane %v20032_v50, %v20613_v52 }
 0x7ab   :  { %v13455_v31 = vadd.f32 %v13454_v61, %v13284_v17  ;;  %v13460_v55 = vrot.slane %v13286_v14, 4  ;;  %14080 = vmatpush1.bf16.msra.mxu1 %v17717_v47  ;;  %v13691_v61 = vld [vmem:[%s20418_s10 + $0x1f0] sm:$0x33]  ;;  %v13540_v47 = vrot.slane %v20032_v50, %v19896_v57 }
 0x7ac   :  { %v13288_v2 = vpop.f32.mrf.mxu1  ;;  %v13452_v5 = vpop.f32.mrf.mxu0  ;;  %14081 = vmatprep.subr.bf16.mxu1 %v17722_v58  ;;  %v17097_v16 = vcombine.high %v13691_v61, %v13691_v61  ;;  %v17096_v38 = vcombine.low %v13691_v61, %v13691_v61 }
 0x7ad   :  { %v13456_v25 = vrot.slane %v13455_v31, 2  ;;  %v13461_v32 = vadd.f32 %v13460_v55, %v13286_v14  ;;  %v17742_v55 = vld [vmem:[%s20418_s10 + $0x1e4] ss:$8 sps:$4 sm:$0xff]   ;;  %v17740_v2 = vld [vmem:[%s20418_s10 + $0x1e0] ss:$8 sps:$4 sm:$0xff]  }
 0x7ae   :  { %v17745_v5 = vld [vmem:[%s20418_s10 + $0x1d4] ss:$8 sps:$4 sm:$0xff]  }
 0x7af   :  { %v13457_v19 = vadd.f32 %v13456_v25, %v13455_v31  ;;  %v13462_v6 = vrot.slane %v13461_v32, 2  ;;  %14082 = vmatpush1.bf16.msra.mxu1 %v17720_v44  ;;  %v14031_v31 = vsel %vm14029_vm12, %v17096_v38, 0  ;;  %v17743_v25 = vld [vmem:[%s20418_s10 + $0x1d0] ss:$8 sps:$4 sm:$0xff]  }
 0x7b0   :  { %14083 = vmatprep.subr.bf16.mxu1 %v17725_v24  ;;  %v17749_v24 = vld [vmem:[%s20418_s10 + $0x1b0] ss:$8 sps:$4 sm:$0xff]  }
 0x7b1   :  { %v13458_v63 = vrot.slane %v13457_v19, 1  ;;  %v13463_v41 = vadd.f32 %v13462_v6, %v13461_v32  ;;  %v13536_v32 = vrot.slane %v20032_v50, %v19436_v1  ;;  %v17746_v6 = vld [vmem:[%s20418_s10 + $0x1c0] ss:$8 sps:$4 sm:$0xff]  }
 0x7b3   :  { %v13459_v53 = vadd.f32 %v13458_v63, %v13457_v19  ;;  %v13464_v42 = vrot.slane %v13463_v41, 1  ;;  %14084 = vmatpush1.bf16.msra.mxu1 %v17723_v33  ;;  %v17748_v19 = vld [vmem:[%s20418_s10 + $0x1c4] ss:$8 sps:$4 sm:$0xff]   ;;  %v13556_v63 = vrot.slane %v13536_v32, %v19436_v1 }
 0x7b4   :  { %14085 = vmatprep.subr.bf16.mxu1 %v17728_v51  ;;  %v17754_v51 = vld [vmem:[%s20418_s10 + $0x1a4] ss:$8 sps:$4 sm:$0xff]  }
 0x7b5   :  { %v13480_v12 = vmul.f32 0.125, %v13459_v53  ;;  %v13465_v7 = vadd.f32 %v13464_v42, %v13463_v41  ;;  %v13580_v41 = vrot.slane %v20032_v50, %v19901_v46  ;;  %v13596_v53 = vrot.slane %v13576_v4, %v20613_v52 }
 0x7b6   :  { %v13560_v42 = vrot.slane %v13540_v47, %v19436_v1 }
 0x7b7   :  { %v20197_v11 = vsub.f32 %v13284_v17, %v13480_v12  ;;  %v13481_v0 = vmul.f32 0.125, %v13465_v7  ;;  %14086 = vmatpush1.bf16.msra.mxu1 %v17726_v13  ;;  %v17751_v12 = vld [vmem:[%s20418_s10 + $0x1b4] ss:$8 sps:$4 sm:$0xff]   ;;  %v17752_v13 = vld [vmem:[%s20418_s10 + $0x1a0] ss:$8 sps:$4 sm:$0xff]  }
 0x7b8   :  { %14087 = vmatprep.subr.bf16.mxu1 %v17731_v9  ;;  %v17760_v9 = vld [vmem:[%s20418_s10 + $0x184] ss:$8 sps:$4 sm:$0xff]  }
 0x7b9   :  { %v13488_v27 = vmul.f32 %v20197_v11, %v20197_v11  ;;  %v20201_v21 = vsub.f32 %v13286_v14, %v13481_v0  ;;  %v13600_v0 = vrot.slane %v13580_v41, %v20613_v52 }
 0x7bb   :  { %v13492_v20 = vrot.slane %v13488_v27, 4  ;;  %v13489_v8 = vmul.f32 %v20201_v21, %v20201_v21  ;;  %14088 = vmatpush1.bf16.msra.mxu1 %v17729_v37 }
 0x7bc   :  { %14089 = vmatprep.subr.bf16.mxu1 %v17734_v15 }
 0x7bd   :  { %v13493_v18 = vadd.f32 %v13492_v20, %v13488_v27  ;;  %v13498_v28 = vrot.slane %v13489_v8, 4 }
 0x7bf   :  { %v13494_v3 = vrot.slane %v13493_v18, 2  ;;  %v13499_v34 = vadd.f32 %v13498_v28, %v13489_v8  ;;  %14090 = vmatpush1.bf16.msra.mxu1 %v17732_v23 }
 0x7c0   :  { %14091 = vmatprep.subr.bf16.mxu1 %v17737_v26 }
 0x7c1   :  { %v13495_v35 = vadd.f32 %v13494_v3, %v13493_v18  ;;  %v13500_v10 = vrot.slane %v13499_v34, 2  ;;  %v17757_v18 = vld [vmem:[%s20418_s10 + $0x194] ss:$8 sps:$4 sm:$0xff]  }
 0x7c3   :  { %v13496_v45 = vrot.slane %v13495_v35, 1  ;;  %v13501_v56 = vadd.f32 %v13500_v10, %v13499_v34  ;;  %14092 = vmatpush1.bf16.msra.mxu1 %v17735_v62 }
 0x7c4   :  { %17098 = vmatprep.subr.msk.bf16.mxu1 %vm14029_vm12, %v17097_v16 }
 0x7c5   :  { %v13497_v54 = vadd.f32 %v13496_v45, %v13495_v35  ;;  %v13502_v36 = vrot.slane %v13501_v56, 1  ;;  %v17758_v35 = vld [vmem:[%s20418_s10 + $0x180] ss:$8 sps:$4 sm:$0xff]  }
 0x7c7   :  { %v13517_v17 = vmul.f32 0.125, %v13497_v54  ;;  %v13503_v29 = vadd.f32 %v13502_v36, %v13501_v56  ;;  %14094 = vmatpush2.bf16.msra.mxu1 %v14031_v31  ;;  %v20288_v54 = vld [vmem:[#allocation12 + $0x8] sm:$0x77] }
 0x7c8   :  { %14095 = vmatprep.subr.bf16.mxu1 %v17742_v55  ;;  %v11835_v36 = vrot.slane %v20288_v54, %v19433_v43  ;;  %v11839_v26 = vrot.slane %v20288_v54, %v19842_v39 }
 0x7c9   :  { %v13521_v14 = vadd.f32 1e-05, %v13517_v17  ;;  %v13518_v30 = vmul.f32 0.125, %v13503_v29 }
 0x7ca   :  { %v11855_v62 = vrot.slane %v11835_v36, %v19433_v43  ;;  %v11859_v17 = vrot.slane %v11839_v26, %v19433_v43 }
 0x7cb   :  { %18024 = vrsqrt.f32 %v13521_v14  ;;  %v13522_v60 = vadd.f32 1e-05, %v13518_v30  ;;  %14096 = vmatpush2.bf16.msra.mxu1 %v17740_v2 }
 0x7cc   :  { %14097 = vmatprep.subr.bf16.mxu1 %v17745_v5 }
 0x7cd   :  { %18026 = vrsqrt.f32 %v13522_v60 }
 0x7cf   :  { %14098 = vmatpush2.bf16.msra.mxu1 %v17743_v25 }
 0x7d0   :  { %14099 = vmatprep.subr.bf16.mxu1 %v17748_v19 }
 0x7d3   :  { %14100 = vmatpush2.bf16.msra.mxu1 %v17746_v6 }
 0x7d4   :  { %14101 = vmatprep.subr.bf16.mxu1 %v17751_v12 }
 0x7d7   :  { %14102 = vmatpush2.bf16.msra.mxu1 %v17749_v24 }
 0x7d8   :  { %v18025_v58 = vpop.eup %18024  ;;  %14103 = vmatprep.subr.bf16.mxu1 %v17754_v51 }
 0x7d9   :  { %v13529_v44 = vmul.f32 %v18025_v58, %v20197_v11 }
 0x7da   :  { %v18027_v7 = vpop.eup %18026 }
 0x7db   :  { %v13569_v33 = vmul.f32 %v13556_v63, %v13529_v44  ;;  %v13530_v50 = vmul.f32 %v18027_v7, %v20201_v21  ;;  %14104 = vmatpush2.bf16.msra.mxu1 %v17752_v13  ;;  %v17755_v21 = vld [vmem:[%s20418_s10 + $0x190] ss:$8 sps:$4 sm:$0xff]   ;;  %s18331_s10 = smov [#allocation21]  }
 0x7dc   :  { %14105 = vmatprep.subr.bf16.mxu1 %v17757_v18  ;;  %s15395_s20 = sshll.u32 %s18331_s10, 4  ;;  %s15396_s20 = int_to_ptr.vmem [resolvable:$true] %s15395_s20 }
 0x7dd   :  { %v13609_v11 = vadd.f32 %v13596_v53, %v13569_v33  ;;  %v13570_v27 = vmul.f32 %v13560_v42, %v13530_v50  ;;  %s18255_s22 = scalar_lea.vmem %s15396_s20, 256  ;;  %p18260_p4 = scmp.lt.s32.totalorder %s15396_s20, %s15396_s20 }
 0x7de   :  { %p18256_p3 = scmp.ne.s32.totalorder %s15396_s20, %s18255_s22  ;;  %p18261_p5 = scmp.lt.s32.totalorder %s18255_s22, %s18255_s22 }
 0x7df   :  { %v13617_v20 = vmul.f32 0.01, %v13609_v11  ;;  %v13610_v8 = vadd.f32 %v13600_v0, %v13570_v27  ;;  %vm13613_vm13 = vcmp.gt.f32.partialorder %v13609_v11, 0.0  ;;  %14106 = vmatpush2.bf16.msra.mxu1 %v17755_v21 }
 0x7e0   :  { %14107 = vmatprep.subr.bf16.mxu1 %v17760_v9  ;;  %p18262_p6 = por %p18261_p5, %p18260_p4 }
 0x7e1   :  { %vm13614_vm14 = vcmp.gt.f32.partialorder %v13610_v8, 0.0  ;;  %v13618_v28 = vmul.f32 0.01, %v13610_v8  ;;  %v13621_v37 = vsel %vm13613_vm13, %v13609_v11, %v13617_v20 }
 0x7e2   :  { %v13625_v10 = vpack.c.bf16 %v13621_v37, %v13621_v37  ;;  %p18263_p7 = pnand %p18262_p6, %p18256_p3 }
 0x7e3   :  { %v13622_v3 = vsel %vm13614_vm14, %v13610_v8, %v13618_v28  ;;  %14108 = vmatpush2.bf16.msra.mxu1 %v17758_v35 }
 0x7e4   :  { %v13626_v34 = vpack.c.bf16 %v13622_v3, %v13622_v3 }
 0x7e6   :  { %v13324_v15 = vpop.f32.mrf.mxu1  ;;  %14068 = vmatprep.mubr.bf16.mxu0 %v13626_v34 }
 0x7e7   :  { %14069 = vmatmul.mubr.bf16.vlgmr.msra.gmra.mxu0 %v13625_v10  ;;  %v13325_v29 = vadd.f32 %v13324_v15, %v11855_v62  ;;  %v13544_v15 = vrot.slane %v20288_v54, %v19436_v1 }
 0x7e8   :  { %v13326_v23 = vpop.f32.mrf.mxu1 }
 0x7e9   :  { %v13327_v61 = vadd.f32 %v13326_v23, %v11859_v17  ;;  %v13366_v14 = vadd.f32 %v20144_v59, %v13325_v29  ;;  %v13584_v23 = vrot.slane %v20288_v54, %v20613_v52  ;;  %v13588_v17 = vrot.slane %v20288_v54, %v19901_v46 }
 0x7ea   :  { %v13328_v45 = vpop.f32.mrf.mxu1 }
 0x7eb   :  { %v13368_v38 = vadd.f32 %v20152_v49, %v13327_v61  ;;  %v13564_v45 = vrot.slane %v13544_v15, %v19436_v1  ;;  %v13604_v62 = vrot.slane %v13584_v23, %v20613_v52  ;;  %v17806_v15 = vld [vmem:[#allocation20 + $0x8] ss:$44 sps:$4 sm:$0xff]   ;;  %v14347_v23 = vld [vmem:[#allocation20 + $0x420] sm:$0xff] }
 0x7ec   :  { %v13329_v56 = vpop.f32.mrf.mxu1 }
 0x7ed   :  { %v13548_v56 = vrot.slane %v20288_v54, %v19896_v57 }
 0x7ef   :  { %v13568_v61 = vrot.slane %v13548_v56, %v19436_v1  ;;  %v17233_v56 = vcombine.high %v14347_v23, %v14347_v23 }
 0x826   :  { %v13406_v30 = vpop.f32.mrf.mxu1 }
 0x827   :  { %v13407_v16 = vadd.f32 %v13406_v30, %v13366_v14 }
 0x828   :  { %v13408_v60 = vpop.f32.mrf.mxu1 }
 0x829   :  { %v13448_v31 = vadd.f32 %v20167_v22, %v13407_v16  ;;  %v13409_v55 = vadd.f32 %v13408_v60, %v13368_v38  ;;  %v13608_v38 = vrot.slane %v13588_v17, %v20613_v52 }
 0x82a   :  { %v13410_v2 = vpop.f32.mrf.mxu1 }
 0x82b   :  { %v13466_v5 = vrot.slane %v13448_v31, 4  ;;  %v13450_v25 = vadd.f32 %v20170_v48, %v13409_v55 }
 0x82c   :  { %v13411_v32 = vpop.f32.mrf.mxu1 }
 0x82d   :  { %v13467_v4 = vadd.f32 %v13466_v5, %v13448_v31  ;;  %v13473_v47 = vsel %vm13472_vm15, %v13450_v25, 0.0 }
 0x82e   :  { %v13474_v19 = vrot.slane %v13473_v47, 4 }
 0x82f   :  { %v13468_v6 = vrot.slane %v13467_v4, 2 }
 0x830   :  { %v13475_v59 = vadd.f32 %v13474_v19, %v13473_v47 }
 0x831   :  { %v13469_v63 = vadd.f32 %v13468_v6, %v13467_v4 }
 0x832   :  { %v13476_v41 = vrot.slane %v13475_v59, 2 }
 0x833   :  { %v13470_v58 = vrot.slane %v13469_v63, 1 }
 0x834   :  { %v13477_v49 = vadd.f32 %v13476_v41, %v13475_v59  ;;  %v17763_v59 = vld [vmem:[#allocation20 + $0x26c] ss:$44 sps:$4 sm:$0xff]   ;;  %v17761_v41 = vld [vmem:[#allocation20 + $0x268] ss:$44 sps:$4 sm:$0xff]  }
 0x835   :  { %v13471_v44 = vadd.f32 %v13470_v58, %v13469_v63  ;;  %v17766_v63 = vld [vmem:[#allocation20 + $0x274] ss:$44 sps:$4 sm:$0xff]   ;;  %v17764_v58 = vld [vmem:[#allocation20 + $0x270] ss:$44 sps:$4 sm:$0xff]   ;;  %15133 = vmatprep.subr.bf16.mxu0 %v17763_v59 }
 0x836   :  { %v13478_v53 = vrot.slane %v13477_v49, 1  ;;  %15174 = vmatprep.subr.bf16.mxu1 %v17766_v63  ;;  %15134 = vmatpush1.bf16.msra.mxu0 %v17761_v41  ;;  %v17834_v59 = vld [vmem:[#allocation20 + $0x2c8] ss:$44 sps:$4 sm:$0xff]   ;;  %v17842_v41 = vld [vmem:[#allocation20 + $0x284] ss:$44 sps:$4 sm:$0xff]  }
 0x837   :  { %v13482_v22 = vmul.f32 0.125, %v13471_v44  ;;  %v17772_v44 = vld [vmem:[#allocation20 + $0x21c] ss:$44 sps:$4 sm:$0xff]  }
 0x838   :  { %v13479_v42 = vadd.f32 %v13478_v53, %v13477_v49  ;;  %v17769_v49 = vld [vmem:[#allocation20 + $0x214] ss:$44 sps:$4 sm:$0xff]   ;;  %v17767_v53 = vld [vmem:[#allocation20 + $0x210] ss:$44 sps:$4 sm:$0xff]  }
 0x839   :  { %v13486_v12 = vsub.f32 %v13448_v31, %v13482_v22  ;;  %v17770_v22 = vld [vmem:[#allocation20 + $0x218] ss:$44 sps:$4 sm:$0xff]   ;;  %15135 = vmatprep.subr.bf16.mxu0 %v17769_v49  ;;  %v17839_v63 = vld [vmem:[#allocation20 + $0x27c] ss:$44 sps:$4 sm:$0xff]  }
 0x83a   :  { %v13483_v7 = vmul.f32 0.125, %v13479_v42  ;;  %15136 = vmatpush1.bf16.msra.mxu0 %v17767_v53  ;;  %v17775_v42 = vld [vmem:[#allocation20 + $0x1bc] ss:$44 sps:$4 sm:$0xff]  }
 0x83b   :  { %v13490_v24 = vmul.f32 %v13486_v12, %v13486_v12  ;;  %15137 = vmatprep.subr.bf16.mxu0 %v17775_v42 }
 0x83c   :  { %v13487_v33 = vsub.f32 %v13450_v25, %v13483_v7  ;;  %v17773_v7 = vld [vmem:[#allocation20 + $0x1b8] ss:$44 sps:$4 sm:$0xff]  }
 0x83d   :  { %v13504_v48 = vrot.slane %v13490_v24, 4 }
 0x83e   :  { %v13491_v50 = vmul.f32 %v13487_v33, %v13487_v33  ;;  %15138 = vmatpush1.bf16.msra.mxu0 %v17773_v7 }
 0x83f   :  { %v13505_v0 = vadd.f32 %v13504_v48, %v13490_v24  ;;  %v17776_v24 = vld [vmem:[#allocation20 + $0x1c0] ss:$44 sps:$4 sm:$0xff]  }
 0x840   :  { %v13510_v11 = vsel %vm13472_vm15, %v13491_v50, 0.0  ;;  %v17784_v48 = vld [vmem:[#allocation20 + $0x16c] ss:$44 sps:$4 sm:$0xff]  }
 0x841   :  { %v13506_v27 = vrot.slane %v13505_v0, 2  ;;  %v13511_v51 = vrot.slane %v13510_v11, 4  ;;  %v17779_v50 = vld [vmem:[#allocation20 + $0x160] ss:$44 sps:$4 sm:$0xff]  }
 0x843   :  { %v13507_v13 = vadd.f32 %v13506_v27, %v13505_v0  ;;  %v13512_v20 = vadd.f32 %v13511_v51, %v13510_v11  ;;  %v17782_v0 = vld [vmem:[#allocation20 + $0x168] ss:$44 sps:$4 sm:$0xff]   ;;  %v17787_v11 = vld [vmem:[#allocation20 + $0x10c] ss:$44 sps:$4 sm:$0xff]  }
 0x844   :  { %v17790_v27 = vld [vmem:[#allocation20 + $0x114] ss:$44 sps:$4 sm:$0xff]  }
 0x845   :  { %v13508_v8 = vrot.slane %v13507_v13, 1  ;;  %v13513_v21 = vrot.slane %v13512_v20, 2  ;;  %v17785_v51 = vld [vmem:[#allocation20 + $0x108] ss:$44 sps:$4 sm:$0xff]  }
 0x847   :  { %v13509_v18 = vadd.f32 %v13508_v8, %v13507_v13  ;;  %v13514_v28 = vadd.f32 %v13513_v21, %v13512_v20  ;;  %v17788_v13 = vld [vmem:[#allocation20 + $0x110] ss:$44 sps:$4 sm:$0xff]   ;;  %v17793_v20 = vld [vmem:[#allocation20 + $0xb4] ss:$44 sps:$4 sm:$0xff]  }
 0x848   :  { %v17796_v8 = vld [vmem:[#allocation20 + $0xbc] ss:$44 sps:$4 sm:$0xff]  }
 0x849   :  { %v13519_v9 = vmul.f32 0.125, %v13509_v18  ;;  %v13515_v37 = vrot.slane %v13514_v28, 1  ;;  %v17791_v21 = vld [vmem:[#allocation20 + $0xb0] ss:$44 sps:$4 sm:$0xff]   ;;  %v17794_v18 = vld [vmem:[#allocation20 + $0xb8] ss:$44 sps:$4 sm:$0xff]  }
 0x84b   :  { %v13523_v3 = vadd.f32 1e-05, %v13519_v9  ;;  %v13516_v34 = vadd.f32 %v13515_v37, %v13514_v28  ;;  %v17799_v28 = vld [vmem:[#allocation20 + $0x5c] ss:$44 sps:$4 sm:$0xff]   ;;  %v17802_v9 = vld [vmem:[#allocation20 + $0x64] ss:$44 sps:$4 sm:$0xff]  }
 0x84c   :  { %v17797_v37 = vld [vmem:[#allocation20 + $0x58] ss:$44 sps:$4 sm:$0xff]  }
 0x84d   :  { %18028 = vrsqrt.f32 %v13523_v3  ;;  %v13520_v35 = vmul.f32 0.125, %v13516_v34  ;;  %v17800_v3 = vld [vmem:[#allocation20 + $0x60] ss:$44 sps:$4 sm:$0xff]   ;;  %v17805_v34 = vld [vmem:[#allocation20 + $0x4] ss:$44 sps:$4 sm:$0xff]  }
 0x84f   :  { %v13524_v10 = vadd.f32 1e-05, %v13520_v35  ;;  %v17808_v35 = vld [vmem:[#allocation20 + $0xc] ss:$44 sps:$4 sm:$0xff]  }
 0x851   :  { %18030 = vrsqrt.f32 %v13524_v10  ;;  %v17803_v10 = vld [vmem:[#allocation20] ss:$44 sps:$4 sm:$0xff]  }
 0x85a   :  { %v18029_v36 = vpop.eup %18028 }
 0x85b   :  { %v13531_v26 = vmul.f32 %v18029_v36, %v13486_v12  ;;  %v17778_v12 = vld [vmem:[#allocation20 + $0x1c4] ss:$44 sps:$4 sm:$0xff]  }
 0x85d   :  { %v13571_v29 = vmul.f32 %v13564_v45, %v13531_v26  ;;  %v14348_v45 = vld [vmem:[#allocation20 + $0x428] sm:$0xff]  ;;  %v17232_v26 = vcombine.low %v14347_v23, %v14347_v23 }
 0x85e   :  { %v18031_v14 = vpop.eup %18030  ;;  %v17235_v36 = vcombine.high %v14348_v45, %v14348_v45 }
 0x85f   :  { %v13611_v30 = vadd.f32 %v13604_v62, %v13571_v29  ;;  %v13532_v16 = vmul.f32 %v18031_v14, %v13487_v33  ;;  %v17781_v33 = vld [vmem:[#allocation20 + $0x164] ss:$44 sps:$4 sm:$0xff]   ;;  %v17234_v62 = vcombine.low %v14348_v45, %v14348_v45  ;;  %v15101_v17 = vsel %vm13113_vm6, %v17232_v26, 0  ;;  %v17818_v14 = vld [vmem:[#allocation20 + $0x3d4] ss:$44 sps:$4 sm:$0xff]  }
 0x860   :  { %15139 = vmatprep.subr.bf16.mxu0 %v17781_v33 }
 0x861   :  { %v13572_v60 = vmul.f32 %v13568_v61, %v13532_v16  ;;  %v13619_v31 = vmul.f32 0.01, %v13611_v30  ;;  %vm13615_vm1 = vcmp.gt.f32.partialorder %v13611_v30, 0.0  ;;  %15140 = vmatpush1.bf16.msra.mxu0 %v17779_v50  ;;  %v15107_v29 = vsel %vm13113_vm6, %v17234_v62, 0  ;;  %v17815_v61 = vld [vmem:[#allocation20 + $0x3cc] ss:$44 sps:$4 sm:$0xff]  }
 0x862   :  { %15141 = vmatprep.subr.bf16.mxu0 %v17787_v11  ;;  %v17816_v16 = vld [vmem:[#allocation20 + $0x3d0] ss:$44 sps:$4 sm:$0xff]  }
 0x863   :  { %v13612_v55 = vadd.f32 %v13608_v38, %v13572_v60  ;;  %v13623_v5 = vsel %vm13615_vm1, %v13611_v30, %v13619_v31  ;;  %v17813_v30 = vld [vmem:[#allocation20 + $0x3c8] ss:$44 sps:$4 sm:$0xff]   ;;  %v17819_v31 = vld [vmem:[#allocation20 + $0x370] ss:$44 sps:$4 sm:$0xff]  }
 0x864   :  { %v13627_v4 = vpack.c.bf16 %v13623_v5, %v13623_v5  ;;  %v17821_v38 = vld [vmem:[#allocation20 + $0x374] ss:$44 sps:$4 sm:$0xff]   ;;  %v17824_v60 = vld [vmem:[#allocation20 + $0x37c] ss:$44 sps:$4 sm:$0xff]   ;;  %v17830_v5 = vld [vmem:[#allocation20 + $0x324] ss:$44 sps:$4 sm:$0xff]  }
 0x865   :  { %vm13616_vm2 = vcmp.gt.f32.partialorder %v13612_v55, 0.0  ;;  %v13620_v2 = vmul.f32 0.01, %v13612_v55  ;;  %15142 = vmatpush1.bf16.msra.mxu0 %v17785_v51 }
 0x866   :  { %15143 = vmatprep.subr.bf16.mxu0 %v17793_v20 }
 0x867   :  { %v13624_v25 = vsel %vm13616_vm2, %v13612_v55, %v13620_v2  ;;  %v17822_v55 = vld [vmem:[#allocation20 + $0x378] ss:$44 sps:$4 sm:$0xff]   ;;  %v17827_v2 = vld [vmem:[#allocation20 + $0x31c] ss:$44 sps:$4 sm:$0xff]  }
 0x868   :  { %v13628_v32 = vpack.c.bf16 %v13624_v25, %v13624_v25  ;;  %v17825_v25 = vld [vmem:[#allocation20 + $0x318] ss:$44 sps:$4 sm:$0xff]  }
 0x869   :  { %15144 = vmatpush1.bf16.msra.mxu0 %v17791_v21 }
 0x86a   :  { %17099 = vmatprep.mubr.msk.bf16.mxu1 %vm13472_vm15, %v13628_v32  ;;  %15145 = vmatprep.subr.bf16.mxu0 %v17799_v28  ;;  %v17828_v32 = vld [vmem:[#allocation20 + $0x320] ss:$44 sps:$4 sm:$0xff]  }
 0x86b   :  { %14110 = vmatmul.mubr.bf16.vlgmr.msra.gmra.mxu1 %v13627_v4  ;;  %v17833_v4 = vld [vmem:[#allocation20 + $0x2c4] ss:$44 sps:$4 sm:$0xff]  }
 0x86c   :  { %15175 = vmatpush1.bf16.msra.mxu1 %v17764_v58  ;;  %v20323_v58 = vld [vmem:[#allocation14] sm:$0x77] }
 0x86d   :  { %15176 = vmatprep.subr.bf16.mxu1 %v17772_v44  ;;  %15146 = vmatpush1.bf16.msra.mxu0 %v17797_v37  ;;  %v13696_v49 = vrot.slane %v20323_v58, %v19433_v43  ;;  %v13700_v44 = vrot.slane %v20323_v58, %v19842_v39 }
 0x86e   :  { %15147 = vmatprep.subr.bf16.mxu0 %v17805_v34 }
 0x86f   :  { %v13706_v53 = vrot.slane %v13696_v49, %v19433_v43 }
 0x870   :  { %15177 = vmatpush1.bf16.msra.mxu1 %v17770_v22  ;;  %v13710_v22 = vrot.slane %v13700_v44, %v19433_v43 }
 0x871   :  { %15178 = vmatprep.subr.bf16.mxu1 %v17778_v12  ;;  %15148 = vmatpush1.bf16.msra.mxu0 %v17803_v10 }
 0x872   :  { %17243 = vmatprep.subr.msk.bf16.mxu0 %vm13113_vm6, %v17233_v56 }
 0x874   :  { %15179 = vmatpush1.bf16.msra.mxu1 %v17776_v24 }
 0x875   :  { %15180 = vmatprep.subr.bf16.mxu1 %v17784_v48  ;;  %15156 = vmatpush2.bf16.msra.mxu0 %v15101_v17 }
 0x876   :  { %15157 = vmatprep.subr.bf16.mxu0 %v17815_v61 }
 0x878   :  { %15181 = vmatpush1.bf16.msra.mxu1 %v17782_v0 }
 0x879   :  { %15182 = vmatprep.subr.bf16.mxu1 %v17790_v27  ;;  %15158 = vmatpush2.bf16.msra.mxu0 %v17813_v30 }
 0x87a   :  { %15159 = vmatprep.subr.bf16.mxu0 %v17821_v38 }
 0x87c   :  { %15183 = vmatpush1.bf16.msra.mxu1 %v17788_v13 }
 0x87d   :  { %15184 = vmatprep.subr.bf16.mxu1 %v17796_v8  ;;  %15160 = vmatpush2.bf16.msra.mxu0 %v17819_v31 }
 0x87e   :  { %15161 = vmatprep.subr.bf16.mxu0 %v17827_v2 }
 0x880   :  { %15185 = vmatpush1.bf16.msra.mxu1 %v17794_v18 }
 0x881   :  { %15186 = vmatprep.subr.bf16.mxu1 %v17802_v9  ;;  %15162 = vmatpush2.bf16.msra.mxu0 %v17825_v25  ;;  %v14168_v25 = vrot.slane %v20323_v58, %v19896_v57 }
 0x882   :  { %15163 = vmatprep.subr.bf16.mxu0 %v17833_v4 }
 0x884   :  { %15187 = vmatpush1.bf16.msra.mxu1 %v17800_v3 }
 0x885   :  { %15188 = vmatprep.subr.bf16.mxu1 %v17808_v35 }
 0x888   :  { %15189 = vmatpush1.bf16.msra.mxu1 %v17806_v15 }
 0x889   :  { %17245 = vmatprep.subr.msk.bf16.mxu1 %vm13113_vm6, %v17235_v36 }
 0x88c   :  { %15197 = vmatpush2.bf16.msra.mxu1 %v15107_v29 }
 0x88d   :  { %15198 = vmatprep.subr.bf16.mxu1 %v17818_v14 }
 0x890   :  { %15199 = vmatpush2.bf16.msra.mxu1 %v17816_v16 }
 0x891   :  { %15200 = vmatprep.subr.bf16.mxu1 %v17824_v60 }
 0x894   :  { %15201 = vmatpush2.bf16.msra.mxu1 %v17822_v55 }
 0x895   :  { %15202 = vmatprep.subr.bf16.mxu1 %v17830_v5  ;;  %v14164_v5 = vrot.slane %v20323_v58, %v19436_v1 }
 0x897   :  { %v14174_v4 = vrot.slane %v14164_v5, %v19436_v1  ;;  %v17895_v5 = vld [vmem:[#allocation20 + $0x380] ss:$44 sps:$4 sm:$0xff]  }
 0x898   :  { %15203 = vmatpush2.bf16.msra.mxu1 %v17828_v32 }
 0x8a7   :  { %v20315_v54 = vpop.f32.mrf.mxu0 }
 0x8a8   :  { %v14071_v42 = vadd.f32 %v20315_v54, %v13706_v53 }
 0x8a9   :  { %v20317_v47 = vpop.f32.mrf.mxu0 }
 0x8aa   :  { %v14073_v7 = vadd.f32 %v20317_v47, %v13710_v22 }
 0x8ab   :  { %v14074_v19 = vpop.f32.mrf.mxu0 }
 0x8ac   :  { %v17836_v19 = vld [vmem:[#allocation20 + $0x2cc] ss:$44 sps:$4 sm:$0xff]  }
 0x8ad   :  { %v14075_v6 = vpop.f32.mrf.mxu0  ;;  %15204 = vmatprep.subr.bf16.mxu1 %v17836_v19  ;;  %v14184_v19 = vrot.slane %v20323_v58, %v20613_v52 }
 0x8ae   :  { %v17831_v6 = vld [vmem:[#allocation20 + $0x2c0] ss:$44 sps:$4 sm:$0xff]   ;;  %15205 = vmatpush2.bf16.msra.mxu1 %v17834_v59  ;;  %v14188_v59 = vrot.slane %v20323_v58, %v19901_v46  ;;  %v17846_v58 = vld [vmem:[#allocation20 + $0x228] ss:$44 sps:$4 sm:$0xff]  }
 0x8af   :  { %15164 = vmatpush2.bf16.msra.mxu0 %v17831_v6  ;;  %15256 = vmatprep.subr.bf16.mxu1 %v17842_v41  ;;  %v14194_v44 = vrot.slane %v14184_v19, %v20613_v52  ;;  %v17848_v46 = vld [vmem:[#allocation20 + $0x22c] ss:$44 sps:$4 sm:$0xff]   ;;  %v17901_v19 = vld [vmem:[#allocation20 + $0x328] ss:$44 sps:$4 sm:$0xff]  }
 0x8b0   :  { %15215 = vmatprep.subr.bf16.mxu0 %v17839_v63  ;;  %v14178_v63 = vrot.slane %v14168_v25, %v19436_v1  ;;  %v14198_v22 = vrot.slane %v14188_v59, %v20613_v52  ;;  %v17845_v1 = vld [vmem:[#allocation20 + $0x224] ss:$44 sps:$4 sm:$0xff]   ;;  %v17843_v52 = vld [vmem:[#allocation20 + $0x220] ss:$44 sps:$4 sm:$0xff]   ;;  %v17898_v25 = vld [vmem:[#allocation20 + $0x388] ss:$44 sps:$4 sm:$0xff]  }
 0x8b1   :  { %v17909_v59 = vld [vmem:[#allocation20 + $0x2d4] ss:$44 sps:$4 sm:$0xff]  }
 0x92b   :  { %v14111_v12 = vpop.f32.mrf.mxu1 }
 0x92c   :  { %v14112_v24 = vadd.f32 %v14111_v12, %v14071_v42 }
 0x92d   :  { %v14113_v33 = vpop.f32.mrf.mxu1 }
 0x92e   :  { %v14121_v48 = vrot.slane %v14112_v24, 4  ;;  %14118 = vst [vmem:[#allocation21] sm:$0xff] %v14112_v24  ;;  %v14114_v50 = vadd.f32 %v14113_v33, %v14073_v7  ;;  %v17840_v33 = vld [vmem:[#allocation20 + $0x280] ss:$44 sps:$4 sm:$0xff]  }
 0x92f   :  { %v14115_v0 = vpop.f32.mrf.mxu1 }
 0x930   :  { %v14122_v11 = vadd.f32 %v14121_v48, %v14112_v24  ;;  %v14127_v27 = vsel %vm14119_vm3, %v14114_v50, 0.0  ;;  %14120 = vst.msk [vmem:[#allocation21 + $0x8] sm:$0xff] %vm14119_vm3, %v14114_v50  ;;  %v17854_v0 = vld [vmem:[#allocation20 + $0x1d4] ss:$44 sps:$4 sm:$0xff]  }
 0x931   :  { %v14128_v51 = vrot.slane %v14127_v27, 4  ;;  %v14116_v13 = vpop.f32.mrf.mxu1 }
 0x932   :  { %v14123_v43 = vrot.slane %v14122_v11, 2  ;;  %v17860_v13 = vld [vmem:[#allocation20 + $0x17c] ss:$44 sps:$4 sm:$0xff]  }
 0x933   :  { %v14129_v20 = vadd.f32 %v14128_v51, %v14127_v27  ;;  %v17852_v27 = vld [vmem:[#allocation20 + $0x1d0] ss:$44 sps:$4 sm:$0xff]   ;;  %v17857_v51 = vld [vmem:[#allocation20 + $0x174] ss:$44 sps:$4 sm:$0xff]  }
 0x934   :  { %v14124_v54 = vadd.f32 %v14123_v43, %v14122_v11  ;;  %v17849_v11 = vld [vmem:[#allocation20 + $0x1c8] ss:$44 sps:$4 sm:$0xff]   ;;  %v17855_v43 = vld [vmem:[#allocation20 + $0x170] ss:$44 sps:$4 sm:$0xff]  }
 0x935   :  { %v14130_v8 = vrot.slane %v14129_v20, 2 }
 0x936   :  { %v14125_v21 = vrot.slane %v14124_v54, 1 }
 0x937   :  { %v14131_v47 = vadd.f32 %v14130_v8, %v14129_v20  ;;  %v17858_v20 = vld [vmem:[#allocation20 + $0x178] ss:$44 sps:$4 sm:$0xff]  }
 0x938   :  { %v14126_v18 = vadd.f32 %v14125_v21, %v14124_v54  ;;  %v17863_v54 = vld [vmem:[#allocation20 + $0x11c] ss:$44 sps:$4 sm:$0xff]   ;;  %v17866_v8 = vld [vmem:[#allocation20 + $0x124] ss:$44 sps:$4 sm:$0xff]  }
 0x939   :  { %v14132_v28 = vrot.slane %v14131_v47, 1  ;;  %v17861_v21 = vld [vmem:[#allocation20 + $0x118] ss:$44 sps:$4 sm:$0xff]  }
 0x93a   :  { %v14134_v9 = vmul.f32 0.125, %v14126_v18  ;;  %v17869_v18 = vld [vmem:[#allocation20 + $0xc4] ss:$44 sps:$4 sm:$0xff]  }
 0x93b   :  { %v14133_v37 = vadd.f32 %v14132_v28, %v14131_v47  ;;  %v17864_v47 = vld [vmem:[#allocation20 + $0x120] ss:$44 sps:$4 sm:$0xff]  }
 0x93c   :  { %v14136_v3 = vsub.f32 %v14112_v24, %v14134_v9  ;;  %v17837_v24 = vld [vmem:[#allocation20 + $0x278] ss:$44 sps:$4 sm:$0xff]   ;;  %v17867_v9 = vld [vmem:[#allocation20 + $0xc0] ss:$44 sps:$4 sm:$0xff]  }
 0x93d   :  { %v14135_v34 = vmul.f32 0.125, %v14133_v37  ;;  %v17872_v28 = vld [vmem:[#allocation20 + $0xcc] ss:$44 sps:$4 sm:$0xff]   ;;  %v17870_v37 = vld [vmem:[#allocation20 + $0xc8] ss:$44 sps:$4 sm:$0xff]  }
 0x93e   :  { %v14138_v35 = vmul.f32 %v14136_v3, %v14136_v3 }
 0x93f   :  { %v14137_v10 = vsub.f32 %v14114_v50, %v14135_v34  ;;  %v17851_v50 = vld [vmem:[#allocation20 + $0x1cc] ss:$44 sps:$4 sm:$0xff]   ;;  %v17878_v34 = vld [vmem:[#allocation20 + $0x74] ss:$44 sps:$4 sm:$0xff]  }
 0x940   :  { %v14140_v15 = vrot.slane %v14138_v35, 4 }
 0x941   :  { %v14139_v23 = vmul.f32 %v14137_v10, %v14137_v10 }
 0x942   :  { %v14141_v45 = vadd.f32 %v14140_v15, %v14138_v35  ;;  %v17873_v35 = vld [vmem:[#allocation20 + $0x68] ss:$44 sps:$4 sm:$0xff]  }
 0x943   :  { %v14146_v56 = vsel %vm14119_vm3, %v14139_v23, 0.0  ;;  %v17881_v15 = vld [vmem:[#allocation20 + $0x14] ss:$44 sps:$4 sm:$0xff]   ;;  %v17884_v23 = vld [vmem:[#allocation20 + $0x1c] ss:$44 sps:$4 sm:$0xff]  }
 0x944   :  { %v14142_v36 = vrot.slane %v14141_v45, 2  ;;  %v14147_v26 = vrot.slane %v14146_v56, 4 }
 0x946   :  { %v14143_v62 = vadd.f32 %v14142_v36, %v14141_v45  ;;  %v14148_v17 = vadd.f32 %v14147_v26, %v14146_v56  ;;  %v14349_v45 = vld [vmem:[#allocation20 + $0x430] sm:$0xff]  ;;  %v14350_v56 = vld [vmem:[#allocation20 + $0x438] sm:$0xff] }
 0x947   :  { %v17879_v36 = vld [vmem:[#allocation20 + $0x10] ss:$44 sps:$4 sm:$0xff]   ;;  %v17882_v26 = vld [vmem:[#allocation20 + $0x18] ss:$44 sps:$4 sm:$0xff]  }
 0x948   :  { %v14144_v29 = vrot.slane %v14143_v62, 1  ;;  %v14149_v61 = vrot.slane %v14148_v17, 2 }
 0x94a   :  { %v14145_v14 = vadd.f32 %v14144_v29, %v14143_v62  ;;  %v14150_v30 = vadd.f32 %v14149_v61, %v14148_v17  ;;  %v17237_v62 = vcombine.high %v14349_v45, %v14349_v45  ;;  %v17239_v17 = vcombine.high %v14350_v56, %v14350_v56 }
 0x94b   :  { %v17236_v29 = vcombine.low %v14349_v45, %v14349_v45  ;;  %v17238_v61 = vcombine.low %v14350_v56, %v14350_v56  ;;  %v17955_v45 = vld [vmem:[#allocation20 + $0x398] ss:$44 sps:$4 sm:$0xff]   ;;  %v17958_v56 = vld [vmem:[#allocation20 + $0x33c] ss:$44 sps:$4 sm:$0xff]  }
 0x94c   :  { %v14153_v16 = vmul.f32 0.125, %v14145_v14  ;;  %v14151_v38 = vrot.slane %v14150_v30, 1 }
 0x94d   :  { %v15113_v14 = vsel %vm13113_vm6, %v17236_v29, 0  ;;  %v17963_v29 = vld [vmem:[#allocation20 + $0x2e8] ss:$44 sps:$4 sm:$0xff]  }
 0x94e   :  { %v14155_v60 = vadd.f32 1e-05, %v14153_v16  ;;  %v14152_v31 = vadd.f32 %v14151_v38, %v14150_v30  ;;  %v15119_v30 = vsel %vm13113_vm6, %v17238_v61, 0  ;;  %v17891_v16 = vld [vmem:[#allocation20 + $0x3dc] ss:$44 sps:$4 sm:$0xff]  }
 0x94f   :  { %v17894_v38 = vld [vmem:[#allocation20 + $0x3e4] ss:$44 sps:$4 sm:$0xff]  }
 0x950   :  { %18032 = vrsqrt.f32 %v14155_v60  ;;  %v14154_v55 = vmul.f32 0.125, %v14152_v31  ;;  %v17889_v60 = vld [vmem:[#allocation20 + $0x3d8] ss:$44 sps:$4 sm:$0xff]   ;;  %v17892_v31 = vld [vmem:[#allocation20 + $0x3e0] ss:$44 sps:$4 sm:$0xff]  }
 0x952   :  { %v14156_v2 = vadd.f32 1e-05, %v14154_v55  ;;  %v17897_v55 = vld [vmem:[#allocation20 + $0x384] ss:$44 sps:$4 sm:$0xff]  }
 0x954   :  { %18034 = vrsqrt.f32 %v14156_v2  ;;  %v17900_v2 = vld [vmem:[#allocation20 + $0x38c] ss:$44 sps:$4 sm:$0xff]  }
 0x95d   :  { %v18033_v32 = vpop.eup %18032 }
 0x95e   :  { %v14159_v6 = vmul.f32 %v18033_v32, %v14136_v3  ;;  %v17875_v3 = vld [vmem:[#allocation20 + $0x6c] ss:$44 sps:$4 sm:$0xff]  }
 0x95f   :  { %v17903_v32 = vld [vmem:[#allocation20 + $0x32c] ss:$44 sps:$4 sm:$0xff]  }
 0x960   :  { %v14179_v49 = vmul.f32 %v14174_v4, %v14159_v6  ;;  %v17906_v4 = vld [vmem:[#allocation20 + $0x334] ss:$44 sps:$4 sm:$0xff]   ;;  %v17904_v6 = vld [vmem:[#allocation20 + $0x330] ss:$44 sps:$4 sm:$0xff]  }
 0x961   :  { %v18035_v41 = vpop.eup %18034 }
 0x962   :  { %v14160_v53 = vmul.f32 %v18035_v41, %v14137_v10  ;;  %v14199_v42 = vadd.f32 %v14194_v44, %v14179_v49  ;;  %v17876_v10 = vld [vmem:[#allocation20 + $0x70] ss:$44 sps:$4 sm:$0xff]   ;;  %v17910_v49 = vld [vmem:[#allocation20 + $0x2d8] ss:$44 sps:$4 sm:$0xff]  }
 0x963   :  { %v17907_v41 = vld [vmem:[#allocation20 + $0x2d0] ss:$44 sps:$4 sm:$0xff]   ;;  %v17915_v44 = vld [vmem:[#allocation20 + $0x28c] ss:$44 sps:$4 sm:$0xff]  }
 0x964   :  { %v14180_v57 = vmul.f32 %v14178_v63, %v14160_v53  ;;  %v20350_v48 = vpack.c.bf16 %v14199_v42, %v14199_v42  ;;  %v17912_v63 = vld [vmem:[#allocation20 + $0x2dc] ss:$44 sps:$4 sm:$0xff]  }
 0x965   :  { %v17913_v53 = vld [vmem:[#allocation20 + $0x288] ss:$44 sps:$4 sm:$0xff]   ;;  %v17917_v42 = vld [vmem:[#allocation20 + $0x230] ss:$44 sps:$4 sm:$0xff]  }
 0x966   :  { %v14200_v12 = vadd.f32 %v14198_v22, %v14180_v57  ;;  %v17916_v22 = vld [vmem:[#allocation20 + $0x290] ss:$44 sps:$4 sm:$0xff]   ;;  %v17919_v57 = vld [vmem:[#allocation20 + $0x234] ss:$44 sps:$4 sm:$0xff]  }
 0x968   :  { %v20348_v7 = vpack.c.bf16 %v14200_v12, %v14200_v12  ;;  %v17920_v12 = vld [vmem:[#allocation20 + $0x238] ss:$44 sps:$4 sm:$0xff]  }
 0x96a   :  { %17244 = vmatprep.mubr.msk.bf16.mxu0 %vm14119_vm3, %v20348_v7  ;;  %17246 = vmatprep.mubr.msk.bf16.mxu1 %vm14119_vm3, %v20348_v7 }
 0x96b   :  { %15166 = vmatmul.mubr.bf16.vlgmr.msra.gmra.mxu0 %v20350_v48  ;;  %15207 = vmatmul.mubr.bf16.vlgmr.msra.gmra.mxu1 %v20350_v48 }
 0x96c   :  { %15216 = vmatpush1.bf16.msra.mxu0 %v17837_v24  ;;  %15257 = vmatpush1.bf16.msra.mxu1 %v17840_v33  ;;  %v17923_v24 = vld [vmem:[#allocation20 + $0x1dc] ss:$44 sps:$4 sm:$0xff]   ;;  %v17921_v33 = vld [vmem:[#allocation20 + $0x1d8] ss:$44 sps:$4 sm:$0xff]  }
 0x96d   :  { %17248 = vmatprep.mubr.msk.bf16.mxu0 %vm14119_vm3, %v20348_v7  ;;  %17250 = vmatprep.mubr.msk.bf16.mxu1 %vm14119_vm3, %v20348_v7 }
 0x96e   :  { %15217 = vmatprep.subr.bf16.mxu0 %v17845_v1  ;;  %15258 = vmatprep.subr.bf16.mxu1 %v17848_v46  ;;  %v17924_v1 = vld [vmem:[#allocation20 + $0x1e0] ss:$44 sps:$4 sm:$0xff]   ;;  %v17927_v46 = vld [vmem:[#allocation20 + $0x184] ss:$44 sps:$4 sm:$0xff]  }
 0x970   :  { %15218 = vmatpush1.bf16.msra.mxu0 %v17843_v52  ;;  %15259 = vmatpush1.bf16.msra.mxu1 %v17846_v58  ;;  %v17925_v52 = vld [vmem:[#allocation20 + $0x180] ss:$44 sps:$4 sm:$0xff]   ;;  %v17928_v58 = vld [vmem:[#allocation20 + $0x188] ss:$44 sps:$4 sm:$0xff]  }
 0x971   :  { %15219 = vmatprep.subr.bf16.mxu0 %v17851_v50  ;;  %15260 = vmatprep.subr.bf16.mxu1 %v17854_v0  ;;  %v17931_v50 = vld [vmem:[#allocation20 + $0x12c] ss:$44 sps:$4 sm:$0xff]   ;;  %v17932_v0 = vld [vmem:[#allocation20 + $0x130] ss:$44 sps:$4 sm:$0xff]  }
 0x974   :  { %15220 = vmatpush1.bf16.msra.mxu0 %v17849_v11  ;;  %15261 = vmatpush1.bf16.msra.mxu1 %v17852_v27  ;;  %v17935_v11 = vld [vmem:[#allocation20 + $0xd4] ss:$44 sps:$4 sm:$0xff]   ;;  %v17933_v27 = vld [vmem:[#allocation20 + $0xd0] ss:$44 sps:$4 sm:$0xff]  }
 0x975   :  { %15221 = vmatprep.subr.bf16.mxu0 %v17857_v51  ;;  %15262 = vmatprep.subr.bf16.mxu1 %v17860_v13  ;;  %v17936_v51 = vld [vmem:[#allocation20 + $0xd8] ss:$44 sps:$4 sm:$0xff]   ;;  %v17939_v13 = vld [vmem:[#allocation20 + $0x7c] ss:$44 sps:$4 sm:$0xff]  }
 0x978   :  { %15222 = vmatpush1.bf16.msra.mxu0 %v17855_v43  ;;  %15263 = vmatpush1.bf16.msra.mxu1 %v17858_v20  ;;  %v17937_v43 = vld [vmem:[#allocation20 + $0x78] ss:$44 sps:$4 sm:$0xff]   ;;  %v17940_v20 = vld [vmem:[#allocation20 + $0x80] ss:$44 sps:$4 sm:$0xff]  }
 0x979   :  { %15223 = vmatprep.subr.bf16.mxu0 %v17863_v54  ;;  %15264 = vmatprep.subr.bf16.mxu1 %v17866_v8  ;;  %v17943_v54 = vld [vmem:[#allocation20 + $0x24] ss:$44 sps:$4 sm:$0xff]  }
 0x97a   :  { %v14351_v8 = vld [vmem:[#allocation20 + $0x440] sm:$0xff] }
 0x97c   :  { %15224 = vmatpush1.bf16.msra.mxu0 %v17861_v21  ;;  %15265 = vmatpush1.bf16.msra.mxu1 %v17864_v47  ;;  %v17941_v21 = vld [vmem:[#allocation20 + $0x20] ss:$44 sps:$4 sm:$0xff]   ;;  %v17944_v47 = vld [vmem:[#allocation20 + $0x28] ss:$44 sps:$4 sm:$0xff]  }
 0x97d   :  { %15225 = vmatprep.subr.bf16.mxu0 %v17869_v18  ;;  %15266 = vmatprep.subr.bf16.mxu1 %v17872_v28  ;;  %v17241_v18 = vcombine.high %v14351_v8, %v14351_v8  ;;  %v17240_v28 = vcombine.low %v14351_v8, %v14351_v8 }
 0x980   :  { %15226 = vmatpush1.bf16.msra.mxu0 %v17867_v9  ;;  %15267 = vmatpush1.bf16.msra.mxu1 %v17870_v37  ;;  %v17947_v9 = vld [vmem:[#allocation20 + $0x448] ss:$0 sps:$4 sm:$0xff]   ;;  %v15125_v37 = vsel %vm13113_vm6, %v17240_v28, 0 }
 0x981   :  { %15227 = vmatprep.subr.bf16.mxu0 %v17875_v3  ;;  %15268 = vmatprep.subr.bf16.mxu1 %v17878_v34  ;;  %v17950_v3 = vld [vmem:[#allocation20 + $0x3ec] ss:$44 sps:$4 sm:$0xff]   ;;  %v15131_v34 = vsel %vm13113_vm6, %v17947_v9, 0 }
 0x984   :  { %15228 = vmatpush1.bf16.msra.mxu0 %v17873_v35  ;;  %15269 = vmatpush1.bf16.msra.mxu1 %v17876_v10  ;;  %v17948_v35 = vld [vmem:[#allocation20 + $0x3e8] ss:$44 sps:$4 sm:$0xff]   ;;  %v17951_v10 = vld [vmem:[#allocation20 + $0x3f0] ss:$44 sps:$4 sm:$0xff]  }
 0x985   :  { %15229 = vmatprep.subr.bf16.mxu0 %v17881_v15  ;;  %15270 = vmatprep.subr.bf16.mxu1 %v17884_v23  ;;  %v17954_v15 = vld [vmem:[#allocation20 + $0x394] ss:$44 sps:$4 sm:$0xff]   ;;  %v17952_v23 = vld [vmem:[#allocation20 + $0x390] ss:$44 sps:$4 sm:$0xff]  }
 0x988   :  { %15230 = vmatpush1.bf16.msra.mxu0 %v17879_v36  ;;  %15271 = vmatpush1.bf16.msra.mxu1 %v17882_v26  ;;  %v17956_v36 = vld [vmem:[#allocation20 + $0x338] ss:$44 sps:$4 sm:$0xff]   ;;  %v17959_v26 = vld [vmem:[#allocation20 + $0x340] ss:$44 sps:$4 sm:$0xff]  }
 0x989   :  { %17247 = vmatprep.subr.msk.bf16.mxu0 %vm13113_vm6, %v17237_v62  ;;  %17249 = vmatprep.subr.msk.bf16.mxu1 %vm13113_vm6, %v17239_v17  ;;  %v17962_v62 = vld [vmem:[#allocation20 + $0x2e4] ss:$44 sps:$4 sm:$0xff]   ;;  %v17960_v17 = vld [vmem:[#allocation20 + $0x2e0] ss:$44 sps:$4 sm:$0xff]  }
 0x98c   :  { %15238 = vmatpush2.bf16.msra.mxu0 %v15113_v14  ;;  %15279 = vmatpush2.bf16.msra.mxu1 %v15119_v30 }
 0x98d   :  { %15239 = vmatprep.subr.bf16.mxu0 %v17891_v16  ;;  %15280 = vmatprep.subr.bf16.mxu1 %v17894_v38 }
 0x990   :  { %15240 = vmatpush2.bf16.msra.mxu0 %v17889_v60  ;;  %15281 = vmatpush2.bf16.msra.mxu1 %v17892_v31 }
 0x991   :  { %15241 = vmatprep.subr.bf16.mxu0 %v17897_v55  ;;  %15282 = vmatprep.subr.bf16.mxu1 %v17900_v2 }
 0x994   :  { %15242 = vmatpush2.bf16.msra.mxu0 %v17895_v5  ;;  %15283 = vmatpush2.bf16.msra.mxu1 %v17898_v25 }
 0x995   :  { %15243 = vmatprep.subr.bf16.mxu0 %v17903_v32  ;;  %15284 = vmatprep.subr.bf16.mxu1 %v17906_v4 }
 0x998   :  { %15244 = vmatpush2.bf16.msra.mxu0 %v17901_v19  ;;  %15285 = vmatpush2.bf16.msra.mxu1 %v17904_v6 }
 0x999   :  { %15245 = vmatprep.subr.bf16.mxu0 %v17909_v59  ;;  %15286 = vmatprep.subr.bf16.mxu1 %v17912_v63 }
 0x99c   :  { %15246 = vmatpush2.bf16.msra.mxu0 %v17907_v41  ;;  %15287 = vmatpush2.bf16.msra.mxu1 %v17910_v49 }
 0x99d   :  { %15297 = vmatprep.subr.bf16.mxu0 %v17915_v44  ;;  %15338 = vmatprep.subr.bf16.mxu1 %v20574_v40 }
 0x99f   :  { %15248 = vmatmul.mubr.bf16.vlgmr.msra.gmra.mxu0 %v20350_v48  ;;  %15289 = vmatmul.mubr.bf16.vlgmr.msra.gmra.mxu1 %v20350_v48 }
 0x9a0   :  { %15298 = vmatpush1.bf16.msra.mxu0 %v17913_v53  ;;  %17252 = vmatprep.mubr.msk.bf16.mxu0 %vm14119_vm3, %v20348_v7 }
 0x9a1   :  { %15339 = vmatpush1.bf16.msra.mxu1 %v17916_v22  ;;  %17253 = vmatprep.mubr.msk.bf16.mxu1 %vm14119_vm3, %v20348_v7  ;;  %v17929_v7 = vld [vmem:[#allocation20 + $0x128] ss:$44 sps:$4 sm:$0xff]  }
 0x9a2   :  { %15299 = vmatprep.subr.bf16.mxu0 %v17919_v57  ;;  %15340 = vmatprep.subr.bf16.mxu1 %v20574_v40 }
 0x9a4   :  { %15300 = vmatpush1.bf16.msra.mxu0 %v17917_v42 }
 0x9a5   :  { %15341 = vmatpush1.bf16.msra.mxu1 %v17920_v12  ;;  %15301 = vmatprep.subr.bf16.mxu0 %v17923_v24 }
 0x9a6   :  { %15342 = vmatprep.subr.bf16.mxu1 %v20574_v40 }
 0x9a8   :  { %15302 = vmatpush1.bf16.msra.mxu0 %v17921_v33 }
 0x9a9   :  { %15343 = vmatpush1.bf16.msra.mxu1 %v17924_v1  ;;  %15303 = vmatprep.subr.bf16.mxu0 %v17927_v46 }
 0x9aa   :  { %15344 = vmatprep.subr.bf16.mxu1 %v20574_v40 }
 0x9ac   :  { %15304 = vmatpush1.bf16.msra.mxu0 %v17925_v52 }
 0x9ad   :  { %15345 = vmatpush1.bf16.msra.mxu1 %v17928_v58  ;;  %15305 = vmatprep.subr.bf16.mxu0 %v17931_v50 }
 0x9ae   :  { %15346 = vmatprep.subr.bf16.mxu1 %v20574_v40 }
 0x9b0   :  { %15306 = vmatpush1.bf16.msra.mxu0 %v17929_v7 }
 0x9b1   :  { %15347 = vmatpush1.bf16.msra.mxu1 %v17932_v0  ;;  %15307 = vmatprep.subr.bf16.mxu0 %v17935_v11 }
 0x9b2   :  { %15348 = vmatprep.subr.bf16.mxu1 %v20574_v40 }
 0x9b4   :  { %15308 = vmatpush1.bf16.msra.mxu0 %v17933_v27 }
 0x9b5   :  { %15349 = vmatpush1.bf16.msra.mxu1 %v17936_v51  ;;  %15309 = vmatprep.subr.bf16.mxu0 %v17939_v13 }
 0x9b6   :  { %15350 = vmatprep.subr.bf16.mxu1 %v20574_v40 }
 0x9b8   :  { %15310 = vmatpush1.bf16.msra.mxu0 %v17937_v43 }
 0x9b9   :  { %15351 = vmatpush1.bf16.msra.mxu1 %v17940_v20  ;;  %15311 = vmatprep.subr.bf16.mxu0 %v17943_v54 }
 0x9ba   :  { %15352 = vmatprep.subr.bf16.mxu1 %v20574_v40 }
 0x9bc   :  { %15312 = vmatpush1.bf16.msra.mxu0 %v17941_v21 }
 0x9bd   :  { %15353 = vmatpush1.bf16.msra.mxu1 %v17944_v47  ;;  %17251 = vmatprep.subr.msk.bf16.mxu0 %vm13113_vm6, %v17241_v18 }
 0x9be   :  { %15360 = vmatprep.subr.bf16.mxu1 %v20574_v40 }
 0x9c0   :  { %15320 = vmatpush2.bf16.msra.mxu0 %v15125_v37 }
 0x9c1   :  { %15361 = vmatpush2.bf16.msra.mxu1 %v15131_v34  ;;  %15321 = vmatprep.subr.bf16.mxu0 %v17950_v3 }
 0x9c2   :  { %15362 = vmatprep.subr.bf16.mxu1 %v20574_v40 }
 0x9c4   :  { %15322 = vmatpush2.bf16.msra.mxu0 %v17948_v35 }
 0x9c5   :  { %15363 = vmatpush2.bf16.msra.mxu1 %v17951_v10  ;;  %15323 = vmatprep.subr.bf16.mxu0 %v17954_v15 }
 0x9c6   :  { %15364 = vmatprep.subr.bf16.mxu1 %v20574_v40 }
 0x9c8   :  { %15324 = vmatpush2.bf16.msra.mxu0 %v17952_v23 }
 0x9c9   :  { %15365 = vmatpush2.bf16.msra.mxu1 %v17955_v45  ;;  %15325 = vmatprep.subr.bf16.mxu0 %v17958_v56 }
 0x9ca   :  { %15366 = vmatprep.subr.bf16.mxu1 %v20574_v40 }
 0x9cc   :  { %15326 = vmatpush2.bf16.msra.mxu0 %v17956_v36 }
 0x9cd   :  { %15367 = vmatpush2.bf16.msra.mxu1 %v17959_v26  ;;  %15327 = vmatprep.subr.bf16.mxu0 %v17962_v62 }
 0x9ce   :  { %15368 = vmatprep.subr.bf16.mxu1 %v20574_v40 }
 0x9d0   :  { %15328 = vmatpush2.bf16.msra.mxu0 %v17960_v17 }
 0x9d1   :  { %15369 = vmatpush2.bf16.msra.mxu1 %v17963_v29 }
 0x9d3   :  { %15330 = vmatmul.mubr.bf16.vlgmr.msra.gmra.mxu0 %v20350_v48 }
 0x9d4   :  { %15371 = vmatmul.mubr.bf16.vlgmr.msra.gmra.mxu1 %v20350_v48 }
 0x9d5   :  { %18266 = shalt.err (!%p18263_p7)
}
 0x9d6   :  { %15398 = dma.vmem_to_hbm [thread:$0]  %s15396_s20, 256, %s20420_s12, [#allocation4]   ;;  %v18048_v40 = vld [vmem:[#allocation9] sm:$0x1f]  ;;  %v18049_v14 = vld [vmem:[#allocation9 + $0x10] sm:$0x1f] }
 0x9d7   :  { %v14356_v61 = vrot.slane %v18048_v40, %v19842_v39  ;;  %v14364_v48 = vrot.slane %v18049_v14, %v19842_v39  ;;  %v18050_v30 = vld [vmem:[#allocation9 + $0x8] sm:$0x1f]  ;;  %v18051_v38 = vld [vmem:[#allocation9 + $0x18] sm:$0x1f]  ;;  %v18052_v49 = vld [vmem:[#allocation9 + $0x20] sm:$0x1f] }
 0x9d8   :  { %v14360_v16 = vrot.slane %v18050_v30, %v19842_v39  ;;  %v14368_v60 = vrot.slane %v18051_v38, %v19842_v39  ;;  %v14372_v44 = vrot.slane %v18052_v49, %v19842_v39  ;;  %v18053_v53 = vld [vmem:[#allocation9 + $0x30] sm:$0x1f]  ;;  %v18054_v57 = vld [vmem:[#allocation9 + $0x28] sm:$0x1f]  ;;  %v18055_v12 = vld [vmem:[#allocation9 + $0x38] sm:$0x1f] }
 0x9d9   :  { %v14380_v22 = vrot.slane %v18053_v53, %v19842_v39  ;;  %v14376_v42 = vrot.slane %v18054_v57, %v19842_v39  ;;  %v14384_v24 = vrot.slane %v18055_v12, %v19842_v39  ;;  %v18056_v43 = vld [vmem:[#allocation9 + $0x40] sm:$0x1f]  ;;  %v18057_v54 = vld [vmem:[#allocation9 + $0x50] sm:$0x1f]  ;;  %v18058_v21 = vld [vmem:[#allocation9 + $0x48] sm:$0x1f] }
 0x9da   :  { %v14388_v20 = vrot.slane %v18056_v43, %v19842_v39  ;;  %v14396_v8 = vrot.slane %v18057_v54, %v19842_v39  ;;  %v14392_v47 = vrot.slane %v18058_v21, %v19842_v39  ;;  %s18332_s12 = smov [#allocation22]  }
 0x9db   :  { %s15405_s3 = sshll.u32 %s18332_s12, 4  ;;  %s15406_s3 = int_to_ptr.vmem [resolvable:$true] %s15405_s3 }
 0x9dc   :  { %s18275_s21 = scalar_lea.vmem %s15406_s3, 1408  ;;  %p18280_p9 = scmp.lt.s32.totalorder %s15406_s3, %s15406_s3 }
 0x9dd   :  { %p18276_p8 = scmp.ne.s32.totalorder %s15406_s3, %s18275_s21  ;;  %p18281_p10 = scmp.lt.s32.totalorder %s18275_s21, %s18275_s21 }
 0x9df   :  { %p18282_p11 = por %p18281_p10, %p18280_p9 }
 0x9e1   :  { %p18283_p12 = pnand %p18282_p11, %p18276_p8 }
 0xa2b   :  { %v15167_v31 = vpop.f32.mrf.mxu0  ;;  %v15208_v55 = vpop.f32.mrf.mxu1 }
 0xa2c   :  { %v15168_v2 = vadd.f32 %v15167_v31, %v14356_v61  ;;  %v15209_v5 = vadd.f32 %v15208_v55, %v14364_v48 }
 0xa2d   :  { %v15169_v25 = vpop.f32.mrf.mxu0  ;;  %v15210_v32 = vpop.f32.mrf.mxu1 }
 0xa2e   :  { %15378 = vst [vmem:[#allocation22] sm:$0xff] %v15168_v2  ;;  %15380 = vst [vmem:[#allocation22 + $0x10] sm:$0xff] %v15209_v5  ;;  %v15170_v4 = vadd.f32 %v15169_v25, %v14360_v16  ;;  %v15211_v19 = vadd.f32 %v15210_v32, %v14368_v60 }
 0xa2f   :  { %v15171_v6 = vpop.f32.mrf.mxu0  ;;  %v15212_v59 = vpop.f32.mrf.mxu1 }
 0xa30   :  { %15379 = vst [vmem:[#allocation22 + $0x8] sm:$0xff] %v15170_v4  ;;  %15381 = vst [vmem:[#allocation22 + $0x18] sm:$0xff] %v15211_v19 }
 0xa31   :  { %v15172_v63 = vpop.f32.mrf.mxu0  ;;  %v15213_v41 = vpop.f32.mrf.mxu1 }
 0xa5f   :  { %v15249_v33 = vpop.f32.mrf.mxu0  ;;  %v15290_v1 = vpop.f32.mrf.mxu1 }
 0xa60   :  { %v15250_v46 = vadd.f32 %v15249_v33, %v14372_v44  ;;  %v15291_v52 = vadd.f32 %v15290_v1, %v14380_v22 }
 0xa61   :  { %v15251_v58 = vpop.f32.mrf.mxu0  ;;  %v15292_v50 = vpop.f32.mrf.mxu1 }
 0xa62   :  { %15382 = vst [vmem:[#allocation22 + $0x20] sm:$0xff] %v15250_v46  ;;  %15384 = vst [vmem:[#allocation22 + $0x30] sm:$0xff] %v15291_v52  ;;  %v15252_v7 = vadd.f32 %v15251_v58, %v14376_v42  ;;  %v15293_v0 = vadd.f32 %v15292_v50, %v14384_v24 }
 0xa63   :  { %v15253_v11 = vpop.f32.mrf.mxu0  ;;  %v15294_v27 = vpop.f32.mrf.mxu1 }
 0xa64   :  { %15383 = vst [vmem:[#allocation22 + $0x28] sm:$0xff] %v15252_v7  ;;  %15385 = vst [vmem:[#allocation22 + $0x38] sm:$0xff] %v15293_v0 }
 0xa65   :  { %v15254_v51 = vpop.f32.mrf.mxu0  ;;  %v15295_v13 = vpop.f32.mrf.mxu1 }
 0xa93   :  { %v15331_v18 = vpop.f32.mrf.mxu0 }
 0xa94   :  { %v15332_v28 = vadd.f32 %v15331_v18, %v14388_v20  ;;  %v15372_v9 = vpop.f32.mrf.mxu1 }
 0xa95   :  { %v15373_v37 = vadd.f32 %v15372_v9, %v14396_v8  ;;  %v15333_v3 = vpop.f32.mrf.mxu0 }
 0xa96   :  { %15386 = vst [vmem:[#allocation22 + $0x40] sm:$0xff] %v15332_v28  ;;  %v15334_v34 = vadd.f32 %v15333_v3, %v14392_v47  ;;  %v15374_v35 = vpop.f32.mrf.mxu1 }
 0xa97   :  { %15388 = vst.msk [vmem:[#allocation22 + $0x50] sm:$0xff] %vm592_vm0, %v15373_v37  ;;  %v15335_v10 = vpop.f32.mrf.mxu0 }
 0xa98   :  { %15387 = vst [vmem:[#allocation22 + $0x48] sm:$0xff] %v15334_v34  ;;  %v15375_v15 = vpop.f32.mrf.mxu1 }
 0xa99   :  { %v15336_v23 = vpop.f32.mrf.mxu0 }
 0xa9a   :  { %18286 = shalt.err (!%p18283_p12)
}
 0xa9b   :  { %15408 = dma.vmem_to_hbm [thread:$0]  %s15406_s3, 1408, %s20421_s13, [#allocation23]   ;;  %v15376_v39 = vpop.f32.mrf.mxu1 }
 0xa9c   :  { %18309 = dma.done.wait [#allocation4], 256  }
 0xa9d   :  { %18310 = vsyncadd [#allocation4], 4294967040 }
 0xa9e   :  { %18311 = dma.done.wait [#allocation23], 1408  }
 0xa9f   :  { %18312 = vsyncadd [#allocation23], 4294965888 }
 0xaa0   :  { %15415 = vsyncpa [#allocation3], 1 }
 0xaa1   :  { %15416 = vsyncpa [#allocation10], 1 }
 0xaa2   :  { %15417 = vsyncpa [#allocation13], 1 }
 0xaa3   :  { %15418 = vsyncpa [#allocation16], 1 }
 0xaa4   :  { %15419 = vsyncpa [#allocation19], 1 }
 0xaa5   :  { %15420 = vsyncpa [#allocation4], 1 }
 0xaa6   :  { %15421 = vsyncpa [#allocation23], 1 }
 0xaa7   :  { %15422 = vsyncpa [#allocation5], 1 }
 0xaa8   :  { %15423 = vsyncpa [#allocation8], 1 }

</bundles_post_ra>
